<compile_context>
chip_gen: v5e
topology: v5e:2x2
jax: 0.10.0
libtpu: 0.0.40
codegen_flags: <defaults>
</compile_context>

<pallas_src>
import functools

import jax
import jax.numpy as jnp
from jax.experimental import pallas as pl
from jax.experimental.pallas import tpu as pltpu


def _round_up(x, m):
    return ((x + m - 1) // m) * m


@functools.lru_cache(maxsize=1)
def _vmem_limit_bytes():
    """Generation-aware Mosaic scoped-VMEM limit (v5e/v6e: 128 MiB phys, v7x: 64 MiB)."""
    phys = 64 * 1024 * 1024                       # conservative fallback (v7x-sized)
    try:
        info = pltpu.get_tpu_info()
        phys = int(info.vmem_capacity_bytes)
    except Exception:
        pass
    # leave headroom for double-buffered blocks + Mosaic internal scratch
    return max(32 * 1024 * 1024, min(int(phys * 0.7), 96 * 1024 * 1024))


# ============================================================================ Pallas kernels
def _matmul_bias_act_kernel(a_ref, b_ref, bias_ref, o_ref, *acc, negative_slope, nk):
    """C = leaky_relu(A @ B + bias). Grid = (M/tm, N/tn, K/tk); K is the reduction axis."""
    if nk == 1:
        y = jnp.dot(a_ref[...], b_ref[...], preferred_element_type=jnp.float32)
        y = y + bias_ref[...]
        if negative_slope != 1.0:
            y = jnp.where(y >= 0.0, y, y * negative_slope)
        o_ref[...] = y.astype(o_ref.dtype)
    else:
        acc_ref = acc[0]

        @pl.when(pl.program_id(2) == 0)
        def _():
            acc_ref[...] = jnp.zeros_like(acc_ref)

        acc_ref[...] += jnp.dot(a_ref[...], b_ref[...], preferred_element_type=jnp.float32)

        @pl.when(pl.program_id(2) == nk - 1)
        def _():
            y = acc_ref[...] + bias_ref[...]
            if negative_slope != 1.0:
                y = jnp.where(y >= 0.0, y, y * negative_slope)
            o_ref[...] = y.astype(y.dtype if o_ref.dtype == y.dtype else o_ref.dtype)


def matmul_bias_act(a, b, bias, negative_slope=1.0, out_dtype=jnp.float32,
                    tm=2048, tn=256, tk=512):
    """Pallas fused (M,K)@(K,N)+bias with LeakyReLU.  bf16 operands, f32 accumulate.

    N is always padded to a lane-dense multiple of 128 so output stores are unmasked.
    """
    M, K = a.shape
    Kb, N = b.shape
    assert K == Kb and bias.shape == (N,)
    a = a.astype(jnp.bfloat16)
    b = b.astype(jnp.bfloat16)
    limit = _vmem_limit_bytes()

    # K: single full-K block when small (avoids padding activations to 128-multiples).
    if K <= 1024:
        tk_eff = _round_up(K, 8)
        Kp = tk_eff
    else:
        tk_eff = tk
        Kp = _round_up(K, tk_eff)
    if Kp != K:
        a = jnp.pad(a, ((0, 0), (0, Kp - K)))
        b = jnp.pad(b, ((0, Kp - K), (0, 0)))

    # N: lane-dense output tiles (128 / 256).  TODO(synk): prefer 128 on v5e's 4x128 MXU.
    Np = _round_up(N, 128)
    tn_eff = 256 if (tn >= 256 and Np % 256 == 0) else 128
    if Np != N:
        b = jnp.pad(b, ((0, 0), (0, Np - N)))
    bias_p = jnp.pad(bias.astype(jnp.float32), (0, Np - N)).reshape(1, Np)

    # M: large tiles, capped so the f32 accumulator stays inside budget.
    acc_budget = limit // 8
    tm_cap = max(256, (acc_budget // (tn_eff * 4)) // 8 * 8)
    tm_eff = min(tm, tm_cap, _round_up(M, 8))
    Mp = _round_up(M, tm_eff)
    if Mp != M:
        a = jnp.pad(a, ((0, Mp - M), (0, 0)))

    nk = Kp // tk_eff
    grid = (Mp // tm_eff, Np // tn_eff, nk)
    scratch = [] if nk == 1 else [pltpu.VMEM((tm_eff, tn_eff), jnp.float32)]

    out = pl.pallas_call(
        functools.partial(_matmul_bias_act_kernel, negative_slope=negative_slope, nk=nk),
        out_shape=jax.ShapeDtypeStruct((Mp, Np), out_dtype),
        grid_spec=pltpu.PrefetchScalarGridSpec(
            num_scalar_prefetch=0,
            grid=grid,
            in_specs=[
                pl.BlockSpec((tm_eff, tk_eff), lambda i, j, k: (i, k)),
                pl.BlockSpec((tk_eff, tn_eff), lambda i, j, k: (k, j)),
                pl.BlockSpec((1, tn_eff), lambda i, j, k: (0, j)),
            ],
            out_specs=pl.BlockSpec((tm_eff, tn_eff), lambda i, j, k: (i, j)),
            scratch_shapes=scratch,
        ),
        compiler_params=pltpu.CompilerParams(
            dimension_semantics=("parallel", "parallel", "arbitrary"),
            vmem_limit_bytes=limit),
        cost_estimate=pl.CostEstimate(
            flops=int(2 * Mp * Np * Kp), transcendentals=0,
            bytes_accessed=int(Mp * Kp * 2 + Kp * Np * 2 + Mp * Np * 4)),
    )(a, b, bias_p)
    return out[:M, :N]


def _conv3x3_kernel(x_ref, w_ref, b_ref, o_ref, im2col_ref, *acc,
                    TR, W, Wp, tci, negative_slope, nk):
    """Row-tiled 3x3 'SAME' conv, taps K-fused into one MXU dot.

    x_ref      : (1, (TR+3)*Wp, tci)   zero-padded input rows (flattened h_pad,w_pad)
    w_ref      : (1, 9*tci, tco)       rows ordered (tap = ky*3+kx, ci_local)
    im2col_ref : ((TR*Wp), 9*tci) bf16 scratch, tap slabs at 128-aligned lane offsets
    Tap (dy,dx) is the flat-row slice starting at dy*Wp+dx; row bleed only lands in the
    >= W pad columns, which are discarded in the epilogue.
    """
    M = TR * Wp
    for dy in range(3):
        for dx in range(3):
            t = dy * 3 + dx
            off = dy * Wp + dx
            im2col_ref[:, t * tci:(t + 1) * tci] = x_ref[0, off:off + M, :]
    lhs = im2col_ref[...]

    def epilogue(y):
        y = y + b_ref[...]
        if negative_slope != 1.0:
            y = jnp.where(y >= 0.0, y, y * negative_slope)
        y = y.reshape(TR, Wp, -1)[:, :W, :]                     # drop pad columns
        o_ref[0] = y.astype(o_ref.dtype)

    if nk == 1:
        # single reduction step: no scratch-accumulator round-trip
        epilogue(jnp.dot(lhs, w_ref[0], preferred_element_type=jnp.float32))
    else:
        acc_ref = acc[0]

        @pl.when(pl.program_id(2) == 0)
        def _():
            acc_ref[...] = jnp.zeros_like(acc_ref)

        acc_ref[...] += jnp.dot(lhs, w_ref[0], preferred_element_type=jnp.float32)

        @pl.when(pl.program_id(2) == nk - 1)
        def _():
            epilogue(acc_ref[...])


def conv3x3_nhwc(x, w9, bias, negative_slope=0.2, out_dtype=jnp.bfloat16):
    """3x3 'SAME' conv, NHWC in / NHWC out.  No im2col in HBM.

    w9: (9 = ky*3+kx, Cin, Cout)
    """
    N, H, W, Cin = x.shape
    assert w9.shape[0] == 9 and w9.shape[1] == Cin
    Cout = w9.shape[2]
    limit = _vmem_limit_bytes()

    Wp = _round_up(W + 2, 8)
    assert Wp >= W + 2, "dx-shift bleed must land in discarded pad columns"
    Cin_pad = _round_up(Cin, 128)                  # lane-aligned tap slabs in the im2col

    # row tile: largest of {8,16,32,64,128} with TR <= round_up(H,8) and TR*Wp <= ~2048 rows
    Hr = _round_up(H, 8)
    TR = 8
    for cand in (16, 32, 64, 128):
        if cand <= Hr and cand * Wp <= 2048:
            TR = cand
    H_pad = _round_up(H, TR)
    n_tiles = H_pad // TR
    M = TR * Wp

    # Cin reduction tile: full slab when the im2col LHS fits the budget, else halve (x128).
    tci = Cin_pad
    while (M * 9 * tci * 2 > limit // 5) and tci % 256 == 0:
        tci //= 2
    nk = Cin_pad // tci

    # Cout tile (256 on v6e/v7x when the accumulator stays small, else 128, else full).
    if Cout % 256 == 0 and M * 256 * 4 <= limit // 8:
        tco = 256
    elif Cout % 128 == 0:
        tco = 128
    else:
        tco = Cout                                  # full-width block (tiny last layer only)

    # ---- HBM-side layout: one padded pass + overlapping (TR+3)-row slabs ---------------
    xpad = jnp.pad(x.astype(jnp.bfloat16),
                   ((0, 0), (1, H_pad - H + 2), (1, Wp - W - 1), (0, Cin_pad - Cin)))
    assert xpad.shape[1] == H_pad + 3 and xpad.shape[2] == Wp
    slabs = jnp.stack([xpad[:, t * TR:t * TR + TR + 3] for t in range(n_tiles)], axis=1)
    slabs = slabs.reshape(N * n_tiles, (TR + 3) * Wp, Cin_pad)

    # weights -> (nk, 9*tci, Cout), rows ordered (tap, ci_local) to match im2col lanes
    w9 = w9.astype(jnp.bfloat16)
    if Cin_pad != Cin:
        w9 = jnp.pad(w9, ((0, 0), (0, Cin_pad - Cin), (0, 0)))
    wk = w9.reshape(9, nk, tci, Cout).transpose(1, 0, 2, 3).reshape(nk, 9 * tci, Cout)
    bias2 = bias.astype(jnp.float32).reshape(1, Cout)

    grid = (N * n_tiles, Cout // tco, nk)
    scratch = [pltpu.VMEM((M, 9 * tci), jnp.bfloat16)]
    if nk > 1:
        scratch.append(pltpu.VMEM((M, tco), jnp.float32))

    out = pl.pallas_call(
        functools.partial(_conv3x3_kernel, TR=TR, W=W, Wp=Wp, tci=tci,
                          negative_slope=negative_slope, nk=nk),
        out_shape=jax.ShapeDtypeStruct((N * n_tiles, TR, W, Cout), out_dtype),
        grid_spec=pltpu.PrefetchScalarGridSpec(
            num_scalar_prefetch=0,
            grid=grid,
            in_specs=[
                pl.BlockSpec((1, (TR + 3) * Wp, tci), lambda g, j, k: (g, 0, k)),
                pl.BlockSpec((1, 9 * tci, tco), lambda g, j, k: (k, 0, j)),
                pl.BlockSpec((1, tco), lambda g, j, k: (0, j)),
            ],
            out_specs=pl.BlockSpec((1, TR, W, tco), lambda g, j, k: (g, 0, 0, j)),
            scratch_shapes=scratch,
        ),
        compiler_params=pltpu.CompilerParams(
            dimension_semantics=("parallel", "parallel", "arbitrary"),
            vmem_limit_bytes=limit),
        cost_estimate=pl.CostEstimate(
            flops=int(2 * N * H_pad * Wp * 9 * Cin_pad * Cout), transcendentals=0,
            bytes_accessed=int(slabs.size * 2 * (Cout // tco) + wk.size * 2
                               + N * H_pad * W * Cout * 2)),
    )(slabs, wk, bias2)
    return out.reshape(N, H_pad, W, Cout)[:, :H]


def _blend_bcast_kernel(x_ref, y_ref, a_ref, o_ref):
    al = a_ref[...]                                   # (1, 1, ts) -> broadcast over channels
    o_ref[...] = x_ref[...] * al + y_ref[...] * (1.0 - al)


def pallas_blend_bcast(x, y, alpha):
    """out = x*alpha + y*(1-alpha) with alpha broadcast over the channel axis in-kernel.

    x, y: (..., C, H, W);  alpha: (..., 1, H, W)
    """
    orig_shape = x.shape
    C, H, W = x.shape[-3], x.shape[-2], x.shape[-1]
    G = 1
    for d in x.shape[:-3]:
        G *= d
    S = H * W

    xf = x.reshape(G, C, S)
    yf = y.reshape(G, C, S)
    af = alpha.astype(x.dtype).reshape(G, 1, S)

    Sp = _round_up(S, 128)
    if Sp > 32768:
        ts = 16384
        Sp = _round_up(S, ts)
    else:
        ts = Sp
    if Sp != S:
        pad = ((0, 0), (0, 0), (0, Sp - S))
        xf, yf, af = jnp.pad(xf, pad), jnp.pad(yf, pad), jnp.pad(af, pad)

    xspec = pl.BlockSpec((1, C, ts), lambda g, s: (g, 0, s))
    aspec = pl.BlockSpec((1, 1, ts), lambda g, s: (g, 0, s))
    itemsize = jnp.dtype(x.dtype).itemsize
    out = pl.pallas_call(
        _blend_bcast_kernel,
        out_shape=jax.ShapeDtypeStruct((G, C, Sp), x.dtype),
        grid_spec=pltpu.PrefetchScalarGridSpec(
            num_scalar_prefetch=0,
            grid=(G, Sp // ts),
            in_specs=[xspec, xspec, aspec],
            out_specs=xspec,
        ),
        compiler_params=pltpu.CompilerParams(
            dimension_semantics=("parallel", "parallel"),
            vmem_limit_bytes=_vmem_limit_bytes()),
        cost_estimate=pl.CostEstimate(
            flops=int(3 * G * C * Sp), transcendentals=0,
            bytes_accessed=int((3 * C + 1) * G * Sp * itemsize)),
    )(xf, yf, af)
    if Sp != S:
        out = out[:, :, :S]
    return out.reshape(orig_shape)


# ============================================================================ JAX glue ops
def interpolate_bilinear(x, size):
    """F.interpolate(..., mode='bilinear', antialias=True) equivalent (NCHW)."""
    N, C, H, W = x.shape
    if (H, W) == (size[0], size[1]):
        return x
    return jax.image.resize(x, (N, C, size[0], size[1]), method="bilinear", antialias=True)


def grid_sample_bilinear(img, grid):
    """F.grid_sample(img, grid, mode='bilinear', padding_mode='zeros', align_corners=False).

    TODO(synk): stays as an XLA gather; a DMA-driven Pallas gather kernel is the next step.
    """
    N, C, H, W = img.shape
    gx, gy = grid[..., 0], grid[..., 1]
    ix = (gx + 1.0) * W * 0.5 - 0.5
    iy = (gy + 1.0) * H * 0.5 - 0.5
    ix0, iy0 = jnp.floor(ix), jnp.floor(iy)

    def per_image(im, ix, iy, ix0, iy0):
        def tap(iy_, ix_, w):
            valid = ((ix_ >= 0) & (ix_ <= W - 1) & (iy_ >= 0) & (iy_ <= H - 1)).astype(im.dtype)
            ixc = jnp.clip(ix_, 0, W - 1).astype(jnp.int32)
            iyc = jnp.clip(iy_, 0, H - 1).astype(jnp.int32)
            return im[:, iyc, ixc] * (w * valid)[None]

        ix1, iy1 = ix0 + 1, iy0 + 1
        wx1, wy1 = ix - ix0, iy - iy0
        wx0, wy0 = 1.0 - wx1, 1.0 - wy1
        return (tap(iy0, ix0, wy0 * wx0) + tap(iy0, ix1, wy0 * wx1)
                + tap(iy1, ix0, wy1 * wx0) + tap(iy1, ix1, wy1 * wx1))

    return jax.vmap(per_image)(img, ix, iy, ix0, iy0)


# ============================================================================ EncoderTriplane
CONFIG_LISTS = [[64, 128, 1, 1], [128, 256, 2, 1], [256, 512, 2, 2], [512, 512, 2, 4], [512, 32, 1, 8]]


def init_encoder_triplane_params(key):
    params = []
    cin = 33
    for i, (_, c_out, down, _) in enumerate(CONFIG_LISTS):
        kw = jax.random.fold_in(key, i)
        # weights stored pre-laid-out as (9 = ky*3+kx, Cin, Cout), cast to bf16 once at init
        w = jax.random.normal(kw, (9, cin, c_out), jnp.float32) * (0.05 / (9.0 * cin) ** 0.5)
        params.append((w.astype(jnp.bfloat16), jnp.zeros((c_out,), jnp.float32), down))
        cin = c_out
    return params


def encoder_triplane(params, init_input_nhwc):
    """EncoderTriplane.forward: sequential blocks, collect cond outputs, return reversed list.

    Runs entirely channels-last (NHWC, bf16).
    """
    # TODO(synk): EncoderResBlock source is not provided; each block is a stand-in
    #             3x3 conv (Pallas) + LeakyReLU(0.2) + stride-`down` subsample.
    cond_list = []
    x_in = init_input_nhwc
    for (w9, b, down) in params:
        y = conv3x3_nhwc(x_in, w9, b, negative_slope=0.2, out_dtype=jnp.bfloat16)
        if down > 1:
            y = y[:, ::down, ::down, :]
        x_in = y
        cond_list.append(y)
    return cond_list[::-1]


# ============================================================================ main module
class TriPlaneReconstructorNeutralizePallas:
    def __init__(self, key, plane_res=64):
        self.R = plane_res                      # stands in for the original 256 triplane res
        self.bbox_256 = [57, 185, 64, 192]
        self.enc_params = init_encoder_triplane_params(jax.random.fold_in(key, 1))
        kb = jax.random.fold_in(key, 2)
        # TODO(synk): StyleGAN2Backbone_cond (face_backbone) source not provided; stand-in 1x1 conv.
        self.fb_w = (jax.random.normal(kb, (33, 32), jnp.float32) * 0.05).astype(jnp.bfloat16)
        self.fb_b = jnp.zeros((32,), jnp.float32)

    # --- rasterize_sinle_input ------------------------------------------------
    def rasterize_single_input(self, texture_feat_input, uvcoords_image, static_feat_input,
                               bbox_256, res_list):
        uvcoords_image = uvcoords_image.astype(jnp.float32)
        grid = uvcoords_image[..., :2]
        alpha_image = jnp.transpose(uvcoords_image[..., 2:], (0, 3, 1, 2))
        # TODO(synk): fill_mouth() source not provided; stand-in keeps alpha and an empty mouth mask.
        full_alpha_image = alpha_image
        mouth_masks = jnp.zeros_like(alpha_image)
        cut = int(round(87 * self.R / 256.0))
        upper_mouth_mask = mouth_masks.at[:, :, :cut].set(0.0)
        upper_mouth_alpha_image = jnp.clip(alpha_image + upper_mouth_mask, 0.0, 1.0)

        res = texture_feat_input.shape[2]
        bbox = [int(round(i * res / 256)) for i in bbox_256]

        rendering_image = grid_sample_bilinear(texture_feat_input, grid)
        rendering_feat = interpolate_bilinear(rendering_image, (res, res))
        alpha_image_ = interpolate_bilinear(alpha_image, (res, res))
        static_feat = interpolate_bilinear(
            static_feat_input[:, :, bbox[0]:bbox[1], bbox[2]:bbox[3]], (res, res))

        # hot path: alpha blend in Pallas with in-kernel channel broadcast of alpha
        rendering_img_nomask = pallas_blend_bcast(rendering_feat, static_feat, alpha_image_)

        # de-duplicated antialiased resizes of the upper-mouth alpha
        needed = sorted(set(list(res_list) + [res]))
        upper_resized = {r: interpolate_bilinear(upper_mouth_alpha_image, (r, r)) for r in needed}

        rendering_image = jnp.concatenate([rendering_img_nomask, upper_resized[res]], axis=1)
        condition_mask_list = [upper_resized[r] for r in res_list]
        return rendering_image, full_alpha_image, rendering_img_nomask, condition_mask_list

    # --- get_triplane -----------------------------------------------------------
    def get_triplane(self, ws, triplane, mesh_condition):
        b = triplane.shape[0]
        ws = jnp.tile(ws, (b, 1, 1))
        static_plane = triplane[:, 1:]                    # (b, 3, 32, R, R)
        static_plane_face = static_plane[:, 0]            # (b, 32, R, R)
        texture_feat = triplane[:, 0]                     # (b, 32, R, R)
        R = self.R
        res_list = [R // 8, R // 8, R // 4, R // 2, R]    # scaled from [32,32,64,128,256] @ 256

        rendering_image, full_alpha_image, _, mask_images = self.rasterize_single_input(
            texture_feat, mesh_condition, static_plane_face, self.bbox_256, res_list)

        # single NCHW -> NHWC boundary conversion for the whole encoder path
        rendering_image_nhwc = jnp.transpose(rendering_image, (0, 2, 3, 1)).astype(jnp.bfloat16)

        rendering_images_no_masks = encoder_triplane(self.enc_params, rendering_image_nhwc)
        rendering_images = []
        for i, r in enumerate(rendering_images_no_masks):
            m = jnp.transpose(mask_images[i], (0, 2, 3, 1)).astype(r.dtype)
            rendering_images.append(jnp.concatenate([r, m], axis=-1))
        rendering_images.append(rendering_image_nhwc)

        # TODO(synk): face_backbone.synthesis (StyleGAN2) not provided; Pallas 1x1-conv stand-in.
        bN, hR, wR, cC = rendering_image_nhwc.shape
        flat = rendering_image_nhwc.reshape(bN * hR * wR, cC)
        stitched = matmul_bias_act(flat, self.fb_w, self.fb_b,
                                   negative_slope=1.0, out_dtype=jnp.float32, tm=4096)
        rendering_stitch = jnp.transpose(stitched.reshape(bN, hR, wR, 32), (0, 3, 1, 2))

        bb = [int(round(i * R / 256)) for i in self.bbox_256]
        half = (bb[1] - bb[0], bb[3] - bb[2])
        rendering_stitch_ = jnp.zeros_like(rendering_stitch)
        full_alpha_image_ = jnp.zeros_like(full_alpha_image)
        rendering_stitch_ = rendering_stitch_.at[:, :, bb[0]:bb[1], bb[2]:bb[3]].set(
            interpolate_bilinear(rendering_stitch, half))
        full_alpha_image_ = full_alpha_image_.at[:, :, bb[0]:bb[1], bb[2]:bb[3]].set(
            interpolate_bilinear(full_alpha_image, half))
        full_alpha_image, rendering_stitch = full_alpha_image_, rendering_stitch_

        # Planes 1-2 have zero stitch and zero alpha, so blending them with static_plane is
        # the identity.  Blend only plane 0 in Pallas (alpha broadcast over 32 channels
        # inside the kernel) and alias the other two planes -> ~3x less HBM traffic and no
        # HBM materialisation of zero tensors.
        blended_plane0 = pallas_blend_bcast(rendering_stitch, static_plane[:, 0],
                                            full_alpha_image)                    # (b, 32, R, R)
        blended_planes = jnp.concatenate([blended_plane0[:, None], static_plane[:, 1:]], axis=1)
        return blended_planes                                                     # (b, 3, 32, R, R)

    # --- synthesis / forward ----------------------------------------------------
    def synthesis(self, imgs_app, imgs_mot, motions_app, motions, c, mesh,
                  latent_recon, triplane_recon, ws_avg,
                  neural_rendering_resolution=None, motion_scale=1.0):
        triplane_recon_input = self.get_triplane(ws_avg, triplane_recon, mesh)
        cam2world_matrix = c[:, :16].reshape(-1, 4, 4)
        intrinsics = c[:, 16:25].reshape(-1, 3, 3)

        # TODO(synk): RaySampler_zxc, EncoderGlobal, EncoderDetail, TriEncoder, EncoderCanonical,
        #             DecoderTriplane, ImportanceRenderer_bsMotion, OSGDecoder and the
        #             super-resolution module are not provided in the reference source, so the
        #             neural-rendering / SR stages are not implemented here.
        cano_tri_ref = jnp.transpose(triplane_recon_input, (0, 2, 1, 3, 4))     # b f c h w -> b c f h w
        b_, f_, c_, h_, w_ = triplane_recon_input.shape
        triplane_recon_ref = triplane_recon_input.reshape(b_, f_ * c_, h_, w_)  # b f c h w -> b (f c) h w

        return {
            "triplane": triplane_recon_input,
            "triplane_ref_flat": triplane_recon_ref,
            "cano_tri_ref": cano_tri_ref,
            "cam2world": cam2world_matrix,
            "intrinsics": intrinsics,
        }

    def forward(self, imgs_app, imgs_mot, motions_app, motions, c, mesh, triplane_recon,
                ws_avg, neural_rendering_resolution=None, motion_scale=1.0):
        return self.synthesis(imgs_app, imgs_mot, motions_app, motions, c, mesh,
                              triplane_recon, triplane_recon, ws_avg,
                              neural_rendering_resolution, motion_scale)


# ============================================================================ self tests
def _self_test():
    key = jax.random.PRNGKey(42)
    k1, k2, k3, k4, k5, k6 = jax.random.split(key, 6)

    # conv3x3 vs lax.conv_general_dilated (bf16-quantised inputs, f32 reference)
    x = jax.random.normal(k1, (1, 16, 16, 12), jnp.float32)
    x = x.astype(jnp.bfloat16).astype(jnp.float32)
    w9 = (jax.random.normal(k2, (9, 12, 24), jnp.float32) * 0.1).astype(jnp.bfloat16)
    bias = jax.random.normal(k3, (24,), jnp.float32) * 0.1
    got = conv3x3_nhwc(x, w9, bias, negative_slope=0.2, out_dtype=jnp.float32)
    w_hwio = w9.astype(jnp.float32).reshape(3, 3, 12, 24)
    ref = jax.lax.conv_general_dilated(
        x, w_hwio, window_strides=(1, 1), padding="SAME",
        dimension_numbers=("NHWC", "HWIO", "NHWC")) + bias
    ref = jnp.where(ref >= 0.0, ref, ref * 0.2)
    assert float(jnp.max(jnp.abs(got - ref))) < 3e-2, "conv3x3 mismatch"

    # fused matmul + bias + leaky-relu
    a = jax.random.normal(k4, (100, 33), jnp.float32)
    bm = jax.random.normal(k5, (33, 20), jnp.float32) * 0.1
    bb = jax.random.normal(k6, (20,), jnp.float32) * 0.1
    got = matmul_bias_act(a, bm, bb, negative_slope=0.2, out_dtype=jnp.float32)
    ref = (a.astype(jnp.bfloat16).astype(jnp.float32)
           @ bm.astype(jnp.bfloat16).astype(jnp.float32)) + bb
    ref = jnp.where(ref >= 0.0, ref, ref * 0.2)
    assert float(jnp.max(jnp.abs(got - ref))) < 3e-2, "matmul mismatch"

    # broadcast blend
    xx = jax.random.normal(k1, (2, 3, 4, 8, 8), jnp.float32)
    yy = jax.random.normal(k2, (2, 3, 4, 8, 8), jnp.float32)
    al = jax.nn.sigmoid(jax.random.normal(k3, (2, 3, 1, 8, 8), jnp.float32))
    got = pallas_blend_bcast(xx, yy, al)
    ref = xx * al + yy * (1.0 - al)
    assert float(jnp.max(jnp.abs(got - ref))) < 1e-5, "blend mismatch"


# ============================================================================ demo
if __name__ == "__main__":
    _self_test()

    key = jax.random.PRNGKey(0)
    R = 64          # small stand-in for the 256-res triplane
    b = 1

    model = TriPlaneReconstructorNeutralizePallas(jax.random.fold_in(key, 100), plane_res=R)

    k_tri, k_uv, k_al, k_c, k_ws, k_app, k_mot, k_ma, k_m = jax.random.split(key, 9)
    triplane_recon = jax.random.normal(k_tri, (b, 4, 32, R, R), jnp.float32) * 0.1
    uv = jax.random.uniform(k_uv, (b, R, R, 2), minval=-1.0, maxval=1.0)
    alpha = jax.nn.sigmoid(jax.random.normal(k_al, (b, R, R, 1)) * 2.0)
    mesh = jnp.concatenate([uv, alpha], axis=-1)                     # uvcoords_image [B, H, W, 3]
    c = jax.random.normal(k_c, (b, 25), jnp.float32)
    ws_avg = jax.random.normal(k_ws, (1, 14, 512), jnp.float32) * 0.1
    imgs_app = jax.random.normal(k_app, (b, 3, 32, 32), jnp.float32)
    imgs_mot = jax.random.normal(k_mot, (b, 3, 32, 32), jnp.float32)
    motions_app = jax.random.normal(k_ma, (b, 512), jnp.float32)
    motions = jax.random.normal(k_m, (b, 512), jnp.float32)

    fwd = jax.jit(model.forward)
    out = fwd(imgs_app, imgs_mot, motions_app, motions, c, mesh, triplane_recon, ws_avg)
    out = jax.block_until_ready(out)

    assert out["triplane"].shape == (b, 3, 32, R, R)
    assert out["cano_tri_ref"].shape == (b, 32, 3, R, R)
    assert out["triplane_ref_flat"].shape == (b, 3 * 32, R, R)
    assert out["cam2world"].shape == (b, 4, 4) and out["intrinsics"].shape == (b, 3, 3)
    print("KERNEL_OK")
</pallas_src>

<mosaic_0001>
module attributes {stable_mosaic.version = 11 : i64} {
  func.func @_conv3x3_kernel(%arg0: i32, %arg1: i32, %arg2: i32, %arg3: memref<1x456x128xbf16, #tpu.memory_space<vmem>>, %arg4: memref<1x1152x24xbf16, #tpu.memory_space<vmem>>, %arg5: memref<1x24xf32, #tpu.memory_space<vmem>>, %arg6: memref<1x16x16x24xf32, #tpu.memory_space<vmem>>, %arg7: memref<384x1152xbf16, #tpu.memory_space<vmem>>) attributes {dimension_semantics = [#tpu.dimension_semantics<parallel>, #tpu.dimension_semantics<parallel>, #tpu.dimension_semantics<arbitrary>], iteration_bounds = array<i64: 1, 1, 1>, scalar_prefetch = 0 : i64, scratch_operands = 1 : i64, tpu.core_type = #tpu.core_type<tc>, window_params = [{transform_indices = @transform_0, window_bounds = array<i64: 1, 456, 128>}, {transform_indices = @transform_1, window_bounds = array<i64: 1, 1152, 24>}, {transform_indices = @transform_2, window_bounds = array<i64: 1, 24>}, {transform_indices = @transform_3, window_bounds = array<i64: 1, 16, 16, 24>}]} {
    %c0 = arith.constant 0 : index
    %c0_0 = arith.constant 0 : index
    %c0_1 = arith.constant 0 : index
    %0 = vector.load %arg3[%c0, %c0_0, %c0_1] : memref<1x456x128xbf16, #tpu.memory_space<vmem>>, vector<1x384x128xbf16>
    %1 = vector.shape_cast %0 : vector<1x384x128xbf16> to vector<384x128xbf16>
    %c0_2 = arith.constant 0 : index
    %c0_3 = arith.constant 0 : index
    %2 = vector.load %arg7[%c0_2, %c0_3] : memref<384x1152xbf16, #tpu.memory_space<vmem>>, vector<384x128xbf16>
    tpu.vector_store %arg7[%c0_2, %c0_3], %1 {strides = array<i32>} : memref<384x1152xbf16, #tpu.memory_space<vmem>>, vector<384x128xbf16>,
    %c0_4 = arith.constant 0 : index
    %c1 = arith.constant 1 : index
    %c0_5 = arith.constant 0 : index
    %3 = vector.load %arg3[%c0_4, %c1, %c0_5] : memref<1x456x128xbf16, #tpu.memory_space<vmem>>, vector<1x384x128xbf16>
    %4 = vector.shape_cast %3 : vector<1x384x128xbf16> to vector<384x128xbf16>
    %c0_6 = arith.constant 0 : index
    %c128 = arith.constant 128 : index
    %5 = vector.load %arg7[%c0_6, %c128] : memref<384x1152xbf16, #tpu.memory_space<vmem>>, vector<384x128xbf16>
    tpu.vector_store %arg7[%c0_6, %c128], %4 {strides = array<i32>} : memref<384x1152xbf16, #tpu.memory_space<vmem>>, vector<384x128xbf16>,
    %c0_7 = arith.constant 0 : index
    %c2 = arith.constant 2 : index
    %c0_8 = arith.constant 0 : index
    %6 = vector.load %arg3[%c0_7, %c2, %c0_8] : memref<1x456x128xbf16, #tpu.memory_space<vmem>>, vector<1x384x128xbf16>
    %7 = vector.shape_cast %6 : vector<1x384x128xbf16> to vector<384x128xbf16>
    %c0_9 = arith.constant 0 : index
    %c256 = arith.constant 256 : index
    %8 = vector.load %arg7[%c0_9, %c256] : memref<384x1152xbf16, #tpu.memory_space<vmem>>, vector<384x128xbf16>
    tpu.vector_store %arg7[%c0_9, %c256], %7 {strides = array<i32>} : memref<384x1152xbf16, #tpu.memory_space<vmem>>, vector<384x128xbf16>,
    %c0_10 = arith.constant 0 : index
    %c24 = arith.constant 24 : index
    %c0_11 = arith.constant 0 : index
    %9 = vector.load %arg3[%c0_10, %c24, %c0_11] : memref<1x456x128xbf16, #tpu.memory_space<vmem>>, vector<1x384x128xbf16>
    %10 = vector.shape_cast %9 : vector<1x384x128xbf16> to vector<384x128xbf16>
    %c0_12 = arith.constant 0 : index
    %c384 = arith.constant 384 : index
    %11 = vector.load %arg7[%c0_12, %c384] : memref<384x1152xbf16, #tpu.memory_space<vmem>>, vector<384x128xbf16>
    tpu.vector_store %arg7[%c0_12, %c384], %10 {strides = array<i32>} : memref<384x1152xbf16, #tpu.memory_space<vmem>>, vector<384x128xbf16>,
    %c0_13 = arith.constant 0 : index
    %c25 = arith.constant 25 : index
    %c0_14 = arith.constant 0 : index
    %12 = vector.load %arg3[%c0_13, %c25, %c0_14] : memref<1x456x128xbf16, #tpu.memory_space<vmem>>, vector<1x384x128xbf16>
    %13 = vector.shape_cast %12 : vector<1x384x128xbf16> to vector<384x128xbf16>
    %c0_15 = arith.constant 0 : index
    %c512 = arith.constant 512 : index
    %14 = vector.load %arg7[%c0_15, %c512] : memref<384x1152xbf16, #tpu.memory_space<vmem>>, vector<384x128xbf16>
    tpu.vector_store %arg7[%c0_15, %c512], %13 {strides = array<i32>} : memref<384x1152xbf16, #tpu.memory_space<vmem>>, vector<384x128xbf16>,
    %c0_16 = arith.constant 0 : index
    %c26 = arith.constant 26 : index
    %c0_17 = arith.constant 0 : index
    %15 = vector.load %arg3[%c0_16, %c26, %c0_17] : memref<1x456x128xbf16, #tpu.memory_space<vmem>>, vector<1x384x128xbf16>
    %16 = vector.shape_cast %15 : vector<1x384x128xbf16> to vector<384x128xbf16>
    %c0_18 = arith.constant 0 : index
    %c640 = arith.constant 640 : index
    %17 = vector.load %arg7[%c0_18, %c640] : memref<384x1152xbf16, #tpu.memory_space<vmem>>, vector<384x128xbf16>
    tpu.vector_store %arg7[%c0_18, %c640], %16 {strides = array<i32>} : memref<384x1152xbf16, #tpu.memory_space<vmem>>, vector<384x128xbf16>,
    %c0_19 = arith.constant 0 : index
    %c48 = arith.constant 48 : index
    %c0_20 = arith.constant 0 : index
    %18 = vector.load %arg3[%c0_19, %c48, %c0_20] : memref<1x456x128xbf16, #tpu.memory_space<vmem>>, vector<1x384x128xbf16>
    %19 = vector.shape_cast %18 : vector<1x384x128xbf16> to vector<384x128xbf16>
    %c0_21 = arith.constant 0 : index
    %c768 = arith.constant 768 : index
    %20 = vector.load %arg7[%c0_21, %c768] : memref<384x1152xbf16, #tpu.memory_space<vmem>>, vector<384x128xbf16>
    tpu.vector_store %arg7[%c0_21, %c768], %19 {strides = array<i32>} : memref<384x1152xbf16, #tpu.memory_space<vmem>>, vector<384x128xbf16>,
    %c0_22 = arith.constant 0 : index
    %c49 = arith.constant 49 : index
    %c0_23 = arith.constant 0 : index
    %21 = vector.load %arg3[%c0_22, %c49, %c0_23] : memref<1x456x128xbf16, #tpu.memory_space<vmem>>, vector<1x384x128xbf16>
    %22 = vector.shape_cast %21 : vector<1x384x128xbf16> to vector<384x128xbf16>
    %c0_24 = arith.constant 0 : index
    %c896 = arith.constant 896 : index
    %23 = vector.load %arg7[%c0_24, %c896] : memref<384x1152xbf16, #tpu.memory_space<vmem>>, vector<384x128xbf16>
    tpu.vector_store %arg7[%c0_24, %c896], %22 {strides = array<i32>} : memref<384x1152xbf16, #tpu.memory_space<vmem>>, vector<384x128xbf16>,
    %c0_25 = arith.constant 0 : index
    %c50 = arith.constant 50 : index
    %c0_26 = arith.constant 0 : index
    %24 = vector.load %arg3[%c0_25, %c50, %c0_26] : memref<1x456x128xbf16, #tpu.memory_space<vmem>>, vector<1x384x128xbf16>
    %25 = vector.shape_cast %24 : vector<1x384x128xbf16> to vector<384x128xbf16>
    %c0_27 = arith.constant 0 : index
    %c1024 = arith.constant 1024 : index
    %26 = vector.load %arg7[%c0_27, %c1024] : memref<384x1152xbf16, #tpu.memory_space<vmem>>, vector<384x128xbf16>
    tpu.vector_store %arg7[%c0_27, %c1024], %25 {strides = array<i32>} : memref<384x1152xbf16, #tpu.memory_space<vmem>>, vector<384x128xbf16>,
    %c0_28 = arith.constant 0 : index
    %c0_29 = arith.constant 0 : index
    %27 = vector.load %arg7[%c0_28, %c0_29] : memref<384x1152xbf16, #tpu.memory_space<vmem>>, vector<384x1152xbf16>
    %c0_30 = arith.constant 0 : index
    %c0_31 = arith.constant 0 : index
    %c0_32 = arith.constant 0 : index
    %28 = vector.load %arg4[%c0_30, %c0_31, %c0_32] : memref<1x1152x24xbf16, #tpu.memory_space<vmem>>, vector<1x1152x24xbf16>
    %29 = vector.shape_cast %28 : vector<1x1152x24xbf16> to vector<1152x24xbf16>
    %cst = arith.constant dense<0.000000e+00> : vector<384x24xf32>
    %30 = tpu.matmul %27, %29, %cst {dimension_numbers = #tpu.dot_dimension_numbers<[1], [0], [0], [1], [0, 0, 1, 1], [], []>} : vector<384x1152xbf16>, vector<1152x24xbf16>, vector<384x24xf32> -> vector<384x24xf32>
    %c0_33 = arith.constant 0 : index
    %c0_34 = arith.constant 0 : index
    %31 = vector.load %arg5[%c0_33, %c0_34] : memref<1x24xf32, #tpu.memory_space<vmem>>, vector<1x24xf32>
    %32 = vector.broadcast %31 : vector<1x24xf32> to vector<384x24xf32>
    %33 = arith.addf %30, %32 : vector<384x24xf32>
    %cst_35 = arith.constant 0.000000e+00 : f32
    %34 = vector.broadcast %cst_35 : f32 to vector<384x24xf32>
    %35 = arith.cmpf oge, %33, %34 : vector<384x24xf32>
    %cst_36 = arith.constant 2.000000e-01 : f32
    %36 = vector.broadcast %cst_36 : f32 to vector<384x24xf32>
    %37 = arith.mulf %33, %36 : vector<384x24xf32>
    %38 = arith.select %35, %33, %37 : vector<384x24xi1>, vector<384x24xf32>
    %39 = vector.shape_cast %38 : vector<384x24xf32> to vector<16x24x24xf32>
    %40 = vector.extract_strided_slice %39 {offsets = [0, 0, 0], sizes = [16, 16, 24], strides = [1, 1, 1]} : vector<16x24x24xf32> to vector<16x16x24xf32>
    %c0_37 = arith.constant 0 : index
    %c0_38 = arith.constant 0 : index
    %c0_39 = arith.constant 0 : index
    %c0_40 = arith.constant 0 : index
    %41 = vector.load %arg6[%c0_37, %c0_38, %c0_39, %c0_40] : memref<1x16x16x24xf32, #tpu.memory_space<vmem>>, vector<1x16x16x24xf32>
    %42 = vector.shape_cast %41 : vector<1x16x16x24xf32> to vector<16x16x24xf32>
    %43 = vector.shape_cast %40 : vector<16x16x24xf32> to vector<1x16x16x24xf32>
    tpu.vector_store %arg6[%c0_37, %c0_38, %c0_39, %c0_40], %43 {strides = array<i32>} : memref<1x16x16x24xf32, #tpu.memory_space<vmem>>, vector<1x16x16x24xf32>,
    return
  }
  func.func @transform_0(%arg0: i32, %arg1: i32, %arg2: i32) -> (i32, i32, i32) {
    %c0_i32 = arith.constant 0 : i32
    %c0_i32_0 = arith.constant 0 : i32
    return %arg0, %c0_i32, %arg2 : i32, i32, i32
  }
  func.func @transform_1(%arg0: i32, %arg1: i32, %arg2: i32) -> (i32, i32, i32) {
    %c0_i32 = arith.constant 0 : i32
    %c0_i32_0 = arith.constant 0 : i32
    return %arg2, %c0_i32, %arg1 : i32, i32, i32
  }
  func.func @transform_2(%arg0: i32, %arg1: i32, %arg2: i32) -> (i32, i32) {
    %c0_i32 = arith.constant 0 : i32
    %c0_i32_0 = arith.constant 0 : i32
    return %c0_i32, %arg1 : i32, i32
  }
  func.func @transform_3(%arg0: i32, %arg1: i32, %arg2: i32) -> (i32, i32, i32, i32) {
    %c0_i32 = arith.constant 0 : i32
    %c0_i32_0 = arith.constant 0 : i32
    %c0_i32_1 = arith.constant 0 : i32
    return %arg0, %c0_i32, %c0_i32_0, %arg1 : i32, i32, i32, i32
  }
}

</mosaic_0001>

<bundles_post_ra>
// kernel: tpu_custom_call.1
= control target key start
LH: loop header
LB: loop body
LE: loop exit
PB: predicated region body
PF: predicated region fallthrough
CT: control target
= control target key end

     0   :  { %s11120_s0 = inlined_call_operand.vmem [shape: bf16[1,456,128], index: 0, kind: input, shape index: {}]   ;;  %s11121_s1 = inlined_call_operand.vmem [shape: bf16[1,1152,24], index: 1, kind: input, shape index: {}]   ;;  %s11122_s2 = inlined_call_operand.vmem [shape: f32[1,24], index: 2, kind: input, shape index: {}]   ;;  %s11123_s3 = inlined_call_operand.hbm [shape: f32[1,16,16,24], index: 3, kind: output, shape index: {}]  }
   0x1   :  { %v7679_v0 = vld [vmem:[%s11121_s1 + $0x38] sm:$0xff]  ;;  %v7678_v1 = vld [vmem:[%s11121_s1 + $0x30] sm:$0xff]  ;;  %v39_v4 = vld [vmem:[%s11120_s0 + $0x60] sm:$0xf] }
   0x2   :  { %7744 = vmatpush.bf16.msra.mxu1 %v7679_v0  ;;  %7745 = vmatpush.bf16.msra.mxu2 %v7679_v0  ;;  %v27_v2 = vld [vmem:[%s11120_s0 + $0x30] sm:$0xf]  ;;  %v28_v3 = vld [vmem:[%s11120_s0 + $0x34] sm:$0xf]  ;;  %v40_v5 = vld [vmem:[%s11120_s0 + $0x64] sm:$0xf] }
   0x3   :  { %7746 = vmatpush.bf16.msra.mxu3 %v7679_v0  ;;  %5137 = vmatpush.bf16.msra.mxu0 %v7679_v0  ;;  %75 = vst [vmem:[#allocation2 + $0x1b0] sm:$0xf] %v27_v2  ;;  %v51_v6 = vld [vmem:[%s11120_s0 + $0x90] sm:$0xf]  ;;  %v52_v7 = vld [vmem:[%s11120_s0 + $0x94] sm:$0xf] }
   0x4   :  { %76 = vst [vmem:[#allocation2 + $0x1d4] sm:$0xf] %v28_v3  ;;  %v7677_v8 = vld [vmem:[%s11121_s1 + $0x28] sm:$0xff]  ;;  %v15_v9 = vld [vmem:[%s11120_s0] sm:$0xf]  ;;  %v7675_v18 = vld [vmem:[%s11121_s1 + $0x18] sm:$0xff] }
   0x5   :  { %87 = vst [vmem:[#allocation2 + $0x360] sm:$0xf] %v39_v4  ;;  %v16_v10 = vld [vmem:[%s11120_s0 + $0x4] sm:$0xf]  ;;  %v29_v11 = vld [vmem:[%s11120_s0 + $0x38] sm:$0xf] }
   0x6   :  { %7747 = vmatpush.bf16.msra.mxu1 %v7678_v1  ;;  %7748 = vmatpush.bf16.msra.mxu2 %v7678_v1  ;;  %88 = vst [vmem:[#allocation2 + $0x384] sm:$0xf] %v40_v5  ;;  %v30_v12 = vld [vmem:[%s11120_s0 + $0x3c] sm:$0xf]  ;;  %v7676_v13 = vld [vmem:[%s11121_s1 + $0x20] sm:$0xff] }
   0x7   :  { %7749 = vmatpush.bf16.msra.mxu3 %v7678_v1  ;;  %5138 = vmatpush.bf16.msra.mxu0 %v7678_v1  ;;  %99 = vst [vmem:[#allocation2 + $0x510] sm:$0xf] %v51_v6  ;;  %v41_v14 = vld [vmem:[%s11120_s0 + $0x68] sm:$0xf]  ;;  %v42_v15 = vld [vmem:[%s11120_s0 + $0x6c] sm:$0xf] }
   0x8   :  { %100 = vst [vmem:[#allocation2 + $0x534] sm:$0xf] %v52_v7  ;;  %v53_v16 = vld [vmem:[%s11120_s0 + $0x98] sm:$0xf]  ;;  %v54_v17 = vld [vmem:[%s11120_s0 + $0x9c] sm:$0xf] }
   0x9   :  { %63 = vst [vmem:[#allocation2] sm:$0xf] %v15_v9  ;;  %v17_v19 = vld [vmem:[%s11120_s0 + $0x8] sm:$0xf]  ;;  %v18_v20 = vld [vmem:[%s11120_s0 + $0xc] sm:$0xf] }
   0xa   :  { %7750 = vmatpush.bf16.msra.mxu1 %v7677_v8  ;;  %7751 = vmatpush.bf16.msra.mxu2 %v7677_v8  ;;  %64 = vst [vmem:[#allocation2 + $0x24] sm:$0xf] %v16_v10 }
   0xb   :  { %7752 = vmatpush.bf16.msra.mxu3 %v7677_v8  ;;  %5139 = vmatpush.bf16.msra.mxu0 %v7677_v8  ;;  %77 = vst [vmem:[#allocation2 + $0x1f8] sm:$0xf] %v29_v11 }
   0xc   :  { %78 = vst [vmem:[#allocation2 + $0x21c] sm:$0xf] %v30_v12 }
   0xd   :  { %89 = vst [vmem:[#allocation2 + $0x3a8] sm:$0xf] %v41_v14 }
   0xe   :  { %7753 = vmatpush.bf16.msra.mxu1 %v7676_v13  ;;  %7754 = vmatpush.bf16.msra.mxu2 %v7676_v13  ;;  %90 = vst [vmem:[#allocation2 + $0x3cc] sm:$0xf] %v42_v15 }
   0xf   :  { %7755 = vmatpush.bf16.msra.mxu3 %v7676_v13  ;;  %5140 = vmatpush.bf16.msra.mxu0 %v7676_v13  ;;  %101 = vst [vmem:[#allocation2 + $0x558] sm:$0xf] %v53_v16 }
  0x10   :  { %102 = vst [vmem:[#allocation2 + $0x57c] sm:$0xf] %v54_v17 }
  0x11   :  { %8 = vsyncpa [#allocation4], 0  ;;  %65 = vst [vmem:[#allocation2 + $0x48] sm:$0xf] %v17_v19  ;;  %v7674_v21 = vld [vmem:[%s11121_s1 + $0x10] sm:$0xff]  ;;  %v7673_v24 = vld [vmem:[%s11121_s1 + $0x8] sm:$0xff] }
  0x12   :  { %7756 = vmatpush.bf16.msra.mxu1 %v7675_v18  ;;  %7757 = vmatpush.bf16.msra.mxu2 %v7675_v18  ;;  %66 = vst [vmem:[#allocation2 + $0x6c] sm:$0xf] %v18_v20  ;;  %v31_v22 = vld [vmem:[%s11120_s0 + $0x40] sm:$0xf]  ;;  %v32_v23 = vld [vmem:[%s11120_s0 + $0x44] sm:$0xf] }
  0x13   :  { %7758 = vmatpush.bf16.msra.mxu3 %v7675_v18  ;;  %5141 = vmatpush.bf16.msra.mxu0 %v7675_v18  ;;  %79 = vst [vmem:[#allocation2 + $0x240] sm:$0xf] %v31_v22  ;;  %v43_v25 = vld [vmem:[%s11120_s0 + $0x70] sm:$0xf]  ;;  %v44_v26 = vld [vmem:[%s11120_s0 + $0x74] sm:$0xf] }
  0x14   :  { %80 = vst [vmem:[#allocation2 + $0x264] sm:$0xf] %v32_v23  ;;  %v7672_v27 = vld [vmem:[%s11121_s1] sm:$0xff]  ;;  %v6522_v28 = vld [vmem:[#allocation2 + $0x1b0] sm:$0xf]  ;;  %v7695_v40 = vld [vmem:[%s11121_s1 + $0xb8] sm:$0xff] }
  0x15   :  { %v7514_v29 = vld [vmem:[#allocation2 + $0x1d0] sm:$0xf0]  ;;  %v6738_v30 = vld [vmem:[#allocation2 + $0x360] sm:$0xf]  ;;  %v7568_v31 = vld [vmem:[#allocation2 + $0x380] sm:$0xf0] }
  0x16   :  { %7759 = vmatpush.bf16.msra.mxu1 %v7674_v21  ;;  %7760 = vmatpush.bf16.msra.mxu2 %v7674_v21  ;;  %91 = vst [vmem:[#allocation2 + $0x3f0] sm:$0xf] %v43_v25  ;;  %v55_v32 = vld [vmem:[%s11120_s0 + $0xa0] sm:$0xf]  ;;  %v6954_v33 = vld [vmem:[#allocation2 + $0x510] sm:$0xf]  ;;  %v6523_v42 = vor.u32 %v7514_v29, %v6522_v28  ;;  %v6739_v43 = vor.u32 %v7568_v31, %v6738_v30 }
  0x17   :  { %7761 = vmatpush.bf16.msra.mxu3 %v7674_v21  ;;  %5142 = vmatpush.bf16.msra.mxu0 %v7674_v21  ;;  %v7622_v34 = vld [vmem:[#allocation2 + $0x530] sm:$0xf0]  ;;  %92 = vst [vmem:[#allocation2 + $0x414] sm:$0xf] %v44_v26  ;;  %v56_v35 = vld [vmem:[%s11120_s0 + $0xa4] sm:$0xf] }
  0x18   :  { %103 = vst [vmem:[#allocation2 + $0x5a0] sm:$0xf] %v55_v32  ;;  %v19_v36 = vld [vmem:[%s11120_s0 + $0x10] sm:$0xf]  ;;  %v20_v37 = vld [vmem:[%s11120_s0 + $0x14] sm:$0xf]  ;;  %v6955_v44 = vor.u32 %v7622_v34, %v6954_v33 }
  0x19   :  { %v6306_v38 = vld [vmem:[#allocation2] sm:$0xf]  ;;  %v7460_v39 = vld [vmem:[#allocation2 + $0x20] sm:$0xf0]  ;;  %104 = vst [vmem:[#allocation2 + $0x5c4] sm:$0xf] %v56_v35 }
  0x1a   :  { %7762 = vmatpush.bf16.msra.mxu1 %v7673_v24  ;;  %7763 = vmatpush.bf16.msra.mxu2 %v7673_v24  ;;  %v7703_v41 = vld [vmem:[%s11121_s1 + $0xf8] sm:$0xff]  ;;  %67 = vst [vmem:[#allocation2 + $0x90] sm:$0xf] %v19_v36  ;;  %v6307_v45 = vor.u32 %v7460_v39, %v6306_v38  ;;  %v7694_v48 = vld [vmem:[%s11121_s1 + $0xb0] sm:$0xff]  ;;  %v7693_v52 = vld [vmem:[%s11121_s1 + $0xa8] sm:$0xff]  ;;  %vm841_vm3 = vcmask 1042432  }
  0x1b   :  { %7764 = vmatpush.bf16.msra.mxu3 %v7673_v24  ;;  %5143 = vmatpush.bf16.msra.mxu0 %v7673_v24  ;;  %68 = vst [vmem:[#allocation2 + $0xb4] sm:$0xf] %v20_v37  ;;  %v7687_v46 = vld [vmem:[%s11121_s1 + $0x78] sm:$0xff]  ;;  %v7702_v49 = vld [vmem:[%s11121_s1 + $0xf0] sm:$0xff]  ;;  %v7701_v53 = vld [vmem:[%s11121_s1 + $0xe8] sm:$0xff]  ;;  %vm842_vm4 = vcmask 1046532  }
  0x1c   :  { %v7711_v47 = vld [vmem:[%s11121_s1 + $0x138] sm:$0xff]  ;;  %v7686_v50 = vld [vmem:[%s11121_s1 + $0x70] sm:$0xff]  ;;  %v33_v54 = vld [vmem:[%s11120_s0 + $0x48] sm:$0xf]  ;;  %vm160_vm0 = vsmask.f32 3328 }
  0x1d   :  { %v7710_v51 = vld [vmem:[%s11121_s1 + $0x130] sm:$0xff]  ;;  %v34_v55 = vld [vmem:[%s11120_s0 + $0x4c] sm:$0xf]  ;;  %81 = vst [vmem:[#allocation2 + $0x288] sm:$0xf] %v33_v54  ;;  %v7692_v1 = vld [vmem:[%s11121_s1 + $0xa0] sm:$0xff] }
  0x1e   :  { %7765 = vmatpush.bf16.msra.mxu1 %v7672_v27  ;;  %7766 = vmatpush.bf16.msra.mxu2 %v7672_v27  ;;  %v7685_v56 = vld [vmem:[%s11121_s1 + $0x68] sm:$0xff]  ;;  %82 = vst [vmem:[#allocation2 + $0x2ac] sm:$0xf] %v34_v55  ;;  %v45_v58 = vld [vmem:[%s11120_s0 + $0x78] sm:$0xf]  ;;  %v7700_v2 = vld [vmem:[%s11121_s1 + $0xe0] sm:$0xff] }
  0x1f   :  { %7767 = vmatpush.bf16.msra.mxu3 %v7672_v27  ;;  %5144 = vmatpush.bf16.msra.mxu0 %v7672_v27  ;;  %v7709_v57 = vld [vmem:[%s11121_s1 + $0x128] sm:$0xff]  ;;  %v46_v59 = vld [vmem:[%s11120_s0 + $0x7c] sm:$0xf]  ;;  %v6558_v61 = vld [vmem:[#allocation2 + $0x1f8] sm:$0xf]  ;;  %vm6250_vm7 = vcmask 195584  }
  0x20   :  { %v57_v60 = vld [vmem:[%s11120_s0 + $0xa8] sm:$0xf]  ;;  %v7523_v62 = vld [vmem:[#allocation2 + $0x218] sm:$0xf0]  ;;  %v7577_v0 = vld [vmem:[#allocation2 + $0x3c8] sm:$0xf0] }
  0x21   :  { %5171 = vmatmul.bf16.vlgmr.msra.gmra.mxu1 %v6523_v42  ;;  %5197 = vmatmul.bf16.vlgmr.msra.gmra.mxu2 %v6739_v43  ;;  %v6774_v63 = vld [vmem:[#allocation2 + $0x3a8] sm:$0xf]  ;;  %93 = vst [vmem:[#allocation2 + $0x438] sm:$0xf] %v45_v58  ;;  %v58_v3 = vld [vmem:[%s11120_s0 + $0xac] sm:$0xf]  ;;  %v6559_v12 = vor.u32 %v7523_v62, %v6558_v61  ;;  %vm8125_vm5 = vmor %vm841_vm3, %vm842_vm4 }
  0x22   :  { %5363 = vmatpush.bf16.msrb.mxu2 %v7695_v40  ;;  %5223 = vmatmul.bf16.vlgmr.msra.gmra.mxu3 %v6955_v44  ;;  %v6990_v4 = vld [vmem:[#allocation2 + $0x558] sm:$0xf]  ;;  %v7631_v5 = vld [vmem:[#allocation2 + $0x578] sm:$0xf0]  ;;  %94 = vst [vmem:[#allocation2 + $0x45c] sm:$0xf] %v46_v59  ;;  %v6775_v13 = vor.u32 %v7577_v0, %v6774_v63 }
  0x23   :  { %5476 = vmatpush.bf16.msrb.mxu3 %v7703_v41  ;;  %5145 = vmatmul.bf16.vlgmr.msra.gmra.mxu0 %v6307_v45  ;;  %v21_v6 = vld [vmem:[%s11120_s0 + $0x18] sm:$0xf]  ;;  %v6342_v7 = vld [vmem:[#allocation2 + $0x48] sm:$0xf]  ;;  %105 = vst [vmem:[#allocation2 + $0x5e8] sm:$0xf] %v57_v60  ;;  %v6991_v14 = vor.u32 %v7631_v5, %v6990_v4 }
  0x24   :  { %5250 = vmatpush.bf16.msrb.mxu1 %v7687_v46  ;;  %5589 = vmatpush.bf16.msrb.mxu0 %v7711_v47  ;;  %v22_v8 = vld [vmem:[%s11120_s0 + $0x1c] sm:$0xf]  ;;  %v7469_v9 = vld [vmem:[#allocation2 + $0x68] sm:$0xf0]  ;;  %v7684_v10 = vld [vmem:[%s11121_s1 + $0x60] sm:$0xff]  ;;  %s6289_s19 = sshll.u32 %s11123_s3, 4  ;;  %s6290_s19 = int_to_ptr.hbm [resolvable:$true] %s6289_s19 }
  0x25   :  { %v7708_v11 = vld [vmem:[%s11121_s1 + $0x120] sm:$0xff]  ;;  %106 = vst [vmem:[#allocation2 + $0x60c] sm:$0xf] %v58_v3  ;;  %v6343_v15 = vor.u32 %v7469_v9, %v6342_v7  ;;  %v7691_v16 = vld [vmem:[%s11121_s1 + $0x98] sm:$0xff]  ;;  %v7690_v20 = vld [vmem:[%s11121_s1 + $0x90] sm:$0xff]  ;;  %s7802_s20 = smov 128  }
  0x26   :  { %5364 = vmatpush.bf16.msrb.mxu2 %v7694_v48  ;;  %69 = vst [vmem:[#allocation2 + $0xd8] sm:$0xf] %v21_v6  ;;  %v7699_v17 = vld [vmem:[%s11121_s1 + $0xd8] sm:$0xff]  ;;  %v7698_v21 = vld [vmem:[%s11121_s1 + $0xd0] sm:$0xff]  ;;  %v47_v24 = vld [vmem:[%s11120_s0 + $0x80] sm:$0xf] }
  0x27   :  { %5477 = vmatpush.bf16.msrb.mxu3 %v7702_v49  ;;  %70 = vst [vmem:[#allocation2 + $0xfc] sm:$0xf] %v22_v8  ;;  %v7683_v18 = vld [vmem:[%s11121_s1 + $0x58] sm:$0xff]  ;;  %v35_v22 = vld [vmem:[%s11120_s0 + $0x50] sm:$0xf]  ;;  %v7689_v44 = vld [vmem:[%s11121_s1 + $0x88] sm:$0xff] }
  0x28   :  { %5251 = vmatpush.bf16.msrb.mxu1 %v7686_v50  ;;  %5590 = vmatpush.bf16.msrb.mxu0 %v7710_v51  ;;  %v7707_v19 = vld [vmem:[%s11121_s1 + $0x118] sm:$0xff]  ;;  %v36_v23 = vld [vmem:[%s11120_s0 + $0x54] sm:$0xf]  ;;  %83 = vst [vmem:[#allocation2 + $0x2d0] sm:$0xf] %v35_v22  ;;  %v7697_v45 = vld [vmem:[%s11121_s1 + $0xc8] sm:$0xff] }
  0x29   :  { %84 = vst [vmem:[#allocation2 + $0x2f4] sm:$0xf] %v36_v23  ;;  %v48_v25 = vld [vmem:[%s11120_s0 + $0x84] sm:$0xf]  ;;  %v6594_v26 = vld [vmem:[#allocation2 + $0x240] sm:$0xf] }
  0x2a   :  { %5365 = vmatpush.bf16.msrb.mxu2 %v7693_v52  ;;  %v7532_v27 = vld [vmem:[#allocation2 + $0x260] sm:$0xf0]  ;;  %v6810_v28 = vld [vmem:[#allocation2 + $0x3f0] sm:$0xf]  ;;  %v7586_v29 = vld [vmem:[#allocation2 + $0x410] sm:$0xf0] }
  0x2b   :  { %5478 = vmatpush.bf16.msrb.mxu3 %v7701_v53  ;;  %95 = vst [vmem:[#allocation2 + $0x480] sm:$0xf] %v47_v24  ;;  %v59_v30 = vld [vmem:[%s11120_s0 + $0xb0] sm:$0xf]  ;;  %v60_v31 = vld [vmem:[%s11120_s0 + $0xb4] sm:$0xf]  ;;  %v6595_v38 = vor.u32 %v7532_v27, %v6594_v26  ;;  %v6811_v39 = vor.u32 %v7586_v29, %v6810_v28 }
  0x2c   :  { %5252 = vmatpush.bf16.msrb.mxu1 %v7685_v56  ;;  %5591 = vmatpush.bf16.msrb.mxu0 %v7709_v57  ;;  %v7026_v32 = vld [vmem:[#allocation2 + $0x5a0] sm:$0xf]  ;;  %96 = vst [vmem:[#allocation2 + $0x4a4] sm:$0xf] %v48_v25  ;;  %v7640_v34 = vld [vmem:[#allocation2 + $0x5c0] sm:$0xf0] }
  0x2d   :  { %v23_v33 = vld [vmem:[%s11120_s0 + $0x20] sm:$0xf]  ;;  %107 = vst [vmem:[#allocation2 + $0x630] sm:$0xf] %v59_v30  ;;  %v24_v35 = vld [vmem:[%s11120_s0 + $0x24] sm:$0xf]  ;;  %v7027_v40 = vor.u32 %v7640_v34, %v7026_v32 }
  0x2e   :  { %5366 = vmatpush.bf16.msrb.mxu2 %v7692_v1  ;;  %v6378_v36 = vld [vmem:[#allocation2 + $0x90] sm:$0xf]  ;;  %v7478_v37 = vld [vmem:[#allocation2 + $0xb0] sm:$0xf0]  ;;  %108 = vst [vmem:[#allocation2 + $0x654] sm:$0xf] %v60_v31 }
  0x2f   :  { %5479 = vmatpush.bf16.msrb.mxu3 %v7700_v2  ;;  %71 = vst [vmem:[#allocation2 + $0x120] sm:$0xf] %v23_v33  ;;  %v6379_v41 = vor.u32 %v7478_v37, %v6378_v36  ;;  %v7682_v42 = vld [vmem:[%s11121_s1 + $0x50] sm:$0xff]  ;;  %v7681_v46 = vld [vmem:[%s11121_s1 + $0x48] sm:$0xff]  ;;  %v37_v47 = vld [vmem:[%s11120_s0 + $0x58] sm:$0xf] }
  0x30   :  { %5253 = vmatpush.bf16.msrb.mxu1 %v7684_v10  ;;  %5592 = vmatpush.bf16.msrb.mxu0 %v7708_v11  ;;  %72 = vst [vmem:[#allocation2 + $0x144] sm:$0xf] %v24_v35  ;;  %v7706_v43 = vld [vmem:[%s11121_s1 + $0x110] sm:$0xff]  ;;  %v38_v48 = vld [vmem:[%s11120_s0 + $0x5c] sm:$0xf]  ;;  %v7705_v11 = vld [vmem:[%s11121_s1 + $0x108] sm:$0xff] }
  0x31   :  { %5176 = vmatmul.bf16.gmra.mxu1 %v6559_v12  ;;  %5202 = vmatmul.bf16.gmra.mxu2 %v6775_v13  ;;  %85 = vst [vmem:[#allocation2 + $0x318] sm:$0xf] %v37_v47  ;;  %v49_v49 = vld [vmem:[%s11120_s0 + $0x88] sm:$0xf]  ;;  %v50_v50 = vld [vmem:[%s11120_s0 + $0x8c] sm:$0xf] }
  0x32   :  { %5228 = vmatmul.bf16.gmra.mxu3 %v6991_v14  ;;  %5367 = vmatpush.bf16.msrb.mxu2 %v7691_v16  ;;  %86 = vst [vmem:[#allocation2 + $0x33c] sm:$0xf] %v38_v48  ;;  %v61_v51 = vld [vmem:[%s11120_s0 + $0xb8] sm:$0xf]  ;;  %v6630_v52 = vld [vmem:[#allocation2 + $0x288] sm:$0xf] }
  0x33   :  { %5150 = vmatmul.bf16.gmra.mxu0 %v6343_v15  ;;  %5480 = vmatpush.bf16.msrb.mxu3 %v7699_v17  ;;  %v7541_v53 = vld [vmem:[#allocation2 + $0x2a8] sm:$0xf0]  ;;  %v6846_v54 = vld [vmem:[#allocation2 + $0x438] sm:$0xf]  ;;  %v7595_v55 = vld [vmem:[#allocation2 + $0x458] sm:$0xf0] }
  0x34   :  { %5254 = vmatpush.bf16.msrb.mxu1 %v7683_v18  ;;  %5593 = vmatpush.bf16.msrb.mxu0 %v7707_v19  ;;  %97 = vst [vmem:[#allocation2 + $0x4c8] sm:$0xf] %v49_v49  ;;  %v62_v56 = vld [vmem:[%s11120_s0 + $0xbc] sm:$0xf]  ;;  %v7062_v57 = vld [vmem:[#allocation2 + $0x5e8] sm:$0xf]  ;;  %v6631_v63 = vor.u32 %v7541_v53, %v6630_v52  ;;  %v6847_v0 = vor.u32 %v7595_v55, %v6846_v54 }
  0x35   :  { %98 = vst [vmem:[#allocation2 + $0x4ec] sm:$0xf] %v50_v50  ;;  %v25_v58 = vld [vmem:[%s11120_s0 + $0x28] sm:$0xf]  ;;  %v7649_v59 = vld [vmem:[#allocation2 + $0x608] sm:$0xf0] }
  0x36   :  { %5368 = vmatpush.bf16.msrb.mxu2 %v7690_v20  ;;  %109 = vst [vmem:[#allocation2 + $0x678] sm:$0xf] %v61_v51  ;;  %v26_v60 = vld [vmem:[%s11120_s0 + $0x2c] sm:$0xf]  ;;  %v6414_v61 = vld [vmem:[#allocation2 + $0xd8] sm:$0xf]  ;;  %v7063_v1 = vor.u32 %v7649_v59, %v7062_v57 }
  0x37   :  { %5481 = vmatpush.bf16.msrb.mxu3 %v7698_v21  ;;  %v7487_v62 = vld [vmem:[#allocation2 + $0xf8] sm:$0xf0]  ;;  %110 = vst [vmem:[#allocation2 + $0x69c] sm:$0xf] %v62_v56  ;;  %v111_v3 = vld [vmem:[%s11120_s0] sm:$0xf] }
  0x38   :  { %5255 = vmatpush.bf16.msrb.mxu1 %v7682_v42  ;;  %5594 = vmatpush.bf16.msrb.mxu0 %v7706_v43  ;;  %73 = vst [vmem:[#allocation2 + $0x168] sm:$0xf] %v25_v58  ;;  %v6415_v2 = vor.u32 %v7487_v62, %v6414_v61  ;;  %v112_v4 = vld [vmem:[%s11120_s0 + $0x4] sm:$0xf]  ;;  %v164_v5 = vshrl.u32 %v111_v3, 16  ;;  %v167_v6 = vshll.u32 %v111_v3, 16 }
  0x39   :  { %74 = vst [vmem:[#allocation2 + $0x18c] sm:$0xf] %v26_v60  ;;  %v173_v7 = vshll.u32 %v112_v4, 16  ;;  %v177_v8 = vshrl.u32 %v112_v4, 16  ;;  %v7688_v12 = vld [vmem:[%s11121_s1 + $0x80] sm:$0xff]  ;;  %s7803_s21 = smov 8  }
  0x3a   :  { %5369 = vmatpush.bf16.msrb.mxu2 %v7689_v44  ;;  %v166_v9 = vrot.slane %v164_v5, 4  ;;  %v169_v10 = vrot.slane %v167_v6, 5  ;;  %v7696_v14 = vld [vmem:[%s11121_s1 + $0xc0] sm:$0xff]  ;;  %vm161_vm1 = vsmask.f32 7440 }
  0x3b   :  { %5482 = vmatpush.bf16.msrb.mxu3 %v7697_v45  ;;  %v175_v13 = vrot.slane %v173_v7, 5  ;;  %v7680_v15 = vld [vmem:[%s11121_s1 + $0x40] sm:$0xff]  ;;  %v8097_v18 = vld [vmem:[%s11120_s0 + $0x8] sm:$0xf]  ;;  %v179_v19 = vrot.slane %v177_v8, 4  ;;  %vm8102_vm2 = vmor %vm160_vm0, %vm161_vm1 }
  0x3c   :  { %5256 = vmatpush.bf16.msrb.mxu1 %v7681_v46  ;;  %v170_v16 = vor.u32 %v169_v10, %v166_v9  ;;  %5595 = vmatpush.bf16.msrb.mxu0 %v7705_v11  ;;  %v7704_v17 = vld [vmem:[%s11121_s1 + $0x100] sm:$0xff]  ;;  %v1181_v20 = vld [vmem:[%s11120_s0 + $0xc] sm:$0xf]  ;;  %v183_v23 = vshll.u32 %v8097_v18, 16  ;;  %v1182_v26 = vld [vmem:[%s11120_s0 + $0x10] sm:$0xf] }
  0x3d   :  { %v743_v24 = vld [vmem:[%s11120_s0] sm:$0xe]  ;;  %v744_v25 = vld [vmem:[%s11120_s0 + $0x4] sm:$0xf]  ;;  %v180_v27 = vor.u32 %v179_v19, %v175_v13  ;;  %v8119_v28 = vld [vmem:[%s11120_s0 + $0x8] sm:$0xf] }
  0x3e   :  { %5370 = vmatpush.bf16.msrb.mxu2 %v7688_v12  ;;  %v171_v22 = vrot.slane %v170_v16, 4  ;;  %v6301_v29 = vrot.slane %v743_v24, 9  ;;  %v8123_v31 = vrot.slane %v183_v23, 5  ;;  %v846_v33 = vrot.slane %v744_v25, 5  ;;  %v1085_v35 = vld [vmem:[%s11120_s0 + $0xc] sm:$0xf] }
  0x3f   :  { %5483 = vmatpush.bf16.msrb.mxu3 %v7696_v14  ;;  %v849_v34 = vrot.slane %v8119_v28, 5  ;;  %v6666_v36 = vld [vmem:[#allocation2 + $0x2d0] sm:$0xf]  ;;  %v7550_v37 = vld [vmem:[#allocation2 + $0x2f0] sm:$0xf0]  ;;  %v1231_v42 = vshrl.u32 %v1181_v20, 16 }
  0x40   :  { %5257 = vmatpush.bf16.msrb.mxu1 %v7680_v15  ;;  %v176_v30 = vsel %vm8102_vm2, %v171_v22, %v175_v13  ;;  %5596 = vmatpush.bf16.msrb.mxu0 %v7704_v17  ;;  %v7098_v43 = vld [vmem:[#allocation2 + $0x630] sm:$0xf]  ;;  %v7658_v44 = vld [vmem:[#allocation2 + $0x650] sm:$0xf0]  ;;  %v6450_v45 = vld [vmem:[#allocation2 + $0x120] sm:$0xf]  ;;  %v847_v46 = vsel %vm8125_vm5, %v6301_v29, %v846_v33  ;;  %v6667_v60 = vor.u32 %v7550_v37, %v6666_v36 }
  0x41   :  { %5180 = vmatmul.bf16.gmra.mxu1 %v6595_v38  ;;  %5206 = vmatmul.bf16.gmra.mxu2 %v6811_v39  ;;  %v6882_v38 = vld [vmem:[#allocation2 + $0x480] sm:$0xf]  ;;  %v7604_v39 = vld [vmem:[#allocation2 + $0x4a0] sm:$0xf0]  ;;  %695 = vst [vmem:[#allocation2 + $0x4] sm:$0xf] %v176_v30 }
  0x42   :  { %5232 = vmatmul.bf16.gmra.mxu3 %v7027_v40  ;;  %v181_v40 = vrot.slane %v180_v27, 4  ;;  %v848_v47 = vrot.slane %v846_v33, 4  ;;  %1133 = vst [vmem:[#allocation2 + $0xc] sm:$0xf] %v1085_v35  ;;  %v8141_v48 = vld [vmem:[%s11120_s0 + $0x14] sm:$0xf]  ;;  %v6883_v61 = vor.u32 %v7604_v39, %v6882_v38 }
  0x43   :  { %5154 = vmatmul.bf16.gmra.mxu0 %v6379_v41  ;;  %v1086_v41 = vld [vmem:[%s11120_s0 + $0x10] sm:$0xf]  ;;  %v1234_v49 = vshll.u32 %v1181_v20, 16  ;;  %1037 = vst [vmem:[#allocation2 + $0x8] sm:$0xf] %v847_v46  ;;  %v1233_v51 = vrot.slane %v1231_v42, 4 }
  0x44   :  { %v186_v50 = vsel %vm8102_vm2, %v181_v40, %v8123_v31  ;;  %v1240_v52 = vshll.u32 %v1182_v26, 16  ;;  %v1244_v53 = vshrl.u32 %v1182_v26, 16  ;;  %v7496_v54 = vld [vmem:[#allocation2 + $0x140] sm:$0xf0]  ;;  %v850_v55 = vsel %vm8125_vm5, %v848_v47, %v849_v34  ;;  %1134 = vst [vmem:[#allocation2 + $0x30] sm:$0xf] %v1086_v41 }
  0x45   :  { %696 = vst [vmem:[#allocation2 + $0x28] sm:$0xf] %v186_v50  ;;  %v1236_v56 = vrot.slane %v1234_v49, 5  ;;  %v1250_v57 = vshll.u32 %v8141_v48, 16  ;;  %v114_v3 = vld [vmem:[%s11120_s0 + $0xc] sm:$0xf] }
  0x46   :  { %1038 = vst [vmem:[#allocation2 + $0x2c] sm:$0xf] %v850_v55  ;;  %v1242_v58 = vrot.slane %v1240_v52, 5  ;;  %v1246_v59 = vrot.slane %v1244_v53, 4  ;;  %v187_v5 = vshrl.u32 %v8097_v18, 16  ;;  %v193_v6 = vshll.u32 %v114_v3, 16 }
  0x47   :  { %v1237_v62 = vor.u32 %v1236_v56, %v1233_v51  ;;  %v197_v7 = vshrl.u32 %v114_v3, 16  ;;  %v7727_v13 = vld [vmem:[%s11121_s1 + $0x1b8] sm:$0xff]  ;;  %v1254_v20 = vshrl.u32 %v8141_v48, 16  ;;  %v115_v22 = vld [vmem:[%s11120_s0 + $0x10] sm:$0xf]  ;;  %v851_v30 = vrot.slane %v849_v34, 4 }
  0x48   :  { %v189_v10 = vrot.slane %v187_v5, 4  ;;  %v195_v11 = vrot.slane %v193_v6, 5  ;;  %v7735_v15 = vld [vmem:[%s11121_s1 + $0x1f8] sm:$0xff]  ;;  %5815 = vmatpush.bf16.msra.mxu2 %v7727_v13  ;;  %v746_v23 = vld [vmem:[%s11120_s0 + $0xc] sm:$0xf]  ;;  %v203_v27 = vshll.u32 %v115_v22, 16 }
  0x49   :  { %v1238_v4 = vrot.slane %v1237_v62, 4  ;;  %v199_v12 = vrot.slane %v197_v7, 4  ;;  %v7719_v16 = vld [vmem:[%s11121_s1 + $0x178] sm:$0xff]  ;;  %5928 = vmatpush.bf16.msra.mxu3 %v7735_v15  ;;  %v8188_v29 = vld [vmem:[%s11120_s0 + $0x10] sm:$0xf]  ;;  %v1256_v38 = vrot.slane %v1254_v20, 4 }
  0x4a   :  { %v7743_v17 = vld [vmem:[%s11121_s1 + $0x238] sm:$0xff]  ;;  %v190_v18 = vor.u32 %v189_v10, %v8123_v31  ;;  %5702 = vmatpush.bf16.msra.mxu1 %v7719_v16  ;;  %v852_v31 = vrot.slane %v746_v23, 5  ;;  %v855_v33 = vrot.slane %v8188_v29, 5  ;;  %v205_v37 = vrot.slane %v203_v27, 5  ;;  %v6918_v41 = vld [vmem:[#allocation2 + $0x4c8] sm:$0xf] }
  0x4b   :  { %v1243_v9 = vsel %vm8102_vm2, %v1238_v4, %v1242_v58  ;;  %v200_v19 = vor.u32 %v199_v12, %v195_v11  ;;  %v1184_v24 = vld [vmem:[%s11120_s0 + $0x18] sm:$0xf]  ;;  %6041 = vmatpush.bf16.msra.mxu0 %v7743_v17  ;;  %v1185_v35 = vld [vmem:[%s11120_s0 + $0x1c] sm:$0xf]  ;;  %v7613_v42 = vld [vmem:[#allocation2 + $0x4e8] sm:$0xf0] }
  0x4c   :  { %1762 = vst [vmem:[#allocation2 + $0x10] sm:$0xf] %v1243_v9  ;;  %v191_v25 = vrot.slane %v190_v18, 4  ;;  %v6702_v39 = vld [vmem:[#allocation2 + $0x318] sm:$0xf]  ;;  %v853_v28 = vsel %vm8125_vm5, %v851_v30, %v852_v31  ;;  %v854_v34 = vrot.slane %v852_v31, 4 }
  0x4d   :  { %v201_v26 = vrot.slane %v200_v19, 4  ;;  %v7559_v40 = vld [vmem:[#allocation2 + $0x338] sm:$0xf0]  ;;  %v6486_v47 = vld [vmem:[#allocation2 + $0x168] sm:$0xf]  ;;  %v1270_v51 = vshll.u32 %v1185_v35, 16 }
  0x4e   :  { %v196_v36 = vsel %vm8102_vm2, %v191_v25, %v195_v11  ;;  %v7667_v46 = vld [vmem:[#allocation2 + $0x698] sm:$0xf0]  ;;  %1039 = vst [vmem:[#allocation2 + $0x50] sm:$0xf] %v853_v28  ;;  %v1087_v49 = vld [vmem:[%s11120_s0 + $0x14] sm:$0xf]  ;;  %v856_v52 = vsel %vm8125_vm5, %v854_v34, %v855_v33 }
  0x4f   :  { %697 = vst [vmem:[#allocation2 + $0x4c] sm:$0xf] %v196_v36  ;;  %v206_v48 = vsel %vm8102_vm2, %v201_v26, %v205_v37  ;;  %v1088_v53 = vld [vmem:[%s11120_s0 + $0x18] sm:$0xf]  ;;  %v7505_v56 = vld [vmem:[#allocation2 + $0x188] sm:$0xf0] }
  0x50   :  { %698 = vst [vmem:[#allocation2 + $0x70] sm:$0xf] %v206_v48  ;;  %v207_v62 = vshrl.u32 %v115_v22, 16  ;;  %v116_v3 = vld [vmem:[%s11120_s0 + $0x14] sm:$0xf]  ;;  %v1274_v7 = vshrl.u32 %v1185_v35, 16 }
  0x51   :  { %5184 = vmatmul.bf16.gmra.mxu1 %v6631_v63  ;;  %5210 = vmatmul.bf16.gmra.mxu2 %v6847_v0  ;;  %v7099_v63 = vor.u32 %v7658_v44, %v7098_v43  ;;  %v6451_v0 = vor.u32 %v7496_v54, %v6450_v45  ;;  %v1260_v43 = vshll.u32 %v1184_v24, 16  ;;  %v1264_v44 = vshrl.u32 %v1184_v24, 16  ;;  %v7134_v45 = vld [vmem:[#allocation2 + $0x678] sm:$0xf]  ;;  %1040 = vst [vmem:[#allocation2 + $0x74] sm:$0xf] %v856_v52 }
  0x52   :  { %5236 = vmatmul.bf16.gmra.mxu3 %v7063_v1  ;;  %v1247_v1 = vor.u32 %v1246_v59, %v1242_v58  ;;  %1135 = vst [vmem:[#allocation2 + $0x54] sm:$0xf] %v1087_v49  ;;  %v1272_v59 = vrot.slane %v1270_v51, 5  ;;  %v213_v4 = vshll.u32 %v116_v3, 16  ;;  %v217_v5 = vshrl.u32 %v116_v3, 16 }
  0x53   :  { %5158 = vmatmul.bf16.gmra.mxu0 %v6415_v2  ;;  %v8151_v2 = vrot.slane %v1250_v57, 5  ;;  %v1262_v54 = vrot.slane %v1260_v43, 5  ;;  %v1266_v55 = vrot.slane %v1264_v44, 4  ;;  %1136 = vst [vmem:[#allocation2 + $0x78] sm:$0xf] %v1088_v53  ;;  %v209_v9 = vrot.slane %v207_v62, 4 }
  0x54   :  { %v1248_v8 = vrot.slane %v1247_v1, 4  ;;  %v6487_v1 = vor.u32 %v7505_v56, %v6486_v47  ;;  %v215_v10 = vrot.slane %v213_v4, 5  ;;  %v117_v11 = vld [vmem:[%s11120_s0 + $0x18] sm:$0xf]  ;;  %v219_v13 = vrot.slane %v217_v5, 4 }
  0x55   :  { %v1257_v50 = vor.u32 %v1256_v38, %v8151_v2  ;;  %v1267_v58 = vor.u32 %v1266_v55, %v1262_v54  ;;  %v210_v12 = vor.u32 %v209_v9, %v205_v37  ;;  %v748_v15 = vld [vmem:[%s11120_s0 + $0x14] sm:$0xf]  ;;  %v8232_v17 = vld [vmem:[%s11120_s0 + $0x18] sm:$0xf]  ;;  %v1276_v19 = vrot.slane %v1274_v7, 4 }
  0x56   :  { %v1253_v14 = vsel %vm8102_vm2, %v1248_v8, %v8151_v2  ;;  %v1186_v8 = vld [vmem:[%s11120_s0 + $0x20] sm:$0xf]  ;;  %v858_v18 = vrot.slane %v748_v15, 5  ;;  %v220_v23 = vor.u32 %v219_v13, %v215_v10  ;;  %v857_v25 = vrot.slane %v855_v33, 4  ;;  %v1187_v30 = vld [vmem:[%s11120_s0 + $0x24] sm:$0xf] }
  0x57   :  { %1763 = vst [vmem:[#allocation2 + $0x34] sm:$0xf] %v1253_v14  ;;  %v1258_v57 = vrot.slane %v1257_v50, 4  ;;  %v1268_v2 = vrot.slane %v1267_v58, 4  ;;  %v223_v14 = vshll.u32 %v117_v11, 16  ;;  %v1280_v16 = vshll.u32 %v1186_v8, 16 }
  0x58   :  { %v1284_v20 = vshrl.u32 %v1186_v8, 16  ;;  %v211_v22 = vrot.slane %v210_v12, 4  ;;  %v860_v26 = vrot.slane %v858_v18, 4  ;;  %v861_v27 = vrot.slane %v8232_v17, 5  ;;  %v7456_v38 = vld [vmem:[#allocation2 + $0x4] sm:$0xf] }
  0x59   :  { %v1273_v6 = vsel %vm8102_vm2, %v1268_v2, %v1272_v59  ;;  %v8234_v24 = vrot.slane %v223_v14, 5  ;;  %v1277_v31 = vor.u32 %v1276_v19, %v1272_v59  ;;  %v221_v36 = vrot.slane %v220_v23, 4  ;;  %v7457_v34 = vld [vmem:[#allocation2 + $0xc] sm:$0xf]  ;;  %v6316_v43 = vld [vmem:[#allocation2 + $0x2c] sm:$0xf0] }
  0x5a   :  { %1765 = vst [vmem:[#allocation2 + $0x7c] sm:$0xf] %v1273_v6  ;;  %v216_v35 = vsel %vm8102_vm2, %v211_v22, %v215_v10  ;;  %v1282_v37 = vrot.slane %v1280_v16, 5  ;;  %v859_v29 = vsel %vm8125_vm5, %v857_v25, %v858_v18  ;;  %v862_v33 = vsel %vm8125_vm5, %v860_v26, %v861_v27  ;;  %v6322_v47 = vld [vmem:[#allocation2 + $0x10] sm:$0xf] }
  0x5b   :  { %699 = vst [vmem:[#allocation2 + $0x94] sm:$0xf] %v216_v35  ;;  %v1286_v28 = vrot.slane %v1284_v20, 4  ;;  %v226_v44 = vsel %vm8102_vm2, %v221_v36, %v8234_v24  ;;  %v1090_v48 = vld [vmem:[%s11120_s0 + $0x20] sm:$0xf]  ;;  %v6319_v56 = vor.u32 %v7457_v34, %v6316_v43  ;;  %v1294_v62 = vshrl.u32 %v1187_v30, 16 }
  0x5c   :  { %1041 = vst [vmem:[#allocation2 + $0x98] sm:$0xf] %v859_v29  ;;  %v118_v59 = vld [vmem:[%s11120_s0 + $0x1c] sm:$0xf]  ;;  %v119_v5 = vld [vmem:[%s11120_s0 + $0x20] sm:$0xf] }
  0x5d   :  { %700 = vst [vmem:[#allocation2 + $0xb8] sm:$0xf] %v226_v44  ;;  %v1287_v49 = vor.u32 %v1286_v28, %v1282_v37  ;;  %v1296_v7 = vrot.slane %v1294_v62, 4  ;;  %v243_v9 = vshll.u32 %v119_v5, 16  ;;  %v750_v10 = vld [vmem:[%s11120_s0 + $0x1c] sm:$0xf] }
  0x5e   :  { %v7462_v50 = vld [vmem:[#allocation2 + $0x30] sm:$0xf0]  ;;  %1042 = vst [vmem:[#allocation2 + $0xbc] sm:$0xf] %v862_v33  ;;  %v8279_v13 = vld [vmem:[%s11120_s0 + $0x20] sm:$0xf] }
  0x5f   :  { %v1288_v53 = vrot.slane %v1287_v49, 4  ;;  %1138 = vst [vmem:[#allocation2 + $0xc0] sm:$0xf] %v1090_v48  ;;  %v864_v14 = vrot.slane %v750_v10, 5  ;;  %v8281_v19 = vrot.slane %v243_v9, 5  ;;  %v863_v20 = vrot.slane %v861_v27, 4 }
  0x60   :  { %v7465_v36 = vld [vmem:[#allocation2 + $0x4c] sm:$0xf]  ;;  %v6350_v17 = vld [vmem:[#allocation2 + $0x50] sm:$0xf]  ;;  %v7470_v27 = vld [vmem:[#allocation2 + $0x70] sm:$0xf0] }
  0x61   :  { %5189 = vmatmul.bf16.gmra.mxu1 %v6667_v60  ;;  %5215 = vmatmul.bf16.gmra.mxu2 %v6883_v61  ;;  %v6703_v60 = vor.u32 %v7559_v40, %v6702_v39  ;;  %v6919_v61 = vor.u32 %v7613_v42, %v6918_v41  ;;  %v6308_v39 = vld [vmem:[#allocation2 + $0x24] sm:$0xf0]  ;;  %v7461_v41 = vld [vmem:[#allocation2 + $0x28] sm:$0xf0]  ;;  %v1278_v42 = vrot.slane %v1277_v31, 4  ;;  %v866_v23 = vrot.slane %v864_v14, 4 }
  0x62   :  { %5241 = vmatmul.bf16.gmra.mxu3 %v7099_v63  ;;  %v1263_v63 = vsel %vm8102_vm2, %v1258_v57, %v1262_v54  ;;  %v6314_v40 = vld [vmem:[#allocation2 + $0x8] sm:$0xf]  ;;  %v6311_v54 = vor.u32 %v7456_v38, %v6308_v39  ;;  %v6323_v57 = vor.u32 %v7462_v50, %v6322_v47  ;;  %v865_v26 = vsel %vm8125_vm5, %v863_v20, %v864_v14  ;;  %v6352_v29 = vld [vmem:[#allocation2 + $0x74] sm:$0xf0]  ;;  %v1091_v33 = vld [vmem:[%s11120_s0 + $0x24] sm:$0xf] }
  0x63   :  { %5163 = vmatmul.bf16.gmra.mxu0 %v6451_v0  ;;  %v7135_v0 = vor.u32 %v7667_v46, %v7134_v45  ;;  %1764 = vst [vmem:[#allocation2 + $0x58] sm:$0xf] %v1263_v63  ;;  %v1089_v45 = vld [vmem:[%s11120_s0 + $0x1c] sm:$0xf]  ;;  %v1290_v46 = vshll.u32 %v1187_v30, 16  ;;  %v1283_v51 = vsel %vm8102_vm2, %v1278_v42, %v1282_v37  ;;  %v6315_v55 = vor.u32 %v7461_v41, %v6314_v40 }
  0x64   :  { %1137 = vst [vmem:[#allocation2 + $0x9c] sm:$0xf] %v1089_v45  ;;  %v237_v63 = vshrl.u32 %v118_v59, 16  ;;  %v1189_v30 = vld [vmem:[%s11120_s0 + $0x2c] sm:$0xf]  ;;  %v6351_v48 = vor.u32 %v7470_v27, %v6350_v17 }
  0x65   :  { %v1292_v52 = vrot.slane %v1290_v46, 5  ;;  %1766 = vst [vmem:[#allocation2 + $0xa0] sm:$0xf] %v1283_v51  ;;  %v6344_v37 = vld [vmem:[#allocation2 + $0x6c] sm:$0xf0]  ;;  %v1310_v40 = vshll.u32 %v1189_v30, 16 }
  0x66   :  { %v239_v6 = vrot.slane %v237_v63, 4  ;;  %v7466_v41 = vld [vmem:[#allocation2 + $0x54] sm:$0xf]  ;;  %1043 = vst [vmem:[#allocation2 + $0xe0] sm:$0xf] %v865_v26  ;;  %v6347_v47 = vor.u32 %v7465_v36, %v6344_v37 }
  0x67   :  { %v1293_v58 = vsel %vm8102_vm2, %v1288_v53, %v1292_v52  ;;  %v1297_v15 = vor.u32 %v1296_v7, %v1292_v52  ;;  %v1092_v28 = vld [vmem:[%s11120_s0 + $0x28] sm:$0xf]  ;;  %v1312_v34 = vrot.slane %v1310_v40, 5  ;;  %v7471_v44 = vld [vmem:[#allocation2 + $0x78] sm:$0xf0]  ;;  %v6355_v49 = vor.u32 %v7466_v41, %v6352_v29 }
  0x68   :  { %1767 = vst [vmem:[#allocation2 + $0xc4] sm:$0xf] %v1293_v58  ;;  %v120_v51 = vld [vmem:[%s11120_s0 + $0x24] sm:$0xf]  ;;  %v247_v52 = vshrl.u32 %v119_v5, 16 }
  0x69   :  { %v1298_v31 = vrot.slane %v1297_v15, 4  ;;  %1139 = vst [vmem:[#allocation2 + $0xe4] sm:$0xf] %v1091_v33  ;;  %v253_v53 = vshll.u32 %v120_v51, 16  ;;  %v8325_v63 = vld [vmem:[%s11120_s0 + $0x28] sm:$0xf] }
  0x6a   :  { %v6358_v43 = vld [vmem:[#allocation2 + $0x58] sm:$0xf]  ;;  %1140 = vst [vmem:[#allocation2 + $0x108] sm:$0xf] %v1092_v28  ;;  %v8335_v5 = vld [vmem:[%s11120_s0 + $0x28] sm:$0xf] }
  0x6b   :  { %v6359_v50 = vor.u32 %v7471_v44, %v6358_v43  ;;  %v255_v58 = vrot.slane %v253_v53, 5  ;;  %v7475_v36 = vld [vmem:[#allocation2 + $0x9c] sm:$0xf]  ;;  %v6388_v37 = vld [vmem:[#allocation2 + $0xbc] sm:$0xf0] }
  0x6c   :  { %v1093_v17 = vld [vmem:[%s11120_s0 + $0x2c] sm:$0xf]  ;;  %v6394_v40 = vld [vmem:[#allocation2 + $0xa0] sm:$0xf]  ;;  %v6391_v44 = vor.u32 %v7475_v36, %v6388_v37  ;;  %v1095_v36 = vld [vmem:[%s11120_s0 + $0x34] sm:$0xf] }
  0x6d   :  { %1141 = vst [vmem:[#allocation2 + $0x12c] sm:$0xf] %v1093_v17 }
  0x6e   :  { %1143 = vst [vmem:[#allocation2 + $0x174] sm:$0xf] %v1095_v36  ;;  %v1097_v36 = vld [vmem:[%s11120_s0 + $0x3c] sm:$0xf] }
  0x6f   :  { %v7480_v41 = vld [vmem:[#allocation2 + $0xc0] sm:$0xf0]  ;;  %1145 = vst [vmem:[#allocation2 + $0x1bc] sm:$0xf] %v1097_v36 }
  0x71   :  { %5193 = vmatmul.bf16.gmra.mxu1 %v6703_v60  ;;  %5219 = vmatmul.bf16.gmra.mxu2 %v6919_v61  ;;  %v227_v60 = vshrl.u32 %v117_v11, 16  ;;  %v233_v61 = vshll.u32 %v118_v59, 16  ;;  %v7726_v59 = vld [vmem:[%s11121_s1 + $0x1b0] sm:$0xff] }
  0x72   :  { %5245 = vmatmul.bf16.gmra.mxu3 %v7135_v0  ;;  %v1188_v0 = vld [vmem:[%s11120_s0 + $0x28] sm:$0xf]  ;;  %5816 = vmatpush.bf16.msra.mxu2 %v7726_v59 }
  0x73   :  { %5167 = vmatmul.bf16.gmra.mxu0 %v6487_v1  ;;  %v229_v1 = vrot.slane %v227_v60, 4  ;;  %v235_v2 = vrot.slane %v233_v61, 5  ;;  %v1300_v3 = vshll.u32 %v1188_v0, 16  ;;  %v1304_v4 = vshrl.u32 %v1188_v0, 16  ;;  %v7734_v60 = vld [vmem:[%s11121_s1 + $0x1f0] sm:$0xff] }
  0x74   :  { %5929 = vmatpush.bf16.msra.mxu3 %v7734_v60 }
  0x75   :  { %v230_v8 = vor.u32 %v229_v1, %v8234_v24  ;;  %v1302_v11 = vrot.slane %v1300_v3, 5  ;;  %v240_v12 = vor.u32 %v239_v6, %v235_v2  ;;  %v1306_v16 = vrot.slane %v1304_v4, 4  ;;  %v752_v1 = vld [vmem:[%s11120_s0 + $0x24] sm:$0xf] }
  0x76   :  { %v867_v24 = vrot.slane %v8279_v13, 5  ;;  %v263_v4 = vshll.u32 %v8325_v63, 16  ;;  %v870_v6 = vrot.slane %v752_v1, 5  ;;  %v7474_v13 = vld [vmem:[#allocation2 + $0x94] sm:$0xf] }
  0x77   :  { %v231_v18 = vrot.slane %v230_v8, 4  ;;  %v241_v22 = vrot.slane %v240_v12, 4  ;;  %v1307_v35 = vor.u32 %v1306_v16, %v1302_v11  ;;  %v1303_v45 = vsel %vm8102_vm2, %v1298_v31, %v1302_v11  ;;  %v7718_v8 = vld [vmem:[%s11121_s1 + $0x170] sm:$0xff] }
  0x78   :  { %v868_v39 = vsel %vm8125_vm5, %v866_v23, %v867_v24  ;;  %1768 = vst [vmem:[#allocation2 + $0xe8] sm:$0xf] %v1303_v45  ;;  %v869_v10 = vrot.slane %v867_v24, 4  ;;  %v873_v11 = vrot.slane %v8335_v5, 5  ;;  %v8343_v14 = vrot.slane %v263_v4, 5  ;;  %5703 = vmatpush.bf16.msra.mxu1 %v7718_v8 }
  0x79   :  { %v236_v25 = vsel %vm8102_vm2, %v231_v18, %v235_v2  ;;  %v246_v38 = vsel %vm8102_vm2, %v241_v22, %v8281_v19  ;;  %v1308_v42 = vrot.slane %v1307_v35, 4  ;;  %1044 = vst [vmem:[#allocation2 + $0x104] sm:$0xf] %v868_v39  ;;  %v872_v15 = vrot.slane %v870_v6, 4  ;;  %v6380_v22 = vld [vmem:[#allocation2 + $0xb4] sm:$0xf0] }
  0x7a   :  { %701 = vst [vmem:[#allocation2 + $0xdc] sm:$0xf] %v236_v25  ;;  %v871_v18 = vsel %vm8125_vm5, %v869_v10, %v870_v6  ;;  %v6386_v23 = vld [vmem:[#allocation2 + $0x98] sm:$0xf]  ;;  %v7479_v24 = vld [vmem:[#allocation2 + $0xb8] sm:$0xf0]  ;;  %v6383_v28 = vor.u32 %v7474_v13, %v6380_v22  ;;  %v6395_v45 = vor.u32 %v7480_v41, %v6394_v40 }
  0x7b   :  { %702 = vst [vmem:[#allocation2 + $0x100] sm:$0xf] %v246_v38  ;;  %v1313_v46 = vsel %vm8102_vm2, %v1308_v42, %v1312_v34  ;;  %v7742_v25 = vld [vmem:[%s11121_s1 + $0x230] sm:$0xff] }
  0x7c   :  { %1769 = vst [vmem:[#allocation2 + $0x10c] sm:$0xf] %v1313_v46  ;;  %6042 = vmatpush.bf16.msra.mxu0 %v7742_v25  ;;  %v1094_v38 = vld [vmem:[%s11120_s0 + $0x30] sm:$0xf] }
  0x7d   :  { %1045 = vst [vmem:[#allocation2 + $0x128] sm:$0xf] %v871_v18  ;;  %v8398_v1 = vld [vmem:[%s11120_s0 + $0x30] sm:$0xf] }
  0x7e   :  { %1142 = vst [vmem:[#allocation2 + $0x150] sm:$0xf] %v1094_v38  ;;  %v1096_v38 = vld [vmem:[%s11120_s0 + $0x38] sm:$0xf] }
  0x7f   :  { %1144 = vst [vmem:[#allocation2 + $0x198] sm:$0xf] %v1096_v38 }
  0x80   :  { %v7488_v25 = vld [vmem:[#allocation2 + $0x100] sm:$0xf0] }
  0x81   :  { %5258 = vmatmul.bf16.vlgmr.msrb.gmra.mxu1 %v6311_v54  ;;  %5371 = vmatmul.bf16.vlgmr.msrb.gmra.mxu2 %v6315_v55  ;;  %v1314_v54 = vshrl.u32 %v1189_v30, 16  ;;  %v257_v55 = vshrl.u32 %v120_v51, 16  ;;  %v874_v30 = vsel %vm8125_vm5, %v872_v15, %v873_v11  ;;  %v7483_v22 = vld [vmem:[#allocation2 + $0xdc] sm:$0xf] }
  0x82   :  { %5484 = vmatmul.bf16.vlgmr.msrb.gmra.mxu3 %v6319_v56  ;;  %v1190_v56 = vld [vmem:[%s11120_s0 + $0x30] sm:$0xf]  ;;  %1046 = vst [vmem:[#allocation2 + $0x14c] sm:$0xf] %v874_v30  ;;  %v7484_v30 = vld [vmem:[#allocation2 + $0xe4] sm:$0xf] }
  0x83   :  { %5597 = vmatmul.bf16.vlgmr.msrb.gmra.mxu0 %v6323_v57  ;;  %v249_v57 = vrot.slane %v247_v52, 4  ;;  %v259_v61 = vrot.slane %v257_v55, 4  ;;  %v1316_v62 = vrot.slane %v1314_v54, 4  ;;  %v1320_v2 = vshll.u32 %v1190_v56, 16 }
  0x84   :  { %v1324_v35 = vshrl.u32 %v1190_v56, 16  ;;  %v1192_v56 = vld [vmem:[%s11120_s0 + $0x38] sm:$0xf] }
  0x85   :  { %v250_v0 = vor.u32 %v249_v57, %v8281_v19  ;;  %v260_v3 = vor.u32 %v259_v61, %v255_v58  ;;  %v1317_v7 = vor.u32 %v1316_v62, %v1312_v34  ;;  %v1191_v19 = vld [vmem:[%s11120_s0 + $0x34] sm:$0xf]  ;;  %v1322_v31 = vrot.slane %v1320_v2, 5  ;;  %v8386_v57 = vld [vmem:[%s11120_s0 + $0x30] sm:$0xf] }
  0x86   :  { %v1330_v27 = vshll.u32 %v1191_v19, 16  ;;  %v1326_v39 = vrot.slane %v1324_v35, 4  ;;  %v6387_v34 = vor.u32 %v7479_v24, %v6386_v23  ;;  %v1334_v53 = vshrl.u32 %v1191_v19, 16  ;;  %v754_v62 = vld [vmem:[%s11120_s0 + $0x2c] sm:$0xf] }
  0x87   :  { %v251_v9 = vrot.slane %v250_v0, 4  ;;  %v261_v12 = vrot.slane %v260_v3, 4  ;;  %v1318_v20 = vrot.slane %v1317_v7, 4  ;;  %v283_v61 = vshll.u32 %v8386_v57, 16  ;;  %v6416_v23 = vld [vmem:[#allocation2 + $0xfc] sm:$0xf0] }
  0x88   :  { %v1327_v33 = vor.u32 %v1326_v39, %v1322_v31  ;;  %v1332_v42 = vrot.slane %v1330_v27, 5  ;;  %v1336_v59 = vrot.slane %v1334_v53, 4  ;;  %v876_v2 = vrot.slane %v754_v62, 5  ;;  %v6422_v24 = vld [vmem:[#allocation2 + $0xe0] sm:$0xf] }
  0x89   :  { %v256_v16 = vsel %vm8102_vm2, %v251_v9, %v255_v58  ;;  %v266_v26 = vsel %vm8102_vm2, %v261_v12, %v8343_v14  ;;  %v1323_v29 = vsel %vm8102_vm2, %v1318_v20, %v1322_v31  ;;  %v1340_v4 = vshll.u32 %v1192_v56, 16  ;;  %v6424_v31 = vld [vmem:[#allocation2 + $0x104] sm:$0xf0]  ;;  %v7489_v39 = vld [vmem:[#allocation2 + $0x108] sm:$0xf0] }
  0x8a   :  { %703 = vst [vmem:[#allocation2 + $0x124] sm:$0xf] %v256_v16  ;;  %v1328_v46 = vrot.slane %v1327_v33, 4  ;;  %v1337_v3 = vor.u32 %v1336_v59, %v1332_v42  ;;  %v8402_v8 = vrot.slane %v283_v61, 5  ;;  %v1344_v9 = vshrl.u32 %v1192_v56, 16 }
  0x8b   :  { %704 = vst [vmem:[#allocation2 + $0x148] sm:$0xf] %v266_v26  ;;  %v878_v15 = vrot.slane %v876_v2, 4  ;;  %v1193_v16 = vld [vmem:[%s11120_s0 + $0x3c] sm:$0xf]  ;;  %v879_v20 = vrot.slane %v8398_v1, 5 }
  0x8c   :  { %1770 = vst [vmem:[#allocation2 + $0x130] sm:$0xf] %v1323_v29  ;;  %v1333_v52 = vsel %vm8102_vm2, %v1328_v46, %v1332_v42  ;;  %v1338_v13 = vrot.slane %v1337_v3, 4  ;;  %v1342_v26 = vrot.slane %v1340_v4, 5  ;;  %v1346_v37 = vrot.slane %v1344_v9, 4 }
  0x8d   :  { %1771 = vst [vmem:[#allocation2 + $0x154] sm:$0xf] %v1333_v52  ;;  %v880_v35 = vsel %vm8125_vm5, %v878_v15, %v879_v20  ;;  %v1350_v17 = vshll.u32 %v1193_v16, 16  ;;  %v6430_v27 = vld [vmem:[#allocation2 + $0xe8] sm:$0xf]  ;;  %v6427_v46 = vor.u32 %v7484_v30, %v6424_v31  ;;  %v881_v62 = vrot.slane %v879_v20, 4 }
  0x8e   :  { %1048 = vst [vmem:[#allocation2 + $0x194] sm:$0xf] %v880_v35  ;;  %v1343_v40 = vsel %vm8102_vm2, %v1338_v13, %v1342_v26  ;;  %v1347_v41 = vor.u32 %v1346_v37, %v1342_v26  ;;  %v756_v1 = vld [vmem:[%s11120_s0 + $0x34] sm:$0xf]  ;;  %v8454_v4 = vld [vmem:[%s11120_s0 + $0x38] sm:$0xf] }
  0x8f   :  { %v1352_v29 = vrot.slane %v1350_v17, 5  ;;  %1772 = vst [vmem:[#allocation2 + $0x178] sm:$0xf] %v1343_v40  ;;  %v1194_v13 = vld [vmem:[%s11120_s0 + $0x40] sm:$0xf] }
  0x90   :  { %v6458_v26 = vld [vmem:[#allocation2 + $0x128] sm:$0xf]  ;;  %v7497_v30 = vld [vmem:[#allocation2 + $0x148] sm:$0xf0]  ;;  %v6460_v17 = vld [vmem:[#allocation2 + $0x14c] sm:$0xf0] }
  0x91   :  { %5263 = vmatmul.bf16.gmra.mxu1 %v6347_v47  ;;  %5376 = vmatmul.bf16.gmra.mxu2 %v6351_v48  ;;  %v122_v47 = vld [vmem:[%s11120_s0 + $0x2c] sm:$0xf]  ;;  %v1360_v38 = vshll.u32 %v1194_v13, 16 }
  0x92   :  { %5489 = vmatmul.bf16.gmra.mxu3 %v6355_v49  ;;  %v267_v49 = vshrl.u32 %v8325_v63, 16  ;;  %v277_v51 = vshrl.u32 %v122_v47, 16  ;;  %v7493_v37 = vld [vmem:[#allocation2 + $0x12c] sm:$0xf] }
  0x93   :  { %5602 = vmatmul.bf16.gmra.mxu0 %v6359_v50  ;;  %v273_v50 = vshll.u32 %v122_v47, 16  ;;  %v6431_v47 = vor.u32 %v7489_v39, %v6430_v27  ;;  %v1364_v39 = vshrl.u32 %v1194_v13, 16 }
  0x94   :  { %v269_v54 = vrot.slane %v267_v49, 4  ;;  %v279_v58 = vrot.slane %v277_v51, 4  ;;  %v124_v49 = vld [vmem:[%s11120_s0 + $0x34] sm:$0xf]  ;;  %v287_v51 = vshrl.u32 %v8386_v57, 16 }
  0x95   :  { %v275_v55 = vrot.slane %v273_v50, 5  ;;  %v293_v53 = vshll.u32 %v124_v49, 16 }
  0x96   :  { %v270_v60 = vor.u32 %v269_v54, %v8343_v14  ;;  %v875_v14 = vrot.slane %v873_v11, 4  ;;  %v297_v54 = vshrl.u32 %v124_v49, 16  ;;  %v289_v56 = vrot.slane %v287_v51, 4 }
  0x97   :  { %v280_v0 = vor.u32 %v279_v58, %v275_v55  ;;  %v295_v58 = vrot.slane %v293_v53, 5  ;;  %v6459_v49 = vor.u32 %v7497_v30, %v6458_v26  ;;  %v8534_v30 = vld [vmem:[%s11120_s0 + $0x40] sm:$0xf] }
  0x98   :  { %v271_v7 = vrot.slane %v270_v60, 4  ;;  %v877_v11 = vsel %vm8125_vm5, %v875_v14, %v876_v2  ;;  %v8444_v60 = vld [vmem:[%s11120_s0 + $0x38] sm:$0xf]  ;;  %v299_v57 = vrot.slane %v297_v54, 4  ;;  %v290_v61 = vor.u32 %v289_v56, %v8402_v8  ;;  %v126_v56 = vld [vmem:[%s11120_s0 + $0x3c] sm:$0xf] }
  0x99   :  { %v281_v12 = vrot.slane %v280_v0, 4  ;;  %1047 = vst [vmem:[#allocation2 + $0x170] sm:$0xf] %v877_v11  ;;  %v303_v0 = vshll.u32 %v8444_v60, 16  ;;  %v6463_v54 = vor.u32 %v7493_v37, %v6460_v17  ;;  %v8543_v17 = vld [vmem:[%s11120_s0 + $0x4c] sm:$0xf] }
  0x9a   :  { %v276_v19 = vsel %vm8102_vm2, %v271_v7, %v275_v55  ;;  %v1354_v55 = vshrl.u32 %v1193_v16, 16  ;;  %v300_v3 = vor.u32 %v299_v57, %v295_v58  ;;  %v882_v7 = vrot.slane %v756_v1, 5 }
  0x9b   :  { %v286_v5 = vsel %vm8102_vm2, %v281_v12, %v8402_v8  ;;  %705 = vst [vmem:[#allocation2 + $0x16c] sm:$0xf] %v276_v19  ;;  %v291_v14 = vrot.slane %v290_v61, 4  ;;  %v8456_v15 = vrot.slane %v303_v0, 5  ;;  %v885_v8 = vrot.slane %v8454_v4, 5 }
  0x9c   :  { %706 = vst [vmem:[#allocation2 + $0x190] sm:$0xf] %v286_v5  ;;  %v1356_v59 = vrot.slane %v1354_v55, 4  ;;  %v301_v19 = vrot.slane %v300_v3, 4  ;;  %v884_v20 = vrot.slane %v882_v7, 4  ;;  %v883_v11 = vsel %vm8125_vm5, %v881_v62, %v882_v7 }
  0x9d   :  { %v296_v5 = vsel %vm8102_vm2, %v291_v14, %v295_v58  ;;  %1049 = vst [vmem:[#allocation2 + $0x1b8] sm:$0xf] %v883_v11  ;;  %v313_v61 = vshll.u32 %v126_v56, 16  ;;  %v317_v0 = vshrl.u32 %v126_v56, 16  ;;  %v1196_v7 = vld [vmem:[%s11120_s0 + $0x48] sm:$0xf] }
  0x9e   :  { %v8370_v43 = vpop.f32.mrf.mxu1  ;;  %v1357_v12 = vor.u32 %v1356_v59, %v1352_v29  ;;  %v306_v31 = vsel %vm8102_vm2, %v301_v19, %v8456_v15  ;;  %707 = vst [vmem:[#allocation2 + $0x1b4] sm:$0xf] %v296_v5  ;;  %v886_v35 = vsel %vm8125_vm5, %v884_v20, %v885_v8  ;;  %v307_v59 = vshrl.u32 %v8444_v60, 16  ;;  %v7725_v60 = vld [vmem:[%s11121_s1 + $0x1a8] sm:$0xff] }
  0x9f   :  { %708 = vst [vmem:[#allocation2 + $0x1d8] sm:$0xf] %v306_v31  ;;  %v315_v3 = vrot.slane %v313_v61, 5  ;;  %v319_v19 = vrot.slane %v317_v0, 4  ;;  %5817 = vmatpush.bf16.msra.mxu2 %v7725_v60  ;;  %v7717_v11 = vld [vmem:[%s11121_s1 + $0x168] sm:$0xff]  ;;  %v887_v36 = vrot.slane %v885_v8, 4 }
  0xa0   :  { %v8375_v48 = vpop.f32.mrf.mxu0  ;;  %v1358_v27 = vrot.slane %v1357_v12, 4  ;;  %1050 = vst [vmem:[#allocation2 + $0x1dc] sm:$0xf] %v886_v35  ;;  %v8517_v12 = vld [vmem:[%s11120_s0 + $0x40] sm:$0xf]  ;;  %5704 = vmatpush.bf16.msra.mxu1 %v7717_v11 }
  0xa1   :  { %5267 = vmatmul.bf16.gmra.mxu1 %v6383_v28  ;;  %5380 = vmatmul.bf16.gmra.mxu2 %v6387_v34  ;;  %v6419_v28 = vor.u32 %v7483_v22, %v6416_v23  ;;  %v6423_v34 = vor.u32 %v7488_v25, %v6422_v24  ;;  %v1195_v22 = vld [vmem:[%s11120_s0 + $0x44] sm:$0xf]  ;;  %v6452_v25 = vld [vmem:[#allocation2 + $0x144] sm:$0xf0]  ;;  %v320_v26 = vor.u32 %v319_v19, %v315_v3  ;;  %v6494_v4 = vld [vmem:[#allocation2 + $0x170] sm:$0xf] }
  0xa2   :  { %5493 = vmatmul.bf16.gmra.mxu3 %v6391_v44  ;;  %v1348_v44 = vrot.slane %v1347_v41, 4  ;;  %v7492_v24 = vld [vmem:[#allocation2 + $0x124] sm:$0xf]  ;;  %v1370_v40 = vshll.u32 %v1195_v22, 16  ;;  %v6466_v41 = vld [vmem:[#allocation2 + $0x130] sm:$0xf] }
  0xa3   :  { %5606 = vmatmul.bf16.gmra.mxu0 %v6395_v45  ;;  %v1374_v62 = vshrl.u32 %v1195_v22, 16  ;;  %v323_v22 = vshll.u32 %v8517_v12, 16  ;;  %v7506_v8 = vld [vmem:[#allocation2 + $0x190] sm:$0xf0]  ;;  %v1100_v61 = vld [vmem:[%s11120_s0 + $0x48] sm:$0xf] }
  0xa4   :  { %v8393_v63 = vpop.f32.mrf.mxu2  ;;  %v1353_v52 = vsel %vm8102_vm2, %v1348_v44, %v1352_v29  ;;  %v1098_v29 = vld [vmem:[%s11120_s0 + $0x40] sm:$0xf]  ;;  %v1366_v44 = vrot.slane %v1364_v39, 4  ;;  %v321_v39 = vrot.slane %v320_v26, 4  ;;  %v6502_v0 = vld [vmem:[#allocation2 + $0x178] sm:$0xf]  ;;  %v6495_v19 = vor.u32 %v7506_v8, %v6494_v4 }
  0xa5   :  { %v8400_v6 = vpop.f32.mrf.mxu3  ;;  %1773 = vst [vmem:[#allocation2 + $0x19c] sm:$0xf] %v1353_v52  ;;  %v8492_v52 = vrot.slane %v1370_v40, 5  ;;  %v1376_v20 = vrot.slane %v1374_v62, 4  ;;  %v8536_v35 = vrot.slane %v323_v22, 5  ;;  %v891_v40 = vrot.slane %v8534_v30, 5 }
  0xa6   :  { %v8404_v10 = vpop.f32.mrf.mxu1  ;;  %1146 = vst [vmem:[#allocation2 + $0x1e0] sm:$0xf] %v1098_v29  ;;  %v7501_v29 = vld [vmem:[#allocation2 + $0x16c] sm:$0xf]  ;;  %v128_v11 = vld [vmem:[%s11120_s0 + $0x44] sm:$0xf] }
  0xa7   :  { %1148 = vst [vmem:[#allocation2 + $0x228] sm:$0xf] %v1100_v61  ;;  %v327_v26 = vshrl.u32 %v8517_v12, 16  ;;  %v8587_v12 = vld [vmem:[%s11120_s0 + $0x48] sm:$0xf] }
  0xa8   :  { %v8411_v18 = vpop.f32.mrf.mxu0  ;;  %v343_v4 = vshll.u32 %v8587_v12, 16  ;;  %v760_v8 = vld [vmem:[%s11120_s0 + $0x44] sm:$0xf] }
  0xac   :  { %v8431_v33 = vpop.f32.mrf.mxu2 }
  0xad   :  { %v8433_v42 = vpop.f32.mrf.mxu3 }
  0xae   :  { %v5177_v45 = vpop.f32.mrf.mxu1 }
  0xb0   :  { %v5151_v50 = vpop.f32.mrf.mxu0 }
  0xb1   :  { %5271 = vmatmul.bf16.gmra.mxu1 %v6419_v28  ;;  %5384 = vmatmul.bf16.gmra.mxu2 %v6423_v34  ;;  %v7498_v28 = vld [vmem:[#allocation2 + $0x150] sm:$0xf0]  ;;  %v1362_v34 = vrot.slane %v1360_v38, 5 }
  0xb2   :  { %5497 = vmatmul.bf16.gmra.mxu3 %v6427_v46  ;;  %v6455_v46 = vor.u32 %v7492_v24, %v6452_v25  ;;  %v6467_v55 = vor.u32 %v7498_v28, %v6466_v41  ;;  %v758_v24 = vld [vmem:[%s11120_s0 + $0x3c] sm:$0xf]  ;;  %v1380_v25 = vshll.u32 %v1196_v7, 16  ;;  %v1377_v41 = vor.u32 %v1376_v20, %v8492_v52  ;;  %v6488_v28 = vld [vmem:[#allocation2 + $0x18c] sm:$0xf0] }
  0xb3   :  { %5610 = vmatmul.bf16.gmra.mxu0 %v6431_v47  ;;  %v1363_v50 = vsel %vm8102_vm2, %v1358_v27, %v1362_v34  ;;  %v1367_v51 = vor.u32 %v1366_v44, %v1362_v34  ;;  %v888_v37 = vrot.slane %v758_v24, 5  ;;  %v7741_v34 = vld [vmem:[%s11121_s1 + $0x228] sm:$0xff] }
  0xb4   :  { %v5203_v2 = vpop.f32.mrf.mxu2  ;;  %1774 = vst [vmem:[#allocation2 + $0x1c0] sm:$0xf] %v1363_v50  ;;  %v1384_v50 = vshrl.u32 %v1196_v7, 16  ;;  %v1378_v56 = vrot.slane %v1377_v41, 4  ;;  %6043 = vmatpush.bf16.msra.mxu0 %v7741_v34  ;;  %v1198_v41 = vld [vmem:[%s11120_s0 + $0x50] sm:$0xf] }
  0xb5   :  { %v5229_v9 = vpop.f32.mrf.mxu3  ;;  %v1368_v57 = vrot.slane %v1367_v51, 4  ;;  %v309_v2 = vrot.slane %v307_v59, 4  ;;  %v889_v44 = vsel %vm8125_vm5, %v887_v36, %v888_v37  ;;  %v7502_v51 = vld [vmem:[#allocation2 + $0x174] sm:$0xf]  ;;  %v1390_v59 = vshll.u32 %v8543_v17, 16 }
  0xb6   :  { %v8459_v16 = vpop.f32.mrf.mxu1  ;;  %v7733_v9 = vld [vmem:[%s11121_s1 + $0x1e8] sm:$0xff]  ;;  %1051 = vst [vmem:[#allocation2 + $0x200] sm:$0xf] %v889_v44  ;;  %v1386_v62 = vrot.slane %v1384_v50, 4  ;;  %v337_v36 = vshrl.u32 %v128_v11, 16 }
  0xb7   :  { %v1373_v1 = vsel %vm8102_vm2, %v1368_v57, %v8492_v52  ;;  %v310_v14 = vor.u32 %v309_v2, %v8456_v15  ;;  %5930 = vmatpush.bf16.msra.mxu3 %v7733_v9  ;;  %v326_v52 = vsel %vm8102_vm2, %v321_v39, %v8536_v35  ;;  %v1392_v60 = vrot.slane %v1390_v59, 5 }
  0xb8   :  { %v8467_v23 = vpop.f32.mrf.mxu0  ;;  %1775 = vst [vmem:[#allocation2 + $0x1e4] sm:$0xf] %v1373_v1  ;;  %v7507_v1 = vld [vmem:[#allocation2 + $0x198] sm:$0xf0] }
  0xb9   :  { %v311_v15 = vrot.slane %v310_v14, 4  ;;  %710 = vst [vmem:[#allocation2 + $0x220] sm:$0xf] %v326_v52  ;;  %v6491_v14 = vor.u32 %v7501_v29, %v6488_v28  ;;  %v6503_v24 = vor.u32 %v7507_v1, %v6502_v0  ;;  %v339_v29 = vrot.slane %v337_v36, 4 }
  0xba   :  { %v8603_v52 = vrot.slane %v343_v4, 5 }
  0xbb   :  { %v316_v38 = vsel %vm8102_vm2, %v311_v15, %v315_v3  ;;  %v6538_v36 = vld [vmem:[#allocation2 + $0x1c0] sm:$0xf] }
  0xbc   :  { %v8486_v45 = vpop.f32.mrf.mxu2  ;;  %709 = vst [vmem:[#allocation2 + $0x1fc] sm:$0xf] %v316_v38  ;;  %v329_v38 = vrot.slane %v327_v26, 4 }
  0xbd   :  { %v8488_v47 = vpop.f32.mrf.mxu3 }
  0xbe   :  { %v8494_v53 = vpop.f32.mrf.mxu1 }
  0xc0   :  { %v8499_v58 = vpop.f32.mrf.mxu0 }
  0xc1   :  { %5276 = vmatmul.bf16.gmra.mxu1 %v6455_v46  ;;  %5389 = vmatmul.bf16.gmra.mxu2 %v6459_v49  ;;  %v890_v46 = vrot.slane %v888_v37, 4  ;;  %v1382_v49 = vrot.slane %v1380_v25, 5 }
  0xc2   :  { %5502 = vmatmul.bf16.gmra.mxu3 %v6463_v54  ;;  %v6496_v54 = vld [vmem:[#allocation2 + $0x194] sm:$0xf0] }
  0xc3   :  { %5615 = vmatmul.bf16.gmra.mxu0 %v6467_v55  ;;  %v1099_v55 = vld [vmem:[%s11120_s0 + $0x44] sm:$0xf]  ;;  %v892_v57 = vsel %vm8125_vm5, %v890_v46, %v891_v40  ;;  %v1383_v2 = vsel %vm8102_vm2, %v1378_v56, %v1382_v49  ;;  %v1387_v7 = vor.u32 %v1386_v62, %v1382_v49  ;;  %v6499_v22 = vor.u32 %v7502_v51, %v6496_v54  ;;  %v8599_v46 = vld [vmem:[%s11120_s0 + $0x48] sm:$0xf]  ;;  %v1199_v62 = vld [vmem:[%s11120_s0 + $0x54] sm:$0xf] }
  0xc4   :  { %v8520_v13 = vpop.f32.mrf.mxu2  ;;  %1052 = vst [vmem:[#allocation2 + $0x224] sm:$0xf] %v892_v57  ;;  %v894_v49 = vrot.slane %v760_v8, 5  ;;  %v1400_v51 = vshll.u32 %v1198_v41, 16  ;;  %v893_v57 = vrot.slane %v891_v40, 4 }
  0xc5   :  { %v8526_v5 = vpop.f32.mrf.mxu3  ;;  %1147 = vst [vmem:[#allocation2 + $0x204] sm:$0xf] %v1099_v55  ;;  %v1388_v25 = vrot.slane %v1387_v7, 4  ;;  %v1404_v55 = vshrl.u32 %v1198_v41, 16  ;;  %v7510_v7 = vld [vmem:[#allocation2 + $0x1b4] sm:$0xf] }
  0xc6   :  { %v5183_v31 = vpop.f32.mrf.mxu1  ;;  %1776 = vst [vmem:[#allocation2 + $0x208] sm:$0xf] %v1383_v2  ;;  %v896_v61 = vrot.slane %v894_v49, 4  ;;  %v897_v2 = vrot.slane %v8599_v46, 5  ;;  %v895_v40 = vsel %vm8125_vm5, %v893_v57, %v894_v49 }
  0xc7   :  { %v333_v31 = vshll.u32 %v128_v11, 16  ;;  %v1393_v37 = vsel %vm8102_vm2, %v1388_v25, %v1392_v60  ;;  %v1101_v11 = vld [vmem:[%s11120_s0 + $0x4c] sm:$0xf]  ;;  %v1406_v26 = vrot.slane %v1404_v55, 4  ;;  %1053 = vst [vmem:[#allocation2 + $0x248] sm:$0xf] %v895_v40 }
  0xc8   :  { %v5157_v27 = vpop.f32.mrf.mxu0  ;;  %1777 = vst [vmem:[#allocation2 + $0x22c] sm:$0xf] %v1393_v37  ;;  %v898_v25 = vsel %vm8125_vm5, %v896_v61, %v897_v2  ;;  %v1102_v37 = vld [vmem:[%s11120_s0 + $0x50] sm:$0xf]  ;;  %v347_v55 = vshrl.u32 %v8587_v12, 16 }
  0xc9   :  { %v1394_v27 = vshrl.u32 %v8543_v17, 16  ;;  %v335_v39 = vrot.slane %v333_v31, 5  ;;  %v330_v17 = vor.u32 %v329_v38, %v8536_v35  ;;  %v1410_v31 = vshll.u32 %v1199_v62, 16  ;;  %1054 = vst [vmem:[#allocation2 + $0x26c] sm:$0xf] %v898_v25 }
  0xca   :  { %1149 = vst [vmem:[#allocation2 + $0x24c] sm:$0xf] %v1101_v11  ;;  %v762_v12 = vld [vmem:[%s11120_s0 + $0x4c] sm:$0xf] }
  0xcb   :  { %v1396_v28 = vrot.slane %v1394_v27, 4  ;;  %v340_v44 = vor.u32 %v339_v29, %v335_v39  ;;  %v331_v35 = vrot.slane %v330_v17, 4  ;;  %v7516_v27 = vld [vmem:[#allocation2 + $0x1e0] sm:$0xf0]  ;;  %v1412_v41 = vrot.slane %v1410_v31, 5 }
  0xcc   :  { %v5209_v3 = vpop.f32.mrf.mxu2  ;;  %1150 = vst [vmem:[#allocation2 + $0x270] sm:$0xf] %v1102_v37  ;;  %v899_v37 = vrot.slane %v897_v2, 4  ;;  %v6566_v2 = vld [vmem:[#allocation2 + $0x200] sm:$0xf] }
  0xcd   :  { %v5235_v9 = vpop.f32.mrf.mxu3  ;;  %v1397_v50 = vor.u32 %v1396_v28, %v1392_v60  ;;  %v341_v59 = vrot.slane %v340_v44, 4  ;;  %v336_v1 = vsel %vm8102_vm2, %v331_v35, %v335_v39  ;;  %v6524_v60 = vld [vmem:[#allocation2 + $0x1d4] sm:$0xf0] }
  0xce   :  { %v8570_v20 = vpop.f32.mrf.mxu1  ;;  %v6530_v9 = vld [vmem:[#allocation2 + $0x1b8] sm:$0xf]  ;;  %711 = vst [vmem:[#allocation2 + $0x244] sm:$0xf] %v336_v1  ;;  %v6527_v17 = vor.u32 %v7510_v7, %v6524_v60  ;;  %v1414_v1 = vshrl.u32 %v1199_v62, 16 }
  0xcf   :  { %v1398_v3 = vrot.slane %v1397_v50, 4  ;;  %v346_v30 = vsel %vm8102_vm2, %v341_v59, %v8603_v52  ;;  %v6539_v50 = vor.u32 %v7516_v27, %v6538_v36 }
  0xd0   :  { %v8575_v15 = vpop.f32.mrf.mxu0  ;;  %712 = vst [vmem:[#allocation2 + $0x268] sm:$0xf] %v346_v30 }
  0xd1   :  { %5280 = vmatmul.bf16.gmra.mxu1 %v6491_v14  ;;  %5393 = vmatmul.bf16.gmra.mxu2 %v6495_v19  ;;  %v7515_v14 = vld [vmem:[#allocation2 + $0x1d8] sm:$0xf0]  ;;  %v1402_v19 = vrot.slane %v1400_v51, 5  ;;  %v130_v51 = vld [vmem:[%s11120_s0 + $0x4c] sm:$0xf] }
  0xd2   :  { %5506 = vmatmul.bf16.gmra.mxu3 %v6499_v22  ;;  %v7511_v22 = vld [vmem:[#allocation2 + $0x1bc] sm:$0xf]  ;;  %v6531_v4 = vor.u32 %v7515_v14, %v6530_v9  ;;  %v353_v57 = vshll.u32 %v130_v51, 16  ;;  %v357_v61 = vshrl.u32 %v130_v51, 16  ;;  %v8647_v9 = vld [vmem:[%s11120_s0 + $0x50] sm:$0xf] }
  0xd3   :  { %5619 = vmatmul.bf16.gmra.mxu0 %v6503_v24  ;;  %v6532_v24 = vld [vmem:[#allocation2 + $0x1dc] sm:$0xf0]  ;;  %v1403_v38 = vsel %vm8102_vm2, %v1398_v3, %v1402_v19  ;;  %v1407_v39 = vor.u32 %v1406_v26, %v1402_v19  ;;  %v349_v3 = vrot.slane %v347_v55, 4  ;;  %v363_v30 = vshll.u32 %v8647_v9, 16  ;;  %v8657_v19 = vld [vmem:[%s11120_s0 + $0x50] sm:$0xf] }
  0xd4   :  { %v8594_v34 = vpop.f32.mrf.mxu2  ;;  %v6535_v49 = vor.u32 %v7511_v22, %v6532_v24  ;;  %1778 = vst [vmem:[#allocation2 + $0x250] sm:$0xf] %v1403_v38  ;;  %v355_v7 = vrot.slane %v353_v57, 5  ;;  %v359_v60 = vrot.slane %v357_v61, 4  ;;  %v900_v22 = vrot.slane %v762_v12, 5 }
  0xd5   :  { %v8601_v54 = vpop.f32.mrf.mxu3  ;;  %v1408_v8 = vrot.slane %v1407_v39, 4  ;;  %v350_v14 = vor.u32 %v349_v3, %v8603_v52  ;;  %v1416_v24 = vrot.slane %v1414_v1, 4  ;;  %v8659_v31 = vrot.slane %v363_v30, 5  ;;  %v1200_v52 = vld [vmem:[%s11120_s0 + $0x58] sm:$0xf] }
  0xd6   :  { %v8605_v56 = vpop.f32.mrf.mxu1  ;;  %v360_v62 = vor.u32 %v359_v60, %v355_v7  ;;  %v902_v27 = vrot.slane %v900_v22, 4  ;;  %v903_v38 = vrot.slane %v8657_v19, 5  ;;  %v1201_v39 = vld [vmem:[%s11120_s0 + $0x5c] sm:$0xf]  ;;  %v901_v51 = vsel %vm8125_vm5, %v899_v37, %v900_v22  ;;  %v7520_v55 = vld [vmem:[#allocation2 + $0x204] sm:$0xf] }
  0xd7   :  { %v1413_v59 = vsel %vm8102_vm2, %v1408_v8, %v1412_v41  ;;  %v351_v11 = vrot.slane %v350_v14, 4  ;;  %v7519_v8 = vld [vmem:[#allocation2 + $0x1fc] sm:$0xf]  ;;  %v1420_v61 = vshll.u32 %v1200_v52, 16  ;;  %v1424_v1 = vshrl.u32 %v1200_v52, 16 }
  0xd8   :  { %v8612_v0 = vpop.f32.mrf.mxu0  ;;  %1779 = vst [vmem:[#allocation2 + $0x274] sm:$0xf] %v1413_v59  ;;  %v361_v26 = vrot.slane %v360_v62, 4  ;;  %v6568_v59 = vld [vmem:[#allocation2 + $0x224] sm:$0xf0]  ;;  %v1430_v3 = vshll.u32 %v1201_v39, 16 }
  0xd9   :  { %1055 = vst [vmem:[#allocation2 + $0x290] sm:$0xf] %v901_v51  ;;  %v1104_v60 = vld [vmem:[%s11120_s0 + $0x58] sm:$0xf]  ;;  %v7525_v12 = vld [vmem:[#allocation2 + $0x228] sm:$0xf0]  ;;  %v6571_v37 = vor.u32 %v7520_v55, %v6568_v59 }
  0xda   :  { %v366_v46 = vsel %vm8102_vm2, %v361_v26, %v8659_v31  ;;  %v1422_v14 = vrot.slane %v1420_v61, 5  ;;  %v1426_v62 = vrot.slane %v1424_v1, 4  ;;  %1152 = vst [vmem:[#allocation2 + $0x2b8] sm:$0xf] %v1104_v60  ;;  %v8697_v26 = vrot.slane %v1430_v3, 5  ;;  %v7724_v55 = vld [vmem:[%s11121_s1 + $0x1a0] sm:$0xff] }
  0xdb   :  { %714 = vst [vmem:[#allocation2 + $0x2b0] sm:$0xf] %v366_v46  ;;  %v8722_v59 = vld [vmem:[%s11120_s0 + $0x58] sm:$0xf]  ;;  %5818 = vmatpush.bf16.msra.mxu2 %v7724_v55  ;;  %v764_v60 = vld [vmem:[%s11120_s0 + $0x54] sm:$0xf] }
  0xdc   :  { %v8634_v29 = vpop.f32.mrf.mxu2  ;;  %v6602_v55 = vld [vmem:[#allocation2 + $0x248] sm:$0xf] }
  0xdd   :  { %v8636_v28 = vpop.f32.mrf.mxu3 }
  0xde   :  { %11133 = vst [vmem:[#allocation6_spill] sm:$0xff] %v8636_v28  ;;  %v5190_v44 = vpop.f32.mrf.mxu1 }
  0xdf   :  { %v6560_v44 = vld [vmem:[#allocation2 + $0x21c] sm:$0xf0] }
  0xe0   :  { %v5164_v35 = vpop.f32.mrf.mxu0 }
  0xe1   :  { %5284 = vmatmul.bf16.gmra.mxu1 %v6527_v17  ;;  %5397 = vmatmul.bf16.gmra.mxu2 %v6531_v4  ;;  %v1417_v17 = vor.u32 %v1416_v24, %v1412_v41  ;;  %v904_v41 = vsel %vm8125_vm5, %v902_v27, %v903_v38  ;;  %v1103_v35 = vld [vmem:[%s11120_s0 + $0x54] sm:$0xf] }
  0xe2   :  { %5510 = vmatmul.bf16.gmra.mxu3 %v6535_v49  ;;  %v356_v49 = vsel %vm8102_vm2, %v351_v11, %v355_v7  ;;  %v6574_v7 = vld [vmem:[#allocation2 + $0x208] sm:$0xf]  ;;  %1056 = vst [vmem:[#allocation2 + $0x2b4] sm:$0xf] %v904_v41  ;;  %v1427_v11 = vor.u32 %v1426_v62, %v1422_v14 }
  0xe3   :  { %5623 = vmatmul.bf16.gmra.mxu0 %v6539_v50  ;;  %v7524_v50 = vld [vmem:[#allocation2 + $0x220] sm:$0xf0]  ;;  %713 = vst [vmem:[#allocation2 + $0x28c] sm:$0xf] %v356_v49  ;;  %v1418_v57 = vrot.slane %v1417_v17, 4  ;;  %v6575_v27 = vor.u32 %v7525_v12, %v6574_v7  ;;  %v383_v7 = vshll.u32 %v8722_v59, 16 }
  0xe4   :  { %v5216_v40 = vpop.f32.mrf.mxu2  ;;  %1151 = vst [vmem:[#allocation2 + $0x294] sm:$0xf] %v1103_v35  ;;  %v6567_v24 = vor.u32 %v7524_v50, %v6566_v2  ;;  %v132_v17 = vld [vmem:[%s11120_s0 + $0x54] sm:$0xf]  ;;  %v1428_v49 = vrot.slane %v1427_v11, 4  ;;  %v1434_v2 = vshrl.u32 %v1201_v39, 16 }
  0xe5   :  { %v5242_v25 = vpop.f32.mrf.mxu3  ;;  %v6563_v40 = vor.u32 %v7519_v8, %v6560_v44  ;;  %v367_v44 = vshrl.u32 %v8647_v9, 16  ;;  %v373_v46 = vshll.u32 %v132_v17, 16  ;;  %v377_v50 = vshrl.u32 %v132_v17, 16  ;;  %v7732_v9 = vld [vmem:[%s11121_s1 + $0x1e0] sm:$0xff] }
  0xe6   :  { %v8664_v36 = vpop.f32.mrf.mxu1  ;;  %v1423_v25 = vsel %vm8102_vm2, %v1418_v57, %v1422_v14  ;;  %v1433_v51 = vsel %vm8102_vm2, %v1428_v49, %v8697_v26  ;;  %v1202_v39 = vld [vmem:[%s11120_s0 + $0x60] sm:$0xf]  ;;  %v1436_v1 = vrot.slane %v1434_v2, 4  ;;  %5931 = vmatpush.bf16.msra.mxu3 %v7732_v9  ;;  %v8741_v11 = vrot.slane %v383_v7, 5  ;;  %v7533_v9 = vld [vmem:[#allocation2 + $0x268] sm:$0xf0] }
  0xe7   :  { %1780 = vst [vmem:[#allocation2 + $0x298] sm:$0xf] %v1423_v25  ;;  %v369_v41 = vrot.slane %v367_v44, 4  ;;  %v375_v35 = vrot.slane %v373_v46, 5  ;;  %v379_v61 = vrot.slane %v377_v50, 4  ;;  %v7716_v14 = vld [vmem:[%s11121_s1 + $0x160] sm:$0xff] }
  0xe8   :  { %v8672_v4 = vpop.f32.mrf.mxu0  ;;  %1781 = vst [vmem:[#allocation2 + $0x2bc] sm:$0xf] %v1433_v51  ;;  %5705 = vmatpush.bf16.msra.mxu1 %v7716_v14  ;;  %v7740_v44 = vld [vmem:[%s11121_s1 + $0x220] sm:$0xff]  ;;  %v1437_v19 = vor.u32 %v1436_v1, %v8697_v26  ;;  %v7529_v7 = vld [vmem:[#allocation2 + $0x24c] sm:$0xf] }
  0xe9   :  { %v370_v57 = vor.u32 %v369_v41, %v8659_v31  ;;  %v380_v31 = vor.u32 %v379_v61, %v375_v35  ;;  %v8754_v50 = vld [vmem:[%s11120_s0 + $0x64] sm:$0xf]  ;;  %v6596_v41 = vld [vmem:[#allocation2 + $0x264] sm:$0xf0]  ;;  %v1105_v61 = vld [vmem:[%s11120_s0 + $0x5c] sm:$0xf]  ;;  %6044 = vmatpush.bf16.msra.mxu0 %v7740_v44 }
  0xea   :  { %v7528_v51 = vld [vmem:[#allocation2 + $0x244] sm:$0xf]  ;;  %v6604_v26 = vld [vmem:[#allocation2 + $0x26c] sm:$0xf0]  ;;  %v1438_v14 = vrot.slane %v1437_v19, 4 }
  0xeb   :  { %v371_v62 = vrot.slane %v370_v57, 4  ;;  %v381_v46 = vrot.slane %v380_v31, 4  ;;  %v6610_v1 = vld [vmem:[#allocation2 + $0x250] sm:$0xf]  ;;  %v1444_v31 = vshrl.u32 %v1202_v39, 16  ;;  %v6599_v19 = vor.u32 %v7528_v51, %v6596_v41 }
  0xec   :  { %v8691_v30 = vpop.f32.mrf.mxu2  ;;  %1153 = vst [vmem:[#allocation2 + $0x2dc] sm:$0xf] %v1105_v61  ;;  %v1454_v51 = vshrl.u32 %v8754_v50, 16 }
  0xed   :  { %v8693_v22 = vpop.f32.mrf.mxu3  ;;  %v376_v49 = vsel %vm8102_vm2, %v371_v62, %v375_v35 }
  0xee   :  { %11134 = vst [vmem:[#allocation7_spill] sm:$0xff] %v8693_v22  ;;  %v8699_v52 = vpop.f32.mrf.mxu1 }
  0xef   :  { %715 = vst [vmem:[#allocation2 + $0x2d4] sm:$0xf] %v376_v49  ;;  %v1446_v49 = vrot.slane %v1444_v31, 4 }
  0xf0   :  { %v8704_v8 = vpop.f32.mrf.mxu0 }
  0xf1   :  { %5289 = vmatmul.bf16.gmra.mxu1 %v6563_v40  ;;  %5402 = vmatmul.bf16.gmra.mxu2 %v6567_v24  ;;  %v8739_v40 = vld [vmem:[%s11120_s0 + $0x58] sm:$0xf]  ;;  %v1440_v24 = vshll.u32 %v1202_v39, 16 }
  0xf2   :  { %5515 = vmatmul.bf16.gmra.mxu3 %v6571_v37  ;;  %v905_v37 = vrot.slane %v903_v38, 4  ;;  %v11124_v2 = vrot.slane %v8739_v40, 5  ;;  %v8760_v38 = vld [vmem:[%s11122_s2] ss:$0 sm:$0xff] }
  0xf3   :  { %5628 = vmatmul.bf16.gmra.mxu0 %v6575_v27  ;;  %v906_v27 = vrot.slane %v764_v60, 5  ;;  %v386_v60 = vsel %vm8102_vm2, %v381_v46, %v8741_v11  ;;  %v1442_v62 = vrot.slane %v1440_v24, 5  ;;  %v5147_v39 = vadd.f32 %v8760_v38, %v8375_v48 }
  0xf4   :  { %v8725_v3 = vpop.f32.mrf.mxu2  ;;  %716 = vst [vmem:[#allocation2 + $0x2f8] sm:$0xf] %v386_v60  ;;  %v387_v48 = vshrl.u32 %v8722_v59, 16  ;;  %v8798_v59 = vld [vmem:[%s11120_s0 + $0x60] sm:$0xf] }
  0xf5   :  { %v8731_v12 = vpop.f32.mrf.mxu3  ;;  %v907_v35 = vsel %vm8125_vm5, %v905_v37, %v906_v27  ;;  %v908_v57 = vrot.slane %v906_v27, 4  ;;  %v1106_v37 = vld [vmem:[%s11120_s0 + $0x60] sm:$0xf]  ;;  %v1450_v27 = vshll.u32 %v8754_v50, 16  ;;  %v1443_v44 = vsel %vm8102_vm2, %v1438_v14, %v1442_v62  ;;  %v134_v14 = vld [vmem:[%s11120_s0 + $0x5c] sm:$0xf] }
  0xf6   :  { %11135 = vst [vmem:[#allocation8_spill] sm:$0xff] %v8731_v12  ;;  %v5196_v25 = vpop.f32.mrf.mxu1  ;;  %v6607_v12 = vor.u32 %v7529_v7, %v6604_v26  ;;  %v397_v41 = vshrl.u32 %v134_v14, 16 }
  0xf7   :  { %1057 = vst [vmem:[#allocation2 + $0x2d8] sm:$0xf] %v907_v35  ;;  %v910_v25 = vsel %vm8125_vm5, %v908_v57, %v11124_v2  ;;  %v6603_v35 = vor.u32 %v7533_v9, %v6602_v55  ;;  %v1447_v57 = vor.u32 %v1446_v49, %v1442_v62  ;;  %v8782_v60 = vrot.slane %v1450_v27, 5  ;;  %v766_v62 = vld [vmem:[%s11120_s0 + $0x5c] sm:$0xf] }
  0xf8   :  { %v5170_v17 = vpop.f32.mrf.mxu0  ;;  %1058 = vst [vmem:[#allocation2 + $0x2fc] sm:$0xf] %v910_v25  ;;  %v389_v9 = vrot.slane %v387_v48, 4  ;;  %v399_v26 = vrot.slane %v397_v41, 4  ;;  %v1456_v27 = vrot.slane %v1454_v51, 4 }
  0xf9   :  { %v7534_v17 = vld [vmem:[#allocation2 + $0x270] sm:$0xf0]  ;;  %1154 = vst [vmem:[#allocation2 + $0x300] sm:$0xf] %v1106_v37  ;;  %v1448_v61 = vrot.slane %v1447_v57, 4  ;;  %v11136_v57 = vrot.slane %v8739_v40, 5 }
  0xfa   :  { %v6611_v22 = vor.u32 %v7534_v17, %v6610_v1  ;;  %1782 = vst [vmem:[#allocation2 + $0x2e0] sm:$0xf] %v1443_v44  ;;  %v390_v50 = vor.u32 %v389_v9, %v8741_v11  ;;  %v403_v1 = vshll.u32 %v8798_v59, 16  ;;  %v5149_v44 = vadd.f32 %v8760_v38, %v8411_v18  ;;  %v7537_v41 = vld [vmem:[#allocation2 + $0x28c] sm:$0xf] }
  0xfb   :  { %v1453_v55 = vsel %vm8102_vm2, %v1448_v61, %v8782_v60  ;;  %v7542_v40 = vld [vmem:[#allocation2 + $0x2b0] sm:$0xf0] }
  0xfc   :  { %v5222_v24 = vpop.f32.mrf.mxu2  ;;  %1783 = vst [vmem:[#allocation2 + $0x304] sm:$0xf] %v1453_v55  ;;  %v6632_v55 = vld [vmem:[#allocation2 + $0x2ac] sm:$0xf0] }
  0xfd   :  { %v5248_v46 = vpop.f32.mrf.mxu3  ;;  %v393_v24 = vshll.u32 %v134_v14, 16  ;;  %v911_v14 = vrot.slane %v11136_v57, 4 }
  0xfe   :  { %v5259_v2 = vpop.f32.mrf.mxu1 }
  0xff   :  { %v5260_v31 = vadd.f32 %v5259_v2, %v5147_v39  ;;  %v395_v7 = vrot.slane %v393_v24, 5  ;;  %v1204_v2 = vld [vmem:[%s11120_s0 + $0x68] sm:$0xf]  ;;  %v391_v39 = vrot.slane %v390_v50, 4  ;;  %v8820_v24 = vld [vmem:[%s11120_s0 + $0x6c] sm:$0xf] }
 0x100   :  { %v5598_v25 = vpop.f32.mrf.mxu0  ;;  %v1460_v17 = vshll.u32 %v1204_v2, 16 }
 0x101   :  { %5293 = vmatmul.bf16.gmra.mxu1 %v6599_v19  ;;  %5406 = vmatmul.bf16.gmra.mxu2 %v6603_v35  ;;  %v400_v46 = vor.u32 %v399_v26, %v395_v7  ;;  %v8812_v35 = vrot.slane %v403_v1, 5  ;;  %v396_v9 = vsel %vm8102_vm2, %v391_v39, %v395_v7  ;;  %v6638_v26 = vld [vmem:[#allocation2 + $0x290] sm:$0xf]  ;;  %v1464_v39 = vshrl.u32 %v1204_v2, 16 }
 0x102   :  { %5519 = vmatmul.bf16.gmra.mxu3 %v6607_v12  ;;  %v912_v12 = vrot.slane %v766_v62, 5  ;;  %717 = vst [vmem:[#allocation2 + $0x31c] sm:$0xf] %v396_v9  ;;  %v6635_v9 = vor.u32 %v7537_v41, %v6632_v55  ;;  %v407_v55 = vshrl.u32 %v8798_v59, 16  ;;  %v8858_v59 = vld [vmem:[%s11120_s0 + $0x68] sm:$0xf] }
 0x103   :  { %5632 = vmatmul.bf16.gmra.mxu0 %v6611_v22  ;;  %v8808_v22 = vld [vmem:[%s11120_s0 + $0x60] sm:$0xf]  ;;  %v401_v50 = vrot.slane %v400_v46, 4  ;;  %v1470_v46 = vshll.u32 %v8820_v24, 16 }
 0x104   :  { %v5372_v37 = vpop.f32.mrf.mxu2  ;;  %v914_v48 = vrot.slane %v912_v12, 4  ;;  %v11125_v61 = vrot.slane %v8808_v22, 5  ;;  %v913_v1 = vsel %vm8125_vm5, %v911_v14, %v912_v12  ;;  %v1107_v12 = vld [vmem:[%s11120_s0 + $0x64] sm:$0xf]  ;;  %v1466_v14 = vrot.slane %v1464_v39, 4 }
 0x105   :  { %v5373_v11 = vadd.f32 %v5372_v37, %v5260_v31  ;;  %v5485_v49 = vpop.f32.mrf.mxu3  ;;  %v1457_v37 = vor.u32 %v1456_v27, %v8782_v60  ;;  %v406_v7 = vsel %vm8102_vm2, %v401_v50, %v8812_v35  ;;  %1059 = vst [vmem:[#allocation2 + $0x320] sm:$0xf] %v913_v1  ;;  %v1108_v60 = vld [vmem:[%s11120_s0 + $0x68] sm:$0xf] }
 0x106   :  { %v5261_v19 = vpop.f32.mrf.mxu1  ;;  %v916_v62 = vsel %vm8125_vm5, %v914_v48, %v11125_v61  ;;  %718 = vst [vmem:[#allocation2 + $0x340] sm:$0xf] %v406_v7  ;;  %v6639_v61 = vor.u32 %v7542_v40, %v6638_v26  ;;  %v1206_v40 = vld [vmem:[%s11120_s0 + $0x70] sm:$0xf] }
 0x107   :  { %v5486_v51 = vadd.f32 %v5485_v49, %v5373_v11  ;;  %v5262_v18 = vadd.f32 %v5261_v19, %v5149_v44  ;;  %v1462_v44 = vrot.slane %v1460_v17, 5  ;;  %v7538_v11 = vld [vmem:[#allocation2 + $0x294] sm:$0xf]  ;;  %v6640_v49 = vld [vmem:[#allocation2 + $0x2b4] sm:$0xf0]  ;;  %v1458_v27 = vrot.slane %v1457_v37, 4 }
 0x108   :  { %v5600_v31 = vpop.f32.mrf.mxu0  ;;  %v6646_v19 = vld [vmem:[#allocation2 + $0x298] sm:$0xf]  ;;  %v7543_v17 = vld [vmem:[#allocation2 + $0x2b8] sm:$0xf0]  ;;  %1060 = vst [vmem:[#allocation2 + $0x344] sm:$0xf] %v916_v62 }
 0x109   :  { %v8838_v57 = vadd.f32 %v5598_v25, %v5486_v51  ;;  %1155 = vst [vmem:[#allocation2 + $0x324] sm:$0xf] %v1107_v12  ;;  %v1463_v50 = vsel %vm8102_vm2, %v1458_v27, %v1462_v44  ;;  %v1467_v25 = vor.u32 %v1466_v14, %v1462_v44  ;;  %v1472_v51 = vrot.slane %v1470_v46, 5  ;;  %v136_v62 = vld [vmem:[%s11120_s0 + $0x64] sm:$0xf] }
 0x10a   :  { %1156 = vst [vmem:[#allocation2 + $0x348] sm:$0xf] %v1108_v60  ;;  %v6647_v28 = vor.u32 %v7543_v17, %v6646_v19  ;;  %v413_v39 = vshll.u32 %v136_v62, 16  ;;  %v417_v26 = vshrl.u32 %v136_v62, 16  ;;  %v768_v60 = vld [vmem:[%s11120_s0 + $0x64] sm:$0xf] }
 0x10b   :  { %11137 = vst [vmem:[#allocation9_spill] sm:$0xff] %v8838_v57  ;;  %v6643_v57 = vor.u32 %v7538_v11, %v6640_v49  ;;  %v1468_v12 = vrot.slane %v1467_v25, 4  ;;  %v409_v11 = vrot.slane %v407_v55, 4  ;;  %v1480_v27 = vshll.u32 %v1206_v40, 16 }
 0x10c   :  { %v5374_v48 = vpop.f32.mrf.mxu2  ;;  %1784 = vst [vmem:[#allocation2 + $0x328] sm:$0xf] %v1463_v50  ;;  %v415_v49 = vrot.slane %v413_v39, 5  ;;  %v419_v46 = vrot.slane %v417_v26, 4  ;;  %v918_v17 = vrot.slane %v768_v60, 5 }
 0x10d   :  { %v5375_v2 = vadd.f32 %v5374_v48, %v5262_v18  ;;  %v5487_v1 = vpop.f32.mrf.mxu3  ;;  %v1474_v18 = vshrl.u32 %v8820_v24, 16  ;;  %v1473_v44 = vsel %vm8102_vm2, %v1468_v12, %v1472_v51  ;;  %v410_v19 = vor.u32 %v409_v11, %v8812_v35  ;;  %v7546_v26 = vld [vmem:[#allocation2 + $0x2d4] sm:$0xf]  ;;  %v7551_v11 = vld [vmem:[#allocation2 + $0x2f8] sm:$0xf0] }
 0x10e   :  { %v5264_v7 = vpop.f32.mrf.mxu1  ;;  %1785 = vst [vmem:[#allocation2 + $0x34c] sm:$0xf] %v1473_v44  ;;  %v6668_v44 = vld [vmem:[#allocation2 + $0x2f4] sm:$0xf0]  ;;  %v7547_v60 = vld [vmem:[#allocation2 + $0x2dc] sm:$0xf] }
 0x10f   :  { %v5488_v37 = vadd.f32 %v5487_v1, %v5375_v2  ;;  %v1476_v14 = vrot.slane %v1474_v18, 4  ;;  %v411_v48 = vrot.slane %v410_v19, 4  ;;  %v11138_v1 = vrot.slane %v8808_v22, 5  ;;  %v6674_v22 = vld [vmem:[#allocation2 + $0x2d8] sm:$0xf] }
 0x110   :  { %v5603_v41 = vpop.f32.mrf.mxu0  ;;  %v920_v7 = vrot.slane %v918_v17, 4  ;;  %v1482_v18 = vrot.slane %v1480_v27, 5  ;;  %v1109_v27 = vld [vmem:[%s11120_s0 + $0x6c] sm:$0xf] }
 0x111   :  { %5297 = vmatmul.bf16.gmra.mxu1 %v6635_v9  ;;  %5410 = vmatmul.bf16.gmra.mxu2 %v6639_v61  ;;  %v8860_v24 = vadd.f32 %v5600_v31, %v5488_v37  ;;  %v423_v61 = vshll.u32 %v8858_v59, 16  ;;  %v5153_v31 = vadd.f32 %v8760_v38, %v8467_v23  ;;  %v420_v9 = vor.u32 %v419_v46, %v415_v49  ;;  %v8882_v37 = vld [vmem:[%s11120_s0 + $0x74] sm:$0xf] }
 0x112   :  { %5523 = vmatmul.bf16.gmra.mxu3 %v6643_v57  ;;  %v917_v25 = vrot.slane %v11138_v1, 4  ;;  %v1477_v41 = vor.u32 %v1476_v14, %v1472_v51  ;;  %v416_v12 = vsel %vm8102_vm2, %v411_v48, %v415_v49  ;;  %v1110_v14 = vld [vmem:[%s11120_s0 + $0x70] sm:$0xf]  ;;  %1157 = vst [vmem:[#allocation2 + $0x36c] sm:$0xf] %v1109_v27 }
 0x113   :  { %5636 = vmatmul.bf16.gmra.mxu0 %v6647_v28  ;;  %v8870_v28 = vld [vmem:[%s11120_s0 + $0x68] sm:$0xf]  ;;  %v8874_v50 = vrot.slane %v423_v61, 5  ;;  %v421_v39 = vrot.slane %v420_v9, 4  ;;  %719 = vst [vmem:[#allocation2 + $0x364] sm:$0xf] %v416_v12  ;;  %v6671_v12 = vor.u32 %v7546_v26, %v6668_v44 }
 0x114   :  { %v5377_v57 = vpop.f32.mrf.mxu2  ;;  %v921_v62 = vrot.slane %v8870_v28, 5  ;;  %v919_v19 = vsel %vm8125_vm5, %v917_v25, %v918_v17  ;;  %v1478_v46 = vrot.slane %v1477_v41, 4  ;;  %v1484_v61 = vshrl.u32 %v1206_v40, 16  ;;  %v6682_v40 = vld [vmem:[#allocation2 + $0x2e0] sm:$0xf]  ;;  %v7739_v28 = vld [vmem:[%s11121_s1 + $0x218] sm:$0xff] }
 0x115   :  { %v5490_v35 = vpop.f32.mrf.mxu3  ;;  %v6676_v57 = vld [vmem:[#allocation2 + $0x2fc] sm:$0xf0]  ;;  %v426_v49 = vsel %vm8102_vm2, %v421_v39, %v8874_v50  ;;  %1061 = vst [vmem:[#allocation2 + $0x368] sm:$0xf] %v919_v19  ;;  %v1490_v17 = vshll.u32 %v8882_v37, 16  ;;  %v5156_v25 = vadd.f32 %v8760_v38, %v8499_v58  ;;  %v6675_v39 = vor.u32 %v7551_v11, %v6674_v22  ;;  %6045 = vmatpush.bf16.msra.mxu0 %v7739_v28 }
 0x116   :  { %v5265_v2 = vpop.f32.mrf.mxu1  ;;  %v922_v51 = vsel %vm8125_vm5, %v920_v7, %v921_v62  ;;  %720 = vst [vmem:[#allocation2 + $0x388] sm:$0xf] %v426_v49  ;;  %v7552_v35 = vld [vmem:[#allocation2 + $0x300] sm:$0xf0]  ;;  %v1483_v48 = vsel %vm8102_vm2, %v1478_v46, %v1482_v18  ;;  %v138_v46 = vld [vmem:[%s11120_s0 + $0x6c] sm:$0xf] }
 0x117   :  { %v5266_v55 = vadd.f32 %v5265_v2, %v5153_v31  ;;  %v1486_v31 = vrot.slane %v1484_v61, 4  ;;  %1062 = vst [vmem:[#allocation2 + $0x38c] sm:$0xf] %v922_v51  ;;  %v8904_v1 = vrot.slane %v1490_v17, 5  ;;  %v6679_v61 = vor.u32 %v7547_v60, %v6676_v57  ;;  %v1208_v11 = vld [vmem:[%s11120_s0 + $0x78] sm:$0xf] }
 0x118   :  { %v5604_v23 = vpop.f32.mrf.mxu0  ;;  %1158 = vst [vmem:[#allocation2 + $0x390] sm:$0xf] %v1110_v14  ;;  %v6683_v49 = vor.u32 %v7552_v35, %v6682_v40  ;;  %v427_v58 = vshrl.u32 %v8858_v59, 16  ;;  %v1494_v44 = vshrl.u32 %v8882_v37, 16  ;;  %v437_v22 = vshrl.u32 %v138_v46, 16  ;;  %v7723_v59 = vld [vmem:[%s11121_s1 + $0x198] sm:$0xff] }
 0x119   :  { %v1487_v2 = vor.u32 %v1486_v31, %v1482_v18  ;;  %1786 = vst [vmem:[#allocation2 + $0x370] sm:$0xf] %v1483_v48  ;;  %v7731_v37 = vld [vmem:[%s11121_s1 + $0x1d8] sm:$0xff]  ;;  %v8932_v35 = vld [vmem:[%s11120_s0 + $0x70] sm:$0xf]  ;;  %5819 = vmatpush.bf16.msra.mxu2 %v7723_v59 }
 0x11a   :  { %v429_v60 = vrot.slane %v427_v58, 4  ;;  %v439_v31 = vrot.slane %v437_v22, 4  ;;  %v1496_v40 = vrot.slane %v1494_v44, 4  ;;  %v770_v48 = vld [vmem:[%s11120_s0 + $0x6c] sm:$0xf]  ;;  %5932 = vmatpush.bf16.msra.mxu3 %v7731_v37 }
 0x11b   :  { %v1488_v51 = vrot.slane %v1487_v2, 4  ;;  %v7555_v59 = vld [vmem:[#allocation2 + $0x31c] sm:$0xf]  ;;  %v6704_v37 = vld [vmem:[#allocation2 + $0x33c] sm:$0xf0] }
 0x11c   :  { %v5378_v9 = vpop.f32.mrf.mxu2 }
 0x11d   :  { %v5379_v7 = vadd.f32 %v5378_v9, %v5266_v55  ;;  %v5491_v41 = vpop.f32.mrf.mxu3  ;;  %v433_v55 = vshll.u32 %v138_v46, 16  ;;  %v1493_v26 = vsel %vm8102_vm2, %v1488_v51, %v8904_v1  ;;  %v1500_v9 = vshll.u32 %v1208_v11, 16 }
 0x11e   :  { %v5268_v19 = vpop.f32.mrf.mxu1  ;;  %1787 = vst [vmem:[#allocation2 + $0x394] sm:$0xf] %v1493_v26  ;;  %v923_v51 = vrot.slane %v921_v62, 4 }
 0x11f   :  { %v5492_v18 = vadd.f32 %v5491_v41, %v5379_v7  ;;  %v5269_v27 = vadd.f32 %v5268_v19, %v5156_v25  ;;  %v435_v57 = vrot.slane %v433_v55, 5  ;;  %v443_v7 = vshll.u32 %v8932_v35, 16  ;;  %v8942_v41 = vld [vmem:[%s11120_s0 + $0x70] sm:$0xf] }
 0x120   :  { %v8911_v17 = vpop.f32.mrf.mxu0  ;;  %v927_v26 = vrot.slane %v8942_v41, 5 }
 0x121   :  { %5302 = vmatmul.bf16.gmra.mxu1 %v6671_v12  ;;  %5415 = vmatmul.bf16.gmra.mxu2 %v6675_v39  ;;  %v8921_v14 = vadd.f32 %v5604_v23, %v5492_v18  ;;  %v430_v23 = vor.u32 %v429_v60, %v8874_v50  ;;  %v440_v25 = vor.u32 %v439_v31, %v435_v57  ;;  %v924_v12 = vrot.slane %v770_v48, 5  ;;  %v6710_v31 = vld [vmem:[#allocation2 + $0x320] sm:$0xf] }
 0x122   :  { %5528 = vmatmul.bf16.gmra.mxu3 %v6679_v61  ;;  %v1497_v39 = vor.u32 %v1496_v40, %v8904_v1  ;;  %v7715_v61 = vld [vmem:[%s11121_s1 + $0x158] sm:$0xff]  ;;  %v8950_v58 = vrot.slane %v443_v7, 5  ;;  %v7560_v40 = vld [vmem:[#allocation2 + $0x340] sm:$0xf0]  ;;  %v6712_v7 = vld [vmem:[#allocation2 + $0x344] sm:$0xf0] }
 0x123   :  { %5641 = vmatmul.bf16.gmra.mxu0 %v6683_v49  ;;  %v431_v49 = vrot.slane %v430_v23, 4  ;;  %v441_v18 = vrot.slane %v440_v25, 4  ;;  %v926_v55 = vrot.slane %v924_v12, 4  ;;  %v8956_v1 = vld [vmem:[%s11120_s0 + $0x7c] sm:$0xf]  ;;  %5706 = vmatpush.bf16.msra.mxu1 %v7715_v61  ;;  %v925_v22 = vsel %vm8125_vm5, %v923_v51, %v924_v12 }
 0x124   :  { %v5381_v2 = vpop.f32.mrf.mxu2  ;;  %v1498_v60 = vrot.slane %v1497_v39, 4  ;;  %v7556_v25 = vld [vmem:[#allocation2 + $0x324] sm:$0xf]  ;;  %v1111_v12 = vld [vmem:[%s11120_s0 + $0x74] sm:$0xf]  ;;  %v1510_v39 = vshll.u32 %v8956_v1, 16 }
 0x125   :  { %v5382_v50 = vadd.f32 %v5381_v2, %v5269_v27  ;;  %v5494_v19 = vpop.f32.mrf.mxu3  ;;  %v436_v62 = vsel %vm8102_vm2, %v431_v49, %v435_v57  ;;  %v446_v23 = vsel %vm8102_vm2, %v441_v18, %v8950_v58  ;;  %v928_v48 = vsel %vm8125_vm5, %v926_v55, %v927_v26  ;;  %1063 = vst [vmem:[#allocation2 + $0x3b0] sm:$0xf] %v925_v22  ;;  %v7561_v61 = vld [vmem:[#allocation2 + $0x348] sm:$0xf0] }
 0x126   :  { %v5270_v46 = vpop.f32.mrf.mxu1  ;;  %721 = vst [vmem:[#allocation2 + $0x3ac] sm:$0xf] %v436_v62  ;;  %v1502_v2 = vrot.slane %v1500_v9, 5  ;;  %v1504_v57 = vshrl.u32 %v1208_v11, 16  ;;  %v6718_v11 = vld [vmem:[#allocation2 + $0x328] sm:$0xf]  ;;  %v6715_v62 = vor.u32 %v7556_v25, %v6712_v7 }
 0x127   :  { %v5495_v27 = vadd.f32 %v5494_v19, %v5382_v50  ;;  %722 = vst [vmem:[#allocation2 + $0x3d0] sm:$0xf] %v446_v23  ;;  %v1112_v19 = vld [vmem:[%s11120_s0 + $0x78] sm:$0xf]  ;;  %v1512_v18 = vrot.slane %v1510_v39, 5  ;;  %v6719_v22 = vor.u32 %v7561_v61, %v6718_v11 }
 0x128   :  { %v5609_v44 = vpop.f32.mrf.mxu0  ;;  %v1506_v9 = vrot.slane %v1504_v57, 4  ;;  %1064 = vst [vmem:[#allocation2 + $0x3d4] sm:$0xf] %v928_v48  ;;  %v1503_v49 = vsel %vm8102_vm2, %v1498_v60, %v1502_v2  ;;  %v140_v60 = vld [vmem:[%s11120_s0 + $0x74] sm:$0xf] }
 0x129   :  { %v8977_v50 = vadd.f32 %v8911_v17, %v5495_v27  ;;  %1159 = vst [vmem:[#allocation2 + $0x3b4] sm:$0xf] %v1111_v12  ;;  %v5160_v17 = vadd.f32 %v8760_v38, %v8575_v15  ;;  %v6707_v27 = vor.u32 %v7555_v59, %v6704_v37  ;;  %v6711_v44 = vor.u32 %v7560_v40, %v6710_v31  ;;  %v1210_v40 = vld [vmem:[%s11120_s0 + $0x80] sm:$0xf]  ;;  %v772_v11 = vld [vmem:[%s11120_s0 + $0x74] sm:$0xf] }
 0x12a   :  { %v1507_v46 = vor.u32 %v1506_v9, %v1502_v2  ;;  %1160 = vst [vmem:[#allocation2 + $0x3d8] sm:$0xf] %v1112_v19  ;;  %v447_v2 = vshrl.u32 %v8932_v35, 16  ;;  %v453_v12 = vshll.u32 %v140_v60, 16  ;;  %v457_v39 = vshrl.u32 %v140_v60, 16 }
 0x12b   :  { %1788 = vst [vmem:[#allocation2 + $0x3b8] sm:$0xf] %v1503_v49  ;;  %v1514_v59 = vshrl.u32 %v8956_v1, 16  ;;  %v8999_v35 = vld [vmem:[%s11120_s0 + $0x78] sm:$0xf]  ;;  %v5162_v1 = vadd.f32 %v8760_v38, %v8612_v0 }
 0x12c   :  { %v5383_v51 = vpop.f32.mrf.mxu2  ;;  %v1508_v23 = vrot.slane %v1507_v46, 4  ;;  %v449_v37 = vrot.slane %v447_v2, 4  ;;  %v455_v31 = vrot.slane %v453_v12, 5  ;;  %v459_v25 = vrot.slane %v457_v39, 4  ;;  %v1211_v12 = vld [vmem:[%s11120_s0 + $0x84] sm:$0xf] }
 0x12d   :  { %v5496_v55 = vpop.f32.mrf.mxu3  ;;  %v1516_v7 = vrot.slane %v1514_v59, 4  ;;  %v463_v9 = vshll.u32 %v8999_v35, 16  ;;  %v9011_v51 = vld [vmem:[%s11120_s0 + $0x78] sm:$0xf]  ;;  %v930_v46 = vrot.slane %v772_v11, 5 }
 0x12e   :  { %v5272_v28 = vpop.f32.mrf.mxu1  ;;  %v1513_v15 = vsel %vm8102_vm2, %v1508_v23, %v1512_v18  ;;  %v450_v19 = vor.u32 %v449_v37, %v8950_v58  ;;  %v460_v49 = vor.u32 %v459_v25, %v455_v31  ;;  %v1520_v55 = vshll.u32 %v1210_v40, 16  ;;  %v7564_v37 = vld [vmem:[#allocation2 + $0x364] sm:$0xf]  ;;  %v6746_v25 = vld [vmem:[#allocation2 + $0x368] sm:$0xf] }
 0x12f   :  { %v5273_v48 = vadd.f32 %v5272_v28, %v5160_v17  ;;  %1789 = vst [vmem:[#allocation2 + $0x3dc] sm:$0xf] %v1513_v15  ;;  %v1517_v17 = vor.u32 %v1516_v7, %v1512_v18  ;;  %v9013_v58 = vrot.slane %v463_v9, 5  ;;  %v1524_v28 = vshrl.u32 %v1210_v40, 16  ;;  %v6740_v40 = vld [vmem:[#allocation2 + $0x384] sm:$0xf0] }
 0x130   :  { %v5611_v57 = vpop.f32.mrf.mxu0  ;;  %v929_v23 = vrot.slane %v927_v26, 4  ;;  %v932_v60 = vrot.slane %v930_v46, 4  ;;  %v11126_v2 = vrot.slane %v9011_v51, 5  ;;  %v7569_v7 = vld [vmem:[#allocation2 + $0x388] sm:$0xf0] }
 0x131   :  { %5306 = vmatmul.bf16.gmra.mxu1 %v6707_v27  ;;  %5419 = vmatmul.bf16.gmra.mxu2 %v6711_v44  ;;  %v451_v44 = vrot.slane %v450_v19, 4  ;;  %v1518_v59 = vrot.slane %v1517_v17, 4  ;;  %v1522_v19 = vrot.slane %v1520_v55, 5  ;;  %v6748_v9 = vld [vmem:[#allocation2 + $0x38c] sm:$0xf0] }
 0x132   :  { %5532 = vmatmul.bf16.gmra.mxu3 %v6715_v62  ;;  %v931_v26 = vsel %vm8125_vm5, %v929_v23, %v930_v46  ;;  %v1113_v11 = vld [vmem:[%s11120_s0 + $0x7c] sm:$0xf]  ;;  %v1114_v46 = vld [vmem:[%s11120_s0 + $0x80] sm:$0xf] }
 0x133   :  { %5645 = vmatmul.bf16.gmra.mxu0 %v6719_v22  ;;  %v461_v22 = vrot.slane %v460_v49, 4  ;;  %v456_v15 = vsel %vm8102_vm2, %v451_v44, %v455_v31  ;;  %v7565_v31 = vld [vmem:[#allocation2 + $0x36c] sm:$0xf]  ;;  %v1530_v49 = vshll.u32 %v1211_v12, 16  ;;  %1065 = vst [vmem:[#allocation2 + $0x3f8] sm:$0xf] %v931_v26  ;;  %v1523_v55 = vsel %vm8102_vm2, %v1518_v59, %v1522_v19 }
 0x134   :  { %v5385_v61 = vpop.f32.mrf.mxu2  ;;  %723 = vst [vmem:[#allocation2 + $0x3f4] sm:$0xf] %v456_v15 }
 0x135   :  { %v5386_v27 = vadd.f32 %v5385_v61, %v5273_v48  ;;  %v5498_v0 = vpop.f32.mrf.mxu3  ;;  %v466_v41 = vsel %vm8102_vm2, %v461_v22, %v9013_v58  ;;  %v1526_v61 = vrot.slane %v1524_v28, 4  ;;  %1161 = vst [vmem:[#allocation2 + $0x3fc] sm:$0xf] %v1113_v11 }
 0x136   :  { %v5274_v62 = vpop.f32.mrf.mxu1  ;;  %724 = vst [vmem:[#allocation2 + $0x418] sm:$0xf] %v466_v41  ;;  %v6751_v41 = vor.u32 %v7565_v31, %v6748_v9 }
 0x137   :  { %v5499_v18 = vadd.f32 %v5498_v0, %v5386_v27  ;;  %v5275_v39 = vadd.f32 %v5274_v62, %v5162_v1  ;;  %v934_v1 = vsel %vm8125_vm5, %v932_v60, %v11126_v2  ;;  %v6754_v27 = vld [vmem:[#allocation2 + $0x370] sm:$0xf]  ;;  %v7570_v0 = vld [vmem:[#allocation2 + $0x390] sm:$0xf0]  ;;  %v1527_v44 = vor.u32 %v1526_v61, %v1522_v19  ;;  %1162 = vst [vmem:[#allocation2 + $0x420] sm:$0xf] %v1114_v46 }
 0x138   :  { %v5613_v48 = vpop.f32.mrf.mxu0  ;;  %1066 = vst [vmem:[#allocation2 + $0x41c] sm:$0xf] %v934_v1  ;;  %v1532_v62 = vrot.slane %v1530_v49, 5  ;;  %v6743_v60 = vor.u32 %v7564_v37, %v6740_v40  ;;  %v6755_v26 = vor.u32 %v7570_v0, %v6754_v27  ;;  %v142_v1 = vld [vmem:[%s11120_s0 + $0x7c] sm:$0xf]  ;;  %v467_v19 = vshrl.u32 %v8999_v35, 16 }
 0x139   :  { %v9035_v17 = vadd.f32 %v5611_v57, %v5499_v18  ;;  %v6747_v57 = vor.u32 %v7569_v7, %v6746_v25  ;;  %v1528_v18 = vrot.slane %v1527_v44, 4  ;;  %1790 = vst [vmem:[#allocation2 + $0x400] sm:$0xf] %v1523_v55  ;;  %v473_v11 = vshll.u32 %v142_v1, 16  ;;  %v1212_v37 = vld [vmem:[%s11120_s0 + $0x88] sm:$0xf] }
 0x13a   :  { %v1534_v40 = vshrl.u32 %v1211_v12, 16  ;;  %v477_v25 = vshrl.u32 %v142_v1, 16  ;;  %v469_v7 = vrot.slane %v467_v19, 4  ;;  %v9054_v35 = vld [vmem:[%s11120_s0 + $0x80] sm:$0xf]  ;;  %v1540_v49 = vshll.u32 %v1212_v37, 16 }
 0x13b   :  { %v475_v31 = vrot.slane %v473_v11, 5  ;;  %v483_v46 = vshll.u32 %v9054_v35, 16  ;;  %v774_v0 = vld [vmem:[%s11120_s0 + $0x7c] sm:$0xf]  ;;  %v5166_v55 = vadd.f32 %v8760_v38, %v8672_v4 }
 0x13c   :  { %v5387_v22 = vpop.f32.mrf.mxu2  ;;  %v479_v9 = vrot.slane %v477_v25, 4  ;;  %v1536_v61 = vrot.slane %v1534_v40, 4  ;;  %v470_v12 = vor.u32 %v469_v7, %v9013_v58  ;;  %v1542_v19 = vrot.slane %v1540_v49, 5  ;;  %v6776_v25 = vld [vmem:[#allocation2 + $0x3cc] sm:$0xf0] }
 0x13d   :  { %v5388_v23 = vadd.f32 %v5387_v22, %v5275_v39  ;;  %v5500_v28 = vpop.f32.mrf.mxu3  ;;  %v1533_v39 = vsel %vm8102_vm2, %v1528_v18, %v1532_v62  ;;  %v6782_v7 = vld [vmem:[#allocation2 + $0x3b0] sm:$0xf] }
 0x13e   :  { %v5277_v15 = vpop.f32.mrf.mxu1  ;;  %1791 = vst [vmem:[#allocation2 + $0x424] sm:$0xf] %v1533_v39  ;;  %v480_v22 = vor.u32 %v479_v9, %v475_v31  ;;  %v471_v58 = vrot.slane %v470_v12, 4  ;;  %v7578_v9 = vld [vmem:[#allocation2 + $0x3d0] sm:$0xf0] }
 0x13f   :  { %v5501_v2 = vadd.f32 %v5500_v28, %v5388_v23  ;;  %v9068_v23 = vld [vmem:[%s11120_s0 + $0x80] sm:$0xf]  ;;  %v1544_v15 = vshrl.u32 %v1212_v37, 16  ;;  %v7573_v37 = vld [vmem:[#allocation2 + $0x3ac] sm:$0xf] }
 0x140   :  { %v5616_v59 = vpop.f32.mrf.mxu0  ;;  %v939_v1 = vrot.slane %v9068_v23, 5  ;;  %v476_v11 = vsel %vm8102_vm2, %v471_v58, %v475_v31  ;;  %v7574_v12 = vld [vmem:[#allocation2 + $0x3b4] sm:$0xf]  ;;  %v6784_v31 = vld [vmem:[#allocation2 + $0x3d4] sm:$0xf0] }
 0x141   :  { %5310 = vmatmul.bf16.gmra.mxu1 %v6743_v60  ;;  %5423 = vmatmul.bf16.gmra.mxu2 %v6747_v57  ;;  %v9056_v27 = vadd.f32 %v5613_v48, %v5501_v2  ;;  %v936_v2 = vrot.slane %v774_v0, 5  ;;  %v1537_v48 = vor.u32 %v1536_v61, %v1532_v62  ;;  %v9070_v60 = vrot.slane %v483_v46, 5  ;;  %v1213_v59 = vld [vmem:[%s11120_s0 + $0x8c] sm:$0xf]  ;;  %725 = vst [vmem:[#allocation2 + $0x43c] sm:$0xf] %v476_v11 }
 0x142   :  { %5536 = vmatmul.bf16.gmra.mxu3 %v6751_v41  ;;  %v11139_v57 = vrot.slane %v9011_v51, 5  ;;  %v1115_v46 = vld [vmem:[%s11120_s0 + $0x84] sm:$0xf]  ;;  %v1546_v0 = vrot.slane %v1544_v15, 4 }
 0x143   :  { %5649 = vmatmul.bf16.gmra.mxu0 %v6755_v26  ;;  %v481_v26 = vrot.slane %v480_v22, 4  ;;  %v938_v4 = vrot.slane %v936_v2, 4  ;;  %v1538_v40 = vrot.slane %v1537_v48, 4  ;;  %v1116_v22 = vld [vmem:[%s11120_s0 + $0x88] sm:$0xf] }
 0x144   :  { %v5390_v44 = vpop.f32.mrf.mxu2  ;;  %v935_v18 = vrot.slane %v11139_v57, 4  ;;  %v5169_v57 = vadd.f32 %v8760_v38, %v8704_v8  ;;  %1163 = vst [vmem:[#allocation2 + $0x444] sm:$0xf] %v1115_v46  ;;  %v487_v8 = vshrl.u32 %v9054_v35, 16  ;;  %v7722_v35 = vld [vmem:[%s11121_s1 + $0x190] sm:$0xff] }
 0x145   :  { %v5503_v28 = vpop.f32.mrf.mxu3  ;;  %v486_v61 = vsel %vm8102_vm2, %v481_v26, %v9070_v60  ;;  %v940_v49 = vsel %vm8125_vm5, %v938_v4, %v939_v1  ;;  %v6790_v44 = vld [vmem:[#allocation2 + $0x3b8] sm:$0xf]  ;;  %v1543_v48 = vsel %vm8102_vm2, %v1538_v40, %v1542_v19  ;;  %v6779_v26 = vor.u32 %v7573_v37, %v6776_v25  ;;  %1164 = vst [vmem:[#allocation2 + $0x468] sm:$0xf] %v1116_v22  ;;  %v1214_v25 = vld [vmem:[%s11120_s0 + $0x90] sm:$0xf] }
 0x146   :  { %v5278_v41 = vpop.f32.mrf.mxu1  ;;  %v937_v51 = vsel %vm8125_vm5, %v935_v18, %v936_v2  ;;  %726 = vst [vmem:[#allocation2 + $0x460] sm:$0xf] %v486_v61  ;;  %v7579_v2 = vld [vmem:[#allocation2 + $0x3d8] sm:$0xf0]  ;;  %v1547_v28 = vor.u32 %v1546_v0, %v1542_v19  ;;  %v6783_v4 = vor.u32 %v7578_v9, %v6782_v7  ;;  %v6787_v61 = vor.u32 %v7574_v12, %v6784_v31  ;;  %v144_v19 = vld [vmem:[%s11120_s0 + $0x84] sm:$0xf] }
 0x147   :  { %v5279_v39 = vadd.f32 %v5278_v41, %v5166_v55  ;;  %v1550_v55 = vshll.u32 %v1213_v59, 16  ;;  %1067 = vst [vmem:[#allocation2 + $0x440] sm:$0xf] %v937_v51  ;;  %v493_v37 = vshll.u32 %v144_v19, 16  ;;  %v489_v7 = vrot.slane %v487_v8, 4  ;;  %5820 = vmatpush.bf16.msra.mxu2 %v7722_v35 }
 0x148   :  { %v5617_v62 = vpop.f32.mrf.mxu0  ;;  %1068 = vst [vmem:[#allocation2 + $0x464] sm:$0xf] %v940_v49  ;;  %v1548_v11 = vrot.slane %v1547_v28, 4  ;;  %v6791_v49 = vor.u32 %v7579_v2, %v6790_v44  ;;  %v497_v9 = vshrl.u32 %v144_v19, 16  ;;  %v9124_v44 = vld [vmem:[%s11120_s0 + $0x88] sm:$0xf] }
 0x149   :  { %v9097_v58 = vrot.slane %v1550_v55, 5  ;;  %1792 = vst [vmem:[#allocation2 + $0x448] sm:$0xf] %v1543_v48  ;;  %v495_v12 = vrot.slane %v493_v37, 5  ;;  %v490_v22 = vor.u32 %v489_v7, %v9070_v60  ;;  %v1560_v48 = vshll.u32 %v1214_v25, 16 }
 0x14a   :  { %v499_v2 = vrot.slane %v497_v9, 4  ;;  %v6812_v7 = vld [vmem:[#allocation2 + $0x414] sm:$0xf0]  ;;  %v7587_v35 = vld [vmem:[#allocation2 + $0x418] sm:$0xf0] }
 0x14b   :  { %v1553_v38 = vsel %vm8102_vm2, %v1548_v11, %v9097_v58  ;;  %v491_v60 = vrot.slane %v490_v22, 4  ;;  %v9138_v11 = vld [vmem:[%s11120_s0 + $0x88] sm:$0xf]  ;;  %v6818_v9 = vld [vmem:[#allocation2 + $0x3f8] sm:$0xf] }
 0x14c   :  { %v5391_v18 = vpop.f32.mrf.mxu2  ;;  %1793 = vst [vmem:[#allocation2 + $0x46c] sm:$0xf] %v1553_v38 }
 0x14d   :  { %v5392_v15 = vadd.f32 %v5391_v18, %v5279_v39  ;;  %v5504_v41 = vpop.f32.mrf.mxu3  ;;  %v1554_v39 = vshrl.u32 %v1213_v59, 16  ;;  %v7730_v59 = vld [vmem:[%s11121_s1 + $0x1d0] sm:$0xff]  ;;  %v776_v18 = vld [vmem:[%s11120_s0 + $0x84] sm:$0xf]  ;;  %v496_v37 = vsel %vm8102_vm2, %v491_v60, %v495_v12 }
 0x14e   :  { %v5281_v51 = vpop.f32.mrf.mxu1  ;;  %5933 = vmatpush.bf16.msra.mxu3 %v7730_v59  ;;  %v942_v19 = vrot.slane %v776_v18, 5  ;;  %727 = vst [vmem:[#allocation2 + $0x484] sm:$0xf] %v496_v37  ;;  %v7588_v60 = vld [vmem:[#allocation2 + $0x420] sm:$0xf0] }
 0x14f   :  { %v5505_v40 = vadd.f32 %v5504_v41, %v5392_v15  ;;  %v5282_v0 = vadd.f32 %v5281_v51, %v5169_v57  ;;  %v1556_v31 = vrot.slane %v1554_v39, 4  ;;  %v503_v57 = vshll.u32 %v9124_v44, 16  ;;  %v7738_v39 = vld [vmem:[%s11121_s1 + $0x210] sm:$0xff] }
 0x150   :  { %v9104_v55 = vpop.f32.mrf.mxu0  ;;  %v1564_v51 = vshrl.u32 %v1214_v25, 16  ;;  %v7582_v25 = vld [vmem:[#allocation2 + $0x3f4] sm:$0xf]  ;;  %6046 = vmatpush.bf16.msra.mxu0 %v7738_v39  ;;  %v6819_v39 = vor.u32 %v7587_v35, %v6818_v9 }
 0x151   :  { %5315 = vmatmul.bf16.gmra.mxu1 %v6779_v26  ;;  %5428 = vmatmul.bf16.gmra.mxu2 %v6783_v4  ;;  %v9119_v46 = vadd.f32 %v5617_v62, %v5505_v40  ;;  %v1557_v62 = vor.u32 %v1556_v31, %v9097_v58  ;;  %v7714_v26 = vld [vmem:[%s11121_s1 + $0x150] sm:$0xff]  ;;  %v500_v4 = vor.u32 %v499_v2, %v495_v12  ;;  %v941_v58 = vrot.slane %v939_v1, 4  ;;  %v7583_v2 = vld [vmem:[#allocation2 + $0x3fc] sm:$0xf]  ;;  %v1117_v12 = vld [vmem:[%s11120_s0 + $0x8c] sm:$0xf] }
 0x152   :  { %5541 = vmatmul.bf16.gmra.mxu3 %v6787_v61  ;;  %v945_v40 = vrot.slane %v9138_v11, 5  ;;  %5707 = vmatpush.bf16.msra.mxu1 %v7714_v26  ;;  %v1562_v1 = vrot.slane %v1560_v48, 5  ;;  %v944_v31 = vrot.slane %v942_v19, 4  ;;  %v1566_v48 = vrot.slane %v1564_v51, 4  ;;  %v1118_v26 = vld [vmem:[%s11120_s0 + $0x90] sm:$0xf] }
 0x153   :  { %5654 = vmatmul.bf16.gmra.mxu0 %v6791_v49  ;;  %v9140_v49 = vrot.slane %v503_v57, 5  ;;  %v501_v23 = vrot.slane %v500_v4, 4  ;;  %v943_v59 = vsel %vm8125_vm5, %v941_v58, %v942_v19  ;;  %v1558_v22 = vrot.slane %v1557_v62, 4  ;;  %1165 = vst [vmem:[#allocation2 + $0x48c] sm:$0xf] %v1117_v12 }
 0x154   :  { %v5394_v28 = vpop.f32.mrf.mxu2  ;;  %1069 = vst [vmem:[#allocation2 + $0x488] sm:$0xf] %v943_v59  ;;  %v946_v62 = vsel %vm8125_vm5, %v944_v31, %v945_v40  ;;  %v1567_v51 = vor.u32 %v1566_v48, %v1562_v1  ;;  %v9181_v58 = vld [vmem:[%s11122_s2] ss:$0 sm:$0xff]  ;;  %v146_v31 = vld [vmem:[%s11120_s0 + $0x8c] sm:$0xf] }
 0x155   :  { %v5395_v15 = vadd.f32 %v5394_v28, %v5282_v0  ;;  %v5507_v41 = vpop.f32.mrf.mxu3  ;;  %v9148_v0 = vld [vmem:[%s11120_s0 + $0x94] sm:$0xf]  ;;  %v6820_v28 = vld [vmem:[#allocation2 + $0x41c] sm:$0xf0]  ;;  %v506_v57 = vsel %vm8102_vm2, %v501_v23, %v9140_v49  ;;  %1070 = vst [vmem:[#allocation2 + $0x4ac] sm:$0xf] %v946_v62  ;;  %v1563_v4 = vsel %vm8102_vm2, %v1558_v22, %v1562_v1  ;;  %v5173_v19 = vadd.f32 %v9181_v58, %v8370_v43 }
 0x156   :  { %v5283_v61 = vpop.f32.mrf.mxu1  ;;  %v1570_v18 = vshll.u32 %v9148_v0, 16  ;;  %728 = vst [vmem:[#allocation2 + $0x4a8] sm:$0xf] %v506_v57  ;;  %v1568_v37 = vrot.slane %v1567_v51, 4  ;;  %v6823_v59 = vor.u32 %v7583_v2, %v6820_v28  ;;  %v507_v12 = vshrl.u32 %v9124_v44, 16 }
 0x157   :  { %v5508_v8 = vadd.f32 %v5507_v41, %v5395_v15  ;;  %v6826_v41 = vld [vmem:[#allocation2 + $0x400] sm:$0xf]  ;;  %1166 = vst [vmem:[#allocation2 + $0x4b0] sm:$0xf] %v1118_v26  ;;  %v1574_v9 = vshrl.u32 %v9148_v0, 16  ;;  %v517_v35 = vshrl.u32 %v146_v31, 16  ;;  %v5175_v51 = vadd.f32 %v9181_v58, %v8404_v10 }
 0x158   :  { %v5622_v38 = vpop.f32.mrf.mxu0  ;;  %v9176_v61 = vrot.slane %v1570_v18, 5  ;;  %v6827_v1 = vor.u32 %v7588_v60, %v6826_v41  ;;  %1794 = vst [vmem:[#allocation2 + $0x490] sm:$0xf] %v1563_v4  ;;  %v509_v2 = vrot.slane %v507_v12, 4  ;;  %v9199_v44 = vld [vmem:[%s11120_s0 + $0x90] sm:$0xf] }
 0x159   :  { %v9165_v15 = vadd.f32 %v9104_v55, %v5508_v8  ;;  %v6815_v38 = vor.u32 %v7582_v25, %v6812_v7  ;;  %v513_v25 = vshll.u32 %v146_v31, 16  ;;  %v1216_v7 = vld [vmem:[%s11120_s0 + $0x98] sm:$0xf]  ;;  %v519_v41 = vrot.slane %v517_v35, 4  ;;  %v778_v60 = vld [vmem:[%s11120_s0 + $0x8c] sm:$0xf] }
 0x15a   :  { %v1573_v43 = vsel %vm8102_vm2, %v1568_v37, %v9176_v61  ;;  %v1580_v48 = vshll.u32 %v1216_v7, 16  ;;  %v1584_v18 = vshrl.u32 %v1216_v7, 16  ;;  %v1576_v62 = vrot.slane %v1574_v9, 4  ;;  %v1217_v7 = vld [vmem:[%s11120_s0 + $0x9c] sm:$0xf] }
 0x15b   :  { %1795 = vst [vmem:[#allocation2 + $0x4b4] sm:$0xf] %v1573_v43  ;;  %v515_v28 = vrot.slane %v513_v25, 5  ;;  %v510_v26 = vor.u32 %v509_v2, %v9140_v49  ;;  %v523_v0 = vshll.u32 %v9199_v44, 16  ;;  %v947_v10 = vrot.slane %v945_v40, 4 }
 0x15c   :  { %v5396_v55 = vpop.f32.mrf.mxu2  ;;  %v1582_v4 = vrot.slane %v1580_v48, 5 }
 0x15d   :  { %v5509_v8 = vpop.f32.mrf.mxu3 }
 0x15e   :  { %v5285_v23 = vpop.f32.mrf.mxu1  ;;  %v9211_v8 = vld [vmem:[%s11120_s0 + $0x90] sm:$0xf] }
 0x15f   :  { %v5286_v22 = vadd.f32 %v5285_v23, %v5173_v19  ;;  %v520_v19 = vor.u32 %v519_v41, %v515_v28  ;;  %v511_v23 = vrot.slane %v510_v26, 4  ;;  %v951_v25 = vrot.slane %v9211_v8, 5  ;;  %v6854_v41 = vld [vmem:[#allocation2 + $0x440] sm:$0xf] }
 0x160   :  { %v5624_v57 = vpop.f32.mrf.mxu0 }
 0x161   :  { %5319 = vmatmul.bf16.gmra.mxu1 %v6815_v38  ;;  %5432 = vmatmul.bf16.gmra.mxu2 %v6819_v39  ;;  %v948_v38 = vrot.slane %v778_v60, 5  ;;  %v1586_v39 = vrot.slane %v1584_v18, 4  ;;  %v521_v12 = vrot.slane %v520_v19, 4  ;;  %v516_v2 = vsel %vm8102_vm2, %v511_v23, %v515_v28  ;;  %v6848_v18 = vld [vmem:[#allocation2 + $0x45c] sm:$0xf0] }
 0x162   :  { %5545 = vmatmul.bf16.gmra.mxu3 %v6823_v59  ;;  %v9213_v59 = vrot.slane %v523_v0, 5  ;;  %729 = vst [vmem:[#allocation2 + $0x4cc] sm:$0xf] %v516_v2  ;;  %v1119_v28 = vld [vmem:[%s11120_s0 + $0x94] sm:$0xf]  ;;  %v1590_v19 = vshll.u32 %v1217_v7, 16 }
 0x163   :  { %5658 = vmatmul.bf16.gmra.mxu0 %v6827_v1  ;;  %v1577_v1 = vor.u32 %v1576_v62, %v9176_v61  ;;  %v950_v43 = vrot.slane %v948_v38, 4  ;;  %v1587_v48 = vor.u32 %v1586_v39, %v1582_v4  ;;  %v7591_v61 = vld [vmem:[#allocation2 + $0x43c] sm:$0xf]  ;;  %v7596_v62 = vld [vmem:[#allocation2 + $0x460] sm:$0xf0]  ;;  %v949_v40 = vsel %vm8125_vm5, %v947_v10, %v948_v38 }
 0x164   :  { %v5398_v55 = vpop.f32.mrf.mxu2  ;;  %v526_v11 = vsel %vm8102_vm2, %v521_v12, %v9213_v59  ;;  %v7592_v0 = vld [vmem:[#allocation2 + $0x444] sm:$0xf]  ;;  %v6856_v60 = vld [vmem:[#allocation2 + $0x464] sm:$0xf0]  ;;  %1071 = vst [vmem:[#allocation2 + $0x4d0] sm:$0xf] %v949_v40  ;;  %v6855_v2 = vor.u32 %v7596_v62, %v6854_v41 }
 0x165   :  { %v5399_v49 = vadd.f32 %v5398_v55, %v5286_v22  ;;  %v5511_v37 = vpop.f32.mrf.mxu3  ;;  %v952_v26 = vsel %vm8125_vm5, %v950_v43, %v951_v25  ;;  %730 = vst [vmem:[#allocation2 + $0x4f0] sm:$0xf] %v526_v11  ;;  %v1588_v55 = vrot.slane %v1587_v48, 4  ;;  %v1120_v38 = vld [vmem:[%s11120_s0 + $0x98] sm:$0xf]  ;;  %v6851_v43 = vor.u32 %v7591_v61, %v6848_v18 }
 0x166   :  { %v5287_v31 = vpop.f32.mrf.mxu1  ;;  %1072 = vst [vmem:[#allocation2 + $0x4f4] sm:$0xf] %v952_v26  ;;  %v6859_v48 = vor.u32 %v7592_v0, %v6856_v60  ;;  %v148_v40 = vld [vmem:[%s11120_s0 + $0x94] sm:$0xf]  ;;  %v1594_v61 = vshrl.u32 %v1217_v7, 16 }
 0x167   :  { %v5512_v9 = vadd.f32 %v5511_v37, %v5399_v49  ;;  %v5288_v22 = vadd.f32 %v5287_v31, %v5175_v51  ;;  %v1578_v51 = vrot.slane %v1577_v1, 4  ;;  %v6862_v49 = vld [vmem:[#allocation2 + $0x448] sm:$0xf]  ;;  %v7597_v37 = vld [vmem:[#allocation2 + $0x468] sm:$0xf0]  ;;  %v1592_v31 = vrot.slane %v1590_v19, 5 }
 0x168   :  { %v5626_v35 = vpop.f32.mrf.mxu0  ;;  %1167 = vst [vmem:[#allocation2 + $0x4d4] sm:$0xf] %v1119_v28  ;;  %v6863_v11 = vor.u32 %v7597_v37, %v6862_v49  ;;  %v527_v28 = vshrl.u32 %v9199_v44, 16  ;;  %v537_v18 = vshrl.u32 %v148_v40, 16  ;;  %v1218_v41 = vld [vmem:[%s11120_s0 + $0xa0] sm:$0xf] }
 0x169   :  { %v9236_v39 = vadd.f32 %v5624_v57, %v5512_v9  ;;  %v1583_v23 = vsel %vm8102_vm2, %v1578_v51, %v1582_v4  ;;  %1168 = vst [vmem:[#allocation2 + $0x4f8] sm:$0xf] %v1120_v38  ;;  %v1593_v57 = vsel %vm8102_vm2, %v1588_v55, %v1592_v31  ;;  %v9255_v60 = vld [vmem:[%s11120_s0 + $0x98] sm:$0xf]  ;;  %v1596_v51 = vrot.slane %v1594_v61, 4 }
 0x16a   :  { %1796 = vst [vmem:[#allocation2 + $0x4d8] sm:$0xf] %v1583_v23  ;;  %v529_v62 = vrot.slane %v527_v28, 4  ;;  %v539_v44 = vrot.slane %v537_v18, 4  ;;  %v1600_v55 = vshll.u32 %v1218_v41, 16  ;;  %v543_v49 = vshll.u32 %v9255_v60, 16 }
 0x16b   :  { %1797 = vst [vmem:[#allocation2 + $0x4fc] sm:$0xf] %v1593_v57  ;;  %v780_v38 = vld [vmem:[%s11120_s0 + $0x94] sm:$0xf]  ;;  %v1219_v61 = vld [vmem:[%s11120_s0 + $0xa4] sm:$0xf] }
 0x16c   :  { %v5400_v12 = vpop.f32.mrf.mxu2  ;;  %v530_v19 = vor.u32 %v529_v62, %v9213_v59  ;;  %v9271_v57 = vrot.slane %v543_v49, 5  ;;  %v6884_v18 = vld [vmem:[#allocation2 + $0x4a4] sm:$0xf0]  ;;  %v7605_v62 = vld [vmem:[#allocation2 + $0x4a8] sm:$0xf0] }
 0x16d   :  { %v5401_v10 = vadd.f32 %v5400_v12, %v5288_v22  ;;  %v5513_v1 = vpop.f32.mrf.mxu3  ;;  %v533_v22 = vshll.u32 %v148_v40, 16  ;;  %v9267_v12 = vld [vmem:[%s11120_s0 + $0x98] sm:$0xf]  ;;  %v1121_v49 = vld [vmem:[%s11120_s0 + $0x9c] sm:$0xf] }
 0x16e   :  { %v5290_v9 = vpop.f32.mrf.mxu1  ;;  %1169 = vst [vmem:[#allocation2 + $0x51c] sm:$0xf] %v1121_v49 }
 0x16f   :  { %v5514_v4 = vadd.f32 %v5513_v1, %v5401_v10  ;;  %v535_v0 = vrot.slane %v533_v22, 5  ;;  %v954_v10 = vrot.slane %v780_v38, 5  ;;  %v1597_v1 = vor.u32 %v1596_v51, %v1592_v31 }
 0x170   :  { %v5629_v26 = vpop.f32.mrf.mxu0  ;;  %v953_v9 = vrot.slane %v951_v25, 4  ;;  %v7600_v25 = vld [vmem:[#allocation2 + $0x484] sm:$0xf]  ;;  %v1610_v38 = vshll.u32 %v1219_v61, 16 }
 0x171   :  { %5323 = vmatmul.bf16.gmra.mxu1 %v6851_v43  ;;  %5436 = vmatmul.bf16.gmra.mxu2 %v6855_v2  ;;  %v9257_v7 = vadd.f32 %v5626_v35, %v5514_v4  ;;  %v540_v23 = vor.u32 %v539_v44, %v535_v0  ;;  %v1604_v43 = vshrl.u32 %v1218_v41, 16  ;;  %v5179_v35 = vadd.f32 %v9181_v58, %v8459_v16  ;;  %v6890_v41 = vld [vmem:[#allocation2 + $0x488] sm:$0xf] }
 0x172   :  { %5549 = vmatmul.bf16.gmra.mxu3 %v6859_v48  ;;  %v531_v2 = vrot.slane %v530_v19, 4  ;;  %v956_v40 = vrot.slane %v954_v10, 4  ;;  %v957_v4 = vrot.slane %v9267_v12, 5  ;;  %v1602_v26 = vrot.slane %v1600_v55, 5  ;;  %v7601_v55 = vld [vmem:[#allocation2 + $0x48c] sm:$0xf] }
 0x173   :  { %5662 = vmatmul.bf16.gmra.mxu0 %v6863_v11  ;;  %v541_v11 = vrot.slane %v540_v23, 4  ;;  %v955_v16 = vsel %vm8125_vm5, %v953_v9, %v954_v10  ;;  %v1598_v8 = vrot.slane %v1597_v1, 4  ;;  %v1606_v51 = vrot.slane %v1604_v43, 4  ;;  %v6892_v19 = vld [vmem:[#allocation2 + $0x4ac] sm:$0xf0] }
 0x174   :  { %v5403_v37 = vpop.f32.mrf.mxu2  ;;  %v536_v31 = vsel %vm8102_vm2, %v531_v2, %v535_v0  ;;  %v958_v0 = vsel %vm8125_vm5, %v956_v40, %v957_v4  ;;  %1073 = vst [vmem:[#allocation2 + $0x518] sm:$0xf] %v955_v16  ;;  %v1122_v23 = vld [vmem:[%s11120_s0 + $0xa0] sm:$0xf]  ;;  %v7606_v1 = vld [vmem:[#allocation2 + $0x4b0] sm:$0xf0]  ;;  %v5182_v9 = vadd.f32 %v9181_v58, %v8494_v53  ;;  %v6887_v40 = vor.u32 %v7600_v25, %v6884_v18 }
 0x175   :  { %v5516_v59 = vpop.f32.mrf.mxu3  ;;  %v546_v44 = vsel %vm8102_vm2, %v541_v11, %v9271_v57  ;;  %731 = vst [vmem:[#allocation2 + $0x514] sm:$0xf] %v536_v31  ;;  %v6898_v37 = vld [vmem:[#allocation2 + $0x490] sm:$0xf]  ;;  %v1607_v10 = vor.u32 %v1606_v51, %v1602_v26  ;;  %v1603_v43 = vsel %vm8102_vm2, %v1598_v8, %v1602_v26  ;;  %v6891_v31 = vor.u32 %v7605_v62, %v6890_v41  ;;  %v150_v8 = vld [vmem:[%s11120_s0 + $0x9c] sm:$0xf] }
 0x176   :  { %v5291_v48 = vpop.f32.mrf.mxu1  ;;  %732 = vst [vmem:[#allocation2 + $0x538] sm:$0xf] %v546_v44  ;;  %v6895_v44 = vor.u32 %v7601_v55, %v6892_v19  ;;  %v6899_v51 = vor.u32 %v7606_v1, %v6898_v37  ;;  %v553_v25 = vshll.u32 %v150_v8, 16  ;;  %v1614_v18 = vshrl.u32 %v1219_v61, 16  ;;  %v7721_v19 = vld [vmem:[%s11121_s1 + $0x188] sm:$0xff] }
 0x177   :  { %v5292_v28 = vadd.f32 %v5291_v48, %v5179_v35  ;;  %1074 = vst [vmem:[#allocation2 + $0x53c] sm:$0xf] %v958_v0  ;;  %v9298_v35 = vrot.slane %v1610_v38, 5  ;;  %v1608_v2 = vrot.slane %v1607_v10, 4  ;;  %v557_v41 = vshrl.u32 %v150_v8, 16  ;;  %v7729_v38 = vld [vmem:[%s11121_s1 + $0x1c8] sm:$0xff]  ;;  %5821 = vmatpush.bf16.msra.mxu2 %v7721_v19 }
 0x178   :  { %v5630_v22 = vpop.f32.mrf.mxu0  ;;  %1170 = vst [vmem:[#allocation2 + $0x540] sm:$0xf] %v1122_v23  ;;  %v555_v55 = vrot.slane %v553_v25, 5  ;;  %v1616_v61 = vrot.slane %v1614_v18, 4  ;;  %v9325_v10 = vld [vmem:[%s11120_s0 + $0xa0] sm:$0xf]  ;;  %5934 = vmatpush.bf16.msra.mxu3 %v7729_v38 }
 0x179   :  { %v1613_v26 = vsel %vm8102_vm2, %v1608_v2, %v9298_v35  ;;  %1798 = vst [vmem:[#allocation2 + $0x520] sm:$0xf] %v1603_v43  ;;  %v559_v37 = vrot.slane %v557_v41, 4  ;;  %v782_v43 = vld [vmem:[%s11120_s0 + $0x9c] sm:$0xf] }
 0x17a   :  { %1799 = vst [vmem:[#allocation2 + $0x544] sm:$0xf] %v1613_v26  ;;  %v6920_v19 = vld [vmem:[#allocation2 + $0x4ec] sm:$0xf0] }
 0x17b   :  { %v560_v2 = vor.u32 %v559_v37, %v555_v55  ;;  %v6926_v38 = vld [vmem:[#allocation2 + $0x4d0] sm:$0xf]  ;;  %v7614_v37 = vld [vmem:[#allocation2 + $0x4f0] sm:$0xf0] }
 0x17c   :  { %v5404_v59 = vpop.f32.mrf.mxu2 }
 0x17d   :  { %v5405_v48 = vadd.f32 %v5404_v59, %v5292_v28  ;;  %v5517_v11 = vpop.f32.mrf.mxu3  ;;  %v547_v28 = vshrl.u32 %v9255_v60, 16  ;;  %v1220_v60 = vld [vmem:[%s11120_s0 + $0xa8] sm:$0xf]  ;;  %v561_v8 = vrot.slane %v560_v2, 4  ;;  %v6928_v2 = vld [vmem:[#allocation2 + $0x4f4] sm:$0xf0] }
 0x17e   :  { %v5294_v16 = vpop.f32.mrf.mxu1 }
 0x17f   :  { %v5518_v0 = vadd.f32 %v5517_v11, %v5405_v48  ;;  %v5295_v49 = vadd.f32 %v5294_v16, %v5182_v9  ;;  %v549_v62 = vrot.slane %v547_v28, 4  ;;  %v563_v9 = vshll.u32 %v9325_v10, 16 }
 0x180   :  { %v9308_v53 = vpop.f32.mrf.mxu0  ;;  %v960_v48 = vrot.slane %v782_v43, 5  ;;  %v1617_v11 = vor.u32 %v1616_v61, %v9298_v35 }
 0x181   :  { %5328 = vmatmul.bf16.gmra.mxu1 %v6887_v40  ;;  %5441 = vmatmul.bf16.gmra.mxu2 %v6891_v31  ;;  %v9320_v23 = vadd.f32 %v5630_v22, %v5518_v0  ;;  %v550_v1 = vor.u32 %v549_v62, %v9271_v57  ;;  %v9335_v22 = vld [vmem:[%s11120_s0 + $0xa0] sm:$0xf]  ;;  %v7713_v31 = vld [vmem:[%s11121_s1 + $0x148] sm:$0xff]  ;;  %v9343_v0 = vrot.slane %v563_v9, 5 }
 0x182   :  { %5554 = vmatmul.bf16.gmra.mxu3 %v6895_v44  ;;  %v959_v44 = vrot.slane %v957_v4, 4  ;;  %v962_v28 = vrot.slane %v960_v48, 4  ;;  %v963_v25 = vrot.slane %v9335_v22, 5  ;;  %5708 = vmatpush.bf16.msra.mxu1 %v7713_v31  ;;  %v1123_v4 = vld [vmem:[%s11120_s0 + $0xa4] sm:$0xf]  ;;  %v1618_v43 = vrot.slane %v1617_v11, 4 }
 0x183   :  { %5667 = vmatmul.bf16.gmra.mxu0 %v6899_v51  ;;  %v551_v16 = vrot.slane %v550_v1, 4  ;;  %v1620_v51 = vshll.u32 %v1220_v60, 16  ;;  %v7609_v62 = vld [vmem:[#allocation2 + $0x4cc] sm:$0xf]  ;;  %v566_v61 = vsel %vm8102_vm2, %v561_v8, %v9343_v0  ;;  %v6934_v31 = vld [vmem:[#allocation2 + $0x4d8] sm:$0xf] }
 0x184   :  { %v5407_v59 = vpop.f32.mrf.mxu2  ;;  %v961_v12 = vsel %vm8125_vm5, %v959_v44, %v960_v48  ;;  %v1221_v1 = vld [vmem:[%s11120_s0 + $0xac] sm:$0xf]  ;;  %734 = vst [vmem:[#allocation2 + $0x580] sm:$0xf] %v566_v61  ;;  %v1624_v48 = vshrl.u32 %v1220_v60, 16 }
 0x185   :  { %v5408_v40 = vadd.f32 %v5407_v59, %v5295_v49  ;;  %v5520_v57 = vpop.f32.mrf.mxu3  ;;  %v7737_v49 = vld [vmem:[%s11121_s1 + $0x208] sm:$0xff]  ;;  %v556_v41 = vsel %vm8102_vm2, %v551_v16, %v555_v55  ;;  %v964_v55 = vsel %vm8125_vm5, %v962_v28, %v963_v25  ;;  %v7610_v59 = vld [vmem:[#allocation2 + $0x4d4] sm:$0xf]  ;;  %v1622_v9 = vrot.slane %v1620_v51, 5  ;;  %1075 = vst [vmem:[#allocation2 + $0x560] sm:$0xf] %v961_v12 }
 0x186   :  { %v5296_v26 = vpop.f32.mrf.mxu1  ;;  %733 = vst [vmem:[#allocation2 + $0x55c] sm:$0xf] %v556_v41  ;;  %6047 = vmatpush.bf16.msra.mxu0 %v7737_v49  ;;  %v1124_v16 = vld [vmem:[%s11120_s0 + $0xa8] sm:$0xf]  ;;  %v7615_v44 = vld [vmem:[#allocation2 + $0x4f8] sm:$0xf0]  ;;  %v5186_v51 = vadd.f32 %v9181_v58, %v8570_v20  ;;  %v6927_v28 = vor.u32 %v7614_v37, %v6926_v38  ;;  %v6931_v41 = vor.u32 %v7610_v59, %v6928_v2 }
 0x187   :  { %v5521_v18 = vadd.f32 %v5520_v57, %v5408_v40  ;;  %v1630_v40 = vshll.u32 %v1221_v1, 16  ;;  %1076 = vst [vmem:[#allocation2 + $0x584] sm:$0xf] %v964_v55  ;;  %v1623_v11 = vsel %vm8102_vm2, %v1618_v43, %v1622_v9  ;;  %v1626_v26 = vrot.slane %v1624_v48, 4  ;;  %v152_v61 = vld [vmem:[%s11120_s0 + $0xa4] sm:$0xf] }
 0x188   :  { %v5635_v35 = vpop.f32.mrf.mxu0  ;;  %1171 = vst [vmem:[#allocation2 + $0x564] sm:$0xf] %v1123_v4  ;;  %v6935_v12 = vor.u32 %v7615_v44, %v6934_v31  ;;  %v567_v20 = vshrl.u32 %v9325_v10, 16  ;;  %v573_v48 = vshll.u32 %v152_v61, 16  ;;  %v9388_v2 = vld [vmem:[%s11120_s0 + $0xa8] sm:$0xf] }
 0x189   :  { %v9367_v57 = vadd.f32 %v9308_v53, %v5521_v18  ;;  %v6923_v53 = vor.u32 %v7609_v62, %v6920_v19  ;;  %1172 = vst [vmem:[#allocation2 + $0x588] sm:$0xf] %v1124_v16  ;;  %v1627_v18 = vor.u32 %v1626_v26, %v1622_v9  ;;  %v9376_v35 = vrot.slane %v1630_v40, 5  ;;  %v784_v40 = vld [vmem:[%s11120_s0 + $0xa4] sm:$0xf] }
 0x18a   :  { %1800 = vst [vmem:[#allocation2 + $0x568] sm:$0xf] %v1623_v11  ;;  %v1634_v62 = vshrl.u32 %v1221_v1, 16  ;;  %v577_v19 = vshrl.u32 %v152_v61, 16  ;;  %v569_v37 = vrot.slane %v567_v20, 4  ;;  %v575_v59 = vrot.slane %v573_v48, 5 }
 0x18b   :  { %v1628_v4 = vrot.slane %v1627_v18, 4  ;;  %v583_v9 = vshll.u32 %v9388_v2, 16  ;;  %v9398_v16 = vld [vmem:[%s11120_s0 + $0xa8] sm:$0xf]  ;;  %v966_v44 = vrot.slane %v784_v40, 5  ;;  %v5188_v26 = vadd.f32 %v9181_v58, %v8605_v56 }
 0x18c   :  { %v5409_v60 = vpop.f32.mrf.mxu2  ;;  %v570_v10 = vor.u32 %v569_v37, %v9343_v0  ;;  %v579_v1 = vrot.slane %v577_v19, 4  ;;  %v1636_v11 = vrot.slane %v1634_v62, 4  ;;  %v9413_v56 = vld [vmem:[%s11120_s0 + $0xb4] sm:$0xf]  ;;  %v6956_v48 = vld [vmem:[#allocation2 + $0x534] sm:$0xf0] }
 0x18d   :  { %v5522_v8 = vpop.f32.mrf.mxu3  ;;  %v1633_v38 = vsel %vm8102_vm2, %v1628_v4, %v9376_v35  ;;  %v9405_v18 = vrot.slane %v583_v9, 5  ;;  %v7618_v4 = vld [vmem:[#allocation2 + $0x514] sm:$0xf]  ;;  %v7623_v22 = vld [vmem:[#allocation2 + $0x538] sm:$0xf0] }
 0x18e   :  { %v5298_v49 = vpop.f32.mrf.mxu1  ;;  %1801 = vst [vmem:[#allocation2 + $0x58c] sm:$0xf] %v1633_v38  ;;  %v571_v60 = vrot.slane %v570_v10, 4  ;;  %v580_v8 = vor.u32 %v579_v1, %v575_v59  ;;  %v6962_v38 = vld [vmem:[#allocation2 + $0x518] sm:$0xf]  ;;  %v1637_v10 = vor.u32 %v1636_v11, %v9376_v35 }
 0x18f   :  { %v5299_v55 = vadd.f32 %v5298_v49, %v5186_v51  ;;  %v965_v49 = vrot.slane %v963_v25, 4  ;;  %v7619_v9 = vld [vmem:[#allocation2 + $0x51c] sm:$0xf]  ;;  %v6964_v40 = vld [vmem:[#allocation2 + $0x53c] sm:$0xf0] }
 0x190   :  { %v5637_v43 = vpop.f32.mrf.mxu0  ;;  %v576_v62 = vsel %vm8102_vm2, %v571_v60, %v575_v59  ;;  %v581_v19 = vrot.slane %v580_v8, 4  ;;  %v1126_v35 = vld [vmem:[%s11120_s0 + $0xb0] sm:$0xf]  ;;  %v1638_v11 = vrot.slane %v1637_v10, 4  ;;  %v7624_v8 = vld [vmem:[#allocation2 + $0x540] sm:$0xf0] }
 0x191   :  { %5332 = vmatmul.bf16.gmra.mxu1 %v6923_v53  ;;  %5445 = vmatmul.bf16.gmra.mxu2 %v6927_v28  ;;  %v1222_v53 = vld [vmem:[%s11120_s0 + $0xb0] sm:$0xf]  ;;  %735 = vst [vmem:[#allocation2 + $0x5a4] sm:$0xf] %v576_v62  ;;  %v967_v25 = vsel %vm8125_vm5, %v965_v49, %v966_v44 }
 0x192   :  { %5558 = vmatmul.bf16.gmra.mxu3 %v6931_v41  ;;  %v968_v41 = vrot.slane %v966_v44, 4  ;;  %v1640_v1 = vshll.u32 %v1222_v53, 16  ;;  %v586_v59 = vsel %vm8102_vm2, %v581_v19, %v9405_v18  ;;  %1077 = vst [vmem:[#allocation2 + $0x5a8] sm:$0xf] %v967_v25  ;;  %v1125_v44 = vld [vmem:[%s11120_s0 + $0xac] sm:$0xf] }
 0x193   :  { %5671 = vmatmul.bf16.gmra.mxu0 %v6935_v12  ;;  %v11127_v12 = vrot.slane %v9398_v16, 5  ;;  %736 = vst [vmem:[#allocation2 + $0x5c8] sm:$0xf] %v586_v59 }
 0x194   :  { %v5411_v31 = vpop.f32.mrf.mxu2  ;;  %v1642_v60 = vrot.slane %v1640_v1, 5  ;;  %1173 = vst [vmem:[#allocation2 + $0x5ac] sm:$0xf] %v1125_v44 }
 0x195   :  { %v5412_v51 = vadd.f32 %v5411_v31, %v5299_v55  ;;  %v5524_v0 = vpop.f32.mrf.mxu3  ;;  %v970_v37 = vsel %vm8125_vm5, %v968_v41, %v11127_v12  ;;  %v6970_v31 = vld [vmem:[#allocation2 + $0x520] sm:$0xf]  ;;  %v6959_v41 = vor.u32 %v7618_v4, %v6956_v48  ;;  %1174 = vst [vmem:[#allocation2 + $0x5d0] sm:$0xf] %v1126_v35  ;;  %v6967_v12 = vor.u32 %v7619_v9, %v6964_v40 }
 0x196   :  { %v5300_v28 = vpop.f32.mrf.mxu1  ;;  %1078 = vst [vmem:[#allocation2 + $0x5cc] sm:$0xf] %v970_v37  ;;  %v154_v37 = vld [vmem:[%s11120_s0 + $0xac] sm:$0xf]  ;;  %v587_v48 = vshrl.u32 %v9388_v2, 16 }
 0x197   :  { %v5525_v61 = vadd.f32 %v5524_v0, %v5412_v51  ;;  %v5301_v55 = vadd.f32 %v5300_v28, %v5188_v26  ;;  %v1644_v26 = vshrl.u32 %v1222_v53, 16  ;;  %v1650_v51 = vshll.u32 %v9413_v56, 16  ;;  %v9451_v2 = vld [vmem:[%s11120_s0 + $0xb0] sm:$0xf] }
 0x198   :  { %v5639_v20 = vpop.f32.mrf.mxu0  ;;  %v1643_v53 = vsel %vm8102_vm2, %v1638_v11, %v1642_v60  ;;  %v593_v44 = vshll.u32 %v154_v37, 16  ;;  %v589_v40 = vrot.slane %v587_v48, 4  ;;  %v603_v35 = vshll.u32 %v9451_v2, 16  ;;  %v786_v11 = vld [vmem:[%s11120_s0 + $0xac] sm:$0xf] }
 0x199   :  { %v9431_v0 = vadd.f32 %v5637_v43, %v5525_v61  ;;  %v1646_v28 = vrot.slane %v1644_v26, 4  ;;  %v6963_v43 = vor.u32 %v7623_v22, %v6962_v38  ;;  %v1652_v25 = vrot.slane %v1650_v51, 5  ;;  %1802 = vst [vmem:[#allocation2 + $0x5b0] sm:$0xf] %v1643_v53  ;;  %v1224_v22 = vld [vmem:[%s11120_s0 + $0xb8] sm:$0xf] }
 0x19a   :  { %v597_v38 = vshrl.u32 %v154_v37, 16  ;;  %v590_v26 = vor.u32 %v589_v40, %v9405_v18  ;;  %v9467_v53 = vrot.slane %v603_v35, 5  ;;  %v9475_v37 = vld [vmem:[%s11120_s0 + $0xbc] sm:$0xf]  ;;  %v7628_v35 = vld [vmem:[#allocation2 + $0x564] sm:$0xf] }
 0x19b   :  { %11140 = vst [vmem:[#allocation10_spill] sm:$0xff] %v9431_v0  ;;  %v1647_v61 = vor.u32 %v1646_v28, %v1642_v60  ;;  %v6971_v0 = vor.u32 %v7624_v8, %v6970_v31  ;;  %v595_v31 = vrot.slane %v593_v44, 5  ;;  %v1660_v60 = vshll.u32 %v1224_v22, 16 }
 0x19c   :  { %v5413_v49 = vpop.f32.mrf.mxu2  ;;  %v599_v51 = vrot.slane %v597_v38, 4  ;;  %v972_v8 = vrot.slane %v786_v11, 5  ;;  %v6992_v38 = vld [vmem:[#allocation2 + $0x57c] sm:$0xf0]  ;;  %v7000_v11 = vld [vmem:[#allocation2 + $0x584] sm:$0xf0] }
 0x19d   :  { %v5414_v62 = vadd.f32 %v5413_v49, %v5301_v55  ;;  %v5526_v19 = vpop.f32.mrf.mxu3  ;;  %v1648_v1 = vrot.slane %v1647_v61, 4  ;;  %v1654_v55 = vshrl.u32 %v9413_v56, 16  ;;  %v591_v49 = vrot.slane %v590_v26, 4 }
 0x19e   :  { %v5303_v59 = vpop.f32.mrf.mxu1  ;;  %v974_v61 = vrot.slane %v972_v8, 4  ;;  %v1662_v44 = vrot.slane %v1660_v60, 5  ;;  %v1127_v60 = vld [vmem:[%s11120_s0 + $0xb4] sm:$0xf] }
 0x19f   :  { %v5527_v10 = vadd.f32 %v5526_v19, %v5414_v62  ;;  %v1653_v9 = vsel %vm8102_vm2, %v1648_v1, %v1652_v25  ;;  %v1656_v28 = vrot.slane %v1654_v55, 4  ;;  %v11141_v19 = vrot.slane %v9398_v16, 5  ;;  %v7627_v55 = vld [vmem:[#allocation2 + $0x55c] sm:$0xf]  ;;  %v6998_v16 = vld [vmem:[#allocation2 + $0x560] sm:$0xf] }
 0x1a0   :  { %v5642_v4 = vpop.f32.mrf.mxu0  ;;  %1803 = vst [vmem:[#allocation2 + $0x5d4] sm:$0xf] %v1653_v9  ;;  %v596_v48 = vsel %vm8102_vm2, %v591_v49, %v595_v31  ;;  %v7632_v9 = vld [vmem:[#allocation2 + $0x580] sm:$0xf0] }
 0x1a1   :  { %5336 = vmatmul.bf16.gmra.mxu1 %v6959_v41  ;;  %5449 = vmatmul.bf16.gmra.mxu2 %v6963_v43  ;;  %v9453_v56 = vadd.f32 %v5639_v20, %v5527_v10  ;;  %v5192_v20 = vadd.f32 %v9181_v58, %v8664_v36  ;;  %v600_v41 = vor.u32 %v599_v51, %v595_v31  ;;  %v971_v43 = vrot.slane %v11141_v19, 4 }
 0x1a2   :  { %5562 = vmatmul.bf16.gmra.mxu3 %v6967_v12  ;;  %v1657_v10 = vor.u32 %v1656_v28, %v1652_v25  ;;  %737 = vst [vmem:[#allocation2 + $0x5ec] sm:$0xf] %v596_v48  ;;  %v1664_v51 = vshrl.u32 %v1224_v22, 16  ;;  %v7006_v22 = vld [vmem:[#allocation2 + $0x568] sm:$0xf]  ;;  %v5195_v19 = vadd.f32 %v9181_v58, %v8699_v52  ;;  %v6999_v48 = vor.u32 %v7632_v9, %v6998_v16 }
 0x1a3   :  { %5675 = vmatmul.bf16.gmra.mxu0 %v6971_v0  ;;  %v9463_v0 = vld [vmem:[%s11120_s0 + $0xb0] sm:$0xf]  ;;  %v601_v1 = vrot.slane %v600_v41, 4  ;;  %v973_v40 = vsel %vm8125_vm5, %v971_v43, %v972_v8  ;;  %v1128_v8 = vld [vmem:[%s11120_s0 + $0xb8] sm:$0xf]  ;;  %v607_v52 = vshrl.u32 %v9451_v2, 16 }
 0x1a4   :  { %v5416_v12 = vpop.f32.mrf.mxu2  ;;  %v975_v59 = vrot.slane %v9463_v0, 5  ;;  %v1658_v26 = vrot.slane %v1657_v10, 4  ;;  %1079 = vst [vmem:[#allocation2 + $0x5f0] sm:$0xf] %v973_v40  ;;  %v1666_v28 = vrot.slane %v1664_v51, 4  ;;  %v6995_v10 = vor.u32 %v7627_v55, %v6992_v38  ;;  %v7720_v2 = vld [vmem:[%s11121_s1 + $0x180] sm:$0xff] }
 0x1a5   :  { %v5529_v18 = vpop.f32.mrf.mxu3  ;;  %v606_v31 = vsel %vm8102_vm2, %v601_v1, %v9467_v53  ;;  %v1670_v12 = vshll.u32 %v9475_v37, 16  ;;  %1175 = vst [vmem:[#allocation2 + $0x5f4] sm:$0xf] %v1127_v60  ;;  %v7003_v40 = vor.u32 %v7628_v35, %v7000_v11  ;;  %v1674_v38 = vshrl.u32 %v9475_v37, 16  ;;  %v1226_v9 = vld [vmem:[%s11120_s0 + $0xc0] sm:$0xf]  ;;  %5822 = vmatpush.bf16.msra.mxu2 %v7720_v2 }
 0x1a6   :  { %v5304_v62 = vpop.f32.mrf.mxu1  ;;  %v976_v25 = vsel %vm8125_vm5, %v974_v61, %v975_v59  ;;  %738 = vst [vmem:[#allocation2 + $0x610] sm:$0xf] %v606_v31  ;;  %v1663_v18 = vsel %vm8102_vm2, %v1658_v26, %v1662_v44  ;;  %v1667_v41 = vor.u32 %v1666_v28, %v1662_v44  ;;  %v156_v26 = vld [vmem:[%s11120_s0 + $0xb4] sm:$0xf]  ;;  %v609_v35 = vrot.slane %v607_v52, 4  ;;  %v7728_v37 = vld [vmem:[%s11121_s1 + $0x1c0] sm:$0xff] }
 0x1a7   :  { %v5305_v4 = vadd.f32 %v5304_v62, %v5192_v20  ;;  %v7633_v20 = vld [vmem:[#allocation2 + $0x588] sm:$0xf0]  ;;  %1080 = vst [vmem:[#allocation2 + $0x614] sm:$0xf] %v976_v25  ;;  %v9497_v62 = vrot.slane %v1670_v12, 5  ;;  %v617_v16 = vshrl.u32 %v156_v26, 16  ;;  %5935 = vmatpush.bf16.msra.mxu3 %v7728_v37 }
 0x1a8   :  { %v5643_v36 = vpop.f32.mrf.mxu0  ;;  %1176 = vst [vmem:[#allocation2 + $0x618] sm:$0xf] %v1128_v8  ;;  %v7007_v51 = vor.u32 %v7633_v20, %v7006_v22  ;;  %v1668_v25 = vrot.slane %v1667_v41, 4  ;;  %v1676_v28 = vrot.slane %v1674_v38, 4  ;;  %v9525_v22 = vld [vmem:[%s11120_s0 + $0xb8] sm:$0xf] }
 0x1a9   :  { %1804 = vst [vmem:[#allocation2 + $0x5f8] sm:$0xf] %v1663_v18  ;;  %v619_v8 = vrot.slane %v617_v16, 4  ;;  %v788_v20 = vld [vmem:[%s11120_s0 + $0xb4] sm:$0xf]  ;;  %v1680_v18 = vshll.u32 %v1226_v9, 16 }
 0x1aa   :  { %v1673_v55 = vsel %vm8102_vm2, %v1668_v25, %v9497_v62  ;;  %v7736_v0 = vld [vmem:[%s11121_s1 + $0x200] sm:$0xff]  ;;  %v7028_v2 = vld [vmem:[#allocation2 + $0x5c4] sm:$0xf0] }
 0x1ab   :  { %1805 = vst [vmem:[#allocation2 + $0x61c] sm:$0xf] %v1673_v55  ;;  %v7034_v37 = vld [vmem:[#allocation2 + $0x5a8] sm:$0xf]  ;;  %6048 = vmatpush.bf16.msra.mxu0 %v7736_v0 }
 0x1ac   :  { %v5417_v49 = vpop.f32.mrf.mxu2 }
 0x1ad   :  { %v5418_v43 = vadd.f32 %v5417_v49, %v5305_v4  ;;  %v5530_v61 = vpop.f32.mrf.mxu3  ;;  %v613_v4 = vshll.u32 %v156_v26, 16 }
 0x1ae   :  { %v5307_v1 = vpop.f32.mrf.mxu1 }
 0x1af   :  { %v5531_v44 = vadd.f32 %v5530_v61, %v5418_v43  ;;  %v5308_v31 = vadd.f32 %v5307_v1, %v5195_v19  ;;  %v615_v11 = vrot.slane %v613_v4, 5  ;;  %v623_v19 = vshll.u32 %v9525_v22, 16  ;;  %v9535_v43 = vld [vmem:[%s11120_s0 + $0xb8] sm:$0xf]  ;;  %v7712_v1 = vld [vmem:[%s11121_s1 + $0x140] sm:$0xff] }
 0x1b0   :  { %v9504_v60 = vpop.f32.mrf.mxu0  ;;  %v978_v61 = vrot.slane %v788_v20, 5  ;;  %v981_v4 = vrot.slane %v9535_v43, 5  ;;  %5709 = vmatpush.bf16.msra.mxu1 %v7712_v1  ;;  %v1682_v20 = vrot.slane %v1680_v18, 5 }
 0x1b1   :  { %5341 = vmatmul.bf16.gmra.mxu1 %v6995_v10  ;;  %5454 = vmatmul.bf16.gmra.mxu2 %v6999_v48  ;;  %v9514_v12 = vadd.f32 %v5643_v36, %v5531_v44  ;;  %v610_v36 = vor.u32 %v609_v35, %v9467_v53  ;;  %v620_v41 = vor.u32 %v619_v8, %v615_v11  ;;  %v9543_v44 = vrot.slane %v623_v19, 5  ;;  %v7636_v35 = vld [vmem:[#allocation2 + $0x5a4] sm:$0xf]  ;;  %v7641_v8 = vld [vmem:[#allocation2 + $0x5c8] sm:$0xf0] }
 0x1b2   :  { %5567 = vmatmul.bf16.gmra.mxu3 %v7003_v40  ;;  %v1677_v10 = vor.u32 %v1676_v28, %v9497_v62  ;;  %v980_v52 = vrot.slane %v978_v61, 4  ;;  %v9549_v62 = vld [vmem:[%s11120_s0 + $0xc4] sm:$0xf]  ;;  %v1129_v19 = vld [vmem:[%s11120_s0 + $0xbc] sm:$0xf] }
 0x1b3   :  { %5680 = vmatmul.bf16.gmra.mxu0 %v7007_v51  ;;  %v611_v40 = vrot.slane %v610_v36, 4  ;;  %v977_v51 = vrot.slane %v975_v59, 4  ;;  %v621_v26 = vrot.slane %v620_v41, 4  ;;  %v7036_v41 = vld [vmem:[#allocation2 + $0x5cc] sm:$0xf0] }
 0x1b4   :  { %v5420_v49 = vpop.f32.mrf.mxu2  ;;  %v1678_v16 = vrot.slane %v1677_v10, 4  ;;  %v982_v36 = vsel %vm8125_vm5, %v980_v52, %v981_v4  ;;  %1177 = vst [vmem:[#allocation2 + $0x63c] sm:$0xf] %v1129_v19  ;;  %v7031_v52 = vor.u32 %v7636_v35, %v7028_v2 }
 0x1b5   :  { %v5421_v53 = vadd.f32 %v5420_v49, %v5308_v31  ;;  %v5533_v48 = vpop.f32.mrf.mxu3  ;;  %v616_v59 = vsel %vm8102_vm2, %v611_v40, %v615_v11  ;;  %v979_v38 = vsel %vm8125_vm5, %v977_v51, %v978_v61  ;;  %v626_v28 = vsel %vm8102_vm2, %v621_v26, %v9543_v44  ;;  %v7637_v49 = vld [vmem:[#allocation2 + $0x5ac] sm:$0xf]  ;;  %1082 = vst [vmem:[#allocation2 + $0x65c] sm:$0xf] %v982_v36 }
 0x1b6   :  { %v5309_v25 = vpop.f32.mrf.mxu1  ;;  %739 = vst [vmem:[#allocation2 + $0x634] sm:$0xf] %v616_v59  ;;  %v1684_v11 = vshrl.u32 %v1226_v9, 16  ;;  %v1690_v61 = vshll.u32 %v9549_v62, 16  ;;  %v7042_v9 = vld [vmem:[#allocation2 + $0x5b0] sm:$0xf]  ;;  %v1683_v1 = vsel %vm8102_vm2, %v1678_v16, %v1682_v20  ;;  %v7039_v0 = vor.u32 %v7637_v49, %v7036_v41 }
 0x1b7   :  { %v5534_v31 = vadd.f32 %v5533_v48, %v5421_v53  ;;  %740 = vst [vmem:[#allocation2 + $0x658] sm:$0xf] %v626_v28  ;;  %v1130_v53 = vld [vmem:[%s11120_s0 + $0xc0] sm:$0xf]  ;;  %v7642_v48 = vld [vmem:[#allocation2 + $0x5d0] sm:$0xf0] }
 0x1b8   :  { %v5648_v55 = vpop.f32.mrf.mxu0  ;;  %1081 = vst [vmem:[#allocation2 + $0x638] sm:$0xf] %v979_v38  ;;  %v1686_v18 = vrot.slane %v1684_v11, 4  ;;  %v1692_v25 = vrot.slane %v1690_v61, 5  ;;  %v7043_v59 = vor.u32 %v7642_v48, %v7042_v9  ;;  %v158_v16 = vld [vmem:[%s11120_s0 + $0xbc] sm:$0xf] }
 0x1b9   :  { %v9570_v10 = vadd.f32 %v9504_v60, %v5534_v31  ;;  %v5199_v60 = vadd.f32 %v9181_v58, %v8393_v63  ;;  %v7035_v31 = vor.u32 %v7641_v8, %v7034_v37  ;;  %1178 = vst [vmem:[#allocation2 + $0x660] sm:$0xf] %v1130_v53  ;;  %v633_v11 = vshll.u32 %v158_v16, 16  ;;  %v1228_v37 = vld [vmem:[%s11120_s0 + $0xc8] sm:$0xf] }
 0x1ba   :  { %v1687_v51 = vor.u32 %v1686_v18, %v1682_v20  ;;  %1806 = vst [vmem:[#allocation2 + $0x640] sm:$0xf] %v1683_v1  ;;  %v627_v20 = vshrl.u32 %v9525_v22, 16  ;;  %v637_v19 = vshrl.u32 %v158_v16, 16  ;;  %v1694_v58 = vshrl.u32 %v9549_v62, 16 }
 0x1bb   :  { %v635_v2 = vrot.slane %v633_v11, 5  ;;  %v159_v22 = vld [vmem:[%s11120_s0 + $0xc0] sm:$0x1]  ;;  %v790_v18 = vld [vmem:[%s11120_s0 + $0xbc] sm:$0xf] }
 0x1bc   :  { %v5422_v40 = vpop.f32.mrf.mxu2  ;;  %v1688_v38 = vrot.slane %v1687_v51, 4  ;;  %v629_v35 = vrot.slane %v627_v20, 4  ;;  %v639_v8 = vrot.slane %v637_v19, 4  ;;  %v1696_v49 = vrot.slane %v1694_v58, 4  ;;  %v9595_v62 = vld [vmem:[%s11122_s2] ss:$0 sm:$0xff] }
 0x1bd   :  { %v5535_v26 = vpop.f32.mrf.mxu3  ;;  %v5201_v41 = vadd.f32 %v9595_v62, %v8431_v33  ;;  %v643_v53 = vshll.u32 %v159_v22, 16  ;;  %v791_v1 = vld [vmem:[%s11120_s0 + $0xc0] sm:$0x1]  ;;  %v984_v40 = vrot.slane %v790_v18, 5  ;;  %v1229_v20 = vld [vmem:[%s11120_s0 + $0xcc] sm:$0x1] }
 0x1be   :  { %v5311_v55 = vpop.f32.mrf.mxu1  ;;  %v1693_v63 = vsel %vm8102_vm2, %v1688_v38, %v1692_v25  ;;  %v630_v61 = vor.u32 %v629_v35, %v9543_v44  ;;  %v640_v48 = vor.u32 %v639_v8, %v635_v2  ;;  %v1697_v51 = vor.u32 %v1696_v49, %v1692_v25  ;;  %v7645_v58 = vld [vmem:[#allocation2 + $0x5ec] sm:$0xf]  ;;  %v7064_v35 = vld [vmem:[#allocation2 + $0x60c] sm:$0xf0]  ;;  %v7650_v22 = vld [vmem:[#allocation2 + $0x610] sm:$0xf0] }
 0x1bf   :  { %v5312_v28 = vadd.f32 %v5311_v55, %v5199_v60  ;;  %1807 = vst [vmem:[#allocation2 + $0x664] sm:$0xf] %v1693_v63  ;;  %v1700_v60 = vshll.u32 %v1228_v37, 16  ;;  %v645_v33 = vrot.slane %v643_v53, 5  ;;  %v1704_v55 = vshrl.u32 %v1228_v37, 16 }
 0x1c0   :  { %v5650_v36 = vpop.f32.mrf.mxu0  ;;  %v986_v38 = vrot.slane %v984_v40, 4  ;;  %v987_v16 = vrot.slane %v791_v1, 5  ;;  %v1698_v63 = vrot.slane %v1697_v51, 4  ;;  %v7070_v37 = vld [vmem:[#allocation2 + $0x5f0] sm:$0xf]  ;;  %v1710_v18 = vshll.u32 %v1229_v20, 16 }
 0x1c1   :  { %5345 = vmatmul.bf16.gmra.mxu1 %v7031_v52  ;;  %5458 = vmatmul.bf16.gmra.mxu2 %v7035_v31  ;;  %v631_v31 = vrot.slane %v630_v61, 4  ;;  %v1702_v49 = vrot.slane %v1700_v60, 5  ;;  %v7072_v61 = vld [vmem:[#allocation2 + $0x614] sm:$0xf0]  ;;  %v1706_v53 = vrot.slane %v1704_v55, 4  ;;  %v7067_v55 = vor.u32 %v7645_v58, %v7064_v35 }
 0x1c2   :  { %5571 = vmatmul.bf16.gmra.mxu3 %v7039_v0  ;;  %v641_v0 = vrot.slane %v640_v48, 4  ;;  %v988_v8 = vsel %vm8125_vm5, %v986_v38, %v987_v16  ;;  %v7078_v48 = vld [vmem:[#allocation2 + $0x5f8] sm:$0xf]  ;;  %v1132_v1 = vld [vmem:[%s11120_s0 + $0xc8] sm:$0xf] }
 0x1c3   :  { %5684 = vmatmul.bf16.gmra.mxu0 %v7043_v59  ;;  %v983_v59 = vrot.slane %v981_v4, 4  ;;  %1084 = vst [vmem:[#allocation2 + $0x6a4] sm:$0xf] %v988_v8  ;;  %v1703_v51 = vsel %vm8102_vm2, %v1698_v63, %v1702_v49  ;;  %v1707_v60 = vor.u32 %v1706_v53, %v1702_v49  ;;  %v2245_v16 = vld [vmem:[%s11120_s0 + $0x18] sm:$0xf] }
 0x1c4   :  { %v5424_v9 = vpop.f32.mrf.mxu2  ;;  %v646_v43 = vsel %vm8102_vm2, %v641_v0, %v645_v33  ;;  %1180 = vst [vmem:[#allocation2 + $0x6a8] sm:$0xf] %v1132_v1  ;;  %v2246_v20 = vld [vmem:[%s11120_s0 + $0x1c] sm:$0xf]  ;;  %v2295_v63 = vshrl.u32 %v2245_v16, 16  ;;  %v2298_v58 = vshll.u32 %v2245_v16, 16  ;;  %v5205_v1 = vadd.f32 %v9595_v62, %v8486_v45 }
 0x1c5   :  { %v5425_v26 = vadd.f32 %v5424_v9, %v5312_v28  ;;  %v5537_v52 = vpop.f32.mrf.mxu3  ;;  %v636_v28 = vsel %vm8102_vm2, %v631_v31, %v635_v2  ;;  %v985_v4 = vsel %vm8125_vm5, %v983_v59, %v984_v40  ;;  %742 = vst [vmem:[#allocation2 + $0x6a0] sm:$0xf] %v646_v43  ;;  %v1131_v2 = vld [vmem:[%s11120_s0 + $0xc4] sm:$0xf]  ;;  %v7651_v40 = vld [vmem:[#allocation2 + $0x618] sm:$0xf0] }
 0x1c6   :  { %v5313_v44 = vpop.f32.mrf.mxu1  ;;  %741 = vst [vmem:[#allocation2 + $0x67c] sm:$0xf] %v636_v28  ;;  %v7079_v38 = vor.u32 %v7651_v40, %v7078_v48  ;;  %v2304_v35 = vshll.u32 %v2246_v20, 16  ;;  %v2308_v8 = vshrl.u32 %v2246_v20, 16  ;;  %v1810_v53 = vld [vmem:[%s11120_s0 + $0xc] sm:$0xe] }
 0x1c7   :  { %v5538_v11 = vadd.f32 %v5537_v52, %v5425_v26  ;;  %v5314_v19 = vadd.f32 %v5313_v44, %v5201_v41  ;;  %v7646_v41 = vld [vmem:[#allocation2 + $0x5f4] sm:$0xf]  ;;  %1083 = vst [vmem:[#allocation2 + $0x680] sm:$0xf] %v985_v4  ;;  %v1712_v26 = vrot.slane %v1710_v18, 5  ;;  %v1708_v44 = vrot.slane %v1707_v60, 4 }
 0x1c8   :  { %v5652_v25 = vpop.f32.mrf.mxu0  ;;  %1179 = vst [vmem:[#allocation2 + $0x684] sm:$0xf] %v1131_v2  ;;  %v7075_v59 = vor.u32 %v7646_v41, %v7072_v61  ;;  %v1811_v4 = vld [vmem:[%s11120_s0 + $0x10] sm:$0xf]  ;;  %v9645_v41 = vld [vmem:[%s11120_s0 + $0x20] sm:$0xf] }
 0x1c9   :  { %v9622_v9 = vadd.f32 %v5650_v36, %v5538_v11  ;;  %v7071_v36 = vor.u32 %v7650_v22, %v7070_v37  ;;  %1808 = vst [vmem:[#allocation2 + $0x688] sm:$0xf] %v1703_v51  ;;  %v2297_v37 = vrot.slane %v2295_v63, 4  ;;  %v2300_v22 = vrot.slane %v2298_v58, 5  ;;  %v2875_v2 = vld [vmem:[%s11120_s0 + $0x1c] sm:$0xf] }
 0x1ca   :  { %v1910_v49 = vrot.slane %v1811_v4, 5  ;;  %v9656_v18 = vld [vmem:[%s11120_s0 + $0x14] sm:$0xf]  ;;  %v2306_v48 = vrot.slane %v2304_v35, 5  ;;  %v6302_v51 = vrot.slane %v1810_v53, 9 }
 0x1cb   :  { %v2301_v61 = vor.u32 %v2300_v22, %v2297_v37  ;;  %v2149_v16 = vld [vmem:[%s11120_s0 + $0x18] sm:$0xf]  ;;  %v2150_v20 = vld [vmem:[%s11120_s0 + $0x1c] sm:$0xf]  ;;  %v9680_v37 = vld [vmem:[%s11120_s0 + $0x20] sm:$0xf] }
 0x1cc   :  { %v5426_v52 = vpop.f32.mrf.mxu2  ;;  %v1912_v60 = vrot.slane %v1910_v49, 4  ;;  %v1911_v45 = vsel %vm8125_vm5, %v6302_v51, %v1910_v49  ;;  %v7659_v63 = vld [vmem:[#allocation2 + $0x658] sm:$0xf0]  ;;  %2197 = vst [vmem:[#allocation2 + $0x18] sm:$0xf] %v2149_v16 }
 0x1cd   :  { %v5427_v31 = vadd.f32 %v5426_v52, %v5314_v19  ;;  %v5539_v33 = vpop.f32.mrf.mxu3  ;;  %v1713_v19 = vsel %vm8102_vm2, %v1708_v44, %v1712_v26  ;;  %v1913_v26 = vrot.slane %v9656_v18, 5  ;;  %v2974_v44 = vrot.slane %v2875_v2, 5  ;;  %2101 = vst [vmem:[#allocation2 + $0x14] sm:$0xf] %v1911_v45  ;;  %v7655_v22 = vld [vmem:[#allocation2 + $0x63c] sm:$0xf] }
 0x1ce   :  { %v5316_v0 = vpop.f32.mrf.mxu1  ;;  %1809 = vst [vmem:[#allocation2 + $0x6ac] sm:$0xf] %v1713_v19  ;;  %v7106_v19 = vld [vmem:[#allocation2 + $0x638] sm:$0xf]  ;;  %v7108_v2 = vld [vmem:[#allocation2 + $0x65c] sm:$0xf0] }
 0x1cf   :  { %v5540_v11 = vadd.f32 %v5539_v33, %v5427_v31  ;;  %v2302_v31 = vrot.slane %v2301_v61, 4  ;;  %v2310_v33 = vrot.slane %v2308_v8, 4  ;;  %v2976_v49 = vrot.slane %v2974_v44, 4  ;;  %v7114_v53 = vld [vmem:[#allocation2 + $0x640] sm:$0xf] }
 0x1d0   :  { %v5655_v28 = vpop.f32.mrf.mxu0  ;;  %v2977_v61 = vrot.slane %v9680_v37, 5  ;;  %2198 = vst [vmem:[#allocation2 + $0x3c] sm:$0xf] %v2150_v20  ;;  %v2151_v18 = vld [vmem:[%s11120_s0 + $0x20] sm:$0xf] }
 0x1d1   :  { %5349 = vmatmul.bf16.gmra.mxu1 %v7067_v55  ;;  %5462 = vmatmul.bf16.gmra.mxu2 %v7071_v36  ;;  %v9637_v43 = vadd.f32 %v5652_v25, %v5540_v11  ;;  %v2314_v55 = vshll.u32 %v9645_v41, 16  ;;  %v2874_v36 = vld [vmem:[%s11120_s0 + $0x18] sm:$0xe]  ;;  %v7654_v11 = vld [vmem:[#allocation2 + $0x634] sm:$0xf]  ;;  %v2311_v58 = vor.u32 %v2310_v33, %v2306_v48  ;;  %v2307_v4 = vsel %vm8102_vm2, %v2302_v31, %v2306_v48 }
 0x1d2   :  { %5575 = vmatmul.bf16.gmra.mxu3 %v7075_v59  ;;  %v7100_v28 = vld [vmem:[#allocation2 + $0x654] sm:$0xf0]  ;;  %v6303_v8 = vrot.slane %v2874_v36, 9  ;;  %2826 = vst [vmem:[#allocation2 + $0x1c] sm:$0xf] %v2307_v4  ;;  %v2978_v48 = vsel %vm8125_vm5, %v2976_v49, %v2977_v61  ;;  %v7107_v36 = vor.u32 %v7659_v63, %v7106_v19  ;;  %v2318_v4 = vshrl.u32 %v9645_v41, 16 }
 0x1d3   :  { %5688 = vmatmul.bf16.gmra.mxu0 %v7079_v38  ;;  %v1914_v38 = vsel %vm8125_vm5, %v1912_v60, %v1913_v26  ;;  %v2316_v35 = vrot.slane %v2314_v55, 5  ;;  %v7103_v55 = vor.u32 %v7654_v11, %v7100_v28  ;;  %3166 = vst [vmem:[#allocation2 + $0x44] sm:$0xf] %v2978_v48  ;;  %v1813_v19 = vld [vmem:[%s11120_s0 + $0x18] sm:$0xf] }
 0x1d4   :  { %v5429_v25 = vpop.f32.mrf.mxu2  ;;  %2102 = vst [vmem:[#allocation2 + $0x38] sm:$0xf] %v1914_v38  ;;  %v7111_v38 = vor.u32 %v7655_v22, %v7108_v2  ;;  %v2320_v11 = vrot.slane %v2318_v4, 4  ;;  %v9705_v63 = vld [vmem:[%s11120_s0 + $0x28] sm:$0xf]  ;;  %v1916_v41 = vrot.slane %v1813_v19, 5 }
 0x1d5   :  { %v5542_v40 = vpop.f32.mrf.mxu3  ;;  %v2312_v25 = vrot.slane %v2311_v58, 4  ;;  %v7668_v19 = vld [vmem:[#allocation2 + $0x6a0] sm:$0xf0]  ;;  %2199 = vst [vmem:[#allocation2 + $0x60] sm:$0xf] %v2151_v18 }
 0x1d6   :  { %v5317_v52 = vpop.f32.mrf.mxu1  ;;  %v2975_v40 = vsel %vm8125_vm5, %v6303_v8, %v2974_v44  ;;  %v2248_v44 = vld [vmem:[%s11120_s0 + $0x24] sm:$0xf]  ;;  %v2321_v8 = vor.u32 %v2320_v11, %v2316_v35 }
 0x1d7   :  { %v5318_v0 = vadd.f32 %v5317_v52, %v5205_v1  ;;  %v7660_v1 = vld [vmem:[#allocation2 + $0x660] sm:$0xf0]  ;;  %v2317_v60 = vsel %vm8102_vm2, %v2312_v25, %v2316_v35  ;;  %v5208_v52 = vadd.f32 %v9595_v62, %v8520_v13  ;;  %3165 = vst [vmem:[#allocation2 + $0x20] sm:$0xf] %v2975_v40  ;;  %v2324_v13 = vshll.u32 %v2248_v44, 16 }
 0x1d8   :  { %v5656_v59 = vpop.f32.mrf.mxu0  ;;  %2827 = vst [vmem:[#allocation2 + $0x40] sm:$0xf] %v2317_v60  ;;  %v7115_v16 = vor.u32 %v7660_v1, %v7114_v53  ;;  %v9713_v25 = vld [vmem:[%s11120_s0 + $0x1c] sm:$0xf]  ;;  %v2334_v53 = vshll.u32 %v9705_v63, 16  ;;  %v1915_v60 = vrot.slane %v1913_v26, 4 }
 0x1d9   :  { %v2326_v22 = vrot.slane %v2324_v13, 5  ;;  %v1918_v35 = vrot.slane %v1916_v41, 4  ;;  %v2979_v26 = vrot.slane %v2977_v61, 4  ;;  %v2152_v13 = vld [vmem:[%s11120_s0 + $0x24] sm:$0xf] }
 0x1da   :  { %2200 = vst [vmem:[#allocation2 + $0x84] sm:$0xf] %v2152_v13 }
 0x1dc   :  { %v5430_v51 = vpop.f32.mrf.mxu2 }
 0x1dd   :  { %v5431_v31 = vadd.f32 %v5430_v51, %v5318_v0  ;;  %v5543_v33 = vpop.f32.mrf.mxu3  ;;  %v2328_v0 = vshrl.u32 %v2248_v44, 16  ;;  %v7663_v44 = vld [vmem:[#allocation2 + $0x67c] sm:$0xf] }
 0x1de   :  { %v5320_v45 = vpop.f32.mrf.mxu1 }
 0x1df   :  { %v5544_v20 = vadd.f32 %v5543_v33, %v5431_v31  ;;  %v5321_v58 = vadd.f32 %v5320_v45, %v5208_v52  ;;  %v2330_v49 = vrot.slane %v2328_v0, 4  ;;  %v1919_v52 = vrot.slane %v9713_v25, 5 }
 0x1e0   :  { %v5659_v37 = vpop.f32.mrf.mxu0  ;;  %v2322_v31 = vrot.slane %v2321_v8, 4 }
 0x1e1   :  { %5354 = vmatmul.bf16.gmra.mxu1 %v7103_v55  ;;  %5467 = vmatmul.bf16.gmra.mxu2 %v7107_v36  ;;  %v9697_v28 = vadd.f32 %v5656_v59, %v5544_v20  ;;  %v2877_v59 = vld [vmem:[%s11120_s0 + $0x24] sm:$0xf]  ;;  %v2331_v33 = vor.u32 %v2330_v49, %v2326_v22  ;;  %v9719_v55 = vrot.slane %v2334_v53, 5  ;;  %v9724_v36 = vld [vmem:[%s11120_s0 + $0x28] sm:$0xf]  ;;  %v1920_v4 = vsel %vm8125_vm5, %v1918_v35, %v1919_v52 }
 0x1e2   :  { %5580 = vmatmul.bf16.gmra.mxu3 %v7111_v38  ;;  %v2980_v1 = vrot.slane %v2877_v59, 5  ;;  %v7136_v20 = vld [vmem:[#allocation2 + $0x69c] sm:$0xf0]  ;;  %2104 = vst [vmem:[#allocation2 + $0x80] sm:$0xf] %v1920_v4  ;;  %v2327_v61 = vsel %vm8102_vm2, %v2322_v31, %v2326_v22  ;;  %v5212_v22 = vadd.f32 %v9595_v62, %v8594_v34 }
 0x1e3   :  { %5693 = vmatmul.bf16.gmra.mxu0 %v7115_v16  ;;  %v1917_v16 = vsel %vm8125_vm5, %v1915_v60, %v1916_v41  ;;  %v2332_v0 = vrot.slane %v2331_v33, 4  ;;  %v2983_v41 = vrot.slane %v9724_v36, 5  ;;  %v7664_v49 = vld [vmem:[#allocation2 + $0x684] sm:$0xf]  ;;  %v7144_v59 = vld [vmem:[#allocation2 + $0x6a4] sm:$0xf0] }
 0x1e4   :  { %v5433_v2 = vpop.f32.mrf.mxu2  ;;  %2103 = vst [vmem:[#allocation2 + $0x5c] sm:$0xf] %v1917_v16  ;;  %v2982_v11 = vrot.slane %v2980_v1, 4  ;;  %v7150_v53 = vld [vmem:[#allocation2 + $0x688] sm:$0xf] }
 0x1e5   :  { %v5434_v40 = vadd.f32 %v5433_v2, %v5321_v58  ;;  %v5546_v51 = vpop.f32.mrf.mxu3  ;;  %v7142_v58 = vld [vmem:[#allocation2 + $0x680] sm:$0xf]  ;;  %v2337_v2 = vsel %vm8102_vm2, %v2332_v0, %v9719_v55  ;;  %2828 = vst [vmem:[#allocation2 + $0x64] sm:$0xf] %v2327_v61  ;;  %v5214_v61 = vadd.f32 %v9595_v62, %v8634_v29  ;;  %v7464_v36 = vld [vmem:[#allocation2 + $0x40] sm:$0xf0] }
 0x1e6   :  { %v5322_v48 = vpop.f32.mrf.mxu1  ;;  %v7143_v31 = vor.u32 %v7668_v19, %v7142_v58  ;;  %2829 = vst [vmem:[#allocation2 + $0x88] sm:$0xf] %v2337_v2  ;;  %v2879_v19 = vld [vmem:[%s11120_s0 + $0x2c] sm:$0xf] }
 0x1e7   :  { %v5547_v45 = vadd.f32 %v5546_v51, %v5434_v40  ;;  %v7669_v40 = vld [vmem:[#allocation2 + $0x6a8] sm:$0xf0]  ;;  %v2981_v51 = vsel %vm8125_vm5, %v2979_v26, %v2980_v1  ;;  %v7139_v48 = vor.u32 %v7663_v44, %v7136_v20  ;;  %v2338_v26 = vshrl.u32 %v9705_v63, 16  ;;  %v1815_v44 = vld [vmem:[%s11120_s0 + $0x20] sm:$0xf] }
 0x1e8   :  { %v5661_v38 = vpop.f32.mrf.mxu0  ;;  %3167 = vst [vmem:[#allocation2 + $0x68] sm:$0xf] %v2981_v51  ;;  %v2250_v1 = vld [vmem:[%s11120_s0 + $0x2c] sm:$0xf]  ;;  %v9764_v20 = vld [vmem:[%s11120_s0 + $0x30] sm:$0xf] }
 0x1e9   :  { %v9741_v8 = vadd.f32 %v5659_v37, %v5547_v45  ;;  %v2984_v37 = vsel %vm8125_vm5, %v2982_v11, %v2983_v41  ;;  %v7147_v45 = vor.u32 %v7664_v49, %v7144_v59  ;;  %v7151_v38 = vor.u32 %v7669_v40, %v7150_v53  ;;  %v9775_v59 = vld [vmem:[%s11120_s0 + $0x24] sm:$0xf] }
 0x1ea   :  { %3168 = vst [vmem:[#allocation2 + $0x8c] sm:$0xf] %v2984_v37  ;;  %v2344_v4 = vshll.u32 %v2250_v1, 16  ;;  %v2348_v13 = vshrl.u32 %v2250_v1, 16  ;;  %v2340_v34 = vrot.slane %v2338_v26, 4  ;;  %v1922_v0 = vrot.slane %v1815_v44, 5 }
 0x1eb   :  { %v2354_v2 = vshll.u32 %v9764_v20, 16  ;;  %v7458_v1 = vld [vmem:[#allocation2 + $0x14] sm:$0xf]  ;;  %v6330_v26 = vld [vmem:[#allocation2 + $0x18] sm:$0xf]  ;;  %v2985_v44 = vrot.slane %v2983_v41, 4 }
 0x1ec   :  { %v5435_v60 = vpop.f32.mrf.mxu2  ;;  %v2346_v58 = vrot.slane %v2344_v4, 5  ;;  %v2341_v63 = vor.u32 %v2340_v34, %v9719_v55  ;;  %v2350_v11 = vrot.slane %v2348_v13, 4  ;;  %v1921_v55 = vrot.slane %v1919_v52, 4  ;;  %v2153_v52 = vld [vmem:[%s11120_s0 + $0x28] sm:$0xf] }
 0x1ed   :  { %v5548_v35 = vpop.f32.mrf.mxu3  ;;  %v1924_v51 = vrot.slane %v1922_v0, 4  ;;  %v2986_v60 = vrot.slane %v2879_v19, 5  ;;  %v2154_v13 = vld [vmem:[%s11120_s0 + $0x2c] sm:$0xf]  ;;  %2201 = vst [vmem:[#allocation2 + $0xa8] sm:$0xf] %v2153_v52 }
 0x1ee   :  { %v5324_v33 = vpop.f32.mrf.mxu1  ;;  %v2342_v35 = vrot.slane %v2341_v63, 4  ;;  %v2351_v29 = vor.u32 %v2350_v11, %v2346_v58  ;;  %v1923_v25 = vsel %vm8125_vm5, %v1921_v55, %v1922_v0  ;;  %v7463_v0 = vld [vmem:[#allocation2 + $0x38] sm:$0xf0]  ;;  %2202 = vst [vmem:[#allocation2 + $0xcc] sm:$0xf] %v2154_v13  ;;  %v2358_v13 = vshrl.u32 %v9764_v20, 16 }
 0x1ef   :  { %v5325_v16 = vadd.f32 %v5324_v33, %v5212_v22  ;;  %v1925_v22 = vrot.slane %v9775_v59, 5  ;;  %2105 = vst [vmem:[#allocation2 + $0xa4] sm:$0xf] %v1923_v25  ;;  %v2988_v11 = vrot.slane %v2986_v60, 4  ;;  %v2987_v41 = vsel %vm8125_vm5, %v2985_v44, %v2986_v60  ;;  %v2252_v60 = vld [vmem:[%s11120_s0 + $0x34] sm:$0xf] }
 0x1f0   :  { %v5663_v18 = vpop.f32.mrf.mxu0  ;;  %v2352_v34 = vrot.slane %v2351_v29, 4  ;;  %v2347_v63 = vsel %vm8102_vm2, %v2342_v35, %v2346_v58  ;;  %v6331_v35 = vor.u32 %v7463_v0, %v6330_v26  ;;  %3169 = vst [vmem:[#allocation2 + $0xb0] sm:$0xf] %v2987_v41  ;;  %v2368_v44 = vshrl.u32 %v2252_v60, 16  ;;  %v9828_v26 = vld [vmem:[%s11120_s0 + $0x38] sm:$0xf] }
 0x1f1   :  { %5358 = vmatmul.bf16.gmra.mxu1 %v7139_v48  ;;  %5471 = vmatmul.bf16.gmra.mxu2 %v7143_v31  ;;  %v9781_v48 = vrot.slane %v2354_v2, 5  ;;  %v9786_v31 = vld [vmem:[%s11120_s0 + $0x30] sm:$0xf]  ;;  %v1926_v4 = vsel %vm8125_vm5, %v1924_v51, %v1925_v22  ;;  %v6332_v2 = vld [vmem:[#allocation2 + $0x3c] sm:$0xf0] }
 0x1f2   :  { %5584 = vmatmul.bf16.gmra.mxu3 %v7147_v45  ;;  %2106 = vst [vmem:[#allocation2 + $0xc8] sm:$0xf] %v1926_v4  ;;  %v2989_v19 = vrot.slane %v9786_v31, 5 }
 0x1f3   :  { %5697 = vmatmul.bf16.gmra.mxu0 %v7151_v38  ;;  %2830 = vst [vmem:[#allocation2 + $0xac] sm:$0xf] %v2347_v63 }
 0x1f4   :  { %v5437_v49 = vpop.f32.mrf.mxu2 }
 0x1f5   :  { %v5438_v53 = vadd.f32 %v5437_v49, %v5325_v16  ;;  %v5550_v40 = vpop.f32.mrf.mxu3  ;;  %v6324_v16 = vld [vmem:[#allocation2 + $0x34] sm:$0xf0]  ;;  %v7459_v49 = vld [vmem:[#allocation2 + $0x1c] sm:$0xf] }
 0x1f6   :  { %v5326_v37 = vpop.f32.mrf.mxu1 }
 0x1f7   :  { %v5551_v33 = vadd.f32 %v5550_v40, %v5438_v53  ;;  %v5327_v45 = vadd.f32 %v5326_v37, %v5214_v61  ;;  %v2357_v53 = vsel %vm8102_vm2, %v2352_v34, %v9781_v48  ;;  %v6338_v40 = vld [vmem:[#allocation2 + $0x20] sm:$0xf]  ;;  %v6327_v37 = vor.u32 %v7458_v1, %v6324_v16  ;;  %v1817_v16 = vld [vmem:[%s11120_s0 + $0x28] sm:$0xf] }
 0x1f8   :  { %v5665_v38 = vpop.f32.mrf.mxu0  ;;  %2831 = vst [vmem:[#allocation2 + $0xd0] sm:$0xf] %v2357_v53  ;;  %v6339_v25 = vor.u32 %v7464_v36, %v6338_v40  ;;  %v2364_v34 = vshll.u32 %v2252_v60, 16  ;;  %v1928_v0 = vrot.slane %v1817_v16, 5  ;;  %v2374_v53 = vshll.u32 %v9828_v26, 16 }
 0x1f9   :  { %v9805_v61 = vadd.f32 %v5663_v18, %v5551_v33  ;;  %v2990_v18 = vsel %vm8125_vm5, %v2988_v11, %v2989_v19  ;;  %v6335_v33 = vor.u32 %v7459_v49, %v6332_v2  ;;  %v2370_v11 = vrot.slane %v2368_v44, 4  ;;  %v9837_v2 = vld [vmem:[%s11120_s0 + $0x2c] sm:$0xf]  ;;  %v2156_v60 = vld [vmem:[%s11120_s0 + $0x34] sm:$0xf] }
 0x1fa   :  { %3170 = vst [vmem:[#allocation2 + $0xd4] sm:$0xf] %v2990_v18  ;;  %v2366_v20 = vrot.slane %v2364_v34, 5  ;;  %v5218_v36 = vadd.f32 %v9595_v62, %v8691_v30  ;;  %v1931_v18 = vrot.slane %v9837_v2, 5  ;;  %v2991_v44 = vrot.slane %v2989_v19, 4 }
 0x1fb   :  { %v7472_v16 = vld [vmem:[#allocation2 + $0x80] sm:$0xf0]  ;;  %2204 = vst [vmem:[#allocation2 + $0x114] sm:$0xf] %v2156_v60  ;;  %v2157_v2 = vld [vmem:[%s11120_s0 + $0x38] sm:$0xf] }
 0x1fc   :  { %v5439_v55 = vpop.f32.mrf.mxu2  ;;  %2205 = vst [vmem:[#allocation2 + $0x138] sm:$0xf] %v2157_v2 }
 0x1fd   :  { %v5440_v58 = vadd.f32 %v5439_v55, %v5327_v45  ;;  %v5552_v51 = vpop.f32.mrf.mxu3  ;;  %v2360_v45 = vrot.slane %v2358_v13, 4  ;;  %v1930_v55 = vrot.slane %v1928_v0, 4  ;;  %v6366_v13 = vld [vmem:[#allocation2 + $0x60] sm:$0xf] }
 0x1fe   :  { %v5329_v29 = vpop.f32.mrf.mxu1 }
 0x1ff   :  { %v5553_v52 = vadd.f32 %v5552_v51, %v5440_v58  ;;  %v2361_v63 = vor.u32 %v2360_v45, %v9781_v48  ;;  %v1927_v48 = vrot.slane %v1925_v22, 4  ;;  %v9850_v29 = vld [vmem:[%s11120_s0 + $0x38] sm:$0xf]  ;;  %v1932_v59 = vsel %vm8125_vm5, %v1930_v55, %v1931_v18  ;;  %v2155_v22 = vld [vmem:[%s11120_s0 + $0x30] sm:$0xf] }
 0x200   :  { %v5668_v4 = vpop.f32.mrf.mxu0  ;;  %2108 = vst [vmem:[#allocation2 + $0x110] sm:$0xf] %v1932_v59 }
 0x201   :  { %5710 = vmatmul.bf16.vlgmr.msra.gmra.mxu1 %v6327_v37  ;;  %5823 = vmatmul.bf16.vlgmr.msra.gmra.mxu2 %v6331_v35  ;;  %v9820_v1 = vadd.f32 %v5665_v38, %v5553_v52  ;;  %v2881_v38 = vld [vmem:[%s11120_s0 + $0x34] sm:$0xf]  ;;  %v2362_v51 = vrot.slane %v2361_v63, 4  ;;  %v2371_v37 = vor.u32 %v2370_v11, %v2366_v20  ;;  %v9845_v35 = vrot.slane %v2374_v53, 5  ;;  %v7467_v52 = vld [vmem:[#allocation2 + $0x5c] sm:$0xf] }
 0x202   :  { %5936 = vmatmul.bf16.vlgmr.msra.gmra.mxu3 %v6335_v33  ;;  %v2992_v40 = vrot.slane %v2881_v38, 5  ;;  %v1929_v30 = vsel %vm8125_vm5, %v1927_v48, %v1928_v0  ;;  %v6360_v4 = vld [vmem:[#allocation2 + $0x7c] sm:$0xf0]  ;;  %v2995_v63 = vrot.slane %v9850_v29, 5  ;;  %v7468_v11 = vld [vmem:[#allocation2 + $0x64] sm:$0xf] }
 0x203   :  { %6049 = vmatmul.bf16.vlgmr.msra.gmra.mxu0 %v6339_v25  ;;  %2107 = vst [vmem:[#allocation2 + $0xec] sm:$0xf] %v1929_v30  ;;  %v2372_v34 = vrot.slane %v2371_v37, 4  ;;  %v2367_v0 = vsel %vm8102_vm2, %v2362_v51, %v2366_v20  ;;  %v6368_v38 = vld [vmem:[#allocation2 + $0x84] sm:$0xf0]  ;;  %v6367_v51 = vor.u32 %v7472_v16, %v6366_v13 }
 0x204   :  { %v5442_v49 = vpop.f32.mrf.mxu2  ;;  %v2994_v45 = vrot.slane %v2992_v40, 4  ;;  %2203 = vst [vmem:[#allocation2 + $0xf0] sm:$0xf] %v2155_v22  ;;  %v6374_v53 = vld [vmem:[#allocation2 + $0x68] sm:$0xf]  ;;  %v2993_v31 = vsel %vm8125_vm5, %v2991_v44, %v2992_v40  ;;  %v6371_v29 = vor.u32 %v7468_v11, %v6368_v38 }
 0x205   :  { %v5555_v41 = vpop.f32.mrf.mxu3  ;;  %v2377_v49 = vsel %vm8102_vm2, %v2372_v34, %v9845_v35  ;;  %2832 = vst [vmem:[#allocation2 + $0xf4] sm:$0xf] %v2367_v0  ;;  %v2254_v40 = vld [vmem:[%s11120_s0 + $0x3c] sm:$0xf]  ;;  %v2378_v34 = vshrl.u32 %v9828_v26, 16 }
 0x206   :  { %v5330_v58 = vpop.f32.mrf.mxu1  ;;  %v2996_v20 = vsel %vm8125_vm5, %v2994_v45, %v2995_v63  ;;  %v5221_v41 = vadd.f32 %v9595_v62, %v8725_v3  ;;  %2833 = vst [vmem:[#allocation2 + $0x118] sm:$0xf] %v2377_v49  ;;  %v2384_v3 = vshll.u32 %v2254_v40, 16  ;;  %v1819_v13 = vld [vmem:[%s11120_s0 + $0x30] sm:$0xf] }
 0x207   :  { %v5331_v33 = vadd.f32 %v5330_v58, %v5218_v36  ;;  %v7473_v36 = vld [vmem:[#allocation2 + $0x88] sm:$0xf0]  ;;  %v6363_v58 = vor.u32 %v7467_v52, %v6360_v4  ;;  %3171 = vst [vmem:[#allocation2 + $0xf8] sm:$0xf] %v2993_v31  ;;  %v2380_v52 = vrot.slane %v2378_v34, 4  ;;  %v1934_v45 = vrot.slane %v1819_v13, 5 }
 0x208   :  { %v5669_v25 = vpop.f32.mrf.mxu0  ;;  %v6375_v30 = vor.u32 %v7473_v36, %v6374_v53  ;;  %3172 = vst [vmem:[#allocation2 + $0x11c] sm:$0xf] %v2996_v20  ;;  %v9890_v44 = vld [vmem:[%s11120_s0 + $0x40] sm:$0xf]  ;;  %v2386_v26 = vrot.slane %v2384_v3, 5 }
 0x209   :  { %v2381_v16 = vor.u32 %v2380_v52, %v9845_v35  ;;  %v9899_v38 = vld [vmem:[%s11120_s0 + $0x34] sm:$0xf]  ;;  %v2394_v49 = vshll.u32 %v9890_v44, 16  ;;  %v1936_v35 = vrot.slane %v1934_v45, 4  ;;  %v2158_v3 = vld [vmem:[%s11120_s0 + $0x3c] sm:$0xf] }
 0x20a   :  { %v7481_v13 = vld [vmem:[#allocation2 + $0xc8] sm:$0xf0]  ;;  %2206 = vst [vmem:[#allocation2 + $0x15c] sm:$0xf] %v2158_v3 }
 0x20c   :  { %v5443_v19 = vpop.f32.mrf.mxu2 }
 0x20d   :  { %v5444_v48 = vadd.f32 %v5443_v19, %v5331_v33  ;;  %v5556_v55 = vpop.f32.mrf.mxu3  ;;  %v2388_v33 = vshrl.u32 %v2254_v40, 16  ;;  %v1933_v19 = vrot.slane %v1931_v18, 4  ;;  %v2997_v18 = vrot.slane %v2995_v63, 4  ;;  %v7476_v40 = vld [vmem:[#allocation2 + $0xa4] sm:$0xf] }
 0x20e   :  { %v5333_v37 = vpop.f32.mrf.mxu1 }
 0x20f   :  { %v5557_v59 = vadd.f32 %v5556_v55, %v5444_v48  ;;  %v5334_v22 = vadd.f32 %v5333_v37, %v5221_v41  ;;  %v2390_v0 = vrot.slane %v2388_v33, 4  ;;  %v1937_v41 = vrot.slane %v9899_v38, 5 }
 0x210   :  { %v5672_v60 = vpop.f32.mrf.mxu0  ;;  %v2382_v48 = vrot.slane %v2381_v16, 4 }
 0x211   :  { %5715 = vmatmul.bf16.gmra.mxu1 %v6363_v58  ;;  %5828 = vmatmul.bf16.gmra.mxu2 %v6367_v51  ;;  %v9882_v4 = vadd.f32 %v5669_v25, %v5557_v59  ;;  %v2883_v25 = vld [vmem:[%s11120_s0 + $0x3c] sm:$0xf]  ;;  %v2391_v55 = vor.u32 %v2390_v0, %v2386_v26  ;;  %v9905_v58 = vrot.slane %v2394_v49, 5  ;;  %v9910_v51 = vld [vmem:[%s11120_s0 + $0x40] sm:$0xf]  ;;  %v1938_v34 = vsel %vm8125_vm5, %v1936_v35, %v1937_v41 }
 0x212   :  { %5941 = vmatmul.bf16.gmra.mxu3 %v6371_v29  ;;  %v2998_v53 = vrot.slane %v2883_v25, 5  ;;  %v6396_v59 = vld [vmem:[#allocation2 + $0xc4] sm:$0xf0]  ;;  %2110 = vst [vmem:[#allocation2 + $0x158] sm:$0xf] %v1938_v34  ;;  %v2387_v63 = vsel %vm8102_vm2, %v2382_v48, %v2386_v26  ;;  %v5225_v26 = vadd.f32 %v9595_v62, %v8400_v6 }
 0x213   :  { %6054 = vmatmul.bf16.gmra.mxu0 %v6375_v30  ;;  %v1935_v30 = vsel %vm8125_vm5, %v1933_v19, %v1934_v45  ;;  %v2392_v33 = vrot.slane %v2391_v55, 4  ;;  %v3001_v45 = vrot.slane %v9910_v51, 5  ;;  %v7477_v0 = vld [vmem:[#allocation2 + $0xac] sm:$0xf]  ;;  %v6404_v25 = vld [vmem:[#allocation2 + $0xcc] sm:$0xf0] }
 0x214   :  { %v5446_v11 = vpop.f32.mrf.mxu2  ;;  %2109 = vst [vmem:[#allocation2 + $0x134] sm:$0xf] %v1935_v30  ;;  %v3000_v52 = vrot.slane %v2998_v53, 4  ;;  %v6410_v49 = vld [vmem:[#allocation2 + $0xb0] sm:$0xf] }
 0x215   :  { %v5447_v36 = vadd.f32 %v5446_v11, %v5334_v22  ;;  %v5559_v31 = vpop.f32.mrf.mxu3  ;;  %v6402_v22 = vld [vmem:[#allocation2 + $0xa8] sm:$0xf]  ;;  %v2397_v11 = vsel %vm8102_vm2, %v2392_v33, %v9905_v58  ;;  %2834 = vst [vmem:[#allocation2 + $0x13c] sm:$0xf] %v2387_v63  ;;  %v5227_v63 = vadd.f32 %v9595_v62, %v8433_v42  ;;  %v7491_v51 = vld [vmem:[#allocation2 + $0x118] sm:$0xf0] }
 0x216   :  { %v5335_v20 = vpop.f32.mrf.mxu1  ;;  %v6403_v48 = vor.u32 %v7481_v13, %v6402_v22  ;;  %2835 = vst [vmem:[#allocation2 + $0x160] sm:$0xf] %v2397_v11  ;;  %v2885_v13 = vld [vmem:[%s11120_s0 + $0x44] sm:$0xf] }
 0x217   :  { %v5560_v37 = vadd.f32 %v5559_v31, %v5447_v36  ;;  %v7482_v36 = vld [vmem:[#allocation2 + $0xd0] sm:$0xf0]  ;;  %v2999_v31 = vsel %vm8125_vm5, %v2997_v18, %v2998_v53  ;;  %v6399_v20 = vor.u32 %v7476_v40, %v6396_v59  ;;  %v2256_v53 = vld [vmem:[%s11120_s0 + $0x44] sm:$0xf]  ;;  %v2398_v18 = vshrl.u32 %v9890_v44, 16 }
 0x218   :  { %v5674_v29 = vpop.f32.mrf.mxu0  ;;  %3173 = vst [vmem:[#allocation2 + $0x140] sm:$0xf] %v2999_v31  ;;  %v2404_v34 = vshll.u32 %v2256_v53, 16  ;;  %v2408_v3 = vshrl.u32 %v2256_v53, 16  ;;  %v1821_v40 = vld [vmem:[%s11120_s0 + $0x38] sm:$0xf] }
 0x219   :  { %v9927_v16 = vadd.f32 %v5672_v60, %v5560_v37  ;;  %v3002_v60 = vsel %vm8125_vm5, %v3000_v52, %v3001_v45  ;;  %v6407_v37 = vor.u32 %v7477_v0, %v6404_v25  ;;  %v6411_v29 = vor.u32 %v7482_v36, %v6410_v49  ;;  %v9950_v59 = vld [vmem:[%s11120_s0 + $0x48] sm:$0xf]  ;;  %v9961_v25 = vld [vmem:[%s11120_s0 + $0x3c] sm:$0xf]  ;;  %v6432_v53 = vld [vmem:[#allocation2 + $0x10c] sm:$0xf0] }
 0x21a   :  { %3174 = vst [vmem:[#allocation2 + $0x164] sm:$0xf] %v3002_v60  ;;  %v2400_v6 = vrot.slane %v2398_v18, 4  ;;  %v2406_v22 = vrot.slane %v2404_v34, 5  ;;  %v1940_v33 = vrot.slane %v1821_v40, 5  ;;  %v2410_v52 = vrot.slane %v2408_v3, 4 }
 0x21b   :  { %v2414_v11 = vshll.u32 %v9950_v59, 16  ;;  %v2160_v34 = vld [vmem:[%s11120_s0 + $0x44] sm:$0xf]  ;;  %v7490_v40 = vld [vmem:[#allocation2 + $0x110] sm:$0xf0] }
 0x21c   :  { %v5448_v19 = vpop.f32.mrf.mxu2  ;;  %v2401_v44 = vor.u32 %v2400_v6, %v9905_v58  ;;  %v1939_v58 = vrot.slane %v1937_v41, 4  ;;  %v1942_v31 = vrot.slane %v1940_v33, 4  ;;  %v2411_v42 = vor.u32 %v2410_v52, %v2406_v22  ;;  %v2159_v41 = vld [vmem:[%s11120_s0 + $0x40] sm:$0xf]  ;;  %2208 = vst [vmem:[#allocation2 + $0x1a4] sm:$0xf] %v2160_v34 }
 0x21d   :  { %v5561_v35 = vpop.f32.mrf.mxu3  ;;  %v3004_v19 = vrot.slane %v2885_v13, 5  ;;  %v9967_v62 = vrot.slane %v2414_v11, 5  ;;  %v3003_v6 = vrot.slane %v3001_v45, 4  ;;  %2207 = vst [vmem:[#allocation2 + $0x180] sm:$0xf] %v2159_v41 }
 0x21e   :  { %v5337_v55 = vpop.f32.mrf.mxu1  ;;  %v2402_v35 = vrot.slane %v2401_v44, 4  ;;  %v1941_v38 = vsel %vm8125_vm5, %v1939_v58, %v1940_v33  ;;  %v2412_v3 = vrot.slane %v2411_v42, 4 }
 0x21f   :  { %v5338_v30 = vadd.f32 %v5337_v55, %v5225_v26  ;;  %v1943_v26 = vrot.slane %v9961_v25, 5  ;;  %2111 = vst [vmem:[#allocation2 + $0x17c] sm:$0xf] %v1941_v38  ;;  %v3006_v44 = vrot.slane %v3004_v19, 4  ;;  %v3005_v45 = vsel %vm8125_vm5, %v3003_v6, %v3004_v19  ;;  %v2258_v19 = vld [vmem:[%s11120_s0 + $0x4c] sm:$0xf] }
 0x220   :  { %v5676_v2 = vpop.f32.mrf.mxu0  ;;  %v2407_v33 = vsel %vm8102_vm2, %v2402_v35, %v2406_v22  ;;  %v2417_v11 = vsel %vm8102_vm2, %v2412_v3, %v9967_v62  ;;  %3175 = vst [vmem:[#allocation2 + $0x188] sm:$0xf] %v3005_v45  ;;  %v2424_v34 = vshll.u32 %v2258_v19, 16  ;;  %v2428_v3 = vshrl.u32 %v2258_v19, 16  ;;  %v2162_v19 = vld [vmem:[%s11120_s0 + $0x4c] sm:$0xf] }
 0x221   :  { %5719 = vmatmul.bf16.gmra.mxu1 %v6399_v20  ;;  %5832 = vmatmul.bf16.gmra.mxu2 %v6403_v48  ;;  %v9972_v20 = vld [vmem:[%s11120_s0 + $0x48] sm:$0xf]  ;;  %v1944_v18 = vsel %vm8125_vm5, %v1942_v31, %v1943_v26  ;;  %2836 = vst [vmem:[#allocation2 + $0x184] sm:$0xf] %v2407_v33  ;;  %v1945_v45 = vrot.slane %v1943_v26, 4 }
 0x222   :  { %5945 = vmatmul.bf16.gmra.mxu3 %v6407_v37  ;;  %2112 = vst [vmem:[#allocation2 + $0x1a0] sm:$0xf] %v1944_v18  ;;  %v3007_v52 = vrot.slane %v9972_v20, 5  ;;  %v2418_v18 = vshrl.u32 %v9950_v59, 16  ;;  %v2426_v59 = vrot.slane %v2424_v34, 5  ;;  %v2430_v33 = vrot.slane %v2428_v3, 4 }
 0x223   :  { %6058 = vmatmul.bf16.gmra.mxu0 %v6411_v29  ;;  %v7485_v29 = vld [vmem:[#allocation2 + $0xec] sm:$0xf]  ;;  %2837 = vst [vmem:[#allocation2 + $0x1a8] sm:$0xf] %v2417_v11  ;;  %v2161_v26 = vld [vmem:[%s11120_s0 + $0x48] sm:$0xf] }
 0x224   :  { %v5450_v0 = vpop.f32.mrf.mxu2  ;;  %v6435_v31 = vor.u32 %v7485_v29, %v6432_v53  ;;  %v1823_v53 = vld [vmem:[%s11120_s0 + $0x40] sm:$0xf]  ;;  %v3009_v3 = vrot.slane %v3007_v52, 4  ;;  %2209 = vst [vmem:[#allocation2 + $0x1c8] sm:$0xf] %v2161_v26 }
 0x225   :  { %v5451_v49 = vadd.f32 %v5450_v0, %v5338_v30  ;;  %v5563_v36 = vpop.f32.mrf.mxu3  ;;  %v6438_v30 = vld [vmem:[#allocation2 + $0xf0] sm:$0xf]  ;;  %v6440_v0 = vld [vmem:[#allocation2 + $0x114] sm:$0xf0]  ;;  %v1946_v6 = vrot.slane %v1823_v53, 5 }
 0x226   :  { %v5339_v60 = vpop.f32.mrf.mxu1  ;;  %v7499_v53 = vld [vmem:[#allocation2 + $0x158] sm:$0xf0]  ;;  %2210 = vst [vmem:[#allocation2 + $0x1ec] sm:$0xf] %v2162_v19 }
 0x227   :  { %v5564_v48 = vadd.f32 %v5563_v36, %v5451_v49  ;;  %v5340_v55 = vadd.f32 %v5339_v60, %v5227_v63  ;;  %v7486_v63 = vld [vmem:[#allocation2 + $0xf4] sm:$0xf]  ;;  %v6446_v49 = vld [vmem:[#allocation2 + $0xf8] sm:$0xf]  ;;  %v6439_v60 = vor.u32 %v7490_v40, %v6438_v30  ;;  %v10014_v30 = vld [vmem:[%s11120_s0 + $0x50] sm:$0xf] }
 0x228   :  { %v5678_v37 = vpop.f32.mrf.mxu0  ;;  %v6443_v42 = vor.u32 %v7486_v63, %v6440_v0  ;;  %v10023_v63 = vld [vmem:[%s11120_s0 + $0x44] sm:$0xf]  ;;  %v2434_v0 = vshll.u32 %v10014_v30, 16 }
 0x229   :  { %v9991_v13 = vadd.f32 %v5676_v2, %v5564_v48  ;;  %v3008_v2 = vsel %vm8125_vm5, %v3006_v44, %v3007_v52  ;;  %v6447_v48 = vor.u32 %v7491_v51, %v6446_v49  ;;  %v10029_v49 = vld [vmem:[%s11122_s2] ss:$0 sm:$0xff] }
 0x22a   :  { %3176 = vst [vmem:[#allocation2 + $0x1ac] sm:$0xf] %v3008_v2  ;;  %v1949_v2 = vrot.slane %v10023_v63, 5  ;;  %v2163_v63 = vld [vmem:[%s11120_s0 + $0x50] sm:$0xf] }
 0x22b   :  { %2211 = vst [vmem:[#allocation2 + $0x210] sm:$0xf] %v2163_v63 }
 0x22c   :  { %v5452_v36 = vpop.f32.mrf.mxu2 }
 0x22d   :  { %v5453_v22 = vadd.f32 %v5452_v36, %v5340_v55  ;;  %v5565_v58 = vpop.f32.mrf.mxu3  ;;  %v2420_v55 = vrot.slane %v2418_v18, 4  ;;  %v1948_v36 = vrot.slane %v1946_v6, 4  ;;  %v6474_v18 = vld [vmem:[#allocation2 + $0x138] sm:$0xf] }
 0x22e   :  { %v5342_v35 = vpop.f32.mrf.mxu1 }
 0x22f   :  { %v5566_v38 = vadd.f32 %v5565_v58, %v5453_v22  ;;  %v2421_v40 = vor.u32 %v2420_v55, %v9967_v62  ;;  %v5231_v62 = vadd.f32 %v10029_v49, %v8488_v47  ;;  %v10041_v35 = vld [vmem:[%s11120_s0 + $0x50] sm:$0xf]  ;;  %v1947_v47 = vsel %vm8125_vm5, %v1945_v45, %v1946_v6 }
 0x230   :  { %v5681_v41 = vpop.f32.mrf.mxu0  ;;  %v1950_v25 = vsel %vm8125_vm5, %v1948_v36, %v1949_v2  ;;  %2113 = vst [vmem:[#allocation2 + $0x1c4] sm:$0xf] %v1947_v47 }
 0x231   :  { %5723 = vmatmul.bf16.gmra.mxu1 %v6435_v31  ;;  %5836 = vmatmul.bf16.gmra.mxu2 %v6439_v60  ;;  %v10006_v29 = vadd.f32 %v5678_v37, %v5566_v38  ;;  %v2887_v37 = vld [vmem:[%s11120_s0 + $0x4c] sm:$0xf]  ;;  %v2422_v58 = vrot.slane %v2421_v40, 4  ;;  %v2431_v31 = vor.u32 %v2430_v33, %v2426_v59  ;;  %v10036_v60 = vrot.slane %v2434_v0, 5  ;;  %v7494_v38 = vld [vmem:[#allocation2 + $0x134] sm:$0xf] }
 0x232   :  { %5949 = vmatmul.bf16.gmra.mxu3 %v6443_v42  ;;  %v3010_v11 = vrot.slane %v2887_v37, 5  ;;  %v6468_v41 = vld [vmem:[#allocation2 + $0x154] sm:$0xf0]  ;;  %2114 = vst [vmem:[#allocation2 + $0x1e8] sm:$0xf] %v1950_v25  ;;  %v3013_v40 = vrot.slane %v10041_v35, 5 }
 0x233   :  { %6062 = vmatmul.bf16.gmra.mxu0 %v6447_v48  ;;  %v2432_v34 = vrot.slane %v2431_v31, 4  ;;  %v2427_v6 = vsel %vm8102_vm2, %v2422_v58, %v2426_v59  ;;  %v7495_v33 = vld [vmem:[#allocation2 + $0x13c] sm:$0xf]  ;;  %v6476_v37 = vld [vmem:[#allocation2 + $0x15c] sm:$0xf0]  ;;  %v6475_v58 = vor.u32 %v7499_v53, %v6474_v18 }
 0x234   :  { %v5455_v44 = vpop.f32.mrf.mxu2  ;;  %v3012_v55 = vrot.slane %v3010_v11, 4  ;;  %v6482_v0 = vld [vmem:[#allocation2 + $0x140] sm:$0xf]  ;;  %v3011_v20 = vsel %vm8125_vm5, %v3009_v3, %v3010_v11  ;;  %2838 = vst [vmem:[#allocation2 + $0x1cc] sm:$0xf] %v2427_v6  ;;  %v6479_v35 = vor.u32 %v7495_v33, %v6476_v37 }
 0x235   :  { %v5568_v51 = vpop.f32.mrf.mxu3  ;;  %v2437_v44 = vsel %vm8102_vm2, %v2432_v34, %v10036_v60  ;;  %3177 = vst [vmem:[#allocation2 + $0x1d0] sm:$0xf] %v3011_v20  ;;  %v2260_v11 = vld [vmem:[%s11120_s0 + $0x54] sm:$0xf]  ;;  %v2438_v34 = vshrl.u32 %v10014_v30, 16 }
 0x236   :  { %v5343_v22 = vpop.f32.mrf.mxu1  ;;  %v3014_v59 = vsel %vm8125_vm5, %v3012_v55, %v3013_v40  ;;  %v5234_v51 = vadd.f32 %v10029_v49, %v8526_v5  ;;  %2839 = vst [vmem:[#allocation2 + $0x1f0] sm:$0xf] %v2437_v44  ;;  %v2444_v5 = vshll.u32 %v2260_v11, 16  ;;  %v1825_v18 = vld [vmem:[%s11120_s0 + $0x48] sm:$0xf] }
 0x237   :  { %v5344_v42 = vadd.f32 %v5343_v22, %v5231_v62  ;;  %v7500_v62 = vld [vmem:[#allocation2 + $0x160] sm:$0xf0]  ;;  %v6471_v22 = vor.u32 %v7494_v38, %v6468_v41  ;;  %3178 = vst [vmem:[#allocation2 + $0x1f4] sm:$0xf] %v3014_v59  ;;  %v2440_v38 = vrot.slane %v2438_v34, 4  ;;  %v1952_v55 = vrot.slane %v1825_v18, 5 }
 0x238   :  { %v5682_v48 = vpop.f32.mrf.mxu0  ;;  %v6483_v47 = vor.u32 %v7500_v62, %v6482_v0  ;;  %v10081_v3 = vld [vmem:[%s11120_s0 + $0x58] sm:$0xf]  ;;  %v2446_v30 = vrot.slane %v2444_v5, 5  ;;  %v10090_v37 = vld [vmem:[%s11120_s0 + $0x4c] sm:$0xf] }
 0x239   :  { %v2441_v53 = vor.u32 %v2440_v38, %v10036_v60  ;;  %v2454_v44 = vshll.u32 %v10081_v3, 16  ;;  %v1954_v60 = vrot.slane %v1952_v55, 4  ;;  %v2164_v5 = vld [vmem:[%s11120_s0 + $0x54] sm:$0xf]  ;;  %v7508_v18 = vld [vmem:[#allocation2 + $0x1a0] sm:$0xf0] }
 0x23a   :  { %2212 = vst [vmem:[#allocation2 + $0x234] sm:$0xf] %v2164_v5 }
 0x23c   :  { %v5456_v52 = vpop.f32.mrf.mxu2 }
 0x23d   :  { %v5457_v45 = vadd.f32 %v5456_v52, %v5344_v42  ;;  %v5569_v36 = vpop.f32.mrf.mxu3  ;;  %v2448_v42 = vshrl.u32 %v2260_v11, 16  ;;  %v1951_v52 = vrot.slane %v1949_v2, 4  ;;  %v3015_v2 = vrot.slane %v3013_v40, 4  ;;  %v7503_v11 = vld [vmem:[#allocation2 + $0x17c] sm:$0xf] }
 0x23e   :  { %v5346_v31 = vpop.f32.mrf.mxu1 }
 0x23f   :  { %v5570_v25 = vadd.f32 %v5569_v36, %v5457_v45  ;;  %v5347_v26 = vadd.f32 %v5346_v31, %v5234_v51  ;;  %v2450_v6 = vrot.slane %v2448_v42, 4  ;;  %v1955_v51 = vrot.slane %v10090_v37, 5 }
 0x240   :  { %v5685_v19 = vpop.f32.mrf.mxu0  ;;  %v2442_v45 = vrot.slane %v2441_v53, 4 }
 0x241   :  { %5728 = vmatmul.bf16.gmra.mxu1 %v6471_v22  ;;  %5841 = vmatmul.bf16.gmra.mxu2 %v6475_v58  ;;  %v10073_v41 = vadd.f32 %v5682_v48, %v5570_v25  ;;  %v2889_v48 = vld [vmem:[%s11120_s0 + $0x54] sm:$0xf]  ;;  %v2451_v36 = vor.u32 %v2450_v6, %v2446_v30  ;;  %v10096_v22 = vrot.slane %v2454_v44, 5  ;;  %v10101_v58 = vld [vmem:[%s11120_s0 + $0x58] sm:$0xf]  ;;  %v1956_v34 = vsel %vm8125_vm5, %v1954_v60, %v1955_v51 }
 0x242   :  { %5954 = vmatmul.bf16.gmra.mxu3 %v6479_v35  ;;  %v3016_v0 = vrot.slane %v2889_v48, 5  ;;  %v6504_v25 = vld [vmem:[#allocation2 + $0x19c] sm:$0xf0]  ;;  %2116 = vst [vmem:[#allocation2 + $0x230] sm:$0xf] %v1956_v34  ;;  %v2447_v40 = vsel %vm8102_vm2, %v2442_v45, %v2446_v30  ;;  %v5238_v30 = vadd.f32 %v10029_v49, %v8601_v54 }
 0x243   :  { %6067 = vmatmul.bf16.gmra.mxu0 %v6483_v47  ;;  %v1953_v47 = vsel %vm8125_vm5, %v1951_v52, %v1952_v55  ;;  %v2452_v42 = vrot.slane %v2451_v36, 4  ;;  %v3019_v55 = vrot.slane %v10101_v58, 5  ;;  %v7504_v6 = vld [vmem:[#allocation2 + $0x184] sm:$0xf]  ;;  %v6512_v48 = vld [vmem:[#allocation2 + $0x1a4] sm:$0xf0] }
 0x244   :  { %v5459_v33 = vpop.f32.mrf.mxu2  ;;  %2115 = vst [vmem:[#allocation2 + $0x20c] sm:$0xf] %v1953_v47  ;;  %v3018_v38 = vrot.slane %v3016_v0, 4  ;;  %v6518_v44 = vld [vmem:[#allocation2 + $0x188] sm:$0xf] }
 0x245   :  { %v5460_v62 = vadd.f32 %v5459_v33, %v5347_v26  ;;  %v5572_v20 = vpop.f32.mrf.mxu3  ;;  %v6510_v26 = vld [vmem:[#allocation2 + $0x180] sm:$0xf]  ;;  %v2457_v33 = vsel %vm8102_vm2, %v2452_v42, %v10096_v22  ;;  %2840 = vst [vmem:[#allocation2 + $0x214] sm:$0xf] %v2447_v40  ;;  %v7518_v58 = vld [vmem:[#allocation2 + $0x1f0] sm:$0xf0] }
 0x246   :  { %v5348_v59 = vpop.f32.mrf.mxu1  ;;  %v6511_v45 = vor.u32 %v7508_v18, %v6510_v26  ;;  %2841 = vst [vmem:[#allocation2 + $0x238] sm:$0xf] %v2457_v33  ;;  %v2891_v18 = vld [vmem:[%s11120_s0 + $0x5c] sm:$0xf]  ;;  %v11142_v40 = vld [vmem:[#allocation6_spill] sm:$0xff] }
 0x247   :  { %v5573_v31 = vadd.f32 %v5572_v20, %v5460_v62  ;;  %v7509_v62 = vld [vmem:[#allocation2 + $0x1a8] sm:$0xf0]  ;;  %v3017_v20 = vsel %vm8125_vm5, %v3015_v2, %v3016_v0  ;;  %v6507_v59 = vor.u32 %v7503_v11, %v6504_v25  ;;  %v2262_v0 = vld [vmem:[%s11120_s0 + $0x5c] sm:$0xf]  ;;  %v2458_v2 = vshrl.u32 %v10081_v3, 16 }
 0x248   :  { %v5687_v35 = vpop.f32.mrf.mxu0  ;;  %3179 = vst [vmem:[#allocation2 + $0x218] sm:$0xf] %v3017_v20  ;;  %v2464_v34 = vshll.u32 %v2262_v0, 16  ;;  %v2468_v5 = vshrl.u32 %v2262_v0, 16  ;;  %v1827_v11 = vld [vmem:[%s11120_s0 + $0x50] sm:$0xf] }
 0x249   :  { %v10118_v53 = vadd.f32 %v5685_v19, %v5573_v31  ;;  %v3020_v19 = vsel %vm8125_vm5, %v3018_v38, %v3019_v55  ;;  %v6515_v31 = vor.u32 %v7504_v6, %v6512_v48  ;;  %v6519_v35 = vor.u32 %v7509_v62, %v6518_v44  ;;  %v10141_v25 = vld [vmem:[%s11120_s0 + $0x60] sm:$0xf]  ;;  %v10152_v33 = vld [vmem:[%s11120_s0 + $0x54] sm:$0xf] }
 0x24a   :  { %3180 = vst [vmem:[#allocation2 + $0x23c] sm:$0xf] %v3020_v19  ;;  %v2460_v54 = vrot.slane %v2458_v2, 4  ;;  %v2466_v26 = vrot.slane %v2464_v34, 5  ;;  %v1958_v42 = vrot.slane %v1827_v11, 5  ;;  %v2470_v38 = vrot.slane %v2468_v5, 4 }
 0x24b   :  { %v5240_v6 = vadd.f32 %v10029_v49, %v11142_v40  ;;  %v2474_v44 = vshll.u32 %v10141_v25, 16  ;;  %v3022_v19 = vrot.slane %v2891_v18, 5  ;;  %v7512_v2 = vld [vmem:[#allocation2 + $0x1c4] sm:$0xf]  ;;  %v6540_v34 = vld [vmem:[#allocation2 + $0x1e4] sm:$0xf0] }
 0x24c   :  { %v5461_v52 = vpop.f32.mrf.mxu2  ;;  %v2461_v3 = vor.u32 %v2460_v54, %v10096_v22  ;;  %v1957_v22 = vrot.slane %v1955_v51, 4  ;;  %v2165_v51 = vld [vmem:[%s11120_s0 + $0x58] sm:$0xf]  ;;  %v6546_v5 = vld [vmem:[#allocation2 + $0x1c8] sm:$0xf] }
 0x24d   :  { %v5574_v60 = vpop.f32.mrf.mxu3  ;;  %v1960_v52 = vrot.slane %v1958_v42, 4  ;;  %v2166_v11 = vld [vmem:[%s11120_s0 + $0x5c] sm:$0xf]  ;;  %v3024_v40 = vrot.slane %v3022_v19, 4  ;;  %2213 = vst [vmem:[#allocation2 + $0x258] sm:$0xf] %v2165_v51 }
 0x24e   :  { %v5350_v36 = vpop.f32.mrf.mxu1  ;;  %v1961_v60 = vrot.slane %v10152_v33, 5  ;;  %v1959_v37 = vsel %vm8125_vm5, %v1957_v22, %v1958_v42  ;;  %v3021_v42 = vrot.slane %v3019_v55, 4  ;;  %v6554_v22 = vld [vmem:[#allocation2 + $0x1d0] sm:$0xf]  ;;  %2214 = vst [vmem:[#allocation2 + $0x27c] sm:$0xf] %v2166_v11 }
 0x24f   :  { %v5351_v47 = vadd.f32 %v5350_v36, %v5238_v30  ;;  %v10158_v36 = vrot.slane %v2474_v44, 5  ;;  %2117 = vst [vmem:[#allocation2 + $0x254] sm:$0xf] %v1959_v37  ;;  %v7513_v44 = vld [vmem:[#allocation2 + $0x1cc] sm:$0xf]  ;;  %v6555_v51 = vor.u32 %v7518_v58, %v6554_v22 }
 0x250   :  { %v5689_v63 = vpop.f32.mrf.mxu0  ;;  %v1962_v54 = vsel %vm8125_vm5, %v1960_v52, %v1961_v60  ;;  %v3023_v55 = vsel %vm8125_vm5, %v3021_v42, %v3022_v19  ;;  %v2264_v19 = vld [vmem:[%s11120_s0 + $0x64] sm:$0xf] }
 0x251   :  { %5732 = vmatmul.bf16.gmra.mxu1 %v6507_v59  ;;  %5845 = vmatmul.bf16.gmra.mxu2 %v6511_v45  ;;  %v2462_v59 = vrot.slane %v2461_v3, 4  ;;  %v2471_v45 = vor.u32 %v2470_v38, %v2466_v26  ;;  %v7517_v38 = vld [vmem:[#allocation2 + $0x1e8] sm:$0xf0]  ;;  %2118 = vst [vmem:[#allocation2 + $0x278] sm:$0xf] %v1962_v54  ;;  %v2484_v42 = vshll.u32 %v2264_v19, 16 }
 0x252   :  { %5958 = vmatmul.bf16.gmra.mxu3 %v6515_v31  ;;  %v10163_v31 = vld [vmem:[%s11120_s0 + $0x60] sm:$0xf]  ;;  %3181 = vst [vmem:[#allocation2 + $0x260] sm:$0xf] %v3023_v55  ;;  %v11143_v55 = vld [vmem:[#allocation7_spill] sm:$0xff] }
 0x253   :  { %6071 = vmatmul.bf16.gmra.mxu0 %v6519_v35  ;;  %v2472_v3 = vrot.slane %v2471_v45, 4  ;;  %v2467_v18 = vsel %vm8102_vm2, %v2462_v59, %v2466_v26  ;;  %v6543_v59 = vor.u32 %v7512_v2, %v6540_v34  ;;  %v6547_v45 = vor.u32 %v7517_v38, %v6546_v5  ;;  %v1829_v34 = vld [vmem:[%s11120_s0 + $0x58] sm:$0xf]  ;;  %v10205_v5 = vld [vmem:[%s11120_s0 + $0x68] sm:$0xf] }
 0x254   :  { %v5463_v48 = vpop.f32.mrf.mxu2  ;;  %2842 = vst [vmem:[#allocation2 + $0x25c] sm:$0xf] %v2467_v18  ;;  %v2488_v18 = vshrl.u32 %v2264_v19, 16  ;;  %v1964_v38 = vrot.slane %v1829_v34, 5  ;;  %v2494_v22 = vshll.u32 %v10205_v5, 16 }
 0x255   :  { %v5464_v62 = vadd.f32 %v5463_v48, %v5351_v47  ;;  %v5576_v20 = vpop.f32.mrf.mxu3 }
 0x256   :  { %v5352_v30 = vpop.f32.mrf.mxu1 }
 0x257   :  { %v5577_v35 = vadd.f32 %v5576_v20, %v5464_v62  ;;  %v5353_v0 = vadd.f32 %v5352_v30, %v5240_v6  ;;  %v3025_v6 = vrot.slane %v10163_v31, 5  ;;  %v6548_v62 = vld [vmem:[#allocation2 + $0x1ec] sm:$0xf0]  ;;  %v2477_v20 = vsel %vm8102_vm2, %v2472_v3, %v10158_v36 }
 0x258   :  { %v5691_v47 = vpop.f32.mrf.mxu0  ;;  %2843 = vst [vmem:[#allocation2 + $0x280] sm:$0xf] %v2477_v20  ;;  %v6551_v37 = vor.u32 %v7513_v44, %v6548_v62  ;;  %v2478_v3 = vshrl.u32 %v10141_v25, 16  ;;  %v2486_v25 = vrot.slane %v2484_v42, 5  ;;  %v2490_v44 = vrot.slane %v2488_v18, 4 }
 0x259   :  { %v10182_v48 = vadd.f32 %v5689_v63, %v5577_v35  ;;  %v3026_v63 = vsel %vm8125_vm5, %v3024_v40, %v3025_v6  ;;  %v10214_v20 = vld [vmem:[%s11120_s0 + $0x5c] sm:$0xf]  ;;  %v7521_v42 = vld [vmem:[#allocation2 + $0x20c] sm:$0xf]  ;;  %v6576_v18 = vld [vmem:[#allocation2 + $0x22c] sm:$0xf0] }
 0x25a   :  { %3182 = vst [vmem:[#allocation2 + $0x284] sm:$0xf] %v3026_v63 }
 0x25c   :  { %v5465_v52 = vpop.f32.mrf.mxu2 }
 0x25d   :  { %v5466_v26 = vadd.f32 %v5465_v52, %v5353_v0  ;;  %v5578_v30 = vpop.f32.mrf.mxu3  ;;  %v2480_v0 = vrot.slane %v2478_v3, 4  ;;  %v5244_v52 = vadd.f32 %v10029_v49, %v11143_v55  ;;  %v2168_v3 = vld [vmem:[%s11120_s0 + $0x64] sm:$0xf]  ;;  %v6584_v55 = vld [vmem:[#allocation2 + $0x234] sm:$0xf0] }
 0x25e   :  { %v5355_v35 = vpop.f32.mrf.mxu1  ;;  %2216 = vst [vmem:[#allocation2 + $0x2c4] sm:$0xf] %v2168_v3 }
 0x25f   :  { %v5579_v54 = vadd.f32 %v5578_v30, %v5466_v26  ;;  %v2481_v40 = vor.u32 %v2480_v0, %v10158_v36  ;;  %v1963_v36 = vrot.slane %v1961_v60, 4  ;;  %v1966_v26 = vrot.slane %v1964_v38, 4  ;;  %v2167_v60 = vld [vmem:[%s11120_s0 + $0x60] sm:$0xf]  ;;  %v6582_v0 = vld [vmem:[#allocation2 + $0x210] sm:$0xf] }
 0x260   :  { %v5694_v11 = vpop.f32.mrf.mxu0  ;;  %v1967_v30 = vrot.slane %v10214_v20, 5  ;;  %v2491_v35 = vor.u32 %v2490_v44, %v2486_v25  ;;  %v7526_v44 = vld [vmem:[#allocation2 + $0x230] sm:$0xf0]  ;;  %2215 = vst [vmem:[#allocation2 + $0x2a0] sm:$0xf] %v2167_v60 }
 0x261   :  { %5736 = vmatmul.bf16.gmra.mxu1 %v6543_v59  ;;  %5849 = vmatmul.bf16.gmra.mxu2 %v6547_v45  ;;  %v10197_v2 = vadd.f32 %v5691_v47, %v5579_v54  ;;  %v2893_v47 = vld [vmem:[%s11120_s0 + $0x64] sm:$0xf]  ;;  %v2482_v45 = vrot.slane %v2481_v40, 4  ;;  %v1965_v11 = vsel %vm8125_vm5, %v1963_v36, %v1964_v38  ;;  %v3027_v38 = vrot.slane %v3025_v6, 4  ;;  %v7527_v36 = vld [vmem:[#allocation2 + $0x238] sm:$0xf0] }
 0x262   :  { %5962 = vmatmul.bf16.gmra.mxu3 %v6551_v37  ;;  %v3028_v58 = vrot.slane %v2893_v47, 5  ;;  %v10222_v37 = vrot.slane %v2494_v22, 5  ;;  %v1968_v33 = vsel %vm8125_vm5, %v1966_v26, %v1967_v30  ;;  %2119 = vst [vmem:[#allocation2 + $0x29c] sm:$0xf] %v1965_v11  ;;  %v2492_v34 = vrot.slane %v2491_v35, 4  ;;  %v11144_v26 = vld [vmem:[#allocation8_spill] sm:$0xff] }
 0x263   :  { %6075 = vmatmul.bf16.gmra.mxu0 %v6555_v51  ;;  %v10227_v51 = vld [vmem:[%s11120_s0 + $0x68] sm:$0xf]  ;;  %2120 = vst [vmem:[#allocation2 + $0x2c0] sm:$0xf] %v1968_v33  ;;  %v2487_v47 = vsel %vm8102_vm2, %v2482_v45, %v2486_v25  ;;  %v7522_v22 = vld [vmem:[#allocation2 + $0x214] sm:$0xf]  ;;  %v6583_v11 = vor.u32 %v7526_v44, %v6582_v0 }
 0x264   :  { %v5468_v62 = vpop.f32.mrf.mxu2  ;;  %v3030_v40 = vrot.slane %v3028_v58, 4  ;;  %v3029_v31 = vsel %vm8125_vm5, %v3027_v38, %v3028_v58  ;;  %2844 = vst [vmem:[#allocation2 + $0x2a4] sm:$0xf] %v2487_v47  ;;  %v6587_v60 = vor.u32 %v7522_v22, %v6584_v55  ;;  %v2266_v58 = vld [vmem:[%s11120_s0 + $0x6c] sm:$0xf] }
 0x265   :  { %v5581_v63 = vpop.f32.mrf.mxu3  ;;  %v3031_v62 = vrot.slane %v10227_v51, 5  ;;  %v6579_v51 = vor.u32 %v7521_v42, %v6576_v18  ;;  %3183 = vst [vmem:[#allocation2 + $0x2a8] sm:$0xf] %v3029_v31  ;;  %v1831_v0 = vld [vmem:[%s11120_s0 + $0x60] sm:$0xf] }
 0x266   :  { %v5356_v59 = vpop.f32.mrf.mxu1  ;;  %v6590_v63 = vld [vmem:[#allocation2 + $0x218] sm:$0xf]  ;;  %v10267_v44 = vld [vmem:[%s11120_s0 + $0x70] sm:$0xf]  ;;  %v1970_v22 = vrot.slane %v1831_v0, 5 }
 0x267   :  { %v5357_v19 = vadd.f32 %v5356_v59, %v5244_v52  ;;  %v2497_v52 = vsel %vm8102_vm2, %v2492_v34, %v10222_v37  ;;  %v3032_v25 = vsel %vm8125_vm5, %v3030_v40, %v3031_v62  ;;  %v5247_v59 = vadd.f32 %v10029_v49, %v11144_v26  ;;  %v2169_v20 = vld [vmem:[%s11120_s0 + $0x68] sm:$0xf] }
 0x268   :  { %v5695_v54 = vpop.f32.mrf.mxu0  ;;  %2845 = vst [vmem:[#allocation2 + $0x2c8] sm:$0xf] %v2497_v52  ;;  %v6591_v34 = vor.u32 %v7527_v36, %v6590_v63  ;;  %v2498_v40 = vshrl.u32 %v10205_v5, 16  ;;  %v2504_v49 = vshll.u32 %v2266_v58, 16  ;;  %v10276_v36 = vld [vmem:[%s11120_s0 + $0x64] sm:$0xf] }
 0x269   :  { %3184 = vst [vmem:[#allocation2 + $0x2cc] sm:$0xf] %v3032_v25  ;;  %v2514_v31 = vshll.u32 %v10267_v44, 16 }
 0x26a   :  { %v2500_v42 = vrot.slane %v2498_v40, 4  ;;  %v2506_v5 = vrot.slane %v2504_v49, 5  ;;  %v6612_v40 = vld [vmem:[#allocation2 + $0x274] sm:$0xf0]  ;;  %2217 = vst [vmem:[#allocation2 + $0x2e8] sm:$0xf] %v2169_v20 }
 0x26b   :  { %v6618_v49 = vld [vmem:[#allocation2 + $0x258] sm:$0xf]  ;;  %v2268_v20 = vld [vmem:[%s11120_s0 + $0x74] sm:$0xf] }
 0x26c   :  { %v5469_v6 = vpop.f32.mrf.mxu2  ;;  %v2501_v55 = vor.u32 %v2500_v42, %v10222_v37  ;;  %v1972_v37 = vrot.slane %v1970_v22, 4  ;;  %v2170_v42 = vld [vmem:[%s11120_s0 + $0x6c] sm:$0xf] }
 0x26d   :  { %v5470_v45 = vadd.f32 %v5469_v6, %v5357_v19  ;;  %v5582_v35 = vpop.f32.mrf.mxu3  ;;  %v2508_v19 = vshrl.u32 %v2266_v58, 16  ;;  %2218 = vst [vmem:[#allocation2 + $0x30c] sm:$0xf] %v2170_v42  ;;  %v2528_v42 = vshrl.u32 %v2268_v20, 16 }
 0x26e   :  { %v5359_v33 = vpop.f32.mrf.mxu1 }
 0x26f   :  { %v5583_v3 = vadd.f32 %v5582_v35, %v5470_v45  ;;  %v5360_v38 = vadd.f32 %v5359_v33, %v5247_v59  ;;  %v2510_v52 = vrot.slane %v2508_v19, 4  ;;  %v1969_v59 = vrot.slane %v1967_v30, 4 }
 0x270   :  { %v5698_v47 = vpop.f32.mrf.mxu0  ;;  %v1973_v35 = vrot.slane %v10276_v36, 5  ;;  %v10282_v33 = vrot.slane %v2514_v31, 5  ;;  %v3033_v30 = vrot.slane %v3031_v62, 4  ;;  %v6620_v31 = vld [vmem:[#allocation2 + $0x27c] sm:$0xf0] }
 0x271   :  { %5741 = vmatmul.bf16.gmra.mxu1 %v6579_v51  ;;  %5854 = vmatmul.bf16.gmra.mxu2 %v6583_v11  ;;  %v10259_v18 = vadd.f32 %v5695_v54, %v5583_v3  ;;  %v2895_v54 = vld [vmem:[%s11120_s0 + $0x6c] sm:$0xf]  ;;  %v2502_v51 = vrot.slane %v2501_v55, 4  ;;  %v2511_v11 = vor.u32 %v2510_v52, %v2506_v5  ;;  %v1971_v3 = vsel %vm8125_vm5, %v1969_v59, %v1970_v22  ;;  %v7535_v55 = vld [vmem:[#allocation2 + $0x278] sm:$0xf0] }
 0x272   :  { %5967 = vmatmul.bf16.gmra.mxu3 %v6587_v60  ;;  %v3034_v6 = vrot.slane %v2895_v54, 5  ;;  %v10287_v60 = vld [vmem:[%s11120_s0 + $0x70] sm:$0xf]  ;;  %v1974_v19 = vsel %vm8125_vm5, %v1972_v37, %v1973_v35  ;;  %2121 = vst [vmem:[#allocation2 + $0x2e4] sm:$0xf] %v1971_v3 }
 0x273   :  { %6080 = vmatmul.bf16.gmra.mxu0 %v6591_v34  ;;  %v2512_v0 = vrot.slane %v2511_v11, 4  ;;  %2122 = vst [vmem:[#allocation2 + $0x308] sm:$0xf] %v1974_v19  ;;  %v2507_v62 = vsel %vm8102_vm2, %v2502_v51, %v2506_v5  ;;  %v3037_v52 = vrot.slane %v10287_v60, 5  ;;  %v7536_v59 = vld [vmem:[#allocation2 + $0x280] sm:$0xf0]  ;;  %v6619_v11 = vor.u32 %v7535_v55, %v6618_v49 }
 0x274   :  { %v5472_v63 = vpop.f32.mrf.mxu2  ;;  %v3036_v22 = vrot.slane %v3034_v6, 4  ;;  %v3035_v37 = vsel %vm8125_vm5, %v3033_v30, %v3034_v6  ;;  %2846 = vst [vmem:[#allocation2 + $0x2ec] sm:$0xf] %v2507_v62  ;;  %v2518_v30 = vshrl.u32 %v10267_v44, 16  ;;  %v2524_v19 = vshll.u32 %v2268_v20, 16 }
 0x275   :  { %v5473_v25 = vadd.f32 %v5472_v63, %v5360_v38  ;;  %v5585_v26 = vpop.f32.mrf.mxu3  ;;  %v7530_v38 = vld [vmem:[#allocation2 + $0x254] sm:$0xf]  ;;  %v7531_v63 = vld [vmem:[#allocation2 + $0x25c] sm:$0xf]  ;;  %3185 = vst [vmem:[#allocation2 + $0x2f0] sm:$0xf] %v3035_v37 }
 0x276   :  { %v5361_v45 = vpop.f32.mrf.mxu1  ;;  %v6615_v51 = vor.u32 %v7530_v38, %v6612_v40  ;;  %v1833_v38 = vld [vmem:[%s11120_s0 + $0x68] sm:$0xf]  ;;  %v10325_v40 = vld [vmem:[%s11120_s0 + $0x78] sm:$0xf]  ;;  %v2526_v49 = vrot.slane %v2524_v19, 5 }
 0x277   :  { %v5586_v34 = vadd.f32 %v5585_v26, %v5473_v25  ;;  %v2517_v25 = vsel %vm8102_vm2, %v2512_v0, %v10282_v33  ;;  %v6626_v26 = vld [vmem:[#allocation2 + $0x260] sm:$0xf]  ;;  %v2520_v0 = vrot.slane %v2518_v30, 4  ;;  %v1976_v55 = vrot.slane %v1833_v38, 5  ;;  %v10346_v20 = vld [vmem:[%s11120_s0 + $0x78] sm:$0xf] }
 0x278   :  { %v5700_v58 = vpop.f32.mrf.mxu0  ;;  %2847 = vst [vmem:[#allocation2 + $0x310] sm:$0xf] %v2517_v25  ;;  %v6627_v3 = vor.u32 %v7536_v59, %v6626_v26  ;;  %v10335_v26 = vld [vmem:[%s11120_s0 + $0x6c] sm:$0xf]  ;;  %v2534_v59 = vshll.u32 %v10325_v40, 16 }
 0x279   :  { %v10304_v54 = vadd.f32 %v5698_v47, %v5586_v34  ;;  %v3038_v47 = vsel %vm8125_vm5, %v3036_v22, %v3037_v52  ;;  %v6623_v58 = vor.u32 %v7531_v63, %v6620_v31  ;;  %v11145_v22 = vld [vmem:[#allocation9_spill] sm:$0xff]  ;;  %v2521_v62 = vor.u32 %v2520_v0, %v10282_v33  ;;  %v2897_v31 = vld [vmem:[%s11120_s0 + $0x74] sm:$0xf]  ;;  %v6648_v0 = vld [vmem:[#allocation2 + $0x2bc] sm:$0xf0] }
 0x27a   :  { %3186 = vst [vmem:[#allocation2 + $0x314] sm:$0xf] %v3038_v47  ;;  %v2530_v63 = vrot.slane %v2528_v42, 4  ;;  %v1975_v47 = vrot.slane %v1973_v35, 4  ;;  %v3040_v33 = vrot.slane %v2897_v31, 5 }
 0x27b   :  { %v7539_v42 = vld [vmem:[#allocation2 + $0x29c] sm:$0xf]  ;;  %v2171_v35 = vld [vmem:[%s11120_s0 + $0x70] sm:$0xf]  ;;  %v6654_v38 = vld [vmem:[#allocation2 + $0x2a0] sm:$0xf] }
 0x27c   :  { %v5474_v45 = vpop.f32.mrf.mxu2  ;;  %v1977_v36 = vsel %vm8125_vm5, %v1975_v47, %v1976_v55  ;;  %v3043_v47 = vrot.slane %v10346_v20, 5  ;;  %2219 = vst [vmem:[#allocation2 + $0x330] sm:$0xf] %v2171_v35 }
 0x27d   :  { %v5587_v5 = vpop.f32.mrf.mxu3  ;;  %2123 = vst [vmem:[#allocation2 + $0x32c] sm:$0xf] %v1977_v36  ;;  %v7545_v36 = vld [vmem:[#allocation2 + $0x2c8] sm:$0xf0] }
 0x27e   :  { %v5711_v34 = vpop.f32.mrf.mxu1  ;;  %v1978_v5 = vrot.slane %v1976_v55, 4  ;;  %v3039_v55 = vrot.slane %v3037_v52, 4 }
 0x27f   :  { %v5712_v44 = vadd.f32 %v5711_v34, %v11145_v22  ;;  %v2522_v34 = vrot.slane %v2521_v62, 4  ;;  %v7544_v22 = vld [vmem:[#allocation2 + $0x2c0] sm:$0xf0]  ;;  %v2172_v62 = vld [vmem:[%s11120_s0 + $0x74] sm:$0xf] }
 0x280   :  { %v6050_v6 = vpop.f32.mrf.mxu0  ;;  %2220 = vst [vmem:[#allocation2 + $0x354] sm:$0xf] %v2172_v62  ;;  %v6655_v35 = vor.u32 %v7544_v22, %v6654_v38 }
 0x281   :  { %5745 = vmatmul.bf16.gmra.mxu1 %v6615_v51  ;;  %5858 = vmatmul.bf16.gmra.mxu2 %v6619_v11  ;;  %v11128_v11 = vrot.slane %v10335_v26, 5 }
 0x282   :  { %5971 = vmatmul.bf16.gmra.mxu3 %v6623_v58  ;;  %v2531_v58 = vor.u32 %v2530_v63, %v2526_v49 }
 0x283   :  { %6084 = vmatmul.bf16.gmra.mxu0 %v6627_v3  ;;  %v10341_v3 = vrot.slane %v2534_v59, 5  ;;  %v6656_v59 = vld [vmem:[#allocation2 + $0x2c4] sm:$0xf0] }
 0x284   :  { %v5824_v25 = vpop.f32.mrf.mxu2  ;;  %v2532_v63 = vrot.slane %v2531_v58, 4 }
 0x285   :  { %v5825_v37 = vadd.f32 %v5824_v25, %v5712_v44  ;;  %v5937_v45 = vpop.f32.mrf.mxu3  ;;  %v1980_v44 = vsel %vm8125_vm5, %v1978_v5, %v11128_v11  ;;  %v7540_v25 = vld [vmem:[#allocation2 + $0x2a4] sm:$0xf]  ;;  %v6662_v5 = vld [vmem:[#allocation2 + $0x2a8] sm:$0xf] }
 0x286   :  { %v5713_v51 = vpop.f32.mrf.mxu1  ;;  %2124 = vst [vmem:[#allocation2 + $0x350] sm:$0xf] %v1980_v44  ;;  %v2537_v58 = vsel %vm8102_vm2, %v2532_v63, %v10341_v3  ;;  %v6663_v62 = vor.u32 %v7545_v36, %v6662_v5 }
 0x287   :  { %v5938_v30 = vadd.f32 %v5937_v45, %v5825_v37  ;;  %v2527_v37 = vsel %vm8102_vm2, %v2522_v34, %v2526_v49  ;;  %v3042_v45 = vrot.slane %v3040_v33, 4  ;;  %v5714_v52 = vadd.f32 %v5713_v51, %v8860_v24  ;;  %2849 = vst [vmem:[#allocation2 + $0x358] sm:$0xf] %v2537_v58 }
 0x288   :  { %v6052_v19 = vpop.f32.mrf.mxu0  ;;  %2848 = vst [vmem:[#allocation2 + $0x334] sm:$0xf] %v2527_v37  ;;  %v3041_v49 = vsel %vm8125_vm5, %v3039_v55, %v3040_v33  ;;  %v6659_v51 = vor.u32 %v7540_v25, %v6656_v59  ;;  %v2538_v55 = vshrl.u32 %v10325_v40, 16  ;;  %v1835_v25 = vld [vmem:[%s11120_s0 + $0x70] sm:$0xf] }
 0x289   :  { %v6051_v31 = vadd.f32 %v6050_v6, %v5938_v30  ;;  %v6651_v30 = vor.u32 %v7539_v42, %v6648_v0  ;;  %v3044_v63 = vsel %vm8125_vm5, %v3042_v45, %v3043_v47  ;;  %v2270_v42 = vld [vmem:[%s11120_s0 + $0x7c] sm:$0xf]  ;;  %3187 = vst [vmem:[#allocation2 + $0x338] sm:$0xf] %v3041_v49  ;;  %v1982_v45 = vrot.slane %v1835_v25, 5 }
 0x28a   :  { %v2544_v38 = vshll.u32 %v2270_v42, 16  ;;  %3188 = vst [vmem:[#allocation2 + $0x35c] sm:$0xf] %v3044_v63  ;;  %v2548_v22 = vshrl.u32 %v2270_v42, 16  ;;  %v2540_v37 = vrot.slane %v2538_v55, 4 }
 0x28b   :  { %vm6154_vm6 = vcmp.ge.f32.partialorder %v6051_v31, 0.0  ;;  %v6186_v60 = vmul.f32 0.2, %v6051_v31  ;;  %v6684_v55 = vld [vmem:[#allocation2 + $0x304] sm:$0xf0] }
 0x28c   :  { %v5826_v6 = vpop.f32.mrf.mxu2  ;;  %v2546_v40 = vrot.slane %v2544_v38, 5  ;;  %v2541_v36 = vor.u32 %v2540_v37, %v10341_v3  ;;  %v2550_v58 = vrot.slane %v2548_v22, 4  ;;  %v6690_v38 = vld [vmem:[#allocation2 + $0x2e8] sm:$0xf]  ;;  %v7553_v22 = vld [vmem:[#allocation2 + $0x308] sm:$0xf0] }
 0x28d   :  { %v6218_v34 = vsel %vm6154_vm6, %v6051_v31, %v6186_v60  ;;  %v5827_v44 = vadd.f32 %v5826_v6, %v5714_v52  ;;  %v5939_v11 = vpop.f32.mrf.mxu3  ;;  %v2174_v37 = vld [vmem:[%s11120_s0 + $0x7c] sm:$0xf] }
 0x28e   :  { %6251 = vst.msk [vmem:[#allocation3] sm:$0xff] %vm6250_vm7, %v6218_v34  ;;  %v5716_v24 = vpop.f32.mrf.mxu1  ;;  %v1984_v34 = vrot.slane %v1982_v45, 4  ;;  %v2551_v3 = vor.u32 %v2550_v58, %v2546_v40 }
 0x28f   :  { %v5940_v33 = vadd.f32 %v5939_v11, %v5827_v44  ;;  %v10386_v11 = vld [vmem:[%s11120_s0 + $0x80] sm:$0xf]  ;;  %v2899_v44 = vld [vmem:[%s11120_s0 + $0x7c] sm:$0xf]  ;;  %v2542_v24 = vrot.slane %v2541_v36, 4 }
 0x290   :  { %v6055_v0 = vpop.f32.mrf.mxu0  ;;  %v2554_v60 = vshll.u32 %v10386_v11, 16  ;;  %v2552_v25 = vrot.slane %v2551_v3, 4  ;;  %v3046_v36 = vrot.slane %v2899_v44, 5  ;;  %2222 = vst [vmem:[#allocation2 + $0x39c] sm:$0xf] %v2174_v37  ;;  %v6691_v3 = vor.u32 %v7553_v22, %v6690_v38 }
 0x291   :  { %v6053_v31 = vadd.f32 %v6052_v19, %v5940_v33  ;;  %5749 = vmatmul.bf16.gmra.mxu1 %v6651_v30  ;;  %5862 = vmatmul.bf16.gmra.mxu2 %v6655_v35  ;;  %v10391_v19 = vld [vmem:[%s11120_s0 + $0x74] sm:$0xf]  ;;  %v11146_v30 = vrot.slane %v10335_v26, 5  ;;  %v2173_v33 = vld [vmem:[%s11120_s0 + $0x78] sm:$0xf] }
 0x292   :  { %5975 = vmatmul.bf16.gmra.mxu3 %v6659_v51  ;;  %v1985_v63 = vrot.slane %v10391_v19, 5  ;;  %v10402_v51 = vrot.slane %v2554_v60, 5  ;;  %v7548_v0 = vld [vmem:[#allocation2 + $0x2e4] sm:$0xf]  ;;  %v6692_v60 = vld [vmem:[#allocation2 + $0x30c] sm:$0xf0] }
 0x293   :  { %6088 = vmatmul.bf16.gmra.mxu0 %v6663_v62  ;;  %vm6155_vm8 = vcmp.ge.f32.partialorder %v6053_v31, 0.0  ;;  %v6187_v59 = vmul.f32 0.2, %v6053_v31  ;;  %v1981_v49 = vrot.slane %v11146_v30, 4  ;;  %v10407_v62 = vld [vmem:[%s11120_s0 + $0x80] sm:$0xf] }
 0x294   :  { %v5829_v5 = vpop.f32.mrf.mxu2  ;;  %v3049_v58 = vrot.slane %v10407_v62, 5  ;;  %2221 = vst [vmem:[#allocation2 + $0x378] sm:$0xf] %v2173_v33  ;;  %v2175_v19 = vld [vmem:[%s11120_s0 + $0x80] sm:$0xf] }
 0x295   :  { %v6219_v52 = vsel %vm6155_vm8, %v6053_v31, %v6187_v59  ;;  %v5942_v6 = vpop.f32.mrf.mxu3  ;;  %v1983_v42 = vsel %vm8125_vm5, %v1981_v49, %v1982_v45  ;;  %v1986_v31 = vsel %vm8125_vm5, %v1984_v34, %v1985_v63  ;;  %v7549_v59 = vld [vmem:[#allocation2 + $0x2ec] sm:$0xf]  ;;  %v2547_v45 = vsel %vm8102_vm2, %v2542_v24, %v2546_v40  ;;  %v7554_v49 = vld [vmem:[#allocation2 + $0x310] sm:$0xf0]  ;;  %2223 = vst [vmem:[#allocation2 + $0x3c0] sm:$0xf] %v2175_v19 }
 0x296   :  { %6252 = vst.msk [vmem:[#allocation3 + $0x8] sm:$0xff] %vm6250_vm7, %v6219_v52  ;;  %v5717_v35 = vpop.f32.mrf.mxu1  ;;  %v3045_v5 = vrot.slane %v3043_v47, 4  ;;  %v6698_v52 = vld [vmem:[#allocation2 + $0x2f0] sm:$0xf]  ;;  %v2557_v6 = vsel %vm8102_vm2, %v2552_v25, %v10402_v51  ;;  %v3048_v34 = vrot.slane %v3046_v36, 4  ;;  %v6687_v24 = vor.u32 %v7548_v0, %v6684_v55 }
 0x297   :  { %2125 = vst [vmem:[#allocation2 + $0x374] sm:$0xf] %v1983_v42  ;;  %v5718_v30 = vadd.f32 %v5717_v35, %v8921_v14  ;;  %v6695_v14 = vor.u32 %v7549_v59, %v6692_v60  ;;  %v6699_v35 = vor.u32 %v7554_v49, %v6698_v52  ;;  %v1837_v59 = vld [vmem:[%s11120_s0 + $0x78] sm:$0xf]  ;;  %v2274_v19 = vld [vmem:[%s11120_s0 + $0x8c] sm:$0xf] }
 0x298   :  { %v6056_v26 = vpop.f32.mrf.mxu0  ;;  %2126 = vst [vmem:[#allocation2 + $0x398] sm:$0xf] %v1986_v31  ;;  %v3047_v40 = vsel %vm8125_vm5, %v3045_v5, %v3046_v36  ;;  %v3050_v42 = vsel %vm8125_vm5, %v3048_v34, %v3049_v58  ;;  %v2272_v31 = vld [vmem:[%s11120_s0 + $0x84] sm:$0xf]  ;;  %v10446_v5 = vld [vmem:[%s11120_s0 + $0x88] sm:$0xf] }
 0x299   :  { %2850 = vst [vmem:[#allocation2 + $0x37c] sm:$0xf] %v2547_v45  ;;  %v2558_v45 = vshrl.u32 %v10386_v11, 16  ;;  %v2564_v0 = vshll.u32 %v2272_v31, 16  ;;  %v2568_v55 = vshrl.u32 %v2272_v31, 16 }
 0x29a   :  { %2851 = vst [vmem:[#allocation2 + $0x3a0] sm:$0xf] %v2557_v6  ;;  %v10452_v6 = vld [vmem:[%s11120_s0 + $0x7c] sm:$0xf] }
 0x29b   :  { %3189 = vst [vmem:[#allocation2 + $0x380] sm:$0xf] %v3047_v40  ;;  %v2560_v22 = vrot.slane %v2558_v45, 4  ;;  %v2566_v36 = vrot.slane %v2564_v0, 5  ;;  %v2570_v49 = vrot.slane %v2568_v55, 4  ;;  %v2574_v40 = vshll.u32 %v10446_v5, 16 }
 0x29c   :  { %v5830_v20 = vpop.f32.mrf.mxu2  ;;  %3190 = vst [vmem:[#allocation2 + $0x3a4] sm:$0xf] %v3050_v42  ;;  %v7557_v45 = vld [vmem:[#allocation2 + $0x32c] sm:$0xf]  ;;  %v6720_v0 = vld [vmem:[#allocation2 + $0x34c] sm:$0xf0] }
 0x29d   :  { %v5831_v47 = vadd.f32 %v5830_v20, %v5718_v30  ;;  %v5943_v44 = vpop.f32.mrf.mxu3  ;;  %v2561_v30 = vor.u32 %v2560_v22, %v10402_v51  ;;  %v2901_v51 = vld [vmem:[%s11120_s0 + $0x84] sm:$0xf]  ;;  %v6726_v55 = vld [vmem:[#allocation2 + $0x330] sm:$0xf] }
 0x29e   :  { %v5720_v33 = vpop.f32.mrf.mxu1 }
 0x29f   :  { %v5944_v37 = vadd.f32 %v5943_v44, %v5831_v47  ;;  %v5721_v60 = vadd.f32 %v5720_v33, %v8977_v50  ;;  %v1987_v44 = vrot.slane %v1985_v63, 4  ;;  %v2562_v42 = vrot.slane %v2561_v30, 4  ;;  %v2176_v63 = vld [vmem:[%s11120_s0 + $0x84] sm:$0xf]  ;;  %v6728_v30 = vld [vmem:[#allocation2 + $0x354] sm:$0xf0] }
 0x2a0   :  { %v6059_v25 = vpop.f32.mrf.mxu0  ;;  %v2571_v33 = vor.u32 %v2570_v49, %v2566_v36  ;;  %2224 = vst [vmem:[#allocation2 + $0x3e4] sm:$0xf] %v2176_v63 }
 0x2a1   :  { %v6057_v38 = vadd.f32 %v6056_v26, %v5944_v37  ;;  %5754 = vmatmul.bf16.gmra.mxu1 %v6687_v24  ;;  %5867 = vmatmul.bf16.gmra.mxu2 %v6691_v3  ;;  %v1988_v26 = vrot.slane %v1837_v59, 5  ;;  %v1991_v3 = vrot.slane %v10452_v6, 5  ;;  %v10471_v37 = vrot.slane %v2574_v40, 5 }
 0x2a2   :  { %5980 = vmatmul.bf16.gmra.mxu3 %v6695_v14  ;;  %v2572_v59 = vrot.slane %v2571_v33, 4  ;;  %v2567_v49 = vsel %vm8102_vm2, %v2562_v42, %v2566_v36  ;;  %v3052_v40 = vrot.slane %v2901_v51, 5  ;;  %v6723_v42 = vor.u32 %v7557_v45, %v6720_v0 }
 0x2a3   :  { %6093 = vmatmul.bf16.gmra.mxu0 %v6699_v35  ;;  %vm6156_vm9 = vcmp.ge.f32.partialorder %v6057_v38, 0.0  ;;  %v6188_v11 = vmul.f32 0.2, %v6057_v38  ;;  %v1990_v24 = vrot.slane %v1988_v26, 4  ;;  %v1989_v31 = vsel %vm8125_vm5, %v1987_v44, %v1988_v26  ;;  %2852 = vst [vmem:[#allocation2 + $0x3c4] sm:$0xf] %v2567_v49 }
 0x2a4   :  { %v5833_v52 = vpop.f32.mrf.mxu2  ;;  %2127 = vst [vmem:[#allocation2 + $0x3bc] sm:$0xf] %v1989_v31  ;;  %v2577_v44 = vsel %vm8102_vm2, %v2572_v59, %v10471_v37  ;;  %v2584_v45 = vshll.u32 %v2274_v19, 16  ;;  %v2588_v0 = vshrl.u32 %v2274_v19, 16  ;;  %v10507_v59 = vld [vmem:[%s11120_s0 + $0x90] sm:$0xf] }
 0x2a5   :  { %v6220_v34 = vsel %vm6156_vm9, %v6057_v38, %v6188_v11  ;;  %v5834_v20 = vadd.f32 %v5833_v52, %v5721_v60  ;;  %v5946_v47 = vpop.f32.mrf.mxu3  ;;  %v7562_v38 = vld [vmem:[#allocation2 + $0x350] sm:$0xf0]  ;;  %v1992_v22 = vsel %vm8125_vm5, %v1990_v24, %v1991_v3  ;;  %v10480_v11 = vld [vmem:[%s11120_s0 + $0x88] sm:$0xf]  ;;  %v3051_v60 = vrot.slane %v3049_v58, 4 }
 0x2a6   :  { %6253 = vst.msk [vmem:[#allocation3 + $0x10] sm:$0xff] %vm6250_vm7, %v6220_v34  ;;  %v5722_v50 = vpop.f32.mrf.mxu1  ;;  %v7558_v52 = vld [vmem:[#allocation2 + $0x334] sm:$0xf]  ;;  %v3055_v34 = vrot.slane %v10480_v11, 5  ;;  %v3054_v58 = vrot.slane %v3052_v40, 4  ;;  %v6727_v33 = vor.u32 %v7562_v38, %v6726_v55 }
 0x2a7   :  { %v5947_v14 = vadd.f32 %v5946_v47, %v5834_v20  ;;  %2128 = vst [vmem:[#allocation2 + $0x3e0] sm:$0xf] %v1992_v22  ;;  %v6734_v20 = vld [vmem:[#allocation2 + $0x338] sm:$0xf]  ;;  %v7563_v47 = vld [vmem:[#allocation2 + $0x358] sm:$0xf0]  ;;  %v3053_v50 = vsel %vm8125_vm5, %v3051_v60, %v3052_v40 }
 0x2a8   :  { %v6061_v35 = vpop.f32.mrf.mxu0  ;;  %2853 = vst [vmem:[#allocation2 + $0x3e8] sm:$0xf] %v2577_v44  ;;  %v3056_v51 = vsel %vm8125_vm5, %v3054_v58, %v3055_v34  ;;  %v6735_v31 = vor.u32 %v7563_v47, %v6734_v20  ;;  %v2578_v22 = vshrl.u32 %v10446_v5, 16  ;;  %v1839_v38 = vld [vmem:[%s11120_s0 + $0x80] sm:$0xf]  ;;  %v2586_v60 = vrot.slane %v2584_v45, 5 }
 0x2a9   :  { %v6060_v26 = vadd.f32 %v6059_v25, %v5947_v14  ;;  %v6731_v35 = vor.u32 %v7558_v52, %v6728_v30  ;;  %3191 = vst [vmem:[#allocation2 + $0x3c8] sm:$0xf] %v3053_v50  ;;  %v2590_v30 = vrot.slane %v2588_v0, 4  ;;  %v2903_v49 = vld [vmem:[%s11120_s0 + $0x8c] sm:$0xf]  ;;  %v2594_v47 = vshll.u32 %v10507_v59, 16 }
 0x2aa   :  { %3192 = vst [vmem:[#allocation2 + $0x3ec] sm:$0xf] %v3056_v51  ;;  %v2580_v55 = vrot.slane %v2578_v22, 4  ;;  %v10517_v20 = vld [vmem:[%s11120_s0 + $0x84] sm:$0xf] }
 0x2ab   :  { %vm6157_vm10 = vcmp.ge.f32.partialorder %v6060_v26, 0.0  ;;  %v6189_v62 = vmul.f32 0.2, %v6060_v26  ;;  %v1997_v50 = vrot.slane %v10517_v20, 5  ;;  %v6762_v19 = vld [vmem:[#allocation2 + $0x378] sm:$0xf] }
 0x2ac   :  { %v5835_v25 = vpop.f32.mrf.mxu2  ;;  %v2581_v52 = vor.u32 %v2580_v55, %v10471_v37  ;;  %v3058_v37 = vrot.slane %v2903_v49, 5  ;;  %v7571_v22 = vld [vmem:[#allocation2 + $0x398] sm:$0xf0]  ;;  %v2178_v0 = vld [vmem:[%s11120_s0 + $0x8c] sm:$0xf] }
 0x2ad   :  { %v6221_v36 = vsel %vm6157_vm10, %v6060_v26, %v6189_v62  ;;  %v5948_v24 = vpop.f32.mrf.mxu3  ;;  %v1994_v26 = vrot.slane %v1839_v38, 5  ;;  %2226 = vst [vmem:[#allocation2 + $0x42c] sm:$0xf] %v2178_v0 }
 0x2ae   :  { %6254 = vst.msk [vmem:[#allocation3 + $0x18] sm:$0xff] %vm6250_vm7, %v6221_v36  ;;  %v5724_v14 = vpop.f32.mrf.mxu1  ;;  %v2582_v36 = vrot.slane %v2581_v52, 4  ;;  %v2591_v24 = vor.u32 %v2590_v30, %v2586_v60  ;;  %v6764_v52 = vld [vmem:[#allocation2 + $0x39c] sm:$0xf0]  ;;  %v3057_v30 = vrot.slane %v3055_v34, 4  ;;  %v3060_v49 = vrot.slane %v3058_v37, 4 }
 0x2af   :  { %v5725_v5 = vadd.f32 %v5724_v14, %v9035_v17  ;;  %v1993_v17 = vrot.slane %v1991_v3, 4  ;;  %v1996_v58 = vrot.slane %v1994_v26, 4  ;;  %v2177_v3 = vld [vmem:[%s11120_s0 + $0x88] sm:$0xf] }
 0x2b0   :  { %v6063_v63 = vpop.f32.mrf.mxu0  ;;  %v2587_v55 = vsel %vm8102_vm2, %v2582_v36, %v2586_v60  ;;  %v2592_v38 = vrot.slane %v2591_v24, 4  ;;  %2225 = vst [vmem:[#allocation2 + $0x408] sm:$0xf] %v2177_v3  ;;  %v3059_v11 = vsel %vm8125_vm5, %v3057_v30, %v3058_v37 }
 0x2b1   :  { %5758 = vmatmul.bf16.gmra.mxu1 %v6723_v42  ;;  %5871 = vmatmul.bf16.gmra.mxu2 %v6727_v33  ;;  %v10523_v42 = vrot.slane %v2594_v47, 5  ;;  %v10528_v33 = vld [vmem:[%s11120_s0 + $0x90] sm:$0xf]  ;;  %v1995_v6 = vsel %vm8125_vm5, %v1993_v17, %v1994_v26  ;;  %v1998_v45 = vsel %vm8125_vm5, %v1996_v58, %v1997_v50  ;;  %v7567_v26 = vld [vmem:[#allocation2 + $0x37c] sm:$0xf] }
 0x2b2   :  { %5984 = vmatmul.bf16.gmra.mxu3 %v6731_v35  ;;  %v7566_v35 = vld [vmem:[#allocation2 + $0x374] sm:$0xf]  ;;  %2129 = vst [vmem:[#allocation2 + $0x404] sm:$0xf] %v1995_v6  ;;  %v6770_v47 = vld [vmem:[#allocation2 + $0x380] sm:$0xf] }
 0x2b3   :  { %6097 = vmatmul.bf16.gmra.mxu0 %v6735_v31  ;;  %v6756_v31 = vld [vmem:[#allocation2 + $0x394] sm:$0xf0]  ;;  %2130 = vst [vmem:[#allocation2 + $0x428] sm:$0xf] %v1998_v45  ;;  %v2598_v45 = vshrl.u32 %v10507_v59, 16 }
 0x2b4   :  { %v5837_v40 = vpop.f32.mrf.mxu2  ;;  %v6759_v58 = vor.u32 %v7566_v35, %v6756_v31  ;;  %2854 = vst [vmem:[#allocation2 + $0x40c] sm:$0xf] %v2587_v55  ;;  %v2276_v35 = vld [vmem:[%s11120_s0 + $0x94] sm:$0xf] }
 0x2b5   :  { %v5838_v44 = vadd.f32 %v5837_v40, %v5725_v5  ;;  %v5950_v62 = vpop.f32.mrf.mxu3  ;;  %v3061_v40 = vrot.slane %v10528_v33, 5  ;;  %3193 = vst [vmem:[#allocation2 + $0x410] sm:$0xf] %v3059_v11  ;;  %v2600_v55 = vrot.slane %v2598_v45, 4 }
 0x2b6   :  { %v5726_v25 = vpop.f32.mrf.mxu1 }
 0x2b7   :  { %v5951_v51 = vadd.f32 %v5950_v62, %v5838_v44  ;;  %v7572_v44 = vld [vmem:[#allocation2 + $0x3a0] sm:$0xf0]  ;;  %v2597_v62 = vsel %vm8102_vm2, %v2592_v38, %v10523_v42  ;;  %v3062_v6 = vsel %vm8125_vm5, %v3060_v49, %v3061_v40  ;;  %v1841_v38 = vld [vmem:[%s11120_s0 + $0x88] sm:$0xf]  ;;  %v2601_v49 = vor.u32 %v2600_v55, %v10523_v42 }
 0x2b8   :  { %v6065_v14 = vpop.f32.mrf.mxu0  ;;  %2855 = vst [vmem:[#allocation2 + $0x430] sm:$0xf] %v2597_v62  ;;  %v6771_v3 = vor.u32 %v7572_v44, %v6770_v47 }
 0x2b9   :  { %v6064_v5 = vadd.f32 %v6063_v63, %v5951_v51  ;;  %v5727_v63 = vadd.f32 %v5726_v25, %v9056_v27  ;;  %v6763_v51 = vor.u32 %v7571_v22, %v6762_v19  ;;  %v6767_v25 = vor.u32 %v7567_v26, %v6764_v52  ;;  %3194 = vst [vmem:[#allocation2 + $0x434] sm:$0xf] %v3062_v6  ;;  %v2179_v6 = vld [vmem:[%s11120_s0 + $0x90] sm:$0xf] }
 0x2ba   :  { %v2604_v19 = vshll.u32 %v2276_v35, 16  ;;  %v2608_v22 = vshrl.u32 %v2276_v35, 16  ;;  %v2000_v52 = vrot.slane %v1841_v38, 5  ;;  %v7580_v35 = vld [vmem:[#allocation2 + $0x3e0] sm:$0xf0] }
 0x2bb   :  { %vm6158_vm11 = vcmp.ge.f32.partialorder %v6064_v5, 0.0  ;;  %v6190_v60 = vmul.f32 0.2, %v6064_v5  ;;  %2227 = vst [vmem:[#allocation2 + $0x450] sm:$0xf] %v2179_v6 }
 0x2bc   :  { %v5839_v17 = vpop.f32.mrf.mxu2  ;;  %v2606_v59 = vrot.slane %v2604_v19, 5  ;;  %v2610_v47 = vrot.slane %v2608_v22, 4  ;;  %v7576_v19 = vld [vmem:[#allocation2 + $0x3c4] sm:$0xf] }
 0x2bd   :  { %v6222_v34 = vsel %vm6158_vm11, %v6064_v5, %v6190_v60  ;;  %v5840_v36 = vadd.f32 %v5839_v17, %v5727_v63  ;;  %v5952_v24 = vpop.f32.mrf.mxu3  ;;  %v10568_v5 = vld [vmem:[%s11120_s0 + $0x98] sm:$0xf]  ;;  %v1999_v63 = vrot.slane %v1997_v50, 4  ;;  %v2002_v17 = vrot.slane %v2000_v52, 4 }
 0x2be   :  { %6255 = vst.msk [vmem:[#allocation3 + $0x20] sm:$0xff] %vm6250_vm7, %v6222_v34  ;;  %v5729_v27 = vpop.f32.mrf.mxu1  ;;  %v2614_v44 = vshll.u32 %v10568_v5, 16  ;;  %v2611_v42 = vor.u32 %v2610_v47, %v2606_v59  ;;  %v7581_v47 = vld [vmem:[#allocation2 + $0x3e8] sm:$0xf0]  ;;  %v2618_v6 = vshrl.u32 %v10568_v5, 16 }
 0x2bf   :  { %v5953_v37 = vadd.f32 %v5952_v24, %v5840_v36  ;;  %v2602_v36 = vrot.slane %v2601_v49, 4  ;;  %v2001_v50 = vsel %vm8125_vm5, %v1999_v63, %v2000_v52  ;;  %v7575_v27 = vld [vmem:[#allocation2 + $0x3bc] sm:$0xf]  ;;  %v6806_v52 = vld [vmem:[#allocation2 + $0x3c8] sm:$0xf] }
 0x2c0   :  { %v6068_v31 = vpop.f32.mrf.mxu0  ;;  %v10584_v24 = vrot.slane %v2614_v44, 5  ;;  %2131 = vst [vmem:[#allocation2 + $0x44c] sm:$0xf] %v2001_v50  ;;  %v2612_v45 = vrot.slane %v2611_v42, 4 }
 0x2c1   :  { %v6066_v0 = vadd.f32 %v6065_v14, %v5953_v37  ;;  %5762 = vmatmul.bf16.gmra.mxu1 %v6759_v58  ;;  %5875 = vmatmul.bf16.gmra.mxu2 %v6763_v51  ;;  %v10573_v14 = vld [vmem:[%s11120_s0 + $0x8c] sm:$0xf]  ;;  %v2905_v58 = vld [vmem:[%s11120_s0 + $0x94] sm:$0xf]  ;;  %v10589_v51 = vld [vmem:[%s11120_s0 + $0x98] sm:$0xf]  ;;  %v2607_v22 = vsel %vm8102_vm2, %v2602_v36, %v2606_v59 }
 0x2c2   :  { %5988 = vmatmul.bf16.gmra.mxu3 %v6767_v25  ;;  %v2003_v34 = vrot.slane %v10573_v14, 5  ;;  %v6792_v25 = vld [vmem:[#allocation2 + $0x3dc] sm:$0xf0]  ;;  %v2180_v31 = vld [vmem:[%s11120_s0 + $0x94] sm:$0xf]  ;;  %v3064_v55 = vrot.slane %v2905_v58, 5 }
 0x2c3   :  { %6101 = vmatmul.bf16.gmra.mxu0 %v6771_v3  ;;  %vm6159_vm12 = vcmp.ge.f32.partialorder %v6066_v0, 0.0  ;;  %v6191_v26 = vmul.f32 0.2, %v6066_v0  ;;  %v6798_v3 = vld [vmem:[#allocation2 + $0x3c0] sm:$0xf]  ;;  %v3067_v38 = vrot.slane %v10589_v51, 5 }
 0x2c4   :  { %v5842_v30 = vpop.f32.mrf.mxu2  ;;  %v2004_v37 = vsel %vm8125_vm5, %v2002_v17, %v2003_v34  ;;  %2228 = vst [vmem:[#allocation2 + $0x474] sm:$0xf] %v2180_v31  ;;  %v3066_v44 = vrot.slane %v3064_v55, 4  ;;  %v6799_v63 = vor.u32 %v7580_v35, %v6798_v3  ;;  %v2278_v36 = vld [vmem:[%s11120_s0 + $0x9c] sm:$0xf]  ;;  %v2620_v35 = vrot.slane %v2618_v6, 4 }
 0x2c5   :  { %v6223_v62 = vsel %vm6159_vm12, %v6066_v0, %v6191_v26  ;;  %v5955_v60 = vpop.f32.mrf.mxu3  ;;  %2132 = vst [vmem:[#allocation2 + $0x470] sm:$0xf] %v2004_v37  ;;  %v3063_v0 = vrot.slane %v3061_v40, 4  ;;  %v6800_v26 = vld [vmem:[#allocation2 + $0x3e4] sm:$0xf0]  ;;  %v2617_v30 = vsel %vm8102_vm2, %v2612_v45, %v10584_v24 }
 0x2c6   :  { %6256 = vst.msk [vmem:[#allocation3 + $0x28] sm:$0xff] %vm6250_vm7, %v6223_v62  ;;  %v5730_v11 = vpop.f32.mrf.mxu1  ;;  %v6795_v60 = vor.u32 %v7575_v27, %v6792_v25  ;;  %v3068_v17 = vsel %vm8125_vm5, %v3066_v44, %v3067_v38  ;;  %v2624_v27 = vshll.u32 %v2278_v36, 16  ;;  %v2628_v25 = vshrl.u32 %v2278_v36, 16  ;;  %v1843_v37 = vld [vmem:[%s11120_s0 + $0x90] sm:$0xf] }
 0x2c7   :  { %v5731_v49 = vadd.f32 %v5730_v11, %v9119_v46  ;;  %v3065_v59 = vsel %vm8125_vm5, %v3063_v0, %v3064_v55  ;;  %2856 = vst [vmem:[#allocation2 + $0x454] sm:$0xf] %v2607_v22  ;;  %v6803_v46 = vor.u32 %v7576_v19, %v6800_v26  ;;  %v6807_v11 = vor.u32 %v7581_v47, %v6806_v52  ;;  %v10628_v31 = vld [vmem:[%s11120_s0 + $0xa0] sm:$0xf]  ;;  %v10634_v0 = vld [vmem:[%s11120_s0 + $0x94] sm:$0xf] }
 0x2c8   :  { %v6069_v20 = vpop.f32.mrf.mxu0  ;;  %2857 = vst [vmem:[#allocation2 + $0x478] sm:$0xf] %v2617_v30  ;;  %v2626_v45 = vrot.slane %v2624_v27, 5  ;;  %v2621_v55 = vor.u32 %v2620_v35, %v10584_v24  ;;  %v2630_v26 = vrot.slane %v2628_v25, 4  ;;  %v2634_v52 = vshll.u32 %v10628_v31, 16 }
 0x2c9   :  { %3195 = vst [vmem:[#allocation2 + $0x458] sm:$0xf] %v3065_v59  ;;  %v2005_v59 = vrot.slane %v2003_v34, 4  ;;  %v2907_v24 = vld [vmem:[%s11120_s0 + $0x9c] sm:$0xf] }
 0x2ca   :  { %3196 = vst [vmem:[#allocation2 + $0x47c] sm:$0xf] %v3068_v17  ;;  %v2181_v14 = vld [vmem:[%s11120_s0 + $0x98] sm:$0xf]  ;;  %v2182_v34 = vld [vmem:[%s11120_s0 + $0x9c] sm:$0xf] }
 0x2cb   :  { %v6834_v36 = vld [vmem:[#allocation2 + $0x408] sm:$0xf]  ;;  %v10662_v25 = vld [vmem:[%s11120_s0 + $0xa0] sm:$0xf]  ;;  %2229 = vst [vmem:[#allocation2 + $0x498] sm:$0xf] %v2181_v14 }
 0x2cc   :  { %v5843_v33 = vpop.f32.mrf.mxu2  ;;  %2230 = vst [vmem:[#allocation2 + $0x4bc] sm:$0xf] %v2182_v34 }
 0x2cd   :  { %v5844_v40 = vadd.f32 %v5843_v33, %v5731_v49  ;;  %v5956_v62 = vpop.f32.mrf.mxu3  ;;  %v2009_v33 = vrot.slane %v10634_v0, 5 }
 0x2ce   :  { %v5733_v58 = vpop.f32.mrf.mxu1 }
 0x2cf   :  { %v5957_v42 = vadd.f32 %v5956_v62, %v5844_v40  ;;  %v5734_v19 = vadd.f32 %v5733_v58, %v9165_v15  ;;  %v2622_v40 = vrot.slane %v2621_v55, 4  ;;  %v2631_v62 = vor.u32 %v2630_v26, %v2626_v45  ;;  %v6842_v55 = vld [vmem:[#allocation2 + $0x410] sm:$0xf]  ;;  %v7590_v26 = vld [vmem:[#allocation2 + $0x430] sm:$0xf0] }
 0x2d0   :  { %v6072_v50 = vpop.f32.mrf.mxu0  ;;  %v10653_v58 = vrot.slane %v2634_v52, 5 }
 0x2d1   :  { %v6070_v3 = vadd.f32 %v6069_v20, %v5957_v42  ;;  %5767 = vmatmul.bf16.gmra.mxu1 %v6795_v60  ;;  %5880 = vmatmul.bf16.gmra.mxu2 %v6799_v63  ;;  %v2006_v20 = vrot.slane %v1843_v37, 5  ;;  %v7589_v42 = vld [vmem:[#allocation2 + $0x428] sm:$0xf0]  ;;  %v2632_v27 = vrot.slane %v2631_v62, 4  ;;  %v6843_v62 = vor.u32 %v7590_v26, %v6842_v55 }
 0x2d2   :  { %5993 = vmatmul.bf16.gmra.mxu3 %v6803_v46  ;;  %v7584_v46 = vld [vmem:[#allocation2 + $0x404] sm:$0xf]  ;;  %v7585_v37 = vld [vmem:[#allocation2 + $0x40c] sm:$0xf] }
 0x2d3   :  { %6106 = vmatmul.bf16.gmra.mxu0 %v6807_v11  ;;  %vm6160_vm13 = vcmp.ge.f32.partialorder %v6070_v3, 0.0  ;;  %v6192_v5 = vmul.f32 0.2, %v6070_v3  ;;  %v2008_v44 = vrot.slane %v2006_v20, 4  ;;  %v2007_v17 = vsel %vm8125_vm5, %v2005_v59, %v2006_v20  ;;  %v6828_v11 = vld [vmem:[#allocation2 + $0x424] sm:$0xf0] }
 0x2d4   :  { %v5846_v22 = vpop.f32.mrf.mxu2  ;;  %2133 = vst [vmem:[#allocation2 + $0x494] sm:$0xf] %v2007_v17  ;;  %v3070_v20 = vrot.slane %v2907_v24, 5  ;;  %v2637_v52 = vsel %vm8102_vm2, %v2632_v27, %v10653_v58  ;;  %v6835_v59 = vor.u32 %v7589_v42, %v6834_v36  ;;  %v2280_v24 = vld [vmem:[%s11120_s0 + $0xa4] sm:$0xf] }
 0x2d5   :  { %v6224_v30 = vsel %vm6160_vm13, %v6070_v3, %v6192_v5  ;;  %v5847_v49 = vadd.f32 %v5846_v22, %v5734_v19  ;;  %v5959_v47 = vpop.f32.mrf.mxu3  ;;  %v2010_v6 = vsel %vm8125_vm5, %v2008_v44, %v2009_v33  ;;  %v3069_v3 = vrot.slane %v3067_v38, 4  ;;  %v6836_v5 = vld [vmem:[#allocation2 + $0x42c] sm:$0xf0]  ;;  %2859 = vst [vmem:[#allocation2 + $0x4c0] sm:$0xf] %v2637_v52 }
 0x2d6   :  { %6257 = vst.msk [vmem:[#allocation3 + $0x30] sm:$0xff] %vm6250_vm7, %v6224_v30  ;;  %v5735_v15 = vpop.f32.mrf.mxu1  ;;  %v2627_v19 = vsel %vm8102_vm2, %v2622_v40, %v2626_v45  ;;  %v3073_v22 = vrot.slane %v10662_v25, 5  ;;  %v3072_v38 = vrot.slane %v3070_v20, 4  ;;  %v6839_v40 = vor.u32 %v7585_v37, %v6836_v5  ;;  %v10699_v37 = vld [vmem:[%s11120_s0 + $0x9c] sm:$0xf] }
 0x2d7   :  { %v5960_v60 = vadd.f32 %v5959_v47, %v5847_v49  ;;  %2134 = vst [vmem:[#allocation2 + $0x4b8] sm:$0xf] %v2010_v6  ;;  %v3071_v30 = vsel %vm8125_vm5, %v3069_v3, %v3070_v20  ;;  %v6831_v47 = vor.u32 %v7584_v46, %v6828_v11  ;;  %v2644_v17 = vshll.u32 %v2280_v24, 16  ;;  %v1845_v46 = vld [vmem:[%s11120_s0 + $0x98] sm:$0xf] }
 0x2d8   :  { %v6074_v63 = vpop.f32.mrf.mxu0  ;;  %2858 = vst [vmem:[#allocation2 + $0x49c] sm:$0xf] %v2627_v19  ;;  %v3074_v15 = vsel %vm8125_vm5, %v3072_v38, %v3073_v22  ;;  %v2648_v14 = vshrl.u32 %v2280_v24, 16  ;;  %v10689_v11 = vld [vmem:[%s11120_s0 + $0xa8] sm:$0xf]  ;;  %v2012_v42 = vrot.slane %v1845_v46, 5 }
 0x2d9   :  { %v6073_v35 = vadd.f32 %v6072_v50, %v5960_v60  ;;  %v2638_v63 = vshrl.u32 %v10628_v31, 16  ;;  %3197 = vst [vmem:[#allocation2 + $0x4a0] sm:$0xf] %v3071_v30  ;;  %v2646_v36 = vrot.slane %v2644_v17, 5  ;;  %v2909_v3 = vld [vmem:[%s11120_s0 + $0xa4] sm:$0xf] }
 0x2da   :  { %3198 = vst [vmem:[#allocation2 + $0x4c4] sm:$0xf] %v3074_v15  ;;  %v2650_v27 = vrot.slane %v2648_v14, 4  ;;  %v2654_v5 = vshll.u32 %v10689_v11, 16  ;;  %v2014_v55 = vrot.slane %v2012_v42, 4  ;;  %v2015_v52 = vrot.slane %v10699_v37, 5 }
 0x2db   :  { %vm6161_vm14 = vcmp.ge.f32.partialorder %v6073_v35, 0.0  ;;  %v6193_v51 = vmul.f32 0.2, %v6073_v35  ;;  %v2640_v34 = vrot.slane %v2638_v63, 4  ;;  %v10710_v30 = vld [vmem:[%s11120_s0 + $0xa8] sm:$0xf] }
 0x2dc   :  { %v5848_v50 = vpop.f32.mrf.mxu2  ;;  %v2651_v38 = vor.u32 %v2650_v27, %v2646_v36  ;;  %v6870_v15 = vld [vmem:[#allocation2 + $0x450] sm:$0xf]  ;;  %v7594_v14 = vld [vmem:[#allocation2 + $0x454] sm:$0xf]  ;;  %v3075_v46 = vrot.slane %v3073_v22, 4 }
 0x2dd   :  { %v6225_v45 = vsel %vm6161_vm14, %v6073_v35, %v6193_v51  ;;  %v5961_v49 = vpop.f32.mrf.mxu3  ;;  %v2641_v6 = vor.u32 %v2640_v34, %v10653_v58  ;;  %v3076_v58 = vrot.slane %v2909_v3, 5  ;;  %v10705_v50 = vrot.slane %v2654_v5, 5  ;;  %v6872_v34 = vld [vmem:[#allocation2 + $0x474] sm:$0xf0]  ;;  %v7599_v27 = vld [vmem:[#allocation2 + $0x478] sm:$0xf0] }
 0x2de   :  { %6258 = vst.msk [vmem:[#allocation3 + $0x38] sm:$0xff] %vm6250_vm7, %v6225_v45  ;;  %v5737_v44 = vpop.f32.mrf.mxu1  ;;  %v2652_v63 = vrot.slane %v2651_v38, 4  ;;  %v2282_v38 = vld [vmem:[%s11120_s0 + $0xac] sm:$0xf] }
 0x2df   :  { %v5738_v31 = vadd.f32 %v5737_v44, %v9236_v39  ;;  %v2011_v39 = vrot.slane %v2009_v33, 4  ;;  %v2642_v51 = vrot.slane %v2641_v6, 4  ;;  %v2183_v33 = vld [vmem:[%s11120_s0 + $0xa0] sm:$0xf]  ;;  %v7598_v44 = vld [vmem:[#allocation2 + $0x470] sm:$0xf0]  ;;  %v3077_v25 = vsel %vm8125_vm5, %v3075_v46, %v3076_v58 }
 0x2e0   :  { %v6076_v60 = vpop.f32.mrf.mxu0  ;;  %v6878_v6 = vld [vmem:[#allocation2 + $0x458] sm:$0xf]  ;;  %2231 = vst [vmem:[#allocation2 + $0x4e0] sm:$0xf] %v2183_v33  ;;  %v2657_v3 = vsel %vm8102_vm2, %v2652_v63, %v10705_v50 }
 0x2e1   :  { %5771 = vmatmul.bf16.gmra.mxu1 %v6831_v47  ;;  %5884 = vmatmul.bf16.gmra.mxu2 %v6835_v59  ;;  %v7593_v47 = vld [vmem:[#allocation2 + $0x44c] sm:$0xf]  ;;  %v6864_v59 = vld [vmem:[#allocation2 + $0x46c] sm:$0xf0]  ;;  %v2013_v0 = vsel %vm8125_vm5, %v2011_v39, %v2012_v42  ;;  %v2647_v24 = vsel %vm8102_vm2, %v2642_v51, %v2646_v36  ;;  %v3079_v42 = vrot.slane %v10710_v30, 5  ;;  %v6871_v39 = vor.u32 %v7598_v44, %v6870_v15 }
 0x2e2   :  { %5997 = vmatmul.bf16.gmra.mxu3 %v6839_v40  ;;  %v2016_v40 = vsel %vm8125_vm5, %v2014_v55, %v2015_v52  ;;  %2135 = vst [vmem:[#allocation2 + $0x4dc] sm:$0xf] %v2013_v0  ;;  %v6867_v5 = vor.u32 %v7593_v47, %v6864_v59  ;;  %v6879_v51 = vor.u32 %v7599_v27, %v6878_v6  ;;  %v2658_v47 = vshrl.u32 %v10689_v11, 16  ;;  %v1847_v44 = vld [vmem:[%s11120_s0 + $0xa0] sm:$0xf] }
 0x2e3   :  { %6110 = vmatmul.bf16.gmra.mxu0 %v6843_v62  ;;  %v2184_v62 = vld [vmem:[%s11120_s0 + $0xa4] sm:$0xf]  ;;  %2136 = vst [vmem:[#allocation2 + $0x500] sm:$0xf] %v2016_v40  ;;  %v2664_v59 = vshll.u32 %v2282_v38, 16  ;;  %v2668_v0 = vshrl.u32 %v2282_v38, 16 }
 0x2e4   :  { %v5850_v35 = vpop.f32.mrf.mxu2  ;;  %2232 = vst [vmem:[#allocation2 + $0x504] sm:$0xf] %v2184_v62  ;;  %v2660_v15 = vrot.slane %v2658_v47, 4  ;;  %v10750_v40 = vld [vmem:[%s11120_s0 + $0xb0] sm:$0xf]  ;;  %v2017_v6 = vrot.slane %v2015_v52, 4 }
 0x2e5   :  { %v5851_v19 = vadd.f32 %v5850_v35, %v5738_v31  ;;  %v5963_v20 = vpop.f32.mrf.mxu3  ;;  %v3078_v31 = vrot.slane %v3076_v58, 4  ;;  %2860 = vst [vmem:[#allocation2 + $0x4e4] sm:$0xf] %v2647_v24  ;;  %v2666_v11 = vrot.slane %v2664_v59, 5  ;;  %v2018_v24 = vrot.slane %v1847_v44, 5 }
 0x2e6   :  { %v5739_v26 = vpop.f32.mrf.mxu1  ;;  %2861 = vst [vmem:[#allocation2 + $0x508] sm:$0xf] %v2657_v3  ;;  %v2911_v3 = vld [vmem:[%s11120_s0 + $0xac] sm:$0xf]  ;;  %v7603_v38 = vld [vmem:[#allocation2 + $0x49c] sm:$0xf] }
 0x2e7   :  { %v5964_v45 = vadd.f32 %v5963_v20, %v5851_v19  ;;  %v3080_v55 = vsel %vm8125_vm5, %v3078_v31, %v3079_v42  ;;  %3199 = vst [vmem:[#allocation2 + $0x4e8] sm:$0xf] %v3077_v25  ;;  %v2020_v27 = vrot.slane %v2018_v24, 4  ;;  %v10771_v25 = vld [vmem:[%s11120_s0 + $0xb0] sm:$0xf]  ;;  %v2019_v52 = vsel %vm8125_vm5, %v2017_v6, %v2018_v24 }
 0x2e8   :  { %v6078_v49 = vpop.f32.mrf.mxu0  ;;  %3200 = vst [vmem:[#allocation2 + $0x50c] sm:$0xf] %v3080_v55  ;;  %v7607_v55 = vld [vmem:[#allocation2 + $0x4b8] sm:$0xf0]  ;;  %v3082_v47 = vrot.slane %v2911_v3, 5  ;;  %v3085_v59 = vrot.slane %v10771_v25, 5 }
 0x2e9   :  { %v6077_v17 = vadd.f32 %v6076_v60, %v5964_v45  ;;  %v5740_v60 = vadd.f32 %v5739_v26, %v9257_v7  ;;  %v6875_v26 = vor.u32 %v7594_v14, %v6872_v34  ;;  %v2670_v14 = vrot.slane %v2668_v0, 4  ;;  %2137 = vst [vmem:[#allocation2 + $0x524] sm:$0xf] %v2019_v52  ;;  %v6908_v0 = vld [vmem:[#allocation2 + $0x4bc] sm:$0xf0] }
 0x2ea   :  { %v2674_v34 = vshll.u32 %v10750_v40, 16  ;;  %v3084_v24 = vrot.slane %v3082_v47, 4  ;;  %v2284_v6 = vld [vmem:[%s11120_s0 + $0xb4] sm:$0xf] }
 0x2eb   :  { %vm6162_vm15 = vcmp.ge.f32.partialorder %v6077_v17, 0.0  ;;  %v6194_v36 = vmul.f32 0.2, %v6077_v17 }
 0x2ec   :  { %v5852_v35 = vpop.f32.mrf.mxu2 }
 0x2ed   :  { %v6226_v22 = vsel %vm6162_vm15, %v6077_v17, %v6194_v36  ;;  %v5853_v19 = vadd.f32 %v5852_v35, %v5740_v60  ;;  %v5965_v20 = vpop.f32.mrf.mxu3  ;;  %v2661_v17 = vor.u32 %v2660_v15, %v10705_v50  ;;  %v2671_v50 = vor.u32 %v2670_v14, %v2666_v11 }
 0x2ee   :  { %6259 = vst.msk [vmem:[#allocation3 + $0x40] sm:$0xff] %vm6250_vm7, %v6226_v22  ;;  %v5742_v7 = vpop.f32.mrf.mxu1  ;;  %v2185_v22 = vld [vmem:[%s11120_s0 + $0xa8] sm:$0xf] }
 0x2ef   :  { %v5966_v58 = vadd.f32 %v5965_v20, %v5853_v19  ;;  %v2662_v35 = vrot.slane %v2661_v17, 4  ;;  %v7602_v19 = vld [vmem:[#allocation2 + $0x494] sm:$0xf]  ;;  %v6900_v20 = vld [vmem:[#allocation2 + $0x4b4] sm:$0xf0] }
 0x2f0   :  { %v6081_v45 = vpop.f32.mrf.mxu0  ;;  %2233 = vst [vmem:[#allocation2 + $0x528] sm:$0xf] %v2185_v22  ;;  %v6903_v17 = vor.u32 %v7602_v19, %v6900_v20  ;;  %v1849_v19 = vld [vmem:[%s11120_s0 + $0xa8] sm:$0xf]  ;;  %v10810_v20 = vld [vmem:[%s11120_s0 + $0xb8] sm:$0xf] }
 0x2f1   :  { %v6079_v33 = vadd.f32 %v6078_v49, %v5966_v58  ;;  %5775 = vmatmul.bf16.gmra.mxu1 %v6867_v5  ;;  %5888 = vmatmul.bf16.gmra.mxu2 %v6871_v39  ;;  %v10755_v49 = vld [vmem:[%s11120_s0 + $0xa4] sm:$0xf]  ;;  %v10766_v5 = vrot.slane %v2674_v34, 5  ;;  %v6906_v39 = vld [vmem:[#allocation2 + $0x498] sm:$0xf]  ;;  %v2667_v58 = vsel %vm8102_vm2, %v2662_v35, %v2666_v11  ;;  %v3081_v45 = vrot.slane %v3079_v42, 4 }
 0x2f2   :  { %6001 = vmatmul.bf16.gmra.mxu3 %v6875_v26  ;;  %v2021_v60 = vrot.slane %v10755_v49, 5  ;;  %v2186_v26 = vld [vmem:[%s11120_s0 + $0xac] sm:$0xf]  ;;  %2862 = vst [vmem:[#allocation2 + $0x52c] sm:$0xf] %v2667_v58  ;;  %v6907_v14 = vor.u32 %v7607_v55, %v6906_v39  ;;  %v3086_v34 = vsel %vm8125_vm5, %v3084_v24, %v3085_v59  ;;  %v2684_v35 = vshll.u32 %v2284_v6, 16 }
 0x2f3   :  { %6114 = vmatmul.bf16.gmra.mxu0 %v6879_v51  ;;  %vm6163_vm0 = vcmp.ge.f32.partialorder %v6079_v33, 0.0  ;;  %v6195_v62 = vmul.f32 0.2, %v6079_v33  ;;  %v2672_v51 = vrot.slane %v2671_v50, 4  ;;  %2234 = vst [vmem:[#allocation2 + $0x54c] sm:$0xf] %v2186_v26  ;;  %v3083_v11 = vsel %vm8125_vm5, %v3081_v45, %v3082_v47 }
 0x2f4   :  { %v5855_v63 = vpop.f32.mrf.mxu2  ;;  %v2022_v7 = vsel %vm8125_vm5, %v2020_v27, %v2021_v60  ;;  %3201 = vst [vmem:[#allocation2 + $0x530] sm:$0xf] %v3083_v11  ;;  %v2688_v50 = vshrl.u32 %v2284_v6, 16  ;;  %v2686_v39 = vrot.slane %v2684_v35, 5  ;;  %v10816_v26 = vld [vmem:[%s11120_s0 + $0xac] sm:$0xf] }
 0x2f5   :  { %v6227_v46 = vsel %vm6163_vm0, %v6079_v33, %v6195_v62  ;;  %v5968_v31 = vpop.f32.mrf.mxu3  ;;  %2138 = vst [vmem:[#allocation2 + $0x548] sm:$0xf] %v2022_v7  ;;  %v6914_v33 = vld [vmem:[#allocation2 + $0x4a0] sm:$0xf]  ;;  %v2677_v15 = vsel %vm8102_vm2, %v2672_v51, %v10766_v5  ;;  %v7608_v62 = vld [vmem:[#allocation2 + $0x4c0] sm:$0xf0] }
 0x2f6   :  { %6260 = vst.msk [vmem:[#allocation3 + $0x48] sm:$0xff] %vm6250_vm7, %v6227_v46  ;;  %v5743_v36 = vpop.f32.mrf.mxu1  ;;  %v6915_v31 = vor.u32 %v7608_v62, %v6914_v33  ;;  %v2694_v58 = vshll.u32 %v10810_v20, 16  ;;  %v2023_v33 = vrot.slane %v2021_v60, 4  ;;  %v2187_v49 = vld [vmem:[%s11120_s0 + $0xb0] sm:$0xf] }
 0x2f7   :  { %v5744_v44 = vadd.f32 %v5743_v36, %v9320_v23  ;;  %2863 = vst [vmem:[#allocation2 + $0x550] sm:$0xf] %v2677_v15  ;;  %v6911_v23 = vor.u32 %v7603_v38, %v6908_v0  ;;  %v2678_v36 = vshrl.u32 %v10750_v40, 16  ;;  %v2690_v38 = vrot.slane %v2688_v50, 4  ;;  %v2188_v60 = vld [vmem:[%s11120_s0 + $0xb4] sm:$0xf] }
 0x2f8   :  { %v6082_v37 = vpop.f32.mrf.mxu0  ;;  %3202 = vst [vmem:[#allocation2 + $0x554] sm:$0xf] %v3086_v34  ;;  %v6942_v34 = vld [vmem:[#allocation2 + $0x4e0] sm:$0xf]  ;;  %v10844_v6 = vld [vmem:[%s11120_s0 + $0xb8] sm:$0xf] }
 0x2f9   :  { %v2680_v22 = vrot.slane %v2678_v36, 4  ;;  %v2691_v11 = vor.u32 %v2690_v38, %v2686_v39  ;;  %v7612_v35 = vld [vmem:[#allocation2 + $0x4e4] sm:$0xf]  ;;  %v6944_v50 = vld [vmem:[#allocation2 + $0x504] sm:$0xf0] }
 0x2fa   :  { %2235 = vst [vmem:[#allocation2 + $0x570] sm:$0xf] %v2187_v49 }
 0x2fb   :  { %v2681_v51 = vor.u32 %v2680_v22, %v10766_v5  ;;  %v2913_v5 = vld [vmem:[%s11120_s0 + $0xb4] sm:$0xf]  ;;  %2236 = vst [vmem:[#allocation2 + $0x594] sm:$0xf] %v2188_v60 }
 0x2fc   :  { %v5856_v30 = vpop.f32.mrf.mxu2  ;;  %v3088_v22 = vrot.slane %v2913_v5, 5 }
 0x2fd   :  { %v5857_v42 = vadd.f32 %v5856_v30, %v5744_v44  ;;  %v5969_v63 = vpop.f32.mrf.mxu3  ;;  %v2027_v44 = vrot.slane %v10816_v26, 5  ;;  %v2682_v62 = vrot.slane %v2681_v51, 4 }
 0x2fe   :  { %v5746_v46 = vpop.f32.mrf.mxu1 }
 0x2ff   :  { %v5970_v27 = vadd.f32 %v5969_v63, %v5857_v42  ;;  %v5747_v55 = vadd.f32 %v5746_v46, %v9367_v57  ;;  %v10835_v63 = vrot.slane %v2694_v58, 5  ;;  %v7616_v46 = vld [vmem:[#allocation2 + $0x500] sm:$0xf0] }
 0x300   :  { %v6085_v3 = vpop.f32.mrf.mxu0  ;;  %v6943_v58 = vor.u32 %v7616_v46, %v6942_v34  ;;  %v2915_v46 = vld [vmem:[%s11120_s0 + $0xbc] sm:$0xf] }
 0x301   :  { %v6083_v52 = vadd.f32 %v6082_v37, %v5970_v27  ;;  %5780 = vmatmul.bf16.gmra.mxu1 %v6903_v17  ;;  %5893 = vmatmul.bf16.gmra.mxu2 %v6907_v14  ;;  %v2024_v37 = vrot.slane %v1849_v19, 5  ;;  %v7611_v17 = vld [vmem:[#allocation2 + $0x4dc] sm:$0xf]  ;;  %v6936_v14 = vld [vmem:[#allocation2 + $0x4fc] sm:$0xf0]  ;;  %v3087_v27 = vrot.slane %v3085_v59, 4 }
 0x302   :  { %6006 = vmatmul.bf16.gmra.mxu3 %v6911_v23  ;;  %v3091_v19 = vrot.slane %v10844_v6, 5  ;;  %v3090_v59 = vrot.slane %v3088_v22, 4  ;;  %v6939_v38 = vor.u32 %v7611_v17, %v6936_v14 }
 0x303   :  { %6119 = vmatmul.bf16.gmra.mxu0 %v6915_v31  ;;  %vm6164_vm1 = vcmp.ge.f32.partialorder %v6083_v52, 0.0  ;;  %v6196_v40 = vmul.f32 0.2, %v6083_v52  ;;  %v2026_v15 = vrot.slane %v2024_v37, 4  ;;  %v2025_v42 = vsel %vm8125_vm5, %v2023_v33, %v2024_v37 }
 0x304   :  { %v5859_v7 = vpop.f32.mrf.mxu2  ;;  %2139 = vst [vmem:[#allocation2 + $0x56c] sm:$0xf] %v2025_v42  ;;  %v2692_v31 = vrot.slane %v2691_v11, 4  ;;  %v10871_v42 = vld [vmem:[%s11120_s0 + $0xc0] sm:$0xf] }
 0x305   :  { %v6228_v45 = vsel %vm6164_vm1, %v6083_v52, %v6196_v40  ;;  %v5860_v47 = vadd.f32 %v5859_v7, %v5747_v55  ;;  %v5972_v0 = vpop.f32.mrf.mxu3  ;;  %v2028_v23 = vsel %vm8125_vm5, %v2026_v15, %v2027_v44  ;;  %v2687_v52 = vsel %vm8102_vm2, %v2682_v62, %v2686_v39  ;;  %v6950_v40 = vld [vmem:[#allocation2 + $0x4e8] sm:$0xf]  ;;  %v7617_v55 = vld [vmem:[#allocation2 + $0x508] sm:$0xf0] }
 0x306   :  { %6261 = vst.msk [vmem:[#allocation3 + $0x50] sm:$0xff] %vm6250_vm7, %v6228_v45  ;;  %v5748_v57 = vpop.f32.mrf.mxu1  ;;  %v2697_v37 = vsel %vm8102_vm2, %v2692_v31, %v10835_v63  ;;  %v3089_v7 = vsel %vm8125_vm5, %v3087_v27, %v3088_v22  ;;  %v3092_v45 = vsel %vm8125_vm5, %v3090_v59, %v3091_v19  ;;  %v6951_v33 = vor.u32 %v7617_v55, %v6950_v40  ;;  %v10881_v31 = vld [vmem:[%s11120_s0 + $0xb4] sm:$0xf]  ;;  %v10892_v59 = vld [vmem:[%s11120_s0 + $0xc0] sm:$0xf] }
 0x307   :  { %v5973_v24 = vadd.f32 %v5972_v0, %v5860_v47  ;;  %2140 = vst [vmem:[#allocation2 + $0x590] sm:$0xf] %v2028_v23  ;;  %v6947_v0 = vor.u32 %v7612_v35, %v6944_v50  ;;  %v2286_v57 = vld [vmem:[%s11120_s0 + $0xbc] sm:$0xf]  ;;  %v2698_v62 = vshrl.u32 %v10810_v20, 16  ;;  %v11147_v20 = vld [vmem:[#allocation10_spill] sm:$0xff] }
 0x308   :  { %v6087_v30 = vpop.f32.mrf.mxu0  ;;  %2864 = vst [vmem:[#allocation2 + $0x574] sm:$0xf] %v2687_v52  ;;  %v2704_v11 = vshll.u32 %v2286_v57, 16  ;;  %v2708_v5 = vshrl.u32 %v2286_v57, 16  ;;  %v2714_v27 = vshll.u32 %v10871_v42, 16  ;;  %v2029_v50 = vrot.slane %v2027_v44, 4 }
 0x309   :  { %v6086_v36 = vadd.f32 %v6085_v3, %v5973_v24  ;;  %2865 = vst [vmem:[#allocation2 + $0x598] sm:$0xf] %v2697_v37  ;;  %v2700_v24 = vrot.slane %v2698_v62, 4  ;;  %v1851_v30 = vld [vmem:[%s11120_s0 + $0xb0] sm:$0xf]  ;;  %v2033_v40 = vrot.slane %v10881_v31, 5 }
 0x30a   :  { %3203 = vst [vmem:[#allocation2 + $0x578] sm:$0xf] %v3089_v7  ;;  %v2706_v49 = vrot.slane %v2704_v11, 5  ;;  %v2030_v17 = vrot.slane %v1851_v30, 5  ;;  %v2710_v34 = vrot.slane %v2708_v5, 4  ;;  %v3093_v5 = vrot.slane %v3091_v19, 4 }
 0x30b   :  { %vm6165_vm3 = vcmp.ge.f32.partialorder %v6086_v36, 0.0  ;;  %v6197_v25 = vmul.f32 0.2, %v6086_v36  ;;  %3204 = vst [vmem:[#allocation2 + $0x59c] sm:$0xf] %v3092_v45  ;;  %v2701_v14 = vor.u32 %v2700_v24, %v10835_v63  ;;  %v3094_v63 = vrot.slane %v2915_v46, 5 }
 0x30c   :  { %v5861_v3 = vpop.f32.mrf.mxu2  ;;  %v2032_v52 = vrot.slane %v2030_v17, 4  ;;  %v2711_v37 = vor.u32 %v2710_v34, %v2706_v49  ;;  %v2031_v26 = vsel %vm8125_vm5, %v2029_v50, %v2030_v17  ;;  %v2189_v44 = vld [vmem:[%s11120_s0 + $0xb8] sm:$0xf]  ;;  %v7621_v62 = vld [vmem:[#allocation2 + $0x52c] sm:$0xf]  ;;  %v3097_v30 = vrot.slane %v10892_v59, 5 }
 0x30d   :  { %v6229_v39 = vsel %vm6165_vm3, %v6086_v36, %v6197_v25  ;;  %v5974_v51 = vpop.f32.mrf.mxu3  ;;  %v2702_v55 = vrot.slane %v2701_v14, 4  ;;  %v10887_v25 = vrot.slane %v2714_v27, 5  ;;  %2141 = vst [vmem:[#allocation2 + $0x5b4] sm:$0xf] %v2031_v26  ;;  %v6980_v11 = vld [vmem:[#allocation2 + $0x54c] sm:$0xf0]  ;;  %v3095_v6 = vsel %vm8125_vm5, %v3093_v5, %v3094_v63 }
 0x30e   :  { %6262 = vst.msk [vmem:[#allocation3 + $0x58] sm:$0xff] %vm6250_vm7, %v6229_v39  ;;  %v5750_v47 = vpop.f32.mrf.mxu1  ;;  %v7620_v39 = vld [vmem:[#allocation2 + $0x524] sm:$0xf]  ;;  %v6972_v51 = vld [vmem:[#allocation2 + $0x544] sm:$0xf0]  ;;  %v2034_v45 = vsel %vm8125_vm5, %v2032_v52, %v2033_v40  ;;  %v3096_v24 = vrot.slane %v3094_v63, 4 }
 0x30f   :  { %v5751_v60 = vadd.f32 %v5750_v47, %v11147_v20  ;;  %v2190_v47 = vld [vmem:[%s11120_s0 + $0xbc] sm:$0xf]  ;;  %2142 = vst [vmem:[#allocation2 + $0x5d8] sm:$0xf] %v2034_v45  ;;  %v6986_v20 = vld [vmem:[#allocation2 + $0x530] sm:$0xf]  ;;  %v6975_v34 = vor.u32 %v7620_v39, %v6972_v51 }
 0x310   :  { %v6089_v15 = vpop.f32.mrf.mxu0  ;;  %2237 = vst [vmem:[#allocation2 + $0x5b8] sm:$0xf] %v2189_v44  ;;  %v2288_v52 = vld [vmem:[%s11120_s0 + $0xc4] sm:$0xf]  ;;  %v1853_v26 = vld [vmem:[%s11120_s0 + $0xb8] sm:$0xf] }
 0x311   :  { %5784 = vmatmul.bf16.gmra.mxu1 %v6939_v38  ;;  %5897 = vmatmul.bf16.gmra.mxu2 %v6943_v58  ;;  %v6978_v38 = vld [vmem:[#allocation2 + $0x528] sm:$0xf]  ;;  %v7625_v58 = vld [vmem:[#allocation2 + $0x548] sm:$0xf0]  ;;  %2238 = vst [vmem:[#allocation2 + $0x5dc] sm:$0xf] %v2190_v47 }
 0x312   :  { %6010 = vmatmul.bf16.gmra.mxu3 %v6947_v0  ;;  %v2707_v0 = vsel %vm8102_vm2, %v2702_v55, %v2706_v49  ;;  %v6979_v27 = vor.u32 %v7625_v58, %v6978_v38  ;;  %v2718_v55 = vshrl.u32 %v10871_v42, 16  ;;  %3205 = vst [vmem:[#allocation2 + $0x5c0] sm:$0xf] %v3095_v6  ;;  %v10932_v44 = vld [vmem:[%s11120_s0 + $0xc8] sm:$0xf]  ;;  %v2036_v58 = vrot.slane %v1853_v26, 5 }
 0x313   :  { %6123 = vmatmul.bf16.gmra.mxu0 %v6951_v33  ;;  %v2712_v33 = vrot.slane %v2711_v37, 4  ;;  %2866 = vst [vmem:[#allocation2 + $0x5bc] sm:$0xf] %v2707_v0  ;;  %v2724_v37 = vshll.u32 %v2288_v52, 16  ;;  %v7008_v6 = vld [vmem:[#allocation2 + $0x58c] sm:$0xf0] }
 0x314   :  { %v5863_v23 = vpop.f32.mrf.mxu2  ;;  %v2720_v51 = vrot.slane %v2718_v55, 4  ;;  %v2038_v5 = vrot.slane %v2036_v58, 4  ;;  %v7022_v55 = vld [vmem:[#allocation2 + $0x578] sm:$0xf] }
 0x315   :  { %v5864_v36 = vadd.f32 %v5863_v23, %v5751_v60  ;;  %v5976_v35 = vpop.f32.mrf.mxu3  ;;  %v7626_v60 = vld [vmem:[#allocation2 + $0x550] sm:$0xf0]  ;;  %v2717_v17 = vsel %vm8102_vm2, %v2712_v33, %v10887_v25  ;;  %v2726_v42 = vrot.slane %v2724_v37, 5  ;;  %v2734_v33 = vshll.u32 %v10932_v44, 16 }
 0x316   :  { %v5752_v22 = vpop.f32.mrf.mxu1  ;;  %2867 = vst [vmem:[#allocation2 + $0x5e0] sm:$0xf] %v2717_v17  ;;  %v6987_v50 = vor.u32 %v7626_v60, %v6986_v20  ;;  %v2721_v47 = vor.u32 %v2720_v51, %v10887_v25 }
 0x317   :  { %v5977_v3 = vadd.f32 %v5976_v35, %v5864_v36  ;;  %v3098_v36 = vsel %vm8125_vm5, %v3096_v24, %v3097_v30  ;;  %v6983_v35 = vor.u32 %v7621_v62, %v6980_v11  ;;  %v2035_v11 = vrot.slane %v2033_v40, 4  ;;  %v2917_v24 = vld [vmem:[%s11120_s0 + $0xc4] sm:$0xf] }
 0x318   :  { %v6091_v7 = vpop.f32.mrf.mxu0  ;;  %3206 = vst [vmem:[#allocation2 + $0x5e4] sm:$0xf] %v3098_v36  ;;  %v2722_v17 = vrot.slane %v2721_v47, 4 }
 0x319   :  { %v6090_v57 = vadd.f32 %v6089_v15, %v5977_v3  ;;  %v5753_v15 = vadd.f32 %v5752_v22, %v9453_v56  ;;  %v2728_v3 = vshrl.u32 %v2288_v52, 16  ;;  %v2037_v40 = vsel %vm8125_vm5, %v2035_v11, %v2036_v58 }
 0x31a   :  { %2143 = vst [vmem:[#allocation2 + $0x5fc] sm:$0xf] %v2037_v40  ;;  %v3100_v52 = vrot.slane %v2917_v24, 5  ;;  %v2738_v11 = vshrl.u32 %v10932_v44, 16  ;;  %v10992_v40 = vld [vmem:[%s11120_s0 + $0xd0] sm:$0xf] }
 0x31b   :  { %vm6166_vm4 = vcmp.ge.f32.partialorder %v6090_v57, 0.0  ;;  %v6198_v49 = vmul.f32 0.2, %v6090_v57  ;;  %v2730_v0 = vrot.slane %v2728_v3, 4 }
 0x31c   :  { %v5865_v14 = vpop.f32.mrf.mxu2  ;;  %v3102_v26 = vrot.slane %v3100_v52, 4 }
 0x31d   :  { %v6230_v19 = vsel %vm6166_vm4, %v6090_v57, %v6198_v49  ;;  %v5866_v46 = vadd.f32 %v5865_v14, %v5753_v15  ;;  %v5978_v23 = vpop.f32.mrf.mxu3  ;;  %v2731_v25 = vor.u32 %v2730_v0, %v2726_v42  ;;  %v10948_v49 = vrot.slane %v2734_v33, 5  ;;  %v10953_v15 = vld [vmem:[%s11120_s0 + $0xc8] sm:$0xf]  ;;  %v2191_v14 = vld [vmem:[%s11120_s0 + $0xc0] sm:$0xf] }
 0x31e   :  { %6263 = vst.msk [vmem:[#allocation3 + $0x60] sm:$0xff] %vm6250_vm7, %v6230_v19  ;;  %v5755_v56 = vpop.f32.mrf.mxu1  ;;  %v7014_v19 = vld [vmem:[#allocation2 + $0x570] sm:$0xf]  ;;  %v2290_v33 = vld [vmem:[%s11120_s0 + $0xcc] sm:$0xf] }
 0x31f   :  { %v5979_v63 = vadd.f32 %v5978_v23, %v5866_v46  ;;  %v7634_v46 = vld [vmem:[#allocation2 + $0x590] sm:$0xf0]  ;;  %v2732_v36 = vrot.slane %v2731_v25, 4  ;;  %2239 = vst [vmem:[#allocation2 + $0x600] sm:$0xf] %v2191_v14  ;;  %v2748_v24 = vshrl.u32 %v2290_v33, 16 }
 0x320   :  { %v6094_v22 = vpop.f32.mrf.mxu0  ;;  %v7630_v56 = vld [vmem:[#allocation2 + $0x574] sm:$0xf]  ;;  %v7015_v58 = vor.u32 %v7634_v46, %v7014_v19  ;;  %v1855_v25 = vld [vmem:[%s11120_s0 + $0xc0] sm:$0xf]  ;;  %v10998_v19 = vld [vmem:[%s11120_s0 + $0xc4] sm:$0xf] }
 0x321   :  { %v6092_v39 = vadd.f32 %v6091_v7, %v5979_v63  ;;  %5788 = vmatmul.bf16.gmra.mxu1 %v6975_v34  ;;  %5901 = vmatmul.bf16.gmra.mxu2 %v6979_v27  ;;  %v10937_v7 = vld [vmem:[%s11120_s0 + $0xbc] sm:$0xf]  ;;  %v7629_v34 = vld [vmem:[#allocation2 + $0x56c] sm:$0xf]  ;;  %v2192_v27 = vld [vmem:[%s11120_s0 + $0xc4] sm:$0xf]  ;;  %v2737_v37 = vsel %vm8102_vm2, %v2732_v36, %v10948_v49 }
 0x322   :  { %6014 = vmatmul.bf16.gmra.mxu3 %v6983_v35  ;;  %v2039_v60 = vrot.slane %v10937_v7, 5  ;;  %v2727_v35 = vsel %vm8102_vm2, %v2722_v17, %v2726_v42  ;;  %v3103_v63 = vrot.slane %v10953_v15, 5  ;;  %v7016_v22 = vld [vmem:[#allocation2 + $0x594] sm:$0xf0]  ;;  %2240 = vst [vmem:[#allocation2 + $0x624] sm:$0xf] %v2192_v27 }
 0x323   :  { %6127 = vmatmul.bf16.gmra.mxu0 %v6987_v50  ;;  %vm6167_vm6 = vcmp.ge.f32.partialorder %v6092_v39, 0.0  ;;  %v6199_v38 = vmul.f32 0.2, %v6092_v39  ;;  %v3099_v50 = vrot.slane %v3097_v30, 4  ;;  %2868 = vst [vmem:[#allocation2 + $0x604] sm:$0xf] %v2727_v35 }
 0x324   :  { %v5868_v45 = vpop.f32.mrf.mxu2  ;;  %v2040_v23 = vsel %vm8125_vm5, %v2038_v5, %v2039_v60  ;;  %2869 = vst [vmem:[#allocation2 + $0x628] sm:$0xf] %v2737_v37  ;;  %v2744_v5 = vshll.u32 %v2290_v33, 16  ;;  %v2740_v17 = vrot.slane %v2738_v11, 4  ;;  %v2754_v27 = vshll.u32 %v10992_v40, 16 }
 0x325   :  { %v6231_v57 = vsel %vm6167_vm6, %v6092_v39, %v6199_v38  ;;  %v5981_v62 = vpop.f32.mrf.mxu3  ;;  %2144 = vst [vmem:[#allocation2 + $0x620] sm:$0xf] %v2040_v23  ;;  %v7635_v39 = vld [vmem:[#allocation2 + $0x598] sm:$0xf0]  ;;  %v3101_v51 = vsel %vm8125_vm5, %v3099_v50, %v3100_v52  ;;  %v7011_v38 = vor.u32 %v7629_v34, %v7008_v6  ;;  %v3104_v45 = vsel %vm8125_vm5, %v3102_v26, %v3103_v63  ;;  %v2193_v7 = vld [vmem:[%s11120_s0 + $0xc8] sm:$0xf] }
 0x326   :  { %6264 = vst.msk [vmem:[#allocation3 + $0x68] sm:$0xff] %vm6250_vm7, %v6231_v57  ;;  %v5756_v20 = vpop.f32.mrf.mxu1  ;;  %v7023_v0 = vor.u32 %v7635_v39, %v7022_v55  ;;  %v2746_v14 = vrot.slane %v2744_v5, 5  ;;  %v2741_v46 = vor.u32 %v2740_v17, %v10948_v49  ;;  %v2750_v23 = vrot.slane %v2748_v24, 4  ;;  %v2919_v49 = vld [vmem:[%s11120_s0 + $0xcc] sm:$0xf] }
 0x327   :  { %v5757_v3 = vadd.f32 %v5756_v20, %v9514_v12  ;;  %v7019_v12 = vor.u32 %v7630_v56, %v7016_v22  ;;  %3207 = vst [vmem:[#allocation2 + $0x608] sm:$0xf] %v3101_v51  ;;  %v2041_v50 = vrot.slane %v2039_v60, 4  ;;  %v2045_v22 = vrot.slane %v10998_v19, 5  ;;  %v2194_v60 = vld [vmem:[%s11120_s0 + $0xcc] sm:$0xf] }
 0x328   :  { %v6095_v31 = vpop.f32.mrf.mxu0  ;;  %3208 = vst [vmem:[#allocation2 + $0x62c] sm:$0xf] %v3104_v45  ;;  %v2742_v55 = vrot.slane %v2741_v46, 4  ;;  %v2751_v37 = vor.u32 %v2750_v23, %v2746_v14  ;;  %v11017_v26 = vrot.slane %v2754_v27, 5  ;;  %v7639_v33 = vld [vmem:[#allocation2 + $0x5bc] sm:$0xf] }
 0x329   :  { %v3106_v5 = vrot.slane %v2919_v49, 5  ;;  %v7644_v17 = vld [vmem:[#allocation2 + $0x5e0] sm:$0xf0]  ;;  %2241 = vst [vmem:[#allocation2 + $0x648] sm:$0xf] %v2193_v7 }
 0x32a   :  { %v2752_v45 = vrot.slane %v2751_v37, 4  ;;  %v2747_v11 = vsel %vm8102_vm2, %v2742_v55, %v2746_v14  ;;  %2242 = vst [vmem:[#allocation2 + $0x66c] sm:$0xf] %v2194_v60  ;;  %v1857_v37 = vld [vmem:[%s11120_s0 + $0xc8] sm:$0xf] }
 0x32b   :  { %2870 = vst [vmem:[#allocation2 + $0x64c] sm:$0xf] %v2747_v11  ;;  %v2293_v49 = vld [vmem:[%s11120_s0 + $0xd8] sm:$0x1]  ;;  %v2921_v60 = vld [vmem:[%s11120_s0 + $0xd4] sm:$0xf] }
 0x32c   :  { %v5869_v59 = vpop.f32.mrf.mxu2  ;;  %v2195_v19 = vld [vmem:[%s11120_s0 + $0xd0] sm:$0xf] }
 0x32d   :  { %v5870_v30 = vadd.f32 %v5869_v59, %v5757_v3  ;;  %v5982_v42 = vpop.f32.mrf.mxu3  ;;  %v7638_v59 = vld [vmem:[#allocation2 + $0x5b4] sm:$0xf]  ;;  %2243 = vst [vmem:[#allocation2 + $0x690] sm:$0xf] %v2195_v19 }
 0x32e   :  { %v5759_v47 = vpop.f32.mrf.mxu1 }
 0x32f   :  { %v5983_v57 = vadd.f32 %v5982_v42, %v5870_v30  ;;  %v5760_v34 = vadd.f32 %v5759_v47, %v9570_v10  ;;  %v7044_v30 = vld [vmem:[#allocation2 + $0x5d4] sm:$0xf0]  ;;  %v11026_v47 = vld [vmem:[%s11120_s0 + $0xd0] sm:$0xf] }
 0x330   :  { %v6098_v62 = vpop.f32.mrf.mxu0  ;;  %v7050_v42 = vld [vmem:[#allocation2 + $0x5b8] sm:$0xf]  ;;  %v3109_v24 = vrot.slane %v11026_v47, 5 }
 0x331   :  { %v6096_v20 = vadd.f32 %v6095_v31, %v5983_v57  ;;  %5793 = vmatmul.bf16.gmra.mxu1 %v7011_v38  ;;  %5906 = vmatmul.bf16.gmra.mxu2 %v7015_v58  ;;  %v2042_v31 = vrot.slane %v1855_v25, 5  ;;  %v7643_v38 = vld [vmem:[#allocation2 + $0x5d8] sm:$0xf0]  ;;  %v7052_v57 = vld [vmem:[#allocation2 + $0x5dc] sm:$0xf0]  ;;  %v2757_v25 = vsel %vm8102_vm2, %v2752_v45, %v11017_v26  ;;  %v2047_v45 = vrot.slane %v2045_v22, 4 }
 0x332   :  { %6019 = vmatmul.bf16.gmra.mxu3 %v7019_v12  ;;  %v3105_v12 = vrot.slane %v3103_v63, 4  ;;  %v3108_v63 = vrot.slane %v3106_v5, 4  ;;  %2871 = vst [vmem:[#allocation2 + $0x670] sm:$0xf] %v2757_v25  ;;  %v7055_v27 = vor.u32 %v7639_v33, %v7052_v57  ;;  %v7647_v25 = vld [vmem:[#allocation2 + $0x5fc] sm:$0xf] }
 0x333   :  { %6132 = vmatmul.bf16.gmra.mxu0 %v7023_v0  ;;  %vm6168_vm8 = vcmp.ge.f32.partialorder %v6096_v20, 0.0  ;;  %v6200_v44 = vmul.f32 0.2, %v6096_v20  ;;  %v2044_v52 = vrot.slane %v2042_v31, 4  ;;  %v2043_v51 = vsel %vm8125_vm5, %v2041_v50, %v2042_v31 }
 0x334   :  { %v5872_v6 = vpop.f32.mrf.mxu2  ;;  %2145 = vst [vmem:[#allocation2 + $0x644] sm:$0xf] %v2043_v51  ;;  %v7047_v31 = vor.u32 %v7638_v59, %v7044_v30  ;;  %v3110_v46 = vsel %vm8125_vm5, %v3108_v63, %v3109_v24  ;;  %v2758_v50 = vshrl.u32 %v10992_v40, 16  ;;  %v1858_v30 = vld [vmem:[%s11120_s0 + $0xcc] sm:$0x1] }
 0x335   :  { %v6232_v36 = vsel %vm6168_vm8, %v6096_v20, %v6200_v44  ;;  %v5873_v56 = vadd.f32 %v5872_v6, %v5760_v34  ;;  %v5985_v35 = vpop.f32.mrf.mxu3  ;;  %v2046_v58 = vsel %vm8125_vm5, %v2044_v52, %v2045_v22  ;;  %v7058_v20 = vld [vmem:[#allocation2 + $0x5c0] sm:$0xf]  ;;  %v3107_v44 = vsel %vm8125_vm5, %v3105_v12, %v3106_v5  ;;  %3210 = vst [vmem:[#allocation2 + $0x674] sm:$0xf] %v3110_v46  ;;  %v2922_v5 = vld [vmem:[%s11120_s0 + $0xd8] sm:$0x1] }
 0x336   :  { %6265 = vst.msk [vmem:[#allocation3 + $0x70] sm:$0xff] %vm6250_vm7, %v6232_v36  ;;  %v5761_v10 = vpop.f32.mrf.mxu1  ;;  %v7051_v6 = vor.u32 %v7643_v38, %v7050_v42  ;;  %v7059_v36 = vor.u32 %v7644_v17, %v7058_v20  ;;  %v2760_v55 = vrot.slane %v2758_v50, 4  ;;  %v2774_v42 = vshll.u32 %v2293_v49, 16  ;;  %v7086_v22 = vld [vmem:[#allocation2 + $0x600] sm:$0xf] }
 0x337   :  { %v5986_v3 = vadd.f32 %v5985_v35, %v5873_v56  ;;  %2146 = vst [vmem:[#allocation2 + $0x668] sm:$0xf] %v2046_v58  ;;  %v2292_v56 = vld [vmem:[%s11120_s0 + $0xd4] sm:$0xf]  ;;  %v3112_v12 = vrot.slane %v2921_v60, 5 }
 0x338   :  { %v6100_v39 = vpop.f32.mrf.mxu0  ;;  %3209 = vst [vmem:[#allocation2 + $0x650] sm:$0xf] %v3107_v44  ;;  %v2764_v10 = vshll.u32 %v2292_v56, 16  ;;  %v2768_v52 = vshrl.u32 %v2292_v56, 16  ;;  %v2761_v51 = vor.u32 %v2760_v55, %v11017_v26  ;;  %v2051_v26 = vrot.slane %v1858_v30, 5 }
 0x339   :  { %v6099_v0 = vadd.f32 %v6098_v62, %v5986_v3  ;;  %v2048_v39 = vrot.slane %v1857_v37, 5  ;;  %v2776_v11 = vrot.slane %v2774_v42, 5  ;;  %v7648_v46 = vld [vmem:[#allocation2 + $0x604] sm:$0xf]  ;;  %v3115_v56 = vrot.slane %v2922_v5, 5 }
 0x33a   :  { %v2766_v3 = vrot.slane %v2764_v10, 5  ;;  %v2770_v7 = vrot.slane %v2768_v52, 4  ;;  %v2762_v33 = vrot.slane %v2761_v51, 4  ;;  %v7094_v50 = vld [vmem:[#allocation2 + $0x608] sm:$0xf] }
 0x33b   :  { %vm6169_vm9 = vcmp.ge.f32.partialorder %v6099_v0, 0.0  ;;  %v6201_v15 = vmul.f32 0.2, %v6099_v0  ;;  %v2049_v63 = vsel %vm8125_vm5, %v2047_v45, %v2048_v39  ;;  %v7653_v10 = vld [vmem:[#allocation2 + $0x628] sm:$0xf0] }
 0x33c   :  { %v5874_v62 = vpop.f32.mrf.mxu2  ;;  %v2771_v57 = vor.u32 %v2770_v7, %v2766_v3  ;;  %2147 = vst [vmem:[#allocation2 + $0x68c] sm:$0xf] %v2049_v63  ;;  %v7124_v5 = vld [vmem:[#allocation2 + $0x66c] sm:$0xf0] }
 0x33d   :  { %v6233_v14 = vsel %vm6169_vm9, %v6099_v0, %v6201_v15  ;;  %v5987_v34 = vpop.f32.mrf.mxu3  ;;  %v7080_v15 = vld [vmem:[#allocation2 + $0x61c] sm:$0xf0]  ;;  %v7652_v62 = vld [vmem:[#allocation2 + $0x620] sm:$0xf0] }
 0x33e   :  { %6266 = vst.msk [vmem:[#allocation3 + $0x78] sm:$0xff] %vm6250_vm7, %v6233_v14  ;;  %v5763_v23 = vpop.f32.mrf.mxu1  ;;  %v2196_v14 = vld [vmem:[%s11120_s0 + $0xd4] sm:$0xf]  ;;  %v2767_v34 = vsel %vm8102_vm2, %v2762_v33, %v2766_v3  ;;  %v7083_v49 = vor.u32 %v7647_v25, %v7080_v15  ;;  %v7661_v33 = vld [vmem:[#allocation2 + $0x668] sm:$0xf0]  ;;  %s7801_s0 = smov [#allocation3]  }
 0x33f   :  { %v5764_v40 = vadd.f32 %v5763_v23, %v9622_v9  ;;  %v2050_v9 = vrot.slane %v2048_v39, 4  ;;  %v7088_v23 = vld [vmem:[#allocation2 + $0x624] sm:$0xf0]  ;;  %2244 = vst [vmem:[#allocation2 + $0x6b4] sm:$0xf] %v2196_v14  ;;  %v7087_v39 = vor.u32 %v7652_v62, %v7086_v22  ;;  %s6287_s16 = sshll.u32 %s7801_s0, 4  ;;  %s6288_s16 = int_to_ptr.vmem [resolvable:$true] %s6287_s16 }
 0x340   :  { %v6102_v35 = vpop.f32.mrf.mxu0  ;;  %2872 = vst [vmem:[#allocation2 + $0x694] sm:$0xf] %v2767_v34  ;;  %v7091_v7 = vor.u32 %v7648_v46, %v7088_v23 }
 0x341   :  { %5797 = vmatmul.bf16.gmra.mxu1 %v7047_v31  ;;  %5910 = vmatmul.bf16.gmra.mxu2 %v7051_v6  ;;  %v2052_v44 = vsel %vm8125_vm5, %v2050_v9, %v2051_v26  ;;  %v2772_v31 = vrot.slane %v2771_v57, 4  ;;  %v7122_v26 = vld [vmem:[#allocation2 + $0x648] sm:$0xf]  ;;  %v7657_v57 = vld [vmem:[#allocation2 + $0x64c] sm:$0xf] }
 0x342   :  { %6023 = vmatmul.bf16.gmra.mxu3 %v7055_v27  ;;  %2148 = vst [vmem:[#allocation2 + $0x6b0] sm:$0xf] %v2052_v44  ;;  %v3111_v27 = vrot.slane %v3109_v24, 4  ;;  %v7123_v22 = vor.u32 %v7661_v33, %v7122_v26  ;;  %v7127_v44 = vor.u32 %v7657_v57, %v7124_v5 }
 0x343   :  { %6136 = vmatmul.bf16.gmra.mxu0 %v7059_v36  ;;  %v3114_v36 = vrot.slane %v3112_v12, 4  ;;  %v2777_v52 = vsel %vm8102_vm2, %v2772_v31, %v2776_v11 }
 0x344   :  { %v5876_v59 = vpop.f32.mrf.mxu2  ;;  %v3113_v47 = vsel %vm8125_vm5, %v3111_v27, %v3112_v12  ;;  %2873 = vst [vmem:[#allocation2 + $0x6b8] sm:$0xf] %v2777_v52  ;;  %v7656_v12 = vld [vmem:[#allocation2 + $0x644] sm:$0xf] }
 0x345   :  { %v5877_v38 = vadd.f32 %v5876_v59, %v5764_v40  ;;  %v5989_v58 = vpop.f32.mrf.mxu3  ;;  %v3116_v21 = vsel %vm8125_vm5, %v3114_v36, %v3115_v56  ;;  %3211 = vst [vmem:[#allocation2 + $0x698] sm:$0xf] %v3113_v47 }
 0x346   :  { %v5765_v0 = vpop.f32.mrf.mxu1  ;;  %3212 = vst [vmem:[#allocation2 + $0x6bc] sm:$0xf] %v3116_v21  ;;  %v7670_v47 = vld [vmem:[#allocation2 + $0x6b0] sm:$0xf0] }
 0x347   :  { %v5990_v20 = vadd.f32 %v5989_v58, %v5877_v38  ;;  %v5766_v37 = vadd.f32 %v5765_v0, %v9637_v43  ;;  %v7095_v43 = vor.u32 %v7653_v10, %v7094_v50  ;;  %v7116_v0 = vld [vmem:[#allocation2 + $0x664] sm:$0xf0] }
 0x348   :  { %v6104_v17 = vpop.f32.mrf.mxu0  ;;  %v7119_v19 = vor.u32 %v7656_v12, %v7116_v0 }
 0x349   :  { %v6103_v6 = vadd.f32 %v6102_v35, %v5990_v20  ;;  %v7130_v20 = vld [vmem:[#allocation2 + $0x650] sm:$0xf] }
 0x34b   :  { %vm6170_vm10 = vcmp.ge.f32.partialorder %v6103_v6, 0.0  ;;  %v6202_v55 = vmul.f32 0.2, %v6103_v6 }
 0x34c   :  { %v5878_v35 = vpop.f32.mrf.mxu2 }
 0x34d   :  { %v6234_v24 = vsel %vm6170_vm10, %v6103_v6, %v6202_v55  ;;  %v5879_v3 = vadd.f32 %v5878_v35, %v5766_v37  ;;  %v5991_v40 = vpop.f32.mrf.mxu3  ;;  %v7665_v55 = vld [vmem:[#allocation2 + $0x68c] sm:$0xf]  ;;  %v7152_v35 = vld [vmem:[#allocation2 + $0x6ac] sm:$0xf0] }
 0x34e   :  { %6267 = vst.msk [vmem:[#allocation3 + $0x80] sm:$0xff] %vm6250_vm7, %v6234_v24  ;;  %v5768_v51 = vpop.f32.mrf.mxu1  ;;  %v7666_v24 = vld [vmem:[#allocation2 + $0x694] sm:$0xf] }
 0x34f   :  { %v5992_v60 = vadd.f32 %v5991_v40, %v5879_v3  ;;  %v7160_v3 = vld [vmem:[#allocation2 + $0x6b4] sm:$0xf0] }
 0x350   :  { %v6107_v59 = vpop.f32.mrf.mxu0  ;;  %v7166_v40 = vld [vmem:[#allocation2 + $0x698] sm:$0xf] }
 0x351   :  { %v6105_v30 = vadd.f32 %v6104_v17, %v5992_v60  ;;  %5801 = vmatmul.bf16.gmra.mxu1 %v7083_v49  ;;  %5914 = vmatmul.bf16.gmra.mxu2 %v7087_v39  ;;  %v7662_v17 = vld [vmem:[#allocation2 + $0x670] sm:$0xf0]  ;;  %v7158_v49 = vld [vmem:[#allocation2 + $0x690] sm:$0xf] }
 0x352   :  { %6027 = vmatmul.bf16.gmra.mxu3 %v7091_v7  ;;  %v7131_v14 = vor.u32 %v7662_v17, %v7130_v20  ;;  %v7159_v60 = vor.u32 %v7670_v47, %v7158_v49 }
 0x353   :  { %6140 = vmatmul.bf16.gmra.mxu0 %v7095_v43  ;;  %vm6171_vm2 = vcmp.ge.f32.partialorder %v6105_v30, 0.0  ;;  %v6203_v42 = vmul.f32 0.2, %v6105_v30  ;;  %v7155_v43 = vor.u32 %v7665_v55, %v7152_v35 }
 0x354   :  { %v5881_v38 = vpop.f32.mrf.mxu2 }
 0x355   :  { %v6235_v58 = vsel %vm6171_vm2, %v6105_v30, %v6203_v42  ;;  %v5994_v32 = vpop.f32.mrf.mxu3  ;;  %v7163_v30 = vor.u32 %v7666_v24, %v7160_v3 }
 0x356   :  { %6268 = vst.msk [vmem:[#allocation3 + $0x88] sm:$0xff] %vm6250_vm7, %v6235_v58  ;;  %v5769_v45 = vpop.f32.mrf.mxu1 }
 0x357   :  { %v5770_v11 = vadd.f32 %v5769_v45, %v9697_v28 }
 0x358   :  { %v6108_v9 = vpop.f32.mrf.mxu0 }
 0x35c   :  { %v5882_v25 = vpop.f32.mrf.mxu2 }
 0x35d   :  { %v5883_v15 = vadd.f32 %v5882_v25, %v5770_v11  ;;  %v5995_v63 = vpop.f32.mrf.mxu3 }
 0x35e   :  { %v5772_v62 = vpop.f32.mrf.mxu1 }
 0x35f   :  { %v5996_v34 = vadd.f32 %v5995_v63, %v5883_v15  ;;  %v5773_v46 = vadd.f32 %v5772_v62, %v9741_v8  ;;  %v7671_v8 = vld [vmem:[#allocation2 + $0x6b8] sm:$0xf0] }
 0x360   :  { %v6111_v31 = vpop.f32.mrf.mxu0  ;;  %v7167_v42 = vor.u32 %v7671_v8, %v7166_v40 }
 0x361   :  { %v6109_v6 = vadd.f32 %v6108_v9, %v5996_v34  ;;  %5806 = vmatmul.bf16.gmra.mxu1 %v7119_v19  ;;  %5919 = vmatmul.bf16.gmra.mxu2 %v7123_v22 }
 0x362   :  { %6032 = vmatmul.bf16.gmra.mxu3 %v7127_v44 }
 0x363   :  { %6145 = vmatmul.bf16.gmra.mxu0 %v7131_v14  ;;  %vm6172_vm5 = vcmp.ge.f32.partialorder %v6109_v6, 0.0  ;;  %v6204_v28 = vmul.f32 0.2, %v6109_v6 }
 0x364   :  { %v5885_v23 = vpop.f32.mrf.mxu2 }
 0x365   :  { %v6236_v27 = vsel %vm6172_vm5, %v6109_v6, %v6204_v28  ;;  %v5886_v36 = vadd.f32 %v5885_v23, %v5773_v46  ;;  %v5998_v56 = vpop.f32.mrf.mxu3 }
 0x366   :  { %6269 = vst.msk [vmem:[#allocation3 + $0x90] sm:$0xff] %vm6250_vm7, %v6236_v27  ;;  %v5774_v50 = vpop.f32.mrf.mxu1 }
 0x367   :  { %v5999_v10 = vadd.f32 %v5998_v56, %v5886_v36 }
 0x368   :  { %v6113_v52 = vpop.f32.mrf.mxu0 }
 0x369   :  { %v6112_v37 = vadd.f32 %v6111_v31, %v5999_v10 }
 0x36b   :  { %vm6173_vm11 = vcmp.ge.f32.partialorder %v6112_v37, 0.0  ;;  %v6205_v39 = vmul.f32 0.2, %v6112_v37 }
 0x36c   :  { %v5887_v21 = vpop.f32.mrf.mxu2 }
 0x36d   :  { %v6237_v51 = vsel %vm6173_vm11, %v6112_v37, %v6205_v39  ;;  %v6000_v7 = vpop.f32.mrf.mxu3 }
 0x36e   :  { %6270 = vst.msk [vmem:[#allocation3 + $0x98] sm:$0xff] %vm6250_vm7, %v6237_v51  ;;  %v5776_v59 = vpop.f32.mrf.mxu1 }
 0x36f   :  { %v5777_v58 = vadd.f32 %v5776_v59, %v9805_v61 }
 0x370   :  { %v6115_v38 = vpop.f32.mrf.mxu0 }
 0x371   :  { %5810 = vmatmul.bf16.gmra.mxu1 %v7155_v43  ;;  %5923 = vmatmul.bf16.gmra.mxu2 %v7159_v60 }
 0x372   :  { %6036 = vmatmul.bf16.gmra.mxu3 %v7163_v30 }
 0x373   :  { %6149 = vmatmul.bf16.gmra.mxu0 %v7167_v42 }
 0x374   :  { %v5889_v32 = vpop.f32.mrf.mxu2 }
 0x375   :  { %v5890_v45 = vadd.f32 %v5889_v32, %v5777_v58  ;;  %v6002_v9 = vpop.f32.mrf.mxu3 }
 0x376   :  { %v5778_v12 = vpop.f32.mrf.mxu1 }
 0x377   :  { %v6003_v0 = vadd.f32 %v6002_v9, %v5890_v45  ;;  %v5779_v11 = vadd.f32 %v5778_v12, %v9820_v1 }
 0x378   :  { %v6117_v26 = vpop.f32.mrf.mxu0 }
 0x379   :  { %v6116_v33 = vadd.f32 %v6115_v38, %v6003_v0 }
 0x37b   :  { %vm6174_vm12 = vcmp.ge.f32.partialorder %v6116_v33, 0.0  ;;  %v6206_v57 = vmul.f32 0.2, %v6116_v33 }
 0x37c   :  { %v5891_v5 = vpop.f32.mrf.mxu2 }
 0x37d   :  { %v6238_v20 = vsel %vm6174_vm12, %v6116_v33, %v6206_v57  ;;  %v5892_v17 = vadd.f32 %v5891_v5, %v5779_v11  ;;  %v6004_v25 = vpop.f32.mrf.mxu3 }
 0x37e   :  { %6271 = vst.msk [vmem:[#allocation3 + $0xa0] sm:$0xff] %vm6250_vm7, %v6238_v20  ;;  %v5781_v15 = vpop.f32.mrf.mxu1 }
 0x37f   :  { %v6005_v63 = vadd.f32 %v6004_v25, %v5892_v17 }
 0x380   :  { %v6120_v61 = vpop.f32.mrf.mxu0 }
 0x381   :  { %v6118_v19 = vadd.f32 %v6117_v26, %v6005_v63 }
 0x383   :  { %vm6175_vm13 = vcmp.ge.f32.partialorder %v6118_v19, 0.0  ;;  %v6207_v22 = vmul.f32 0.2, %v6118_v19 }
 0x384   :  { %v5894_v62 = vpop.f32.mrf.mxu2 }
 0x385   :  { %v6239_v44 = vsel %vm6175_vm13, %v6118_v19, %v6207_v22  ;;  %v6007_v14 = vpop.f32.mrf.mxu3 }
 0x386   :  { %6272 = vst.msk [vmem:[#allocation3 + $0xa8] sm:$0xff] %vm6250_vm7, %v6239_v44  ;;  %v5782_v34 = vpop.f32.mrf.mxu1 }
 0x387   :  { %v5783_v1 = vadd.f32 %v5782_v34, %v9882_v4 }
 0x388   :  { %v6121_v31 = vpop.f32.mrf.mxu0 }
 0x38c   :  { %v5895_v6 = vpop.f32.mrf.mxu2 }
 0x38d   :  { %v5896_v28 = vadd.f32 %v5895_v6, %v5783_v1  ;;  %v6008_v46 = vpop.f32.mrf.mxu3 }
 0x38e   :  { %v5785_v23 = vpop.f32.mrf.mxu1 }
 0x38f   :  { %v6009_v27 = vadd.f32 %v6008_v46, %v5896_v28  ;;  %v5786_v10 = vadd.f32 %v5785_v23, %v9927_v16 }
 0x390   :  { %v6124_v36 = vpop.f32.mrf.mxu0 }
 0x391   :  { %v6122_v56 = vadd.f32 %v6121_v31, %v6009_v27 }
 0x393   :  { %vm6176_vm14 = vcmp.ge.f32.partialorder %v6122_v56, 0.0  ;;  %v6208_v50 = vmul.f32 0.2, %v6122_v56 }
 0x394   :  { %v5898_v52 = vpop.f32.mrf.mxu2 }
 0x395   :  { %v6240_v55 = vsel %vm6176_vm14, %v6122_v56, %v6208_v50  ;;  %v5899_v37 = vadd.f32 %v5898_v52, %v5786_v10  ;;  %v6011_v35 = vpop.f32.mrf.mxu3 }
 0x396   :  { %6273 = vst.msk [vmem:[#allocation3 + $0xb0] sm:$0xff] %vm6250_vm7, %v6240_v55  ;;  %v5787_v49 = vpop.f32.mrf.mxu1 }
 0x397   :  { %v6012_v47 = vadd.f32 %v6011_v35, %v5899_v37 }
 0x398   :  { %v6126_v4 = vpop.f32.mrf.mxu0 }
 0x399   :  { %v6125_v24 = vadd.f32 %v6124_v36, %v6012_v47 }
 0x39b   :  { %vm6177_vm15 = vcmp.ge.f32.partialorder %v6125_v24, 0.0  ;;  %v6209_v3 = vmul.f32 0.2, %v6125_v24 }
 0x39c   :  { %v5900_v40 = vpop.f32.mrf.mxu2 }
 0x39d   :  { %v6241_v39 = vsel %vm6177_vm15, %v6125_v24, %v6209_v3  ;;  %v6013_v8 = vpop.f32.mrf.mxu3 }
 0x39e   :  { %6274 = vst.msk [vmem:[#allocation3 + $0xb8] sm:$0xff] %vm6250_vm7, %v6241_v39  ;;  %v5789_v21 = vpop.f32.mrf.mxu1 }
 0x39f   :  { %v5790_v16 = vadd.f32 %v5789_v21, %v9991_v13 }
 0x3a0   :  { %v6128_v51 = vpop.f32.mrf.mxu0 }
 0x3a4   :  { %v5902_v7 = vpop.f32.mrf.mxu2 }
 0x3a5   :  { %v5903_v43 = vadd.f32 %v5902_v7, %v5790_v16  ;;  %v6015_v60 = vpop.f32.mrf.mxu3 }
 0x3a6   :  { %v5791_v59 = vpop.f32.mrf.mxu1 }
 0x3a7   :  { %v6016_v30 = vadd.f32 %v6015_v60, %v5903_v43  ;;  %v5792_v32 = vadd.f32 %v5791_v59, %v10006_v29 }
 0x3a8   :  { %v6130_v42 = vpop.f32.mrf.mxu0 }
 0x3a9   :  { %v6129_v38 = vadd.f32 %v6128_v51, %v6016_v30 }
 0x3ab   :  { %vm6178_vm0 = vcmp.ge.f32.partialorder %v6129_v38, 0.0  ;;  %v6210_v58 = vmul.f32 0.2, %v6129_v38 }
 0x3ac   :  { %v5904_v45 = vpop.f32.mrf.mxu2 }
 0x3ad   :  { %v6242_v9 = vsel %vm6178_vm0, %v6129_v38, %v6210_v58  ;;  %v5905_v12 = vadd.f32 %v5904_v45, %v5792_v32  ;;  %v6017_v0 = vpop.f32.mrf.mxu3 }
 0x3ae   :  { %6275 = vst.msk [vmem:[#allocation3 + $0xc0] sm:$0xff] %vm6250_vm7, %v6242_v9  ;;  %v5794_v26 = vpop.f32.mrf.mxu1 }
 0x3af   :  { %v6018_v33 = vadd.f32 %v6017_v0, %v5905_v12 }
 0x3b0   :  { %v6133_v13 = vpop.f32.mrf.mxu0 }
 0x3b1   :  { %v6131_v57 = vadd.f32 %v6130_v42, %v6018_v33 }
 0x3b3   :  { %vm6179_vm1 = vcmp.ge.f32.partialorder %v6131_v57, 0.0  ;;  %v6211_v11 = vmul.f32 0.2, %v6131_v57 }
 0x3b4   :  { %v5907_v5 = vpop.f32.mrf.mxu2 }
 0x3b5   :  { %v6243_v20 = vsel %vm6179_vm1, %v6131_v57, %v6211_v11  ;;  %v6020_v17 = vpop.f32.mrf.mxu3 }
 0x3b6   :  { %6276 = vst.msk [vmem:[#allocation3 + $0xc8] sm:$0xff] %vm6250_vm7, %v6243_v20  ;;  %v5795_v25 = vpop.f32.mrf.mxu1 }
 0x3b7   :  { %v5796_v29 = vadd.f32 %v5795_v25, %v10073_v41 }
 0x3b8   :  { %v6134_v15 = vpop.f32.mrf.mxu0 }
 0x3bc   :  { %v5908_v63 = vpop.f32.mrf.mxu2 }
 0x3bd   :  { %v5909_v61 = vadd.f32 %v5908_v63, %v5796_v29  ;;  %v6021_v19 = vpop.f32.mrf.mxu3 }
 0x3be   :  { %v5798_v22 = vpop.f32.mrf.mxu1 }
 0x3bf   :  { %v6022_v62 = vadd.f32 %v6021_v19, %v5909_v61  ;;  %v5799_v31 = vadd.f32 %v5798_v22, %v10118_v53 }
 0x3c0   :  { %v6137_v44 = vpop.f32.mrf.mxu0 }
 0x3c1   :  { %v6135_v14 = vadd.f32 %v6134_v15, %v6022_v62 }
 0x3c3   :  { %vm6180_vm3 = vcmp.ge.f32.partialorder %v6135_v14, 0.0  ;;  %v6212_v34 = vmul.f32 0.2, %v6135_v14 }
 0x3c4   :  { %v5911_v1 = vpop.f32.mrf.mxu2 }
 0x3c5   :  { %v6244_v6 = vsel %vm6180_vm3, %v6135_v14, %v6212_v34  ;;  %v5912_v28 = vadd.f32 %v5911_v1, %v5799_v31  ;;  %v6024_v46 = vpop.f32.mrf.mxu3 }
 0x3c6   :  { %6277 = vst.msk [vmem:[#allocation3 + $0xd0] sm:$0xff] %vm6250_vm7, %v6244_v6  ;;  %v5800_v23 = vpop.f32.mrf.mxu1 }
 0x3c7   :  { %v6025_v27 = vadd.f32 %v6024_v46, %v5912_v28 }
 0x3c8   :  { %v6139_v41 = vpop.f32.mrf.mxu0 }
 0x3c9   :  { %v6138_v36 = vadd.f32 %v6137_v44, %v6025_v27 }
 0x3cb   :  { %vm6181_vm4 = vcmp.ge.f32.partialorder %v6138_v36, 0.0  ;;  %v6213_v56 = vmul.f32 0.2, %v6138_v36 }
 0x3cc   :  { %v5913_v50 = vpop.f32.mrf.mxu2 }
 0x3cd   :  { %v6245_v10 = vsel %vm6181_vm4, %v6138_v36, %v6213_v56  ;;  %v6026_v52 = vpop.f32.mrf.mxu3 }
 0x3ce   :  { %6278 = vst.msk [vmem:[#allocation3 + $0xd8] sm:$0xff] %vm6250_vm7, %v6245_v10  ;;  %v5802_v55 = vpop.f32.mrf.mxu1 }
 0x3cf   :  { %v5803_v53 = vadd.f32 %v5802_v55, %v10182_v48 }
 0x3d0   :  { %v6141_v37 = vpop.f32.mrf.mxu0 }
 0x3d4   :  { %v5915_v35 = vpop.f32.mrf.mxu2 }
 0x3d5   :  { %v5916_v49 = vadd.f32 %v5915_v35, %v5803_v53  ;;  %v6028_v47 = vpop.f32.mrf.mxu3 }
 0x3d6   :  { %v5804_v4 = vpop.f32.mrf.mxu1 }
 0x3d7   :  { %v6029_v24 = vadd.f32 %v6028_v47, %v5916_v49  ;;  %v5805_v8 = vadd.f32 %v5804_v4, %v10197_v2 }
 0x3d8   :  { %v6143_v3 = vpop.f32.mrf.mxu0 }
 0x3d9   :  { %v6142_v40 = vadd.f32 %v6141_v37, %v6029_v24 }
 0x3db   :  { %vm6182_vm6 = vcmp.ge.f32.partialorder %v6142_v40, 0.0  ;;  %v6214_v39 = vmul.f32 0.2, %v6142_v40 }
 0x3dc   :  { %v5917_v21 = vpop.f32.mrf.mxu2 }
 0x3dd   :  { %v6246_v51 = vsel %vm6182_vm6, %v6142_v40, %v6214_v39  ;;  %v5918_v16 = vadd.f32 %v5917_v21, %v5805_v8  ;;  %v6030_v7 = vpop.f32.mrf.mxu3 }
 0x3de   :  { %6279 = vst.msk [vmem:[#allocation3 + $0xe0] sm:$0xff] %vm6250_vm7, %v6246_v51  ;;  %v5807_v43 = vpop.f32.mrf.mxu1 }
 0x3df   :  { %v6031_v60 = vadd.f32 %v6030_v7, %v5918_v16 }
 0x3e0   :  { %v6146_v48 = vpop.f32.mrf.mxu0 }
 0x3e1   :  { %v6144_v59 = vadd.f32 %v6143_v3, %v6031_v60 }
 0x3e3   :  { %vm6183_vm8 = vcmp.ge.f32.partialorder %v6144_v59, 0.0  ;;  %v6215_v30 = vmul.f32 0.2, %v6144_v59 }
 0x3e4   :  { %v5920_v42 = vpop.f32.mrf.mxu2 }
 0x3e5   :  { %v6247_v38 = vsel %vm6183_vm8, %v6144_v59, %v6215_v30  ;;  %v6033_v58 = vpop.f32.mrf.mxu3 }
 0x3e6   :  { %6280 = vst.msk [vmem:[#allocation3 + $0xe8] sm:$0xff] %vm6250_vm7, %v6247_v38  ;;  %v5808_v32 = vpop.f32.mrf.mxu1 }
 0x3e7   :  { %v5809_v2 = vadd.f32 %v5808_v32, %v10259_v18 }
 0x3e8   :  { %v6147_v45 = vpop.f32.mrf.mxu0 }
 0x3ec   :  { %v5921_v9 = vpop.f32.mrf.mxu2 }
 0x3ed   :  { %v5922_v12 = vadd.f32 %v5921_v9, %v5809_v2  ;;  %v6034_v0 = vpop.f32.mrf.mxu3 }
 0x3ee   :  { %v5811_v26 = vpop.f32.mrf.mxu1 }
 0x3ef   :  { %v6035_v33 = vadd.f32 %v6034_v0, %v5922_v12  ;;  %v5812_v5 = vadd.f32 %v5811_v26, %v10304_v54 }
 0x3f0   :  { %v6150_v13 = vpop.f32.mrf.mxu0 }
 0x3f1   :  { %v6148_v57 = vadd.f32 %v6147_v45, %v6035_v33 }
 0x3f3   :  { %vm6184_vm9 = vcmp.ge.f32.partialorder %v6148_v57, 0.0  ;;  %v6216_v11 = vmul.f32 0.2, %v6148_v57 }
 0x3f4   :  { %v5924_v20 = vpop.f32.mrf.mxu2 }
 0x3f5   :  { %v6248_v17 = vsel %vm6184_vm9, %v6148_v57, %v6216_v11  ;;  %v5925_v25 = vadd.f32 %v5924_v20, %v5812_v5  ;;  %v6037_v15 = vpop.f32.mrf.mxu3 }
 0x3f6   :  { %6281 = vst.msk [vmem:[#allocation3 + $0xf0] sm:$0xff] %vm6250_vm7, %v6248_v17  ;;  %v5813_v29 = vpop.f32.mrf.mxu1 }
 0x3f7   :  { %v6038_v63 = vadd.f32 %v6037_v15, %v5925_v25 }
 0x3f8   :  { %v6152_v18 = vpop.f32.mrf.mxu0 }
 0x3f9   :  { %v6151_v61 = vadd.f32 %v6150_v13, %v6038_v63 }
 0x3fb   :  { %vm6185_vm10 = vcmp.ge.f32.partialorder %v6151_v61, 0.0  ;;  %v6217_v19 = vmul.f32 0.2, %v6151_v61 }
 0x3fc   :  { %v5926_v54 = vpop.f32.mrf.mxu2 }
 0x3fd   :  { %v6249_v22 = vsel %vm6185_vm10, %v6151_v61, %v6217_v19  ;;  %v6039_v62 = vpop.f32.mrf.mxu3 }
 0x3fe   :  { %6282 = vst.msk [vmem:[#allocation3 + $0xf8] sm:$0xff] %vm6250_vm7, %v6249_v22 }
 0x3ff   :  { %6295 = dma.vmem_to_hbm [thread:$0]  %s6288_s16, 4096, %s6290_s19, [#allocation4], %s7802_s20, %s7802_s20, %s7803_s21  }
 0x400   :  { %7799 = dma.done.wait [#allocation4], 4096  }
 0x401   :  { %7800 = vsyncadd [#allocation4], 4294963200 }
 0x402   :  { %6300 = vsyncpa [#allocation4], 1 }

</bundles_post_ra>
